<compile_context>
chip_gen: v6e
topology: v6e:2x2x1
jax: 0.10.0
libtpu: 0.0.40
codegen_flags: <defaults>
</compile_context>

<pallas_src>
import jax
import jax.numpy as jnp
from jax.experimental import pallas as pl
from jax.experimental.pallas import tpu as pltpu

EPS = 1e-5
NUM_CLASSES = 10
ACT_DTYPE = jnp.bfloat16          # MXU-native dtype for activations/weights (f32 accumulate)
VMEM_LIMIT = 32 * 1024 * 1024

# Scaled-down config (structure identical to the reference MLFN:
# 16 MLFNBlocks, 4 stages, fsm branch, group gating, fc_x / fc_s heads).
CHANNELS = [8, 16, 32, 64, 128]   # reference: [64, 256, 512, 1024, 2048]
GROUPS = 4                        # reference: 32
EMBED = 32                        # reference: 1024

# (in_channels, out_channels, stride, fsm_channels) for the 16 blocks.
BLOCK_CFG = [
    (CHANNELS[0], CHANNELS[1], 1, (16, 8)),
    (CHANNELS[1], CHANNELS[1], 1, (16, 8)),
    (CHANNELS[1], CHANNELS[1], 1, (16, 8)),
    (CHANNELS[1], CHANNELS[2], 2, (32, 16)),
    (CHANNELS[2], CHANNELS[2], 1, (32, 16)),
    (CHANNELS[2], CHANNELS[2], 1, (32, 16)),
    (CHANNELS[2], CHANNELS[2], 1, (32, 16)),
    (CHANNELS[2], CHANNELS[3], 2, (64, 16)),
    (CHANNELS[3], CHANNELS[3], 1, (64, 16)),
    (CHANNELS[3], CHANNELS[3], 1, (64, 16)),
    (CHANNELS[3], CHANNELS[3], 1, (64, 16)),
    (CHANNELS[3], CHANNELS[3], 1, (64, 16)),
    (CHANNELS[3], CHANNELS[3], 1, (64, 16)),
    (CHANNELS[3], CHANNELS[4], 2, (64, 16)),
    (CHANNELS[4], CHANNELS[4], 1, (64, 16)),
    (CHANNELS[4], CHANNELS[4], 1, (64, 16)),
]


def _cparams(ndims):
    return pltpu.CompilerParams(dimension_semantics=("parallel",) * ndims,
                                vmem_limit_bytes=VMEM_LIMIT)


def _round_up(x, m):
    return -(-x // m) * m


def _row2(v):
    return v.reshape(1, -1).astype(jnp.float32)


def fold_bn_into_w(w, bn, conv_bias=None, eps=EPS):
    """Fold eval-mode BatchNorm (+ optional conv bias) into the weight columns and a
    per-channel f32 bias.  Kernel epilogues become a single `+ bias`."""
    s = bn["gamma"] / jnp.sqrt(bn["var"] + eps)          # (C,)
    b = bn["beta"] - bn["mean"] * s
    if conv_bias is not None:
        b = b + conv_bias * s
    return w * s[None, :], b


# ------------------------- Pallas kernels -------------------------

def _mm_bias_relu_kernel(x_ref, w_ref, b_ref, o_ref):
    # stem: relu((x @ w_bnfolded) + b), bf16 in / f32 accumulate / bf16 out.
    y = jnp.dot(x_ref[...], w_ref[...], preferred_element_type=jnp.float32)
    o_ref[...] = jnp.maximum(y + b_ref[...], 0.0).astype(o_ref.dtype)


def _fsm_conv1_kernel(x_ref, w1_ref, b1_ref,
                      wf1_ref, bf1_ref, wf2_ref, bf2_ref, wf3_ref, bf3_ref,
                      y_ref, s_ref):
    # Per-sample: FSM branch (global-avg-pool + 1x1conv/BN/ReLU x2 + 1x1conv/BN/Sigmoid)
    # AND fm_conv1 + BN1 + ReLU, fused into one kernel over the same x tile.
    x = x_ref[...]
    pooled = jnp.mean(x.astype(jnp.float32), axis=0, keepdims=True)          # (1, cin)
    h = jnp.dot(pooled, wf1_ref[...], preferred_element_type=jnp.float32)
    h = jnp.maximum(h + bf1_ref[...], 0.0)
    h = jnp.dot(h, wf2_ref[...], preferred_element_type=jnp.float32)
    h = jnp.maximum(h + bf2_ref[...], 0.0)
    g = jnp.dot(h, wf3_ref[...], preferred_element_type=jnp.float32)
    s_ref[...] = jax.nn.sigmoid(g + bf3_ref[...])
    y = jnp.dot(x, w1_ref[...], preferred_element_type=jnp.float32)
    y_ref[...] = jnp.maximum(y + b1_ref[...], 0.0).astype(y_ref.dtype)


def _block_tail_kernel(p_ref, w2_ref, b2_ref, g_ref, w3_ref, b3_ref, r_ref, o_ref):
    # fm_conv2(grouped, block-diag matmul)+BN2+ReLU, FSM gate, fm_conv3+BN3+ReLU,
    # identity residual add, final ReLU.  The `mid`-wide intermediate stays in VMEM.
    y = jnp.dot(p_ref[...], w2_ref[...], preferred_element_type=jnp.float32)
    y = jnp.maximum(y + b2_ref[...], 0.0) * g_ref[...]
    y = jnp.dot(y.astype(w3_ref.dtype), w3_ref[...], preferred_element_type=jnp.float32)
    y = jnp.maximum(y + b3_ref[...], 0.0)
    o_ref[...] = jnp.maximum(r_ref[...].astype(jnp.float32) + y, 0.0).astype(o_ref.dtype)


def _block_tail_down_kernel(p_ref, w2_ref, b2_ref, g_ref, w3_ref, b3_ref,
                            r_ref, wd_ref, bd_ref, o_ref):
    # Same as above, but the residual is projected by the 1x1 downsample conv + BN
    # (third MXU dot) inside the same kernel.
    y = jnp.dot(p_ref[...], w2_ref[...], preferred_element_type=jnp.float32)
    y = jnp.maximum(y + b2_ref[...], 0.0) * g_ref[...]
    y = jnp.dot(y.astype(w3_ref.dtype), w3_ref[...], preferred_element_type=jnp.float32)
    y = jnp.maximum(y + b3_ref[...], 0.0)
    r = jnp.dot(r_ref[...], wd_ref[...], preferred_element_type=jnp.float32) + bd_ref[...]
    o_ref[...] = jnp.maximum(r + y, 0.0).astype(o_ref.dtype)


def _head_kernel(y_ref, s_ref, wx_ref, bx_ref, ws_ref, bs_ref, o_ref):
    # Final head per sample: global-avg-pool + fc_x (1x1conv+BN+ReLU) + fc_s + 0.5*(vx+vs).
    pooled = jnp.mean(y_ref[...].astype(jnp.float32), axis=0, keepdims=True)
    vx = jnp.dot(pooled, wx_ref[...], preferred_element_type=jnp.float32)
    vx = jnp.maximum(vx + bx_ref[...], 0.0)
    vs = jnp.dot(s_ref[...], ws_ref[...], preferred_element_type=jnp.float32)
    vs = jnp.maximum(vs + bs_ref[...], 0.0)
    o_ref[...] = 0.5 * (vx + vs)


# ------------------------- wrappers -------------------------

def stem_conv(patches2d, w, b, *, tm_max=128):
    """Stem 7x7 conv as (N*Ho*Wo, 147) @ (147, C) + bias + relu.  Batch folded into rows;
    TM chosen so the grid has several steps (both v7x TCs busy, DMA/compute overlap)."""
    M, K = patches2d.shape
    C = w.shape[1]
    TM = min(tm_max, _round_up(M, 16))
    Mp = _round_up(M, TM)
    if Mp != M:
        patches2d = jnp.pad(patches2d, ((0, Mp - M), (0, 0)))
    out = pl.pallas_call(
        _mm_bias_relu_kernel,
        out_shape=jax.ShapeDtypeStruct((Mp, C), ACT_DTYPE),
        grid=(Mp // TM,),
        in_specs=[pl.BlockSpec((TM, K), lambda i: (i, 0)),
                  pl.BlockSpec((K, C), lambda i: (0, 0)),
                  pl.BlockSpec((1, C), lambda i: (0, 0))],
        out_specs=pl.BlockSpec((TM, C), lambda i: (i, 0)),
        compiler_params=_cparams(1),
    )(patches2d.astype(ACT_DTYPE), w.astype(ACT_DTYPE), _row2(b))
    return out[:M] if Mp != M else out


def fsm_conv1(x, p):
    """Fused FSM branch + fm_conv1/BN1/ReLU: one pallas_call per block, two outputs."""
    N, H, W, cin = x.shape
    HW = H * W
    x3 = x.reshape(N, HW, cin).astype(ACT_DTYPE)
    mid = p["fm_conv1_w"].shape[1]
    w1, b1 = fold_bn_into_w(p["fm_conv1_w"], p["fm_bn1"])
    wf1, bf1 = fold_bn_into_w(p["fsm_conv1_w"], p["fsm_bn1"], p["fsm_conv1_b"])
    wf2, bf2 = fold_bn_into_w(p["fsm_conv2_w"], p["fsm_bn2"], p["fsm_conv2_b"])
    wf3, bf3 = fold_bn_into_w(p["fsm_conv3_w"], p["fsm_bn3"], p["fsm_conv3_b"])
    f0, f1 = wf1.shape[1], wf2.shape[1]
    y, s = pl.pallas_call(
        _fsm_conv1_kernel,
        out_shape=(jax.ShapeDtypeStruct((N, HW, mid), ACT_DTYPE),
                   jax.ShapeDtypeStruct((N, 1, GROUPS), jnp.float32)),
        grid=(N,),
        in_specs=[
            pl.BlockSpec((None, HW, cin), lambda b: (b, 0, 0)),
            pl.BlockSpec((cin, mid), lambda b: (0, 0)),
            pl.BlockSpec((1, mid), lambda b: (0, 0)),
            pl.BlockSpec((cin, f0), lambda b: (0, 0)),
            pl.BlockSpec((1, f0), lambda b: (0, 0)),
            pl.BlockSpec((f0, f1), lambda b: (0, 0)),
            pl.BlockSpec((1, f1), lambda b: (0, 0)),
            pl.BlockSpec((f1, GROUPS), lambda b: (0, 0)),
            pl.BlockSpec((1, GROUPS), lambda b: (0, 0)),
        ],
        out_specs=[pl.BlockSpec((None, HW, mid), lambda b: (b, 0, 0)),
                   pl.BlockSpec((None, 1, GROUPS), lambda b: (b, 0, 0))],
        compiler_params=_cparams(1),
    )(x3,
      w1.astype(ACT_DTYPE), _row2(b1),
      wf1.astype(jnp.float32), _row2(bf1),
      wf2.astype(jnp.float32), _row2(bf2),
      wf3.astype(jnp.float32), _row2(bf3))
    return y.reshape(N, H, W, mid), s.reshape(N, GROUPS)


def block_tail(patches, gate, w2, b2, w3, b3, residual, down=None, *, tm_max=512):
    """Fused block tail: conv2+BN2+ReLU, gate, conv3+BN3+ReLU, residual (+downsample), ReLU."""
    N, M, K = patches.shape
    mid = w2.shape[1]
    cout = w3.shape[1]
    cr = residual.shape[-1]
    if M <= tm_max:
        TM, Mp, padm = M, M, 0                 # full-sample tile (block == full dim, no pad)
    else:
        TM = _round_up(min(tm_max, M), 16)     # bf16-native 16-row sublane tiles
        Mp = _round_up(M, TM)
        padm = Mp - M

    def pad_rows(a):
        return jnp.pad(a, ((0, 0), (0, padm), (0, 0))) if padm else a

    args = [pad_rows(patches).astype(ACT_DTYPE),
            w2.astype(ACT_DTYPE), _row2(b2),
            gate.reshape(N, 1, mid).astype(jnp.float32),
            w3.astype(ACT_DTYPE), _row2(b3),
            pad_rows(residual).astype(ACT_DTYPE)]
    in_specs = [
        pl.BlockSpec((None, TM, K), lambda b, i: (b, i, 0)),
        pl.BlockSpec((K, mid), lambda b, i: (0, 0)),
        pl.BlockSpec((1, mid), lambda b, i: (0, 0)),
        pl.BlockSpec((None, 1, mid), lambda b, i: (b, 0, 0)),
        pl.BlockSpec((mid, cout), lambda b, i: (0, 0)),
        pl.BlockSpec((1, cout), lambda b, i: (0, 0)),
        pl.BlockSpec((None, TM, cr), lambda b, i: (b, i, 0)),
    ]
    if down is None:
        kernel = _block_tail_kernel
    else:
        wd, bd = down
        args += [wd.astype(ACT_DTYPE), _row2(bd)]
        in_specs += [pl.BlockSpec((cr, cout), lambda b, i: (0, 0)),
                     pl.BlockSpec((1, cout), lambda b, i: (0, 0))]
        kernel = _block_tail_down_kernel

    out = pl.pallas_call(
        kernel,
        out_shape=jax.ShapeDtypeStruct((N, Mp, cout), ACT_DTYPE),
        grid=(N, Mp // TM),
        in_specs=in_specs,
        out_specs=pl.BlockSpec((None, TM, cout), lambda b, i: (b, i, 0)),
        compiler_params=_cparams(2),
    )(*args)
    return out[:, :M] if padm else out


def head(y, s_hat, params):
    """Fused final head: global pool + fc_x + fc_s + 0.5*(vx+vs), one kernel."""
    N, H, W, C4 = y.shape
    y3 = y.reshape(N, H * W, C4)
    ns = s_hat.shape[1]
    s3d = s_hat.reshape(N, 1, ns).astype(jnp.float32)
    wx, bx = fold_bn_into_w(params["fc_x_w"], params["fc_x_bn"])
    ws, bs = fold_bn_into_w(params["fc_s_w"], params["fc_s_bn"])
    out = pl.pallas_call(
        _head_kernel,
        out_shape=jax.ShapeDtypeStruct((N, 1, EMBED), jnp.float32),
        grid=(N,),
        in_specs=[
            pl.BlockSpec((None, H * W, C4), lambda b: (b, 0, 0)),
            pl.BlockSpec((None, 1, ns), lambda b: (b, 0, 0)),
            pl.BlockSpec((C4, EMBED), lambda b: (0, 0)),
            pl.BlockSpec((1, EMBED), lambda b: (0, 0)),
            pl.BlockSpec((ns, EMBED), lambda b: (0, 0)),
            pl.BlockSpec((1, EMBED), lambda b: (0, 0)),
        ],
        out_specs=pl.BlockSpec((None, 1, EMBED), lambda b: (b, 0, 0)),
        compiler_params=_cparams(1),
    )(y3, s3d,
      wx.astype(jnp.float32), _row2(bx),
      ws.astype(jnp.float32), _row2(bs))
    return out.reshape(N, EMBED)


def maxpool_3x3_s2_p1(x):
    """MaxPool2d(3, stride=2, padding=1) as a plain-JAX jnp.maximum tree (no 9x HBM copy,
    no pallas_call launch for a tiny op — per performance review)."""
    N, H, W, C = x.shape
    Ho = (H - 1) // 2 + 1
    Wo = (W - 1) // 2 + 1
    xp = jnp.pad(x, ((0, 0), (1, 1), (1, 1), (0, 0)), constant_values=-jnp.inf)
    out = None
    for i in range(3):
        for j in range(3):
            tap = xp[:, i:i + 2 * (Ho - 1) + 1:2, j:j + 2 * (Wo - 1) + 1:2, :]
            out = tap if out is None else jnp.maximum(out, tap)
    return out


def extract_patches(x, kh, kw, stride, pad):
    """im2col glue (plain JAX, bf16): (N,H,W,C) -> (N,Ho,Wo, kh*kw*C), feature order (ky,kx,c)."""
    N, H, W, C = x.shape
    xp = jnp.pad(x, ((0, 0), (pad, pad), (pad, pad), (0, 0)))
    Ho = (H + 2 * pad - kh) // stride + 1
    Wo = (W + 2 * pad - kw) // stride + 1
    cols = []
    for i in range(kh):
        for j in range(kw):
            cols.append(xp[:, i:i + stride * (Ho - 1) + 1:stride,
                           j:j + stride * (Wo - 1) + 1:stride, :])
    return jnp.concatenate(cols, axis=-1)


# ------------------------- model -------------------------

def mlfn_block(x, p, stride):
    N, H, W, cin = x.shape
    residual = x

    # Fused FSM branch + fm_conv1/BN1/ReLU (one kernel).
    y, s = fsm_conv1(x, p)                                             # y:(N,H,W,mid), s:(N,G)
    mid = y.shape[-1]

    # Fused block tail (one kernel): grouped 3x3 conv as a dense block-diagonal matmul
    # (at cg=2..16 the dense form keeps the output lane-dense; at reference widths a
    # per-group grid would save GROUPSx MXU FLOPs), BN2+ReLU, FSM group gating
    # (channel c scaled by s[:, c // (mid//GROUPS)], matching the reference permute),
    # then fm_conv3+BN3+ReLU, residual add (+ fused 1x1 downsample conv/BN), final ReLU.
    patches = extract_patches(y, 3, 3, stride, 1)
    Ho, Wo = patches.shape[1], patches.shape[2]
    w2, b2 = fold_bn_into_w(p["fm_conv2_w"], p["fm_bn2"])
    w3, b3 = fold_bn_into_w(p["fm_conv3_w"], p["fm_bn3"])
    gate = jnp.repeat(s, mid // GROUPS, axis=1)                        # (N, mid)
    cout = w3.shape[1]
    if "down_conv_w" in p:
        r = residual[:, ::stride, ::stride, :].reshape(N, Ho * Wo, cin)
        wd, bd = fold_bn_into_w(p["down_conv_w"], p["down_bn"])
        down = (wd, bd)
    else:
        r = residual.reshape(N, Ho * Wo, cout)
        down = None
    out = block_tail(patches.reshape(N, Ho * Wo, 9 * mid), gate, w2, b2, w3, b3, r, down)
    return out.reshape(N, Ho, Wo, cout), s


def mlfn_forward(params, x_nchw):
    # Eval-mode forward: returns the embedding v (PyTorch: `if not self.training: return v`).
    x = jnp.transpose(x_nchw, (0, 2, 3, 1)).astype(ACT_DTYPE)          # NCHW -> NHWC, bf16
    N = x.shape[0]

    # stem: 7x7 s2 conv (+bias) + BN + ReLU (BN folded into weight), then 3x3 s2 max-pool.
    p = params["stem"]
    patches = extract_patches(x, 7, 7, 2, 3)
    Ho, Wo = patches.shape[1], patches.shape[2]
    w, b = fold_bn_into_w(p["conv1_w"], p["bn1"], p["conv1_b"])
    y = stem_conv(patches.reshape(N * Ho * Wo, -1), w, b)
    y = y.reshape(N, Ho, Wo, CHANNELS[0])
    y = maxpool_3x3_s2_p1(y)

    s_list = []
    for bp, (_, _, stride, _) in zip(params["blocks"], BLOCK_CFG):
        y, s = mlfn_block(y, bp, stride)
        s_list.append(s)
    s_hat = jnp.concatenate(s_list, axis=1)                            # (N, GROUPS*16)

    v = head(y, s_hat, params)
    # TODO(synk): the nn.Linear classifier is only used in training mode; eval returns v.
    return v


# ------------------------- deterministic param init -------------------------

def init_params(key):
    keys = iter(jax.random.split(key, 4096))
    nk = lambda: next(keys)

    def conv(shape, fan_in):
        return jax.random.normal(nk(), shape, jnp.float32) * (2.0 / fan_in) ** 0.5

    def bn(c):
        return dict(
            gamma=jax.random.uniform(nk(), (c,), jnp.float32, 0.5, 1.5),
            beta=0.1 * jax.random.normal(nk(), (c,), jnp.float32),
            mean=0.1 * jax.random.normal(nk(), (c,), jnp.float32),
            var=jax.random.uniform(nk(), (c,), jnp.float32, 0.5, 1.5),
        )

    params = {}
    c0 = CHANNELS[0]
    params["stem"] = dict(
        conv1_w=conv((7 * 7 * 3, c0), 7 * 7 * 3),          # (ky,kx,cin) x cout, matches patch order
        conv1_b=0.1 * jax.random.normal(nk(), (c0,), jnp.float32),
        bn1=bn(c0),
    )

    blocks = []
    for cin, cout, stride, (f0, f1) in BLOCK_CFG:
        mid = cout // 2
        cg = mid // GROUPS
        # grouped 3x3 conv -> block-diagonal flat weight (9*mid, mid); feature order (ky,kx,cin)
        wg = jax.random.normal(nk(), (GROUPS, 3, 3, cg, cg), jnp.float32) * (2.0 / (9 * cg)) ** 0.5
        full = jnp.zeros((3, 3, mid, mid), jnp.float32)
        for g in range(GROUPS):
            full = full.at[:, :, g * cg:(g + 1) * cg, g * cg:(g + 1) * cg].set(wg[g])
        bp = dict(
            fm_conv1_w=conv((cin, mid), cin),
            fm_bn1=bn(mid),
            fm_conv2_w=full.reshape(9 * mid, mid),
            fm_bn2=bn(mid),
            fm_conv3_w=conv((mid, cout), mid),
            fm_bn3=bn(cout),
            fsm_conv1_w=conv((cin, f0), cin),
            fsm_conv1_b=0.1 * jax.random.normal(nk(), (f0,), jnp.float32),
            fsm_bn1=bn(f0),
            fsm_conv2_w=conv((f0, f1), f0),
            fsm_conv2_b=0.1 * jax.random.normal(nk(), (f1,), jnp.float32),
            fsm_bn2=bn(f1),
            fsm_conv3_w=conv((f1, GROUPS), f1),
            fsm_conv3_b=0.1 * jax.random.normal(nk(), (GROUPS,), jnp.float32),
            fsm_bn3=bn(GROUPS),
        )
        if cin != cout or stride > 1:
            bp["down_conv_w"] = conv((cin, cout), cin)
            bp["down_bn"] = bn(cout)
        blocks.append(bp)
    params["blocks"] = blocks

    c4 = CHANNELS[4]
    params["fc_x_w"] = conv((c4, EMBED), c4)
    params["fc_x_bn"] = bn(EMBED)
    params["fc_s_w"] = conv((GROUPS * 16, EMBED), GROUPS * 16)
    params["fc_s_bn"] = bn(EMBED)
    # classifier params exist in the module but are unused in eval mode
    params["classifier_w"] = 0.01 * jax.random.normal(nk(), (EMBED, NUM_CLASSES), jnp.float32)
    params["classifier_b"] = jnp.zeros((NUM_CLASSES,), jnp.float32)
    return params


if __name__ == "__main__":
    key = jax.random.PRNGKey(0)
    pkey, xkey = jax.random.split(key)
    params = init_params(pkey)
    x = jax.random.normal(xkey, (2, 3, 32, 32), jnp.float32)   # NCHW, like the PyTorch module
    fwd = jax.jit(mlfn_forward)
    v = fwd(params, x)
    jax.block_until_ready(v)
    assert v.shape == (2, EMBED) and v.dtype == jnp.float32
    print("KERNEL_OK")
</pallas_src>

<mosaic_0001>
module attributes {stable_mosaic.version = 11 : i64} {
  func.func @_mm_bias_relu_kernel(%arg0: i32, %arg1: memref<128x147xbf16, #tpu.memory_space<vmem>>, %arg2: memref<147x8xbf16, #tpu.memory_space<vmem>>, %arg3: memref<1x8xf32, #tpu.memory_space<vmem>>, %arg4: memref<128x8xbf16, #tpu.memory_space<vmem>>) attributes {dimension_semantics = [#tpu.dimension_semantics<parallel>], iteration_bounds = array<i64: 4>, scalar_prefetch = 0 : i64, scratch_operands = 0 : i64, tpu.core_type = #tpu.core_type<tc>, window_params = [{transform_indices = @transform_0, window_bounds = array<i64: 128, 147>}, {pipeline_mode = #tpu.pipeline_mode<synchronous>, transform_indices = @transform_1, window_bounds = array<i64: 147, 8>}, {pipeline_mode = #tpu.pipeline_mode<synchronous>, transform_indices = @transform_2, window_bounds = array<i64: 1, 8>}, {transform_indices = @transform_3, window_bounds = array<i64: 128, 8>}]} {
    %c0 = arith.constant 0 : index
    %c0_0 = arith.constant 0 : index
    %0 = vector.load %arg1[%c0, %c0_0] : memref<128x147xbf16, #tpu.memory_space<vmem>>, vector<128x147xbf16>
    %c0_1 = arith.constant 0 : index
    %c0_2 = arith.constant 0 : index
    %1 = vector.load %arg2[%c0_1, %c0_2] : memref<147x8xbf16, #tpu.memory_space<vmem>>, vector<147x8xbf16>
    %cst = arith.constant dense<0.000000e+00> : vector<128x8xf32>
    %2 = tpu.matmul %0, %1, %cst {dimension_numbers = #tpu.dot_dimension_numbers<[1], [0], [0], [1], [0, 0, 1, 1], [], []>} : vector<128x147xbf16>, vector<147x8xbf16>, vector<128x8xf32> -> vector<128x8xf32>
    %c0_3 = arith.constant 0 : index
    %c0_4 = arith.constant 0 : index
    %3 = vector.load %arg3[%c0_3, %c0_4] : memref<1x8xf32, #tpu.memory_space<vmem>>, vector<1x8xf32>
    %4 = vector.broadcast %3 : vector<1x8xf32> to vector<128x8xf32>
    %5 = arith.addf %2, %4 : vector<128x8xf32>
    %cst_5 = arith.constant 0.000000e+00 : f32
    %6 = vector.broadcast %cst_5 : f32 to vector<128x8xf32>
    %7 = arith.maximumf %5, %6 : vector<128x8xf32>
    %8 = arith.truncf %7 : vector<128x8xf32> to vector<128x8xbf16>
    %c0_6 = arith.constant 0 : index
    %c0_7 = arith.constant 0 : index
    %9 = vector.load %arg4[%c0_6, %c0_7] : memref<128x8xbf16, #tpu.memory_space<vmem>>, vector<128x8xbf16>
    tpu.vector_store %arg4[%c0_6, %c0_7], %8 {strides = array<i32>} : memref<128x8xbf16, #tpu.memory_space<vmem>>, vector<128x8xbf16>,
    return
  }
  func.func @transform_0(%arg0: i32) -> (i32, i32) {
    %c0_i32 = arith.constant 0 : i32
    %c0_i32_0 = arith.constant 0 : i32
    return %arg0, %c0_i32 : i32, i32
  }
  func.func @transform_1(%arg0: i32) -> (i32, i32) {
    %c0_i32 = arith.constant 0 : i32
    %c0_i32_0 = arith.constant 0 : i32
    %c0_i32_1 = arith.constant 0 : i32
    return %c0_i32, %c0_i32_0 : i32, i32
  }
  func.func @transform_2(%arg0: i32) -> (i32, i32) {
    %c0_i32 = arith.constant 0 : i32
    %c0_i32_0 = arith.constant 0 : i32
    %c0_i32_1 = arith.constant 0 : i32
    return %c0_i32, %c0_i32_0 : i32, i32
  }
  func.func @transform_3(%arg0: i32) -> (i32, i32) {
    %c0_i32 = arith.constant 0 : i32
    %c0_i32_0 = arith.constant 0 : i32
    return %arg0, %c0_i32 : i32, i32
  }
}

module attributes {stable_mosaic.version = 11 : i64} {
  func.func @_fsm_conv1_kernel(%arg0: i32, %arg1: memref<1x64x8xbf16, #tpu.memory_space<vmem>>, %arg2: memref<8x8xbf16, #tpu.memory_space<vmem>>, %arg3: memref<1x8xf32, #tpu.memory_space<vmem>>, %arg4: memref<8x16xf32, #tpu.memory_space<vmem>>, %arg5: memref<1x16xf32, #tpu.memory_space<vmem>>, %arg6: memref<16x8xf32, #tpu.memory_space<vmem>>, %arg7: memref<1x8xf32, #tpu.memory_space<vmem>>, %arg8: memref<8x4xf32, #tpu.memory_space<vmem>>, %arg9: memref<1x4xf32, #tpu.memory_space<vmem>>, %arg10: memref<1x64x8xbf16, #tpu.memory_space<vmem>>, %arg11: memref<1x1x4xf32, #tpu.memory_space<vmem>>) attributes {dimension_semantics = [#tpu.dimension_semantics<parallel>], iteration_bounds = array<i64: 2>, scalar_prefetch = 0 : i64, scratch_operands = 0 : i64, tpu.core_type = #tpu.core_type<tc>, window_params = [{transform_indices = @transform_0, window_bounds = array<i64: 1, 64, 8>}, {pipeline_mode = #tpu.pipeline_mode<synchronous>, transform_indices = @transform_1, window_bounds = array<i64: 8, 8>}, {pipeline_mode = #tpu.pipeline_mode<synchronous>, transform_indices = @transform_2, window_bounds = array<i64: 1, 8>}, {pipeline_mode = #tpu.pipeline_mode<synchronous>, transform_indices = @transform_3, window_bounds = array<i64: 8, 16>}, {pipeline_mode = #tpu.pipeline_mode<synchronous>, transform_indices = @transform_4, window_bounds = array<i64: 1, 16>}, {pipeline_mode = #tpu.pipeline_mode<synchronous>, transform_indices = @transform_5, window_bounds = array<i64: 16, 8>}, {pipeline_mode = #tpu.pipeline_mode<synchronous>, transform_indices = @transform_6, window_bounds = array<i64: 1, 8>}, {pipeline_mode = #tpu.pipeline_mode<synchronous>, transform_indices = @transform_7, window_bounds = array<i64: 8, 4>}, {pipeline_mode = #tpu.pipeline_mode<synchronous>, transform_indices = @transform_8, window_bounds = array<i64: 1, 4>}, {transform_indices = @transform_9, window_bounds = array<i64: 1, 64, 8>}, {transform_indices = @transform_10, window_bounds = array<i64: 1, 1, 4>}]} {
    %c0 = arith.constant 0 : index
    %c0_0 = arith.constant 0 : index
    %c0_1 = arith.constant 0 : index
    %0 = vector.load %arg1[%c0, %c0_0, %c0_1] : memref<1x64x8xbf16, #tpu.memory_space<vmem>>, vector<1x64x8xbf16>
    %1 = vector.shape_cast %0 : vector<1x64x8xbf16> to vector<64x8xbf16>
    %2 = arith.extf %1 : vector<64x8xbf16> to vector<64x8xf32>
    %cst = arith.constant dense<0.000000e+00> : vector<8xf32>
    %3 = vector.multi_reduction <add>, %2, %cst [0] : vector<64x8xf32> to vector<8xf32>
    %4 = vector.shape_cast %3 : vector<8xf32> to vector<1x8xf32>
    %cst_2 = arith.constant 6.400000e+01 : f32
    %5 = vector.broadcast %cst_2 : f32 to vector<1x8xf32>
    %6 = arith.divf %4, %5 : vector<1x8xf32>
    %c0_3 = arith.constant 0 : index
    %c0_4 = arith.constant 0 : index
    %7 = vector.load %arg4[%c0_3, %c0_4] : memref<8x16xf32, #tpu.memory_space<vmem>>, vector<8x16xf32>
    %cst_5 = arith.constant dense<0.000000e+00> : vector<1x16xf32>
    %8 = tpu.matmul %6, %7, %cst_5 {dimension_numbers = #tpu.dot_dimension_numbers<[1], [0], [0], [1], [0, 0, 1, 1], [], []>} : vector<1x8xf32>, vector<8x16xf32>, vector<1x16xf32> -> vector<1x16xf32>
    %c0_6 = arith.constant 0 : index
    %c0_7 = arith.constant 0 : index
    %9 = vector.load %arg5[%c0_6, %c0_7] : memref<1x16xf32, #tpu.memory_space<vmem>>, vector<1x16xf32>
    %10 = arith.addf %8, %9 : vector<1x16xf32>
    %cst_8 = arith.constant 0.000000e+00 : f32
    %11 = vector.broadcast %cst_8 : f32 to vector<1x16xf32>
    %12 = arith.maximumf %10, %11 : vector<1x16xf32>
    %c0_9 = arith.constant 0 : index
    %c0_10 = arith.constant 0 : index
    %13 = vector.load %arg6[%c0_9, %c0_10] : memref<16x8xf32, #tpu.memory_space<vmem>>, vector<16x8xf32>
    %cst_11 = arith.constant dense<0.000000e+00> : vector<1x8xf32>
    %14 = tpu.matmul %12, %13, %cst_11 {dimension_numbers = #tpu.dot_dimension_numbers<[1], [0], [0], [1], [0, 0, 1, 1], [], []>} : vector<1x16xf32>, vector<16x8xf32>, vector<1x8xf32> -> vector<1x8xf32>
    %c0_12 = arith.constant 0 : index
    %c0_13 = arith.constant 0 : index
    %15 = vector.load %arg7[%c0_12, %c0_13] : memref<1x8xf32, #tpu.memory_space<vmem>>, vector<1x8xf32>
    %16 = arith.addf %14, %15 : vector<1x8xf32>
    %cst_14 = arith.constant 0.000000e+00 : f32
    %17 = vector.broadcast %cst_14 : f32 to vector<1x8xf32>
    %18 = arith.maximumf %16, %17 : vector<1x8xf32>
    %c0_15 = arith.constant 0 : index
    %c0_16 = arith.constant 0 : index
    %19 = vector.load %arg8[%c0_15, %c0_16] : memref<8x4xf32, #tpu.memory_space<vmem>>, vector<8x4xf32>
    %cst_17 = arith.constant dense<0.000000e+00> : vector<1x4xf32>
    %20 = tpu.matmul %18, %19, %cst_17 {dimension_numbers = #tpu.dot_dimension_numbers<[1], [0], [0], [1], [0, 0, 1, 1], [], []>} : vector<1x8xf32>, vector<8x4xf32>, vector<1x4xf32> -> vector<1x4xf32>
    %c0_18 = arith.constant 0 : index
    %c0_19 = arith.constant 0 : index
    %21 = vector.load %arg9[%c0_18, %c0_19] : memref<1x4xf32, #tpu.memory_space<vmem>>, vector<1x4xf32>
    %22 = arith.addf %20, %21 : vector<1x4xf32>
    %23 = arith.negf %22 : vector<1x4xf32>
    %24 = math.exp %23 : vector<1x4xf32>
    %cst_20 = arith.constant 1.000000e+00 : f32
    %25 = vector.broadcast %cst_20 : f32 to vector<1x4xf32>
    %26 = arith.addf %25, %24 : vector<1x4xf32>
    %27 = arith.divf %25, %26 : vector<1x4xf32>
    %c0_21 = arith.constant 0 : index
    %c0_22 = arith.constant 0 : index
    %c0_23 = arith.constant 0 : index
    %28 = vector.load %arg11[%c0_21, %c0_22, %c0_23] : memref<1x1x4xf32, #tpu.memory_space<vmem>>, vector<1x1x4xf32>
    %29 = vector.shape_cast %28 : vector<1x1x4xf32> to vector<1x4xf32>
    %30 = vector.shape_cast %27 : vector<1x4xf32> to vector<1x1x4xf32>
    tpu.vector_store %arg11[%c0_21, %c0_22, %c0_23], %30 {strides = array<i32>} : memref<1x1x4xf32, #tpu.memory_space<vmem>>, vector<1x1x4xf32>,
    %c0_24 = arith.constant 0 : index
    %c0_25 = arith.constant 0 : index
    %31 = vector.load %arg2[%c0_24, %c0_25] : memref<8x8xbf16, #tpu.memory_space<vmem>>, vector<8x8xbf16>
    %cst_26 = arith.constant dense<0.000000e+00> : vector<64x8xf32>
    %32 = tpu.matmul %1, %31, %cst_26 {dimension_numbers = #tpu.dot_dimension_numbers<[1], [0], [0], [1], [0, 0, 1, 1], [], []>} : vector<64x8xbf16>, vector<8x8xbf16>, vector<64x8xf32> -> vector<64x8xf32>
    %c0_27 = arith.constant 0 : index
    %c0_28 = arith.constant 0 : index
    %33 = vector.load %arg3[%c0_27, %c0_28] : memref<1x8xf32, #tpu.memory_space<vmem>>, vector<1x8xf32>
    %34 = vector.broadcast %33 : vector<1x8xf32> to vector<64x8xf32>
    %35 = arith.addf %32, %34 : vector<64x8xf32>
    %cst_29 = arith.constant 0.000000e+00 : f32
    %36 = vector.broadcast %cst_29 : f32 to vector<64x8xf32>
    %37 = arith.maximumf %35, %36 : vector<64x8xf32>
    %38 = arith.truncf %37 : vector<64x8xf32> to vector<64x8xbf16>
    %c0_30 = arith.constant 0 : index
    %c0_31 = arith.constant 0 : index
    %c0_32 = arith.constant 0 : index
    %39 = vector.load %arg10[%c0_30, %c0_31, %c0_32] : memref<1x64x8xbf16, #tpu.memory_space<vmem>>, vector<1x64x8xbf16>
    %40 = vector.shape_cast %39 : vector<1x64x8xbf16> to vector<64x8xbf16>
    %41 = vector.shape_cast %38 : vector<64x8xbf16> to vector<1x64x8xbf16>
    tpu.vector_store %arg10[%c0_30, %c0_31, %c0_32], %41 {strides = array<i32>} : memref<1x64x8xbf16, #tpu.memory_space<vmem>>, vector<1x64x8xbf16>,
    return
  }
  func.func @transform_0(%arg0: i32) -> (i32, i32, i32) {
    %c0_i32 = arith.constant 0 : i32
    %c0_i32_0 = arith.constant 0 : i32
    %c0_i32_1 = arith.constant 0 : i32
    return %arg0, %c0_i32, %c0_i32_0 : i32, i32, i32
  }
  func.func @transform_1(%arg0: i32) -> (i32, i32) {
    %c0_i32 = arith.constant 0 : i32
    %c0_i32_0 = arith.constant 0 : i32
    %c0_i32_1 = arith.constant 0 : i32
    return %c0_i32, %c0_i32_0 : i32, i32
  }
  func.func @transform_2(%arg0: i32) -> (i32, i32) {
    %c0_i32 = arith.constant 0 : i32
    %c0_i32_0 = arith.constant 0 : i32
    %c0_i32_1 = arith.constant 0 : i32
    return %c0_i32, %c0_i32_0 : i32, i32
  }
  func.func @transform_3(%arg0: i32) -> (i32, i32) {
    %c0_i32 = arith.constant 0 : i32
    %c0_i32_0 = arith.constant 0 : i32
    %c0_i32_1 = arith.constant 0 : i32
    return %c0_i32, %c0_i32_0 : i32, i32
  }
  func.func @transform_4(%arg0: i32) -> (i32, i32) {
    %c0_i32 = arith.constant 0 : i32
    %c0_i32_0 = arith.constant 0 : i32
    %c0_i32_1 = arith.constant 0 : i32
    return %c0_i32, %c0_i32_0 : i32, i32
  }
  func.func @transform_5(%arg0: i32) -> (i32, i32) {
    %c0_i32 = arith.constant 0 : i32
    %c0_i32_0 = arith.constant 0 : i32
    %c0_i32_1 = arith.constant 0 : i32
    return %c0_i32, %c0_i32_0 : i32, i32
  }
  func.func @transform_6(%arg0: i32) -> (i32, i32) {
    %c0_i32 = arith.constant 0 : i32
    %c0_i32_0 = arith.constant 0 : i32
    %c0_i32_1 = arith.constant 0 : i32
    return %c0_i32, %c0_i32_0 : i32, i32
  }
  func.func @transform_7(%arg0: i32) -> (i32, i32) {
    %c0_i32 = arith.constant 0 : i32
    %c0_i32_0 = arith.constant 0 : i32
    %c0_i32_1 = arith.constant 0 : i32
    return %c0_i32, %c0_i32_0 : i32, i32
  }
  func.func @transform_8(%arg0: i32) -> (i32, i32) {
    %c0_i32 = arith.constant 0 : i32
    %c0_i32_0 = arith.constant 0 : i32
    %c0_i32_1 = arith.constant 0 : i32
    return %c0_i32, %c0_i32_0 : i32, i32
  }
  func.func @transform_9(%arg0: i32) -> (i32, i32, i32) {
    %c0_i32 = arith.constant 0 : i32
    %c0_i32_0 = arith.constant 0 : i32
    %c0_i32_1 = arith.constant 0 : i32
    return %arg0, %c0_i32, %c0_i32_0 : i32, i32, i32
  }
  func.func @transform_10(%arg0: i32) -> (i32, i32, i32) {
    %c0_i32 = arith.constant 0 : i32
    %c0_i32_0 = arith.constant 0 : i32
    %c0_i32_1 = arith.constant 0 : i32
    return %arg0, %c0_i32, %c0_i32_0 : i32, i32, i32
  }
}

module attributes {stable_mosaic.version = 11 : i64} {
  func.func @_block_tail_down_kernel(%arg0: i32, %arg1: i32, %arg2: memref<1x64x72xbf16, #tpu.memory_space<vmem>>, %arg3: memref<72x8xbf16, #tpu.memory_space<vmem>>, %arg4: memref<1x8xf32, #tpu.memory_space<vmem>>, %arg5: memref<1x1x8xf32, #tpu.memory_space<vmem>>, %arg6: memref<8x16xbf16, #tpu.memory_space<vmem>>, %arg7: memref<1x16xf32, #tpu.memory_space<vmem>>, %arg8: memref<1x64x8xbf16, #tpu.memory_space<vmem>>, %arg9: memref<8x16xbf16, #tpu.memory_space<vmem>>, %arg10: memref<1x16xf32, #tpu.memory_space<vmem>>, %arg11: memref<1x64x16xbf16, #tpu.memory_space<vmem>>) attributes {dimension_semantics = [#tpu.dimension_semantics<parallel>, #tpu.dimension_semantics<parallel>], iteration_bounds = array<i64: 2, 1>, scalar_prefetch = 0 : i64, scratch_operands = 0 : i64, tpu.core_type = #tpu.core_type<tc>, window_params = [{transform_indices = @transform_0, window_bounds = array<i64: 1, 64, 72>}, {pipeline_mode = #tpu.pipeline_mode<synchronous>, transform_indices = @transform_1, window_bounds = array<i64: 72, 8>}, {pipeline_mode = #tpu.pipeline_mode<synchronous>, transform_indices = @transform_2, window_bounds = array<i64: 1, 8>}, {transform_indices = @transform_3, window_bounds = array<i64: 1, 1, 8>}, {pipeline_mode = #tpu.pipeline_mode<synchronous>, transform_indices = @transform_4, window_bounds = array<i64: 8, 16>}, {pipeline_mode = #tpu.pipeline_mode<synchronous>, transform_indices = @transform_5, window_bounds = array<i64: 1, 16>}, {transform_indices = @transform_6, window_bounds = array<i64: 1, 64, 8>}, {pipeline_mode = #tpu.pipeline_mode<synchronous>, transform_indices = @transform_7, window_bounds = array<i64: 8, 16>}, {pipeline_mode = #tpu.pipeline_mode<synchronous>, transform_indices = @transform_8, window_bounds = array<i64: 1, 16>}, {transform_indices = @transform_9, window_bounds = array<i64: 1, 64, 16>}]} {
    %c0 = arith.constant 0 : index
    %c0_0 = arith.constant 0 : index
    %c0_1 = arith.constant 0 : index
    %0 = vector.load %arg2[%c0, %c0_0, %c0_1] : memref<1x64x72xbf16, #tpu.memory_space<vmem>>, vector<1x64x72xbf16>
    %1 = vector.shape_cast %0 : vector<1x64x72xbf16> to vector<64x72xbf16>
    %c0_2 = arith.constant 0 : index
    %c0_3 = arith.constant 0 : index
    %2 = vector.load %arg3[%c0_2, %c0_3] : memref<72x8xbf16, #tpu.memory_space<vmem>>, vector<72x8xbf16>
    %cst = arith.constant dense<0.000000e+00> : vector<64x8xf32>
    %3 = tpu.matmul %1, %2, %cst {dimension_numbers = #tpu.dot_dimension_numbers<[1], [0], [0], [1], [0, 0, 1, 1], [], []>} : vector<64x72xbf16>, vector<72x8xbf16>, vector<64x8xf32> -> vector<64x8xf32>
    %c0_4 = arith.constant 0 : index
    %c0_5 = arith.constant 0 : index
    %4 = vector.load %arg4[%c0_4, %c0_5] : memref<1x8xf32, #tpu.memory_space<vmem>>, vector<1x8xf32>
    %5 = vector.broadcast %4 : vector<1x8xf32> to vector<64x8xf32>
    %6 = arith.addf %3, %5 : vector<64x8xf32>
    %cst_6 = arith.constant 0.000000e+00 : f32
    %7 = vector.broadcast %cst_6 : f32 to vector<64x8xf32>
    %8 = arith.maximumf %6, %7 : vector<64x8xf32>
    %c0_7 = arith.constant 0 : index
    %c0_8 = arith.constant 0 : index
    %c0_9 = arith.constant 0 : index
    %9 = vector.load %arg5[%c0_7, %c0_8, %c0_9] : memref<1x1x8xf32, #tpu.memory_space<vmem>>, vector<1x1x8xf32>
    %10 = vector.shape_cast %9 : vector<1x1x8xf32> to vector<1x8xf32>
    %11 = vector.broadcast %10 : vector<1x8xf32> to vector<64x8xf32>
    %12 = arith.mulf %8, %11 : vector<64x8xf32>
    %13 = arith.truncf %12 : vector<64x8xf32> to vector<64x8xbf16>
    %c0_10 = arith.constant 0 : index
    %c0_11 = arith.constant 0 : index
    %14 = vector.load %arg6[%c0_10, %c0_11] : memref<8x16xbf16, #tpu.memory_space<vmem>>, vector<8x16xbf16>
    %cst_12 = arith.constant dense<0.000000e+00> : vector<64x16xf32>
    %15 = tpu.matmul %13, %14, %cst_12 {dimension_numbers = #tpu.dot_dimension_numbers<[1], [0], [0], [1], [0, 0, 1, 1], [], []>} : vector<64x8xbf16>, vector<8x16xbf16>, vector<64x16xf32> -> vector<64x16xf32>
    %c0_13 = arith.constant 0 : index
    %c0_14 = arith.constant 0 : index
    %16 = vector.load %arg7[%c0_13, %c0_14] : memref<1x16xf32, #tpu.memory_space<vmem>>, vector<1x16xf32>
    %17 = vector.broadcast %16 : vector<1x16xf32> to vector<64x16xf32>
    %18 = arith.addf %15, %17 : vector<64x16xf32>
    %cst_15 = arith.constant 0.000000e+00 : f32
    %19 = vector.broadcast %cst_15 : f32 to vector<64x16xf32>
    %20 = arith.maximumf %18, %19 : vector<64x16xf32>
    %c0_16 = arith.constant 0 : index
    %c0_17 = arith.constant 0 : index
    %c0_18 = arith.constant 0 : index
    %21 = vector.load %arg8[%c0_16, %c0_17, %c0_18] : memref<1x64x8xbf16, #tpu.memory_space<vmem>>, vector<1x64x8xbf16>
    %22 = vector.shape_cast %21 : vector<1x64x8xbf16> to vector<64x8xbf16>
    %c0_19 = arith.constant 0 : index
    %c0_20 = arith.constant 0 : index
    %23 = vector.load %arg9[%c0_19, %c0_20] : memref<8x16xbf16, #tpu.memory_space<vmem>>, vector<8x16xbf16>
    %cst_21 = arith.constant dense<0.000000e+00> : vector<64x16xf32>
    %24 = tpu.matmul %22, %23, %cst_21 {dimension_numbers = #tpu.dot_dimension_numbers<[1], [0], [0], [1], [0, 0, 1, 1], [], []>} : vector<64x8xbf16>, vector<8x16xbf16>, vector<64x16xf32> -> vector<64x16xf32>
    %c0_22 = arith.constant 0 : index
    %c0_23 = arith.constant 0 : index
    %25 = vector.load %arg10[%c0_22, %c0_23] : memref<1x16xf32, #tpu.memory_space<vmem>>, vector<1x16xf32>
    %26 = vector.broadcast %25 : vector<1x16xf32> to vector<64x16xf32>
    %27 = arith.addf %24, %26 : vector<64x16xf32>
    %28 = arith.addf %27, %20 : vector<64x16xf32>
    %cst_24 = arith.constant 0.000000e+00 : f32
    %29 = vector.broadcast %cst_24 : f32 to vector<64x16xf32>
    %30 = arith.maximumf %28, %29 : vector<64x16xf32>
    %31 = arith.truncf %30 : vector<64x16xf32> to vector<64x16xbf16>
    %c0_25 = arith.constant 0 : index
    %c0_26 = arith.constant 0 : index
    %c0_27 = arith.constant 0 : index
    %32 = vector.load %arg11[%c0_25, %c0_26, %c0_27] : memref<1x64x16xbf16, #tpu.memory_space<vmem>>, vector<1x64x16xbf16>
    %33 = vector.shape_cast %32 : vector<1x64x16xbf16> to vector<64x16xbf16>
    %34 = vector.shape_cast %31 : vector<64x16xbf16> to vector<1x64x16xbf16>
    tpu.vector_store %arg11[%c0_25, %c0_26, %c0_27], %34 {strides = array<i32>} : memref<1x64x16xbf16, #tpu.memory_space<vmem>>, vector<1x64x16xbf16>,
    return
  }
  func.func @transform_0(%arg0: i32, %arg1: i32) -> (i32, i32, i32) {
    %c0_i32 = arith.constant 0 : i32
    %c0_i32_0 = arith.constant 0 : i32
    return %arg0, %arg1, %c0_i32 : i32, i32, i32
  }
  func.func @transform_1(%arg0: i32, %arg1: i32) -> (i32, i32) {
    %c0_i32 = arith.constant 0 : i32
    %c0_i32_0 = arith.constant 0 : i32
    %c0_i32_1 = arith.constant 0 : i32
    return %c0_i32, %c0_i32_0 : i32, i32
  }
  func.func @transform_2(%arg0: i32, %arg1: i32) -> (i32, i32) {
    %c0_i32 = arith.constant 0 : i32
    %c0_i32_0 = arith.constant 0 : i32
    %c0_i32_1 = arith.constant 0 : i32
    return %c0_i32, %c0_i32_0 : i32, i32
  }
  func.func @transform_3(%arg0: i32, %arg1: i32) -> (i32, i32, i32) {
    %c0_i32 = arith.constant 0 : i32
    %c0_i32_0 = arith.constant 0 : i32
    %c0_i32_1 = arith.constant 0 : i32
    return %arg0, %c0_i32, %c0_i32_0 : i32, i32, i32
  }
  func.func @transform_4(%arg0: i32, %arg1: i32) -> (i32, i32) {
    %c0_i32 = arith.constant 0 : i32
    %c0_i32_0 = arith.constant 0 : i32
    %c0_i32_1 = arith.constant 0 : i32
    return %c0_i32, %c0_i32_0 : i32, i32
  }
  func.func @transform_5(%arg0: i32, %arg1: i32) -> (i32, i32) {
    %c0_i32 = arith.constant 0 : i32
    %c0_i32_0 = arith.constant 0 : i32
    %c0_i32_1 = arith.constant 0 : i32
    return %c0_i32, %c0_i32_0 : i32, i32
  }
  func.func @transform_6(%arg0: i32, %arg1: i32) -> (i32, i32, i32) {
    %c0_i32 = arith.constant 0 : i32
    %c0_i32_0 = arith.constant 0 : i32
    return %arg0, %arg1, %c0_i32 : i32, i32, i32
  }
  func.func @transform_7(%arg0: i32, %arg1: i32) -> (i32, i32) {
    %c0_i32 = arith.constant 0 : i32
    %c0_i32_0 = arith.constant 0 : i32
    %c0_i32_1 = arith.constant 0 : i32
    return %c0_i32, %c0_i32_0 : i32, i32
  }
  func.func @transform_8(%arg0: i32, %arg1: i32) -> (i32, i32) {
    %c0_i32 = arith.constant 0 : i32
    %c0_i32_0 = arith.constant 0 : i32
    %c0_i32_1 = arith.constant 0 : i32
    return %c0_i32, %c0_i32_0 : i32, i32
  }
  func.func @transform_9(%arg0: i32, %arg1: i32) -> (i32, i32, i32) {
    %c0_i32 = arith.constant 0 : i32
    %c0_i32_0 = arith.constant 0 : i32
    return %arg0, %arg1, %c0_i32 : i32, i32, i32
  }
}

module attributes {stable_mosaic.version = 11 : i64} {
  func.func @_fsm_conv1_kernel(%arg0: i32, %arg1: memref<1x64x16xbf16, #tpu.memory_space<vmem>>, %arg2: memref<16x8xbf16, #tpu.memory_space<vmem>>, %arg3: memref<1x8xf32, #tpu.memory_space<vmem>>, %arg4: memref<16x16xf32, #tpu.memory_space<vmem>>, %arg5: memref<1x16xf32, #tpu.memory_space<vmem>>, %arg6: memref<16x8xf32, #tpu.memory_space<vmem>>, %arg7: memref<1x8xf32, #tpu.memory_space<vmem>>, %arg8: memref<8x4xf32, #tpu.memory_space<vmem>>, %arg9: memref<1x4xf32, #tpu.memory_space<vmem>>, %arg10: memref<1x64x8xbf16, #tpu.memory_space<vmem>>, %arg11: memref<1x1x4xf32, #tpu.memory_space<vmem>>) attributes {dimension_semantics = [#tpu.dimension_semantics<parallel>], iteration_bounds = array<i64: 2>, scalar_prefetch = 0 : i64, scratch_operands = 0 : i64, tpu.core_type = #tpu.core_type<tc>, window_params = [{transform_indices = @transform_0, window_bounds = array<i64: 1, 64, 16>}, {pipeline_mode = #tpu.pipeline_mode<synchronous>, transform_indices = @transform_1, window_bounds = array<i64: 16, 8>}, {pipeline_mode = #tpu.pipeline_mode<synchronous>, transform_indices = @transform_2, window_bounds = array<i64: 1, 8>}, {pipeline_mode = #tpu.pipeline_mode<synchronous>, transform_indices = @transform_3, window_bounds = array<i64: 16, 16>}, {pipeline_mode = #tpu.pipeline_mode<synchronous>, transform_indices = @transform_4, window_bounds = array<i64: 1, 16>}, {pipeline_mode = #tpu.pipeline_mode<synchronous>, transform_indices = @transform_5, window_bounds = array<i64: 16, 8>}, {pipeline_mode = #tpu.pipeline_mode<synchronous>, transform_indices = @transform_6, window_bounds = array<i64: 1, 8>}, {pipeline_mode = #tpu.pipeline_mode<synchronous>, transform_indices = @transform_7, window_bounds = array<i64: 8, 4>}, {pipeline_mode = #tpu.pipeline_mode<synchronous>, transform_indices = @transform_8, window_bounds = array<i64: 1, 4>}, {transform_indices = @transform_9, window_bounds = array<i64: 1, 64, 8>}, {transform_indices = @transform_10, window_bounds = array<i64: 1, 1, 4>}]} {
    %c0 = arith.constant 0 : index
    %c0_0 = arith.constant 0 : index
    %c0_1 = arith.constant 0 : index
    %0 = vector.load %arg1[%c0, %c0_0, %c0_1] : memref<1x64x16xbf16, #tpu.memory_space<vmem>>, vector<1x64x16xbf16>
    %1 = vector.shape_cast %0 : vector<1x64x16xbf16> to vector<64x16xbf16>
    %2 = arith.extf %1 : vector<64x16xbf16> to vector<64x16xf32>
    %cst = arith.constant dense<0.000000e+00> : vector<16xf32>
    %3 = vector.multi_reduction <add>, %2, %cst [0] : vector<64x16xf32> to vector<16xf32>
    %4 = vector.shape_cast %3 : vector<16xf32> to vector<1x16xf32>
    %cst_2 = arith.constant 6.400000e+01 : f32
    %5 = vector.broadcast %cst_2 : f32 to vector<1x16xf32>
    %6 = arith.divf %4, %5 : vector<1x16xf32>
    %c0_3 = arith.constant 0 : index
    %c0_4 = arith.constant 0 : index
    %7 = vector.load %arg4[%c0_3, %c0_4] : memref<16x16xf32, #tpu.memory_space<vmem>>, vector<16x16xf32>
    %cst_5 = arith.constant dense<0.000000e+00> : vector<1x16xf32>
    %8 = tpu.matmul %6, %7, %cst_5 {dimension_numbers = #tpu.dot_dimension_numbers<[1], [0], [0], [1], [0, 0, 1, 1], [], []>} : vector<1x16xf32>, vector<16x16xf32>, vector<1x16xf32> -> vector<1x16xf32>
    %c0_6 = arith.constant 0 : index
    %c0_7 = arith.constant 0 : index
    %9 = vector.load %arg5[%c0_6, %c0_7] : memref<1x16xf32, #tpu.memory_space<vmem>>, vector<1x16xf32>
    %10 = arith.addf %8, %9 : vector<1x16xf32>
    %cst_8 = arith.constant 0.000000e+00 : f32
    %11 = vector.broadcast %cst_8 : f32 to vector<1x16xf32>
    %12 = arith.maximumf %10, %11 : vector<1x16xf32>
    %c0_9 = arith.constant 0 : index
    %c0_10 = arith.constant 0 : index
    %13 = vector.load %arg6[%c0_9, %c0_10] : memref<16x8xf32, #tpu.memory_space<vmem>>, vector<16x8xf32>
    %cst_11 = arith.constant dense<0.000000e+00> : vector<1x8xf32>
    %14 = tpu.matmul %12, %13, %cst_11 {dimension_numbers = #tpu.dot_dimension_numbers<[1], [0], [0], [1], [0, 0, 1, 1], [], []>} : vector<1x16xf32>, vector<16x8xf32>, vector<1x8xf32> -> vector<1x8xf32>
    %c0_12 = arith.constant 0 : index
    %c0_13 = arith.constant 0 : index
    %15 = vector.load %arg7[%c0_12, %c0_13] : memref<1x8xf32, #tpu.memory_space<vmem>>, vector<1x8xf32>
    %16 = arith.addf %14, %15 : vector<1x8xf32>
    %cst_14 = arith.constant 0.000000e+00 : f32
    %17 = vector.broadcast %cst_14 : f32 to vector<1x8xf32>
    %18 = arith.maximumf %16, %17 : vector<1x8xf32>
    %c0_15 = arith.constant 0 : index
    %c0_16 = arith.constant 0 : index
    %19 = vector.load %arg8[%c0_15, %c0_16] : memref<8x4xf32, #tpu.memory_space<vmem>>, vector<8x4xf32>
    %cst_17 = arith.constant dense<0.000000e+00> : vector<1x4xf32>
    %20 = tpu.matmul %18, %19, %cst_17 {dimension_numbers = #tpu.dot_dimension_numbers<[1], [0], [0], [1], [0, 0, 1, 1], [], []>} : vector<1x8xf32>, vector<8x4xf32>, vector<1x4xf32> -> vector<1x4xf32>
    %c0_18 = arith.constant 0 : index
    %c0_19 = arith.constant 0 : index
    %21 = vector.load %arg9[%c0_18, %c0_19] : memref<1x4xf32, #tpu.memory_space<vmem>>, vector<1x4xf32>
    %22 = arith.addf %20, %21 : vector<1x4xf32>
    %23 = arith.negf %22 : vector<1x4xf32>
    %24 = math.exp %23 : vector<1x4xf32>
    %cst_20 = arith.constant 1.000000e+00 : f32
    %25 = vector.broadcast %cst_20 : f32 to vector<1x4xf32>
    %26 = arith.addf %25, %24 : vector<1x4xf32>
    %27 = arith.divf %25, %26 : vector<1x4xf32>
    %c0_21 = arith.constant 0 : index
    %c0_22 = arith.constant 0 : index
    %c0_23 = arith.constant 0 : index
    %28 = vector.load %arg11[%c0_21, %c0_22, %c0_23] : memref<1x1x4xf32, #tpu.memory_space<vmem>>, vector<1x1x4xf32>
    %29 = vector.shape_cast %28 : vector<1x1x4xf32> to vector<1x4xf32>
    %30 = vector.shape_cast %27 : vector<1x4xf32> to vector<1x1x4xf32>
    tpu.vector_store %arg11[%c0_21, %c0_22, %c0_23], %30 {strides = array<i32>} : memref<1x1x4xf32, #tpu.memory_space<vmem>>, vector<1x1x4xf32>,
    %c0_24 = arith.constant 0 : index
    %c0_25 = arith.constant 0 : index
    %31 = vector.load %arg2[%c0_24, %c0_25] : memref<16x8xbf16, #tpu.memory_space<vmem>>, vector<16x8xbf16>
    %cst_26 = arith.constant dense<0.000000e+00> : vector<64x8xf32>
    %32 = tpu.matmul %1, %31, %cst_26 {dimension_numbers = #tpu.dot_dimension_numbers<[1], [0], [0], [1], [0, 0, 1, 1], [], []>} : vector<64x16xbf16>, vector<16x8xbf16>, vector<64x8xf32> -> vector<64x8xf32>
    %c0_27 = arith.constant 0 : index
    %c0_28 = arith.constant 0 : index
    %33 = vector.load %arg3[%c0_27, %c0_28] : memref<1x8xf32, #tpu.memory_space<vmem>>, vector<1x8xf32>
    %34 = vector.broadcast %33 : vector<1x8xf32> to vector<64x8xf32>
    %35 = arith.addf %32, %34 : vector<64x8xf32>
    %cst_29 = arith.constant 0.000000e+00 : f32
    %36 = vector.broadcast %cst_29 : f32 to vector<64x8xf32>
    %37 = arith.maximumf %35, %36 : vector<64x8xf32>
    %38 = arith.truncf %37 : vector<64x8xf32> to vector<64x8xbf16>
    %c0_30 = arith.constant 0 : index
    %c0_31 = arith.constant 0 : index
    %c0_32 = arith.constant 0 : index
    %39 = vector.load %arg10[%c0_30, %c0_31, %c0_32] : memref<1x64x8xbf16, #tpu.memory_space<vmem>>, vector<1x64x8xbf16>
    %40 = vector.shape_cast %39 : vector<1x64x8xbf16> to vector<64x8xbf16>
    %41 = vector.shape_cast %38 : vector<64x8xbf16> to vector<1x64x8xbf16>
    tpu.vector_store %arg10[%c0_30, %c0_31, %c0_32], %41 {strides = array<i32>} : memref<1x64x8xbf16, #tpu.memory_space<vmem>>, vector<1x64x8xbf16>,
    return
  }
  func.func @transform_0(%arg0: i32) -> (i32, i32, i32) {
    %c0_i32 = arith.constant 0 : i32
    %c0_i32_0 = arith.constant 0 : i32
    %c0_i32_1 = arith.constant 0 : i32
    return %arg0, %c0_i32, %c0_i32_0 : i32, i32, i32
  }
  func.func @transform_1(%arg0: i32) -> (i32, i32) {
    %c0_i32 = arith.constant 0 : i32
    %c0_i32_0 = arith.constant 0 : i32
    %c0_i32_1 = arith.constant 0 : i32
    return %c0_i32, %c0_i32_0 : i32, i32
  }
  func.func @transform_2(%arg0: i32) -> (i32, i32) {
    %c0_i32 = arith.constant 0 : i32
    %c0_i32_0 = arith.constant 0 : i32
    %c0_i32_1 = arith.constant 0 : i32
    return %c0_i32, %c0_i32_0 : i32, i32
  }
  func.func @transform_3(%arg0: i32) -> (i32, i32) {
    %c0_i32 = arith.constant 0 : i32
    %c0_i32_0 = arith.constant 0 : i32
    %c0_i32_1 = arith.constant 0 : i32
    return %c0_i32, %c0_i32_0 : i32, i32
  }
  func.func @transform_4(%arg0: i32) -> (i32, i32) {
    %c0_i32 = arith.constant 0 : i32
    %c0_i32_0 = arith.constant 0 : i32
    %c0_i32_1 = arith.constant 0 : i32
    return %c0_i32, %c0_i32_0 : i32, i32
  }
  func.func @transform_5(%arg0: i32) -> (i32, i32) {
    %c0_i32 = arith.constant 0 : i32
    %c0_i32_0 = arith.constant 0 : i32
    %c0_i32_1 = arith.constant 0 : i32
    return %c0_i32, %c0_i32_0 : i32, i32
  }
  func.func @transform_6(%arg0: i32) -> (i32, i32) {
    %c0_i32 = arith.constant 0 : i32
    %c0_i32_0 = arith.constant 0 : i32
    %c0_i32_1 = arith.constant 0 : i32
    return %c0_i32, %c0_i32_0 : i32, i32
  }
  func.func @transform_7(%arg0: i32) -> (i32, i32) {
    %c0_i32 = arith.constant 0 : i32
    %c0_i32_0 = arith.constant 0 : i32
    %c0_i32_1 = arith.constant 0 : i32
    return %c0_i32, %c0_i32_0 : i32, i32
  }
  func.func @transform_8(%arg0: i32) -> (i32, i32) {
    %c0_i32 = arith.constant 0 : i32
    %c0_i32_0 = arith.constant 0 : i32
    %c0_i32_1 = arith.constant 0 : i32
    return %c0_i32, %c0_i32_0 : i32, i32
  }
  func.func @transform_9(%arg0: i32) -> (i32, i32, i32) {
    %c0_i32 = arith.constant 0 : i32
    %c0_i32_0 = arith.constant 0 : i32
    %c0_i32_1 = arith.constant 0 : i32
    return %arg0, %c0_i32, %c0_i32_0 : i32, i32, i32
  }
  func.func @transform_10(%arg0: i32) -> (i32, i32, i32) {
    %c0_i32 = arith.constant 0 : i32
    %c0_i32_0 = arith.constant 0 : i32
    %c0_i32_1 = arith.constant 0 : i32
    return %arg0, %c0_i32, %c0_i32_0 : i32, i32, i32
  }
}

module attributes {stable_mosaic.version = 11 : i64} {
  func.func @_block_tail_kernel(%arg0: i32, %arg1: i32, %arg2: memref<1x64x72xbf16, #tpu.memory_space<vmem>>, %arg3: memref<72x8xbf16, #tpu.memory_space<vmem>>, %arg4: memref<1x8xf32, #tpu.memory_space<vmem>>, %arg5: memref<1x1x8xf32, #tpu.memory_space<vmem>>, %arg6: memref<8x16xbf16, #tpu.memory_space<vmem>>, %arg7: memref<1x16xf32, #tpu.memory_space<vmem>>, %arg8: memref<1x64x16xbf16, #tpu.memory_space<vmem>>, %arg9: memref<1x64x16xbf16, #tpu.memory_space<vmem>>) attributes {dimension_semantics = [#tpu.dimension_semantics<parallel>, #tpu.dimension_semantics<parallel>], iteration_bounds = array<i64: 2, 1>, scalar_prefetch = 0 : i64, scratch_operands = 0 : i64, tpu.core_type = #tpu.core_type<tc>, window_params = [{transform_indices = @transform_0, window_bounds = array<i64: 1, 64, 72>}, {pipeline_mode = #tpu.pipeline_mode<synchronous>, transform_indices = @transform_1, window_bounds = array<i64: 72, 8>}, {pipeline_mode = #tpu.pipeline_mode<synchronous>, transform_indices = @transform_2, window_bounds = array<i64: 1, 8>}, {transform_indices = @transform_3, window_bounds = array<i64: 1, 1, 8>}, {pipeline_mode = #tpu.pipeline_mode<synchronous>, transform_indices = @transform_4, window_bounds = array<i64: 8, 16>}, {pipeline_mode = #tpu.pipeline_mode<synchronous>, transform_indices = @transform_5, window_bounds = array<i64: 1, 16>}, {transform_indices = @transform_6, window_bounds = array<i64: 1, 64, 16>}, {transform_indices = @transform_7, window_bounds = array<i64: 1, 64, 16>}]} {
    %c0 = arith.constant 0 : index
    %c0_0 = arith.constant 0 : index
    %c0_1 = arith.constant 0 : index
    %0 = vector.load %arg2[%c0, %c0_0, %c0_1] : memref<1x64x72xbf16, #tpu.memory_space<vmem>>, vector<1x64x72xbf16>
    %1 = vector.shape_cast %0 : vector<1x64x72xbf16> to vector<64x72xbf16>
    %c0_2 = arith.constant 0 : index
    %c0_3 = arith.constant 0 : index
    %2 = vector.load %arg3[%c0_2, %c0_3] : memref<72x8xbf16, #tpu.memory_space<vmem>>, vector<72x8xbf16>
    %cst = arith.constant dense<0.000000e+00> : vector<64x8xf32>
    %3 = tpu.matmul %1, %2, %cst {dimension_numbers = #tpu.dot_dimension_numbers<[1], [0], [0], [1], [0, 0, 1, 1], [], []>} : vector<64x72xbf16>, vector<72x8xbf16>, vector<64x8xf32> -> vector<64x8xf32>
    %c0_4 = arith.constant 0 : index
    %c0_5 = arith.constant 0 : index
    %4 = vector.load %arg4[%c0_4, %c0_5] : memref<1x8xf32, #tpu.memory_space<vmem>>, vector<1x8xf32>
    %5 = vector.broadcast %4 : vector<1x8xf32> to vector<64x8xf32>
    %6 = arith.addf %3, %5 : vector<64x8xf32>
    %cst_6 = arith.constant 0.000000e+00 : f32
    %7 = vector.broadcast %cst_6 : f32 to vector<64x8xf32>
    %8 = arith.maximumf %6, %7 : vector<64x8xf32>
    %c0_7 = arith.constant 0 : index
    %c0_8 = arith.constant 0 : index
    %c0_9 = arith.constant 0 : index
    %9 = vector.load %arg5[%c0_7, %c0_8, %c0_9] : memref<1x1x8xf32, #tpu.memory_space<vmem>>, vector<1x1x8xf32>
    %10 = vector.shape_cast %9 : vector<1x1x8xf32> to vector<1x8xf32>
    %11 = vector.broadcast %10 : vector<1x8xf32> to vector<64x8xf32>
    %12 = arith.mulf %8, %11 : vector<64x8xf32>
    %13 = arith.truncf %12 : vector<64x8xf32> to vector<64x8xbf16>
    %c0_10 = arith.constant 0 : index
    %c0_11 = arith.constant 0 : index
    %14 = vector.load %arg6[%c0_10, %c0_11] : memref<8x16xbf16, #tpu.memory_space<vmem>>, vector<8x16xbf16>
    %cst_12 = arith.constant dense<0.000000e+00> : vector<64x16xf32>
    %15 = tpu.matmul %13, %14, %cst_12 {dimension_numbers = #tpu.dot_dimension_numbers<[1], [0], [0], [1], [0, 0, 1, 1], [], []>} : vector<64x8xbf16>, vector<8x16xbf16>, vector<64x16xf32> -> vector<64x16xf32>
    %c0_13 = arith.constant 0 : index
    %c0_14 = arith.constant 0 : index
    %16 = vector.load %arg7[%c0_13, %c0_14] : memref<1x16xf32, #tpu.memory_space<vmem>>, vector<1x16xf32>
    %17 = vector.broadcast %16 : vector<1x16xf32> to vector<64x16xf32>
    %18 = arith.addf %15, %17 : vector<64x16xf32>
    %cst_15 = arith.constant 0.000000e+00 : f32
    %19 = vector.broadcast %cst_15 : f32 to vector<64x16xf32>
    %20 = arith.maximumf %18, %19 : vector<64x16xf32>
    %c0_16 = arith.constant 0 : index
    %c0_17 = arith.constant 0 : index
    %c0_18 = arith.constant 0 : index
    %21 = vector.load %arg8[%c0_16, %c0_17, %c0_18] : memref<1x64x16xbf16, #tpu.memory_space<vmem>>, vector<1x64x16xbf16>
    %22 = vector.shape_cast %21 : vector<1x64x16xbf16> to vector<64x16xbf16>
    %23 = arith.extf %22 : vector<64x16xbf16> to vector<64x16xf32>
    %24 = arith.addf %23, %20 : vector<64x16xf32>
    %cst_19 = arith.constant 0.000000e+00 : f32
    %25 = vector.broadcast %cst_19 : f32 to vector<64x16xf32>
    %26 = arith.maximumf %24, %25 : vector<64x16xf32>
    %27 = arith.truncf %26 : vector<64x16xf32> to vector<64x16xbf16>
    %c0_20 = arith.constant 0 : index
    %c0_21 = arith.constant 0 : index
    %c0_22 = arith.constant 0 : index
    %28 = vector.load %arg9[%c0_20, %c0_21, %c0_22] : memref<1x64x16xbf16, #tpu.memory_space<vmem>>, vector<1x64x16xbf16>
    %29 = vector.shape_cast %28 : vector<1x64x16xbf16> to vector<64x16xbf16>
    %30 = vector.shape_cast %27 : vector<64x16xbf16> to vector<1x64x16xbf16>
    tpu.vector_store %arg9[%c0_20, %c0_21, %c0_22], %30 {strides = array<i32>} : memref<1x64x16xbf16, #tpu.memory_space<vmem>>, vector<1x64x16xbf16>,
    return
  }
  func.func @transform_0(%arg0: i32, %arg1: i32) -> (i32, i32, i32) {
    %c0_i32 = arith.constant 0 : i32
    %c0_i32_0 = arith.constant 0 : i32
    return %arg0, %arg1, %c0_i32 : i32, i32, i32
  }
  func.func @transform_1(%arg0: i32, %arg1: i32) -> (i32, i32) {
    %c0_i32 = arith.constant 0 : i32
    %c0_i32_0 = arith.constant 0 : i32
    %c0_i32_1 = arith.constant 0 : i32
    return %c0_i32, %c0_i32_0 : i32, i32
  }
  func.func @transform_2(%arg0: i32, %arg1: i32) -> (i32, i32) {
    %c0_i32 = arith.constant 0 : i32
    %c0_i32_0 = arith.constant 0 : i32
    %c0_i32_1 = arith.constant 0 : i32
    return %c0_i32, %c0_i32_0 : i32, i32
  }
  func.func @transform_3(%arg0: i32, %arg1: i32) -> (i32, i32, i32) {
    %c0_i32 = arith.constant 0 : i32
    %c0_i32_0 = arith.constant 0 : i32
    %c0_i32_1 = arith.constant 0 : i32
    return %arg0, %c0_i32, %c0_i32_0 : i32, i32, i32
  }
  func.func @transform_4(%arg0: i32, %arg1: i32) -> (i32, i32) {
    %c0_i32 = arith.constant 0 : i32
    %c0_i32_0 = arith.constant 0 : i32
    %c0_i32_1 = arith.constant 0 : i32
    return %c0_i32, %c0_i32_0 : i32, i32
  }
  func.func @transform_5(%arg0: i32, %arg1: i32) -> (i32, i32) {
    %c0_i32 = arith.constant 0 : i32
    %c0_i32_0 = arith.constant 0 : i32
    %c0_i32_1 = arith.constant 0 : i32
    return %c0_i32, %c0_i32_0 : i32, i32
  }
  func.func @transform_6(%arg0: i32, %arg1: i32) -> (i32, i32, i32) {
    %c0_i32 = arith.constant 0 : i32
    %c0_i32_0 = arith.constant 0 : i32
    return %arg0, %arg1, %c0_i32 : i32, i32, i32
  }
  func.func @transform_7(%arg0: i32, %arg1: i32) -> (i32, i32, i32) {
    %c0_i32 = arith.constant 0 : i32
    %c0_i32_0 = arith.constant 0 : i32
    return %arg0, %arg1, %c0_i32 : i32, i32, i32
  }
}

module attributes {stable_mosaic.version = 11 : i64} {
  func.func @_fsm_conv1_kernel(%arg0: i32, %arg1: memref<1x64x16xbf16, #tpu.memory_space<vmem>>, %arg2: memref<16x16xbf16, #tpu.memory_space<vmem>>, %arg3: memref<1x16xf32, #tpu.memory_space<vmem>>, %arg4: memref<16x32xf32, #tpu.memory_space<vmem>>, %arg5: memref<1x32xf32, #tpu.memory_space<vmem>>, %arg6: memref<32x16xf32, #tpu.memory_space<vmem>>, %arg7: memref<1x16xf32, #tpu.memory_space<vmem>>, %arg8: memref<16x4xf32, #tpu.memory_space<vmem>>, %arg9: memref<1x4xf32, #tpu.memory_space<vmem>>, %arg10: memref<1x64x16xbf16, #tpu.memory_space<vmem>>, %arg11: memref<1x1x4xf32, #tpu.memory_space<vmem>>) attributes {dimension_semantics = [#tpu.dimension_semantics<parallel>], iteration_bounds = array<i64: 2>, scalar_prefetch = 0 : i64, scratch_operands = 0 : i64, tpu.core_type = #tpu.core_type<tc>, window_params = [{transform_indices = @transform_0, window_bounds = array<i64: 1, 64, 16>}, {pipeline_mode = #tpu.pipeline_mode<synchronous>, transform_indices = @transform_1, window_bounds = array<i64: 16, 16>}, {pipeline_mode = #tpu.pipeline_mode<synchronous>, transform_indices = @transform_2, window_bounds = array<i64: 1, 16>}, {pipeline_mode = #tpu.pipeline_mode<synchronous>, transform_indices = @transform_3, window_bounds = array<i64: 16, 32>}, {pipeline_mode = #tpu.pipeline_mode<synchronous>, transform_indices = @transform_4, window_bounds = array<i64: 1, 32>}, {pipeline_mode = #tpu.pipeline_mode<synchronous>, transform_indices = @transform_5, window_bounds = array<i64: 32, 16>}, {pipeline_mode = #tpu.pipeline_mode<synchronous>, transform_indices = @transform_6, window_bounds = array<i64: 1, 16>}, {pipeline_mode = #tpu.pipeline_mode<synchronous>, transform_indices = @transform_7, window_bounds = array<i64: 16, 4>}, {pipeline_mode = #tpu.pipeline_mode<synchronous>, transform_indices = @transform_8, window_bounds = array<i64: 1, 4>}, {transform_indices = @transform_9, window_bounds = array<i64: 1, 64, 16>}, {transform_indices = @transform_10, window_bounds = array<i64: 1, 1, 4>}]} {
    %c0 = arith.constant 0 : index
    %c0_0 = arith.constant 0 : index
    %c0_1 = arith.constant 0 : index
    %0 = vector.load %arg1[%c0, %c0_0, %c0_1] : memref<1x64x16xbf16, #tpu.memory_space<vmem>>, vector<1x64x16xbf16>
    %1 = vector.shape_cast %0 : vector<1x64x16xbf16> to vector<64x16xbf16>
    %2 = arith.extf %1 : vector<64x16xbf16> to vector<64x16xf32>
    %cst = arith.constant dense<0.000000e+00> : vector<16xf32>
    %3 = vector.multi_reduction <add>, %2, %cst [0] : vector<64x16xf32> to vector<16xf32>
    %4 = vector.shape_cast %3 : vector<16xf32> to vector<1x16xf32>
    %cst_2 = arith.constant 6.400000e+01 : f32
    %5 = vector.broadcast %cst_2 : f32 to vector<1x16xf32>
    %6 = arith.divf %4, %5 : vector<1x16xf32>
    %c0_3 = arith.constant 0 : index
    %c0_4 = arith.constant 0 : index
    %7 = vector.load %arg4[%c0_3, %c0_4] : memref<16x32xf32, #tpu.memory_space<vmem>>, vector<16x32xf32>
    %cst_5 = arith.constant dense<0.000000e+00> : vector<1x32xf32>
    %8 = tpu.matmul %6, %7, %cst_5 {dimension_numbers = #tpu.dot_dimension_numbers<[1], [0], [0], [1], [0, 0, 1, 1], [], []>} : vector<1x16xf32>, vector<16x32xf32>, vector<1x32xf32> -> vector<1x32xf32>
    %c0_6 = arith.constant 0 : index
    %c0_7 = arith.constant 0 : index
    %9 = vector.load %arg5[%c0_6, %c0_7] : memref<1x32xf32, #tpu.memory_space<vmem>>, vector<1x32xf32>
    %10 = arith.addf %8, %9 : vector<1x32xf32>
    %cst_8 = arith.constant 0.000000e+00 : f32
    %11 = vector.broadcast %cst_8 : f32 to vector<1x32xf32>
    %12 = arith.maximumf %10, %11 : vector<1x32xf32>
    %c0_9 = arith.constant 0 : index
    %c0_10 = arith.constant 0 : index
    %13 = vector.load %arg6[%c0_9, %c0_10] : memref<32x16xf32, #tpu.memory_space<vmem>>, vector<32x16xf32>
    %cst_11 = arith.constant dense<0.000000e+00> : vector<1x16xf32>
    %14 = tpu.matmul %12, %13, %cst_11 {dimension_numbers = #tpu.dot_dimension_numbers<[1], [0], [0], [1], [0, 0, 1, 1], [], []>} : vector<1x32xf32>, vector<32x16xf32>, vector<1x16xf32> -> vector<1x16xf32>
    %c0_12 = arith.constant 0 : index
    %c0_13 = arith.constant 0 : index
    %15 = vector.load %arg7[%c0_12, %c0_13] : memref<1x16xf32, #tpu.memory_space<vmem>>, vector<1x16xf32>
    %16 = arith.addf %14, %15 : vector<1x16xf32>
    %cst_14 = arith.constant 0.000000e+00 : f32
    %17 = vector.broadcast %cst_14 : f32 to vector<1x16xf32>
    %18 = arith.maximumf %16, %17 : vector<1x16xf32>
    %c0_15 = arith.constant 0 : index
    %c0_16 = arith.constant 0 : index
    %19 = vector.load %arg8[%c0_15, %c0_16] : memref<16x4xf32, #tpu.memory_space<vmem>>, vector<16x4xf32>
    %cst_17 = arith.constant dense<0.000000e+00> : vector<1x4xf32>
    %20 = tpu.matmul %18, %19, %cst_17 {dimension_numbers = #tpu.dot_dimension_numbers<[1], [0], [0], [1], [0, 0, 1, 1], [], []>} : vector<1x16xf32>, vector<16x4xf32>, vector<1x4xf32> -> vector<1x4xf32>
    %c0_18 = arith.constant 0 : index
    %c0_19 = arith.constant 0 : index
    %21 = vector.load %arg9[%c0_18, %c0_19] : memref<1x4xf32, #tpu.memory_space<vmem>>, vector<1x4xf32>
    %22 = arith.addf %20, %21 : vector<1x4xf32>
    %23 = arith.negf %22 : vector<1x4xf32>
    %24 = math.exp %23 : vector<1x4xf32>
    %cst_20 = arith.constant 1.000000e+00 : f32
    %25 = vector.broadcast %cst_20 : f32 to vector<1x4xf32>
    %26 = arith.addf %25, %24 : vector<1x4xf32>
    %27 = arith.divf %25, %26 : vector<1x4xf32>
    %c0_21 = arith.constant 0 : index
    %c0_22 = arith.constant 0 : index
    %c0_23 = arith.constant 0 : index
    %28 = vector.load %arg11[%c0_21, %c0_22, %c0_23] : memref<1x1x4xf32, #tpu.memory_space<vmem>>, vector<1x1x4xf32>
    %29 = vector.shape_cast %28 : vector<1x1x4xf32> to vector<1x4xf32>
    %30 = vector.shape_cast %27 : vector<1x4xf32> to vector<1x1x4xf32>
    tpu.vector_store %arg11[%c0_21, %c0_22, %c0_23], %30 {strides = array<i32>} : memref<1x1x4xf32, #tpu.memory_space<vmem>>, vector<1x1x4xf32>,
    %c0_24 = arith.constant 0 : index
    %c0_25 = arith.constant 0 : index
    %31 = vector.load %arg2[%c0_24, %c0_25] : memref<16x16xbf16, #tpu.memory_space<vmem>>, vector<16x16xbf16>
    %cst_26 = arith.constant dense<0.000000e+00> : vector<64x16xf32>
    %32 = tpu.matmul %1, %31, %cst_26 {dimension_numbers = #tpu.dot_dimension_numbers<[1], [0], [0], [1], [0, 0, 1, 1], [], []>} : vector<64x16xbf16>, vector<16x16xbf16>, vector<64x16xf32> -> vector<64x16xf32>
    %c0_27 = arith.constant 0 : index
    %c0_28 = arith.constant 0 : index
    %33 = vector.load %arg3[%c0_27, %c0_28] : memref<1x16xf32, #tpu.memory_space<vmem>>, vector<1x16xf32>
    %34 = vector.broadcast %33 : vector<1x16xf32> to vector<64x16xf32>
    %35 = arith.addf %32, %34 : vector<64x16xf32>
    %cst_29 = arith.constant 0.000000e+00 : f32
    %36 = vector.broadcast %cst_29 : f32 to vector<64x16xf32>
    %37 = arith.maximumf %35, %36 : vector<64x16xf32>
    %38 = arith.truncf %37 : vector<64x16xf32> to vector<64x16xbf16>
    %c0_30 = arith.constant 0 : index
    %c0_31 = arith.constant 0 : index
    %c0_32 = arith.constant 0 : index
    %39 = vector.load %arg10[%c0_30, %c0_31, %c0_32] : memref<1x64x16xbf16, #tpu.memory_space<vmem>>, vector<1x64x16xbf16>
    %40 = vector.shape_cast %39 : vector<1x64x16xbf16> to vector<64x16xbf16>
    %41 = vector.shape_cast %38 : vector<64x16xbf16> to vector<1x64x16xbf16>
    tpu.vector_store %arg10[%c0_30, %c0_31, %c0_32], %41 {strides = array<i32>} : memref<1x64x16xbf16, #tpu.memory_space<vmem>>, vector<1x64x16xbf16>,
    return
  }
  func.func @transform_0(%arg0: i32) -> (i32, i32, i32) {
    %c0_i32 = arith.constant 0 : i32
    %c0_i32_0 = arith.constant 0 : i32
    %c0_i32_1 = arith.constant 0 : i32
    return %arg0, %c0_i32, %c0_i32_0 : i32, i32, i32
  }
  func.func @transform_1(%arg0: i32) -> (i32, i32) {
    %c0_i32 = arith.constant 0 : i32
    %c0_i32_0 = arith.constant 0 : i32
    %c0_i32_1 = arith.constant 0 : i32
    return %c0_i32, %c0_i32_0 : i32, i32
  }
  func.func @transform_2(%arg0: i32) -> (i32, i32) {
    %c0_i32 = arith.constant 0 : i32
    %c0_i32_0 = arith.constant 0 : i32
    %c0_i32_1 = arith.constant 0 : i32
    return %c0_i32, %c0_i32_0 : i32, i32
  }
  func.func @transform_3(%arg0: i32) -> (i32, i32) {
    %c0_i32 = arith.constant 0 : i32
    %c0_i32_0 = arith.constant 0 : i32
    %c0_i32_1 = arith.constant 0 : i32
    return %c0_i32, %c0_i32_0 : i32, i32
  }
  func.func @transform_4(%arg0: i32) -> (i32, i32) {
    %c0_i32 = arith.constant 0 : i32
    %c0_i32_0 = arith.constant 0 : i32
    %c0_i32_1 = arith.constant 0 : i32
    return %c0_i32, %c0_i32_0 : i32, i32
  }
  func.func @transform_5(%arg0: i32) -> (i32, i32) {
    %c0_i32 = arith.constant 0 : i32
    %c0_i32_0 = arith.constant 0 : i32
    %c0_i32_1 = arith.constant 0 : i32
    return %c0_i32, %c0_i32_0 : i32, i32
  }
  func.func @transform_6(%arg0: i32) -> (i32, i32) {
    %c0_i32 = arith.constant 0 : i32
    %c0_i32_0 = arith.constant 0 : i32
    %c0_i32_1 = arith.constant 0 : i32
    return %c0_i32, %c0_i32_0 : i32, i32
  }
  func.func @transform_7(%arg0: i32) -> (i32, i32) {
    %c0_i32 = arith.constant 0 : i32
    %c0_i32_0 = arith.constant 0 : i32
    %c0_i32_1 = arith.constant 0 : i32
    return %c0_i32, %c0_i32_0 : i32, i32
  }
  func.func @transform_8(%arg0: i32) -> (i32, i32) {
    %c0_i32 = arith.constant 0 : i32
    %c0_i32_0 = arith.constant 0 : i32
    %c0_i32_1 = arith.constant 0 : i32
    return %c0_i32, %c0_i32_0 : i32, i32
  }
  func.func @transform_9(%arg0: i32) -> (i32, i32, i32) {
    %c0_i32 = arith.constant 0 : i32
    %c0_i32_0 = arith.constant 0 : i32
    %c0_i32_1 = arith.constant 0 : i32
    return %arg0, %c0_i32, %c0_i32_0 : i32, i32, i32
  }
  func.func @transform_10(%arg0: i32) -> (i32, i32, i32) {
    %c0_i32 = arith.constant 0 : i32
    %c0_i32_0 = arith.constant 0 : i32
    %c0_i32_1 = arith.constant 0 : i32
    return %arg0, %c0_i32, %c0_i32_0 : i32, i32, i32
  }
}

module attributes {stable_mosaic.version = 11 : i64} {
  func.func @_block_tail_down_kernel(%arg0: i32, %arg1: i32, %arg2: memref<1x16x144xbf16, #tpu.memory_space<vmem>>, %arg3: memref<144x16xbf16, #tpu.memory_space<vmem>>, %arg4: memref<1x16xf32, #tpu.memory_space<vmem>>, %arg5: memref<1x1x16xf32, #tpu.memory_space<vmem>>, %arg6: memref<16x32xbf16, #tpu.memory_space<vmem>>, %arg7: memref<1x32xf32, #tpu.memory_space<vmem>>, %arg8: memref<1x16x16xbf16, #tpu.memory_space<vmem>>, %arg9: memref<16x32xbf16, #tpu.memory_space<vmem>>, %arg10: memref<1x32xf32, #tpu.memory_space<vmem>>, %arg11: memref<1x16x32xbf16, #tpu.memory_space<vmem>>) attributes {dimension_semantics = [#tpu.dimension_semantics<parallel>, #tpu.dimension_semantics<parallel>], iteration_bounds = array<i64: 2, 1>, scalar_prefetch = 0 : i64, scratch_operands = 0 : i64, tpu.core_type = #tpu.core_type<tc>, window_params = [{transform_indices = @transform_0, window_bounds = array<i64: 1, 16, 144>}, {pipeline_mode = #tpu.pipeline_mode<synchronous>, transform_indices = @transform_1, window_bounds = array<i64: 144, 16>}, {pipeline_mode = #tpu.pipeline_mode<synchronous>, transform_indices = @transform_2, window_bounds = array<i64: 1, 16>}, {transform_indices = @transform_3, window_bounds = array<i64: 1, 1, 16>}, {pipeline_mode = #tpu.pipeline_mode<synchronous>, transform_indices = @transform_4, window_bounds = array<i64: 16, 32>}, {pipeline_mode = #tpu.pipeline_mode<synchronous>, transform_indices = @transform_5, window_bounds = array<i64: 1, 32>}, {transform_indices = @transform_6, window_bounds = array<i64: 1, 16, 16>}, {pipeline_mode = #tpu.pipeline_mode<synchronous>, transform_indices = @transform_7, window_bounds = array<i64: 16, 32>}, {pipeline_mode = #tpu.pipeline_mode<synchronous>, transform_indices = @transform_8, window_bounds = array<i64: 1, 32>}, {transform_indices = @transform_9, window_bounds = array<i64: 1, 16, 32>}]} {
    %c0 = arith.constant 0 : index
    %c0_0 = arith.constant 0 : index
    %c0_1 = arith.constant 0 : index
    %0 = vector.load %arg2[%c0, %c0_0, %c0_1] : memref<1x16x144xbf16, #tpu.memory_space<vmem>>, vector<1x16x144xbf16>
    %1 = vector.shape_cast %0 : vector<1x16x144xbf16> to vector<16x144xbf16>
    %c0_2 = arith.constant 0 : index
    %c0_3 = arith.constant 0 : index
    %2 = vector.load %arg3[%c0_2, %c0_3] : memref<144x16xbf16, #tpu.memory_space<vmem>>, vector<144x16xbf16>
    %cst = arith.constant dense<0.000000e+00> : vector<16x16xf32>
    %3 = tpu.matmul %1, %2, %cst {dimension_numbers = #tpu.dot_dimension_numbers<[1], [0], [0], [1], [0, 0, 1, 1], [], []>} : vector<16x144xbf16>, vector<144x16xbf16>, vector<16x16xf32> -> vector<16x16xf32>
    %c0_4 = arith.constant 0 : index
    %c0_5 = arith.constant 0 : index
    %4 = vector.load %arg4[%c0_4, %c0_5] : memref<1x16xf32, #tpu.memory_space<vmem>>, vector<1x16xf32>
    %5 = vector.broadcast %4 : vector<1x16xf32> to vector<16x16xf32>
    %6 = arith.addf %3, %5 : vector<16x16xf32>
    %cst_6 = arith.constant 0.000000e+00 : f32
    %7 = vector.broadcast %cst_6 : f32 to vector<16x16xf32>
    %8 = arith.maximumf %6, %7 : vector<16x16xf32>
    %c0_7 = arith.constant 0 : index
    %c0_8 = arith.constant 0 : index
    %c0_9 = arith.constant 0 : index
    %9 = vector.load %arg5[%c0_7, %c0_8, %c0_9] : memref<1x1x16xf32, #tpu.memory_space<vmem>>, vector<1x1x16xf32>
    %10 = vector.shape_cast %9 : vector<1x1x16xf32> to vector<1x16xf32>
    %11 = vector.broadcast %10 : vector<1x16xf32> to vector<16x16xf32>
    %12 = arith.mulf %8, %11 : vector<16x16xf32>
    %13 = arith.truncf %12 : vector<16x16xf32> to vector<16x16xbf16>
    %c0_10 = arith.constant 0 : index
    %c0_11 = arith.constant 0 : index
    %14 = vector.load %arg6[%c0_10, %c0_11] : memref<16x32xbf16, #tpu.memory_space<vmem>>, vector<16x32xbf16>
    %cst_12 = arith.constant dense<0.000000e+00> : vector<16x32xf32>
    %15 = tpu.matmul %13, %14, %cst_12 {dimension_numbers = #tpu.dot_dimension_numbers<[1], [0], [0], [1], [0, 0, 1, 1], [], []>} : vector<16x16xbf16>, vector<16x32xbf16>, vector<16x32xf32> -> vector<16x32xf32>
    %c0_13 = arith.constant 0 : index
    %c0_14 = arith.constant 0 : index
    %16 = vector.load %arg7[%c0_13, %c0_14] : memref<1x32xf32, #tpu.memory_space<vmem>>, vector<1x32xf32>
    %17 = vector.broadcast %16 : vector<1x32xf32> to vector<16x32xf32>
    %18 = arith.addf %15, %17 : vector<16x32xf32>
    %cst_15 = arith.constant 0.000000e+00 : f32
    %19 = vector.broadcast %cst_15 : f32 to vector<16x32xf32>
    %20 = arith.maximumf %18, %19 : vector<16x32xf32>
    %c0_16 = arith.constant 0 : index
    %c0_17 = arith.constant 0 : index
    %c0_18 = arith.constant 0 : index
    %21 = vector.load %arg8[%c0_16, %c0_17, %c0_18] : memref<1x16x16xbf16, #tpu.memory_space<vmem>>, vector<1x16x16xbf16>
    %22 = vector.shape_cast %21 : vector<1x16x16xbf16> to vector<16x16xbf16>
    %c0_19 = arith.constant 0 : index
    %c0_20 = arith.constant 0 : index
    %23 = vector.load %arg9[%c0_19, %c0_20] : memref<16x32xbf16, #tpu.memory_space<vmem>>, vector<16x32xbf16>
    %cst_21 = arith.constant dense<0.000000e+00> : vector<16x32xf32>
    %24 = tpu.matmul %22, %23, %cst_21 {dimension_numbers = #tpu.dot_dimension_numbers<[1], [0], [0], [1], [0, 0, 1, 1], [], []>} : vector<16x16xbf16>, vector<16x32xbf16>, vector<16x32xf32> -> vector<16x32xf32>
    %c0_22 = arith.constant 0 : index
    %c0_23 = arith.constant 0 : index
    %25 = vector.load %arg10[%c0_22, %c0_23] : memref<1x32xf32, #tpu.memory_space<vmem>>, vector<1x32xf32>
    %26 = vector.broadcast %25 : vector<1x32xf32> to vector<16x32xf32>
    %27 = arith.addf %24, %26 : vector<16x32xf32>
    %28 = arith.addf %27, %20 : vector<16x32xf32>
    %cst_24 = arith.constant 0.000000e+00 : f32
    %29 = vector.broadcast %cst_24 : f32 to vector<16x32xf32>
    %30 = arith.maximumf %28, %29 : vector<16x32xf32>
    %31 = arith.truncf %30 : vector<16x32xf32> to vector<16x32xbf16>
    %c0_25 = arith.constant 0 : index
    %c0_26 = arith.constant 0 : index
    %c0_27 = arith.constant 0 : index
    %32 = vector.load %arg11[%c0_25, %c0_26, %c0_27] : memref<1x16x32xbf16, #tpu.memory_space<vmem>>, vector<1x16x32xbf16>
    %33 = vector.shape_cast %32 : vector<1x16x32xbf16> to vector<16x32xbf16>
    %34 = vector.shape_cast %31 : vector<16x32xbf16> to vector<1x16x32xbf16>
    tpu.vector_store %arg11[%c0_25, %c0_26, %c0_27], %34 {strides = array<i32>} : memref<1x16x32xbf16, #tpu.memory_space<vmem>>, vector<1x16x32xbf16>,
    return
  }
  func.func @transform_0(%arg0: i32, %arg1: i32) -> (i32, i32, i32) {
    %c0_i32 = arith.constant 0 : i32
    %c0_i32_0 = arith.constant 0 : i32
    return %arg0, %arg1, %c0_i32 : i32, i32, i32
  }
  func.func @transform_1(%arg0: i32, %arg1: i32) -> (i32, i32) {
    %c0_i32 = arith.constant 0 : i32
    %c0_i32_0 = arith.constant 0 : i32
    %c0_i32_1 = arith.constant 0 : i32
    return %c0_i32, %c0_i32_0 : i32, i32
  }
  func.func @transform_2(%arg0: i32, %arg1: i32) -> (i32, i32) {
    %c0_i32 = arith.constant 0 : i32
    %c0_i32_0 = arith.constant 0 : i32
    %c0_i32_1 = arith.constant 0 : i32
    return %c0_i32, %c0_i32_0 : i32, i32
  }
  func.func @transform_3(%arg0: i32, %arg1: i32) -> (i32, i32, i32) {
    %c0_i32 = arith.constant 0 : i32
    %c0_i32_0 = arith.constant 0 : i32
    %c0_i32_1 = arith.constant 0 : i32
    return %arg0, %c0_i32, %c0_i32_0 : i32, i32, i32
  }
  func.func @transform_4(%arg0: i32, %arg1: i32) -> (i32, i32) {
    %c0_i32 = arith.constant 0 : i32
    %c0_i32_0 = arith.constant 0 : i32
    %c0_i32_1 = arith.constant 0 : i32
    return %c0_i32, %c0_i32_0 : i32, i32
  }
  func.func @transform_5(%arg0: i32, %arg1: i32) -> (i32, i32) {
    %c0_i32 = arith.constant 0 : i32
    %c0_i32_0 = arith.constant 0 : i32
    %c0_i32_1 = arith.constant 0 : i32
    return %c0_i32, %c0_i32_0 : i32, i32
  }
  func.func @transform_6(%arg0: i32, %arg1: i32) -> (i32, i32, i32) {
    %c0_i32 = arith.constant 0 : i32
    %c0_i32_0 = arith.constant 0 : i32
    return %arg0, %arg1, %c0_i32 : i32, i32, i32
  }
  func.func @transform_7(%arg0: i32, %arg1: i32) -> (i32, i32) {
    %c0_i32 = arith.constant 0 : i32
    %c0_i32_0 = arith.constant 0 : i32
    %c0_i32_1 = arith.constant 0 : i32
    return %c0_i32, %c0_i32_0 : i32, i32
  }
  func.func @transform_8(%arg0: i32, %arg1: i32) -> (i32, i32) {
    %c0_i32 = arith.constant 0 : i32
    %c0_i32_0 = arith.constant 0 : i32
    %c0_i32_1 = arith.constant 0 : i32
    return %c0_i32, %c0_i32_0 : i32, i32
  }
  func.func @transform_9(%arg0: i32, %arg1: i32) -> (i32, i32, i32) {
    %c0_i32 = arith.constant 0 : i32
    %c0_i32_0 = arith.constant 0 : i32
    return %arg0, %arg1, %c0_i32 : i32, i32, i32
  }
}

module attributes {stable_mosaic.version = 11 : i64} {
  func.func @_fsm_conv1_kernel(%arg0: i32, %arg1: memref<1x16x32xbf16, #tpu.memory_space<vmem>>, %arg2: memref<32x16xbf16, #tpu.memory_space<vmem>>, %arg3: memref<1x16xf32, #tpu.memory_space<vmem>>, %arg4: memref<32x32xf32, #tpu.memory_space<vmem>>, %arg5: memref<1x32xf32, #tpu.memory_space<vmem>>, %arg6: memref<32x16xf32, #tpu.memory_space<vmem>>, %arg7: memref<1x16xf32, #tpu.memory_space<vmem>>, %arg8: memref<16x4xf32, #tpu.memory_space<vmem>>, %arg9: memref<1x4xf32, #tpu.memory_space<vmem>>, %arg10: memref<1x16x16xbf16, #tpu.memory_space<vmem>>, %arg11: memref<1x1x4xf32, #tpu.memory_space<vmem>>) attributes {dimension_semantics = [#tpu.dimension_semantics<parallel>], iteration_bounds = array<i64: 2>, scalar_prefetch = 0 : i64, scratch_operands = 0 : i64, tpu.core_type = #tpu.core_type<tc>, window_params = [{transform_indices = @transform_0, window_bounds = array<i64: 1, 16, 32>}, {pipeline_mode = #tpu.pipeline_mode<synchronous>, transform_indices = @transform_1, window_bounds = array<i64: 32, 16>}, {pipeline_mode = #tpu.pipeline_mode<synchronous>, transform_indices = @transform_2, window_bounds = array<i64: 1, 16>}, {pipeline_mode = #tpu.pipeline_mode<synchronous>, transform_indices = @transform_3, window_bounds = array<i64: 32, 32>}, {pipeline_mode = #tpu.pipeline_mode<synchronous>, transform_indices = @transform_4, window_bounds = array<i64: 1, 32>}, {pipeline_mode = #tpu.pipeline_mode<synchronous>, transform_indices = @transform_5, window_bounds = array<i64: 32, 16>}, {pipeline_mode = #tpu.pipeline_mode<synchronous>, transform_indices = @transform_6, window_bounds = array<i64: 1, 16>}, {pipeline_mode = #tpu.pipeline_mode<synchronous>, transform_indices = @transform_7, window_bounds = array<i64: 16, 4>}, {pipeline_mode = #tpu.pipeline_mode<synchronous>, transform_indices = @transform_8, window_bounds = array<i64: 1, 4>}, {transform_indices = @transform_9, window_bounds = array<i64: 1, 16, 16>}, {transform_indices = @transform_10, window_bounds = array<i64: 1, 1, 4>}]} {
    %c0 = arith.constant 0 : index
    %c0_0 = arith.constant 0 : index
    %c0_1 = arith.constant 0 : index
    %0 = vector.load %arg1[%c0, %c0_0, %c0_1] : memref<1x16x32xbf16, #tpu.memory_space<vmem>>, vector<1x16x32xbf16>
    %1 = vector.shape_cast %0 : vector<1x16x32xbf16> to vector<16x32xbf16>
    %2 = arith.extf %1 : vector<16x32xbf16> to vector<16x32xf32>
    %cst = arith.constant dense<0.000000e+00> : vector<32xf32>
    %3 = vector.multi_reduction <add>, %2, %cst [0] : vector<16x32xf32> to vector<32xf32>
    %4 = vector.shape_cast %3 : vector<32xf32> to vector<1x32xf32>
    %cst_2 = arith.constant 1.600000e+01 : f32
    %5 = vector.broadcast %cst_2 : f32 to vector<1x32xf32>
    %6 = arith.divf %4, %5 : vector<1x32xf32>
    %c0_3 = arith.constant 0 : index
    %c0_4 = arith.constant 0 : index
    %7 = vector.load %arg4[%c0_3, %c0_4] : memref<32x32xf32, #tpu.memory_space<vmem>>, vector<32x32xf32>
    %cst_5 = arith.constant dense<0.000000e+00> : vector<1x32xf32>
    %8 = tpu.matmul %6, %7, %cst_5 {dimension_numbers = #tpu.dot_dimension_numbers<[1], [0], [0], [1], [0, 0, 1, 1], [], []>} : vector<1x32xf32>, vector<32x32xf32>, vector<1x32xf32> -> vector<1x32xf32>
    %c0_6 = arith.constant 0 : index
    %c0_7 = arith.constant 0 : index
    %9 = vector.load %arg5[%c0_6, %c0_7] : memref<1x32xf32, #tpu.memory_space<vmem>>, vector<1x32xf32>
    %10 = arith.addf %8, %9 : vector<1x32xf32>
    %cst_8 = arith.constant 0.000000e+00 : f32
    %11 = vector.broadcast %cst_8 : f32 to vector<1x32xf32>
    %12 = arith.maximumf %10, %11 : vector<1x32xf32>
    %c0_9 = arith.constant 0 : index
    %c0_10 = arith.constant 0 : index
    %13 = vector.load %arg6[%c0_9, %c0_10] : memref<32x16xf32, #tpu.memory_space<vmem>>, vector<32x16xf32>
    %cst_11 = arith.constant dense<0.000000e+00> : vector<1x16xf32>
    %14 = tpu.matmul %12, %13, %cst_11 {dimension_numbers = #tpu.dot_dimension_numbers<[1], [0], [0], [1], [0, 0, 1, 1], [], []>} : vector<1x32xf32>, vector<32x16xf32>, vector<1x16xf32> -> vector<1x16xf32>
    %c0_12 = arith.constant 0 : index
    %c0_13 = arith.constant 0 : index
    %15 = vector.load %arg7[%c0_12, %c0_13] : memref<1x16xf32, #tpu.memory_space<vmem>>, vector<1x16xf32>
    %16 = arith.addf %14, %15 : vector<1x16xf32>
    %cst_14 = arith.constant 0.000000e+00 : f32
    %17 = vector.broadcast %cst_14 : f32 to vector<1x16xf32>
    %18 = arith.maximumf %16, %17 : vector<1x16xf32>
    %c0_15 = arith.constant 0 : index
    %c0_16 = arith.constant 0 : index
    %19 = vector.load %arg8[%c0_15, %c0_16] : memref<16x4xf32, #tpu.memory_space<vmem>>, vector<16x4xf32>
    %cst_17 = arith.constant dense<0.000000e+00> : vector<1x4xf32>
    %20 = tpu.matmul %18, %19, %cst_17 {dimension_numbers = #tpu.dot_dimension_numbers<[1], [0], [0], [1], [0, 0, 1, 1], [], []>} : vector<1x16xf32>, vector<16x4xf32>, vector<1x4xf32> -> vector<1x4xf32>
    %c0_18 = arith.constant 0 : index
    %c0_19 = arith.constant 0 : index
    %21 = vector.load %arg9[%c0_18, %c0_19] : memref<1x4xf32, #tpu.memory_space<vmem>>, vector<1x4xf32>
    %22 = arith.addf %20, %21 : vector<1x4xf32>
    %23 = arith.negf %22 : vector<1x4xf32>
    %24 = math.exp %23 : vector<1x4xf32>
    %cst_20 = arith.constant 1.000000e+00 : f32
    %25 = vector.broadcast %cst_20 : f32 to vector<1x4xf32>
    %26 = arith.addf %25, %24 : vector<1x4xf32>
    %27 = arith.divf %25, %26 : vector<1x4xf32>
    %c0_21 = arith.constant 0 : index
    %c0_22 = arith.constant 0 : index
    %c0_23 = arith.constant 0 : index
    %28 = vector.load %arg11[%c0_21, %c0_22, %c0_23] : memref<1x1x4xf32, #tpu.memory_space<vmem>>, vector<1x1x4xf32>
    %29 = vector.shape_cast %28 : vector<1x1x4xf32> to vector<1x4xf32>
    %30 = vector.shape_cast %27 : vector<1x4xf32> to vector<1x1x4xf32>
    tpu.vector_store %arg11[%c0_21, %c0_22, %c0_23], %30 {strides = array<i32>} : memref<1x1x4xf32, #tpu.memory_space<vmem>>, vector<1x1x4xf32>,
    %c0_24 = arith.constant 0 : index
    %c0_25 = arith.constant 0 : index
    %31 = vector.load %arg2[%c0_24, %c0_25] : memref<32x16xbf16, #tpu.memory_space<vmem>>, vector<32x16xbf16>
    %cst_26 = arith.constant dense<0.000000e+00> : vector<16x16xf32>
    %32 = tpu.matmul %1, %31, %cst_26 {dimension_numbers = #tpu.dot_dimension_numbers<[1], [0], [0], [1], [0, 0, 1, 1], [], []>} : vector<16x32xbf16>, vector<32x16xbf16>, vector<16x16xf32> -> vector<16x16xf32>
    %c0_27 = arith.constant 0 : index
    %c0_28 = arith.constant 0 : index
    %33 = vector.load %arg3[%c0_27, %c0_28] : memref<1x16xf32, #tpu.memory_space<vmem>>, vector<1x16xf32>
    %34 = vector.broadcast %33 : vector<1x16xf32> to vector<16x16xf32>
    %35 = arith.addf %32, %34 : vector<16x16xf32>
    %cst_29 = arith.constant 0.000000e+00 : f32
    %36 = vector.broadcast %cst_29 : f32 to vector<16x16xf32>
    %37 = arith.maximumf %35, %36 : vector<16x16xf32>
    %38 = arith.truncf %37 : vector<16x16xf32> to vector<16x16xbf16>
    %c0_30 = arith.constant 0 : index
    %c0_31 = arith.constant 0 : index
    %c0_32 = arith.constant 0 : index
    %39 = vector.load %arg10[%c0_30, %c0_31, %c0_32] : memref<1x16x16xbf16, #tpu.memory_space<vmem>>, vector<1x16x16xbf16>
    %40 = vector.shape_cast %39 : vector<1x16x16xbf16> to vector<16x16xbf16>
    %41 = vector.shape_cast %38 : vector<16x16xbf16> to vector<1x16x16xbf16>
    tpu.vector_store %arg10[%c0_30, %c0_31, %c0_32], %41 {strides = array<i32>} : memref<1x16x16xbf16, #tpu.memory_space<vmem>>, vector<1x16x16xbf16>,
    return
  }
  func.func @transform_0(%arg0: i32) -> (i32, i32, i32) {
    %c0_i32 = arith.constant 0 : i32
    %c0_i32_0 = arith.constant 0 : i32
    %c0_i32_1 = arith.constant 0 : i32
    return %arg0, %c0_i32, %c0_i32_0 : i32, i32, i32
  }
  func.func @transform_1(%arg0: i32) -> (i32, i32) {
    %c0_i32 = arith.constant 0 : i32
    %c0_i32_0 = arith.constant 0 : i32
    %c0_i32_1 = arith.constant 0 : i32
    return %c0_i32, %c0_i32_0 : i32, i32
  }
  func.func @transform_2(%arg0: i32) -> (i32, i32) {
    %c0_i32 = arith.constant 0 : i32
    %c0_i32_0 = arith.constant 0 : i32
    %c0_i32_1 = arith.constant 0 : i32
    return %c0_i32, %c0_i32_0 : i32, i32
  }
  func.func @transform_3(%arg0: i32) -> (i32, i32) {
    %c0_i32 = arith.constant 0 : i32
    %c0_i32_0 = arith.constant 0 : i32
    %c0_i32_1 = arith.constant 0 : i32
    return %c0_i32, %c0_i32_0 : i32, i32
  }
  func.func @transform_4(%arg0: i32) -> (i32, i32) {
    %c0_i32 = arith.constant 0 : i32
    %c0_i32_0 = arith.constant 0 : i32
    %c0_i32_1 = arith.constant 0 : i32
    return %c0_i32, %c0_i32_0 : i32, i32
  }
  func.func @transform_5(%arg0: i32) -> (i32, i32) {
    %c0_i32 = arith.constant 0 : i32
    %c0_i32_0 = arith.constant 0 : i32
    %c0_i32_1 = arith.constant 0 : i32
    return %c0_i32, %c0_i32_0 : i32, i32
  }
  func.func @transform_6(%arg0: i32) -> (i32, i32) {
    %c0_i32 = arith.constant 0 : i32
    %c0_i32_0 = arith.constant 0 : i32
    %c0_i32_1 = arith.constant 0 : i32
    return %c0_i32, %c0_i32_0 : i32, i32
  }
  func.func @transform_7(%arg0: i32) -> (i32, i32) {
    %c0_i32 = arith.constant 0 : i32
    %c0_i32_0 = arith.constant 0 : i32
    %c0_i32_1 = arith.constant 0 : i32
    return %c0_i32, %c0_i32_0 : i32, i32
  }
  func.func @transform_8(%arg0: i32) -> (i32, i32) {
    %c0_i32 = arith.constant 0 : i32
    %c0_i32_0 = arith.constant 0 : i32
    %c0_i32_1 = arith.constant 0 : i32
    return %c0_i32, %c0_i32_0 : i32, i32
  }
  func.func @transform_9(%arg0: i32) -> (i32, i32, i32) {
    %c0_i32 = arith.constant 0 : i32
    %c0_i32_0 = arith.constant 0 : i32
    %c0_i32_1 = arith.constant 0 : i32
    return %arg0, %c0_i32, %c0_i32_0 : i32, i32, i32
  }
  func.func @transform_10(%arg0: i32) -> (i32, i32, i32) {
    %c0_i32 = arith.constant 0 : i32
    %c0_i32_0 = arith.constant 0 : i32
    %c0_i32_1 = arith.constant 0 : i32
    return %arg0, %c0_i32, %c0_i32_0 : i32, i32, i32
  }
}

module attributes {stable_mosaic.version = 11 : i64} {
  func.func @_block_tail_kernel(%arg0: i32, %arg1: i32, %arg2: memref<1x16x144xbf16, #tpu.memory_space<vmem>>, %arg3: memref<144x16xbf16, #tpu.memory_space<vmem>>, %arg4: memref<1x16xf32, #tpu.memory_space<vmem>>, %arg5: memref<1x1x16xf32, #tpu.memory_space<vmem>>, %arg6: memref<16x32xbf16, #tpu.memory_space<vmem>>, %arg7: memref<1x32xf32, #tpu.memory_space<vmem>>, %arg8: memref<1x16x32xbf16, #tpu.memory_space<vmem>>, %arg9: memref<1x16x32xbf16, #tpu.memory_space<vmem>>) attributes {dimension_semantics = [#tpu.dimension_semantics<parallel>, #tpu.dimension_semantics<parallel>], iteration_bounds = array<i64: 2, 1>, scalar_prefetch = 0 : i64, scratch_operands = 0 : i64, tpu.core_type = #tpu.core_type<tc>, window_params = [{transform_indices = @transform_0, window_bounds = array<i64: 1, 16, 144>}, {pipeline_mode = #tpu.pipeline_mode<synchronous>, transform_indices = @transform_1, window_bounds = array<i64: 144, 16>}, {pipeline_mode = #tpu.pipeline_mode<synchronous>, transform_indices = @transform_2, window_bounds = array<i64: 1, 16>}, {transform_indices = @transform_3, window_bounds = array<i64: 1, 1, 16>}, {pipeline_mode = #tpu.pipeline_mode<synchronous>, transform_indices = @transform_4, window_bounds = array<i64: 16, 32>}, {pipeline_mode = #tpu.pipeline_mode<synchronous>, transform_indices = @transform_5, window_bounds = array<i64: 1, 32>}, {transform_indices = @transform_6, window_bounds = array<i64: 1, 16, 32>}, {transform_indices = @transform_7, window_bounds = array<i64: 1, 16, 32>}]} {
    %c0 = arith.constant 0 : index
    %c0_0 = arith.constant 0 : index
    %c0_1 = arith.constant 0 : index
    %0 = vector.load %arg2[%c0, %c0_0, %c0_1] : memref<1x16x144xbf16, #tpu.memory_space<vmem>>, vector<1x16x144xbf16>
    %1 = vector.shape_cast %0 : vector<1x16x144xbf16> to vector<16x144xbf16>
    %c0_2 = arith.constant 0 : index
    %c0_3 = arith.constant 0 : index
    %2 = vector.load %arg3[%c0_2, %c0_3] : memref<144x16xbf16, #tpu.memory_space<vmem>>, vector<144x16xbf16>
    %cst = arith.constant dense<0.000000e+00> : vector<16x16xf32>
    %3 = tpu.matmul %1, %2, %cst {dimension_numbers = #tpu.dot_dimension_numbers<[1], [0], [0], [1], [0, 0, 1, 1], [], []>} : vector<16x144xbf16>, vector<144x16xbf16>, vector<16x16xf32> -> vector<16x16xf32>
    %c0_4 = arith.constant 0 : index
    %c0_5 = arith.constant 0 : index
    %4 = vector.load %arg4[%c0_4, %c0_5] : memref<1x16xf32, #tpu.memory_space<vmem>>, vector<1x16xf32>
    %5 = vector.broadcast %4 : vector<1x16xf32> to vector<16x16xf32>
    %6 = arith.addf %3, %5 : vector<16x16xf32>
    %cst_6 = arith.constant 0.000000e+00 : f32
    %7 = vector.broadcast %cst_6 : f32 to vector<16x16xf32>
    %8 = arith.maximumf %6, %7 : vector<16x16xf32>
    %c0_7 = arith.constant 0 : index
    %c0_8 = arith.constant 0 : index
    %c0_9 = arith.constant 0 : index
    %9 = vector.load %arg5[%c0_7, %c0_8, %c0_9] : memref<1x1x16xf32, #tpu.memory_space<vmem>>, vector<1x1x16xf32>
    %10 = vector.shape_cast %9 : vector<1x1x16xf32> to vector<1x16xf32>
    %11 = vector.broadcast %10 : vector<1x16xf32> to vector<16x16xf32>
    %12 = arith.mulf %8, %11 : vector<16x16xf32>
    %13 = arith.truncf %12 : vector<16x16xf32> to vector<16x16xbf16>
    %c0_10 = arith.constant 0 : index
    %c0_11 = arith.constant 0 : index
    %14 = vector.load %arg6[%c0_10, %c0_11] : memref<16x32xbf16, #tpu.memory_space<vmem>>, vector<16x32xbf16>
    %cst_12 = arith.constant dense<0.000000e+00> : vector<16x32xf32>
    %15 = tpu.matmul %13, %14, %cst_12 {dimension_numbers = #tpu.dot_dimension_numbers<[1], [0], [0], [1], [0, 0, 1, 1], [], []>} : vector<16x16xbf16>, vector<16x32xbf16>, vector<16x32xf32> -> vector<16x32xf32>
    %c0_13 = arith.constant 0 : index
    %c0_14 = arith.constant 0 : index
    %16 = vector.load %arg7[%c0_13, %c0_14] : memref<1x32xf32, #tpu.memory_space<vmem>>, vector<1x32xf32>
    %17 = vector.broadcast %16 : vector<1x32xf32> to vector<16x32xf32>
    %18 = arith.addf %15, %17 : vector<16x32xf32>
    %cst_15 = arith.constant 0.000000e+00 : f32
    %19 = vector.broadcast %cst_15 : f32 to vector<16x32xf32>
    %20 = arith.maximumf %18, %19 : vector<16x32xf32>
    %c0_16 = arith.constant 0 : index
    %c0_17 = arith.constant 0 : index
    %c0_18 = arith.constant 0 : index
    %21 = vector.load %arg8[%c0_16, %c0_17, %c0_18] : memref<1x16x32xbf16, #tpu.memory_space<vmem>>, vector<1x16x32xbf16>
    %22 = vector.shape_cast %21 : vector<1x16x32xbf16> to vector<16x32xbf16>
    %23 = arith.extf %22 : vector<16x32xbf16> to vector<16x32xf32>
    %24 = arith.addf %23, %20 : vector<16x32xf32>
    %cst_19 = arith.constant 0.000000e+00 : f32
    %25 = vector.broadcast %cst_19 : f32 to vector<16x32xf32>
    %26 = arith.maximumf %24, %25 : vector<16x32xf32>
    %27 = arith.truncf %26 : vector<16x32xf32> to vector<16x32xbf16>
    %c0_20 = arith.constant 0 : index
    %c0_21 = arith.constant 0 : index
    %c0_22 = arith.constant 0 : index
    %28 = vector.load %arg9[%c0_20, %c0_21, %c0_22] : memref<1x16x32xbf16, #tpu.memory_space<vmem>>, vector<1x16x32xbf16>
    %29 = vector.shape_cast %28 : vector<1x16x32xbf16> to vector<16x32xbf16>
    %30 = vector.shape_cast %27 : vector<16x32xbf16> to vector<1x16x32xbf16>
    tpu.vector_store %arg9[%c0_20, %c0_21, %c0_22], %30 {strides = array<i32>} : memref<1x16x32xbf16, #tpu.memory_space<vmem>>, vector<1x16x32xbf16>,
    return
  }
  func.func @transform_0(%arg0: i32, %arg1: i32) -> (i32, i32, i32) {
    %c0_i32 = arith.constant 0 : i32
    %c0_i32_0 = arith.constant 0 : i32
    return %arg0, %arg1, %c0_i32 : i32, i32, i32
  }
  func.func @transform_1(%arg0: i32, %arg1: i32) -> (i32, i32) {
    %c0_i32 = arith.constant 0 : i32
    %c0_i32_0 = arith.constant 0 : i32
    %c0_i32_1 = arith.constant 0 : i32
    return %c0_i32, %c0_i32_0 : i32, i32
  }
  func.func @transform_2(%arg0: i32, %arg1: i32) -> (i32, i32) {
    %c0_i32 = arith.constant 0 : i32
    %c0_i32_0 = arith.constant 0 : i32
    %c0_i32_1 = arith.constant 0 : i32
    return %c0_i32, %c0_i32_0 : i32, i32
  }
  func.func @transform_3(%arg0: i32, %arg1: i32) -> (i32, i32, i32) {
    %c0_i32 = arith.constant 0 : i32
    %c0_i32_0 = arith.constant 0 : i32
    %c0_i32_1 = arith.constant 0 : i32
    return %arg0, %c0_i32, %c0_i32_0 : i32, i32, i32
  }
  func.func @transform_4(%arg0: i32, %arg1: i32) -> (i32, i32) {
    %c0_i32 = arith.constant 0 : i32
    %c0_i32_0 = arith.constant 0 : i32
    %c0_i32_1 = arith.constant 0 : i32
    return %c0_i32, %c0_i32_0 : i32, i32
  }
  func.func @transform_5(%arg0: i32, %arg1: i32) -> (i32, i32) {
    %c0_i32 = arith.constant 0 : i32
    %c0_i32_0 = arith.constant 0 : i32
    %c0_i32_1 = arith.constant 0 : i32
    return %c0_i32, %c0_i32_0 : i32, i32
  }
  func.func @transform_6(%arg0: i32, %arg1: i32) -> (i32, i32, i32) {
    %c0_i32 = arith.constant 0 : i32
    %c0_i32_0 = arith.constant 0 : i32
    return %arg0, %arg1, %c0_i32 : i32, i32, i32
  }
  func.func @transform_7(%arg0: i32, %arg1: i32) -> (i32, i32, i32) {
    %c0_i32 = arith.constant 0 : i32
    %c0_i32_0 = arith.constant 0 : i32
    return %arg0, %arg1, %c0_i32 : i32, i32, i32
  }
}

module attributes {stable_mosaic.version = 11 : i64} {
  func.func @_fsm_conv1_kernel(%arg0: i32, %arg1: memref<1x16x32xbf16, #tpu.memory_space<vmem>>, %arg2: memref<32x32xbf16, #tpu.memory_space<vmem>>, %arg3: memref<1x32xf32, #tpu.memory_space<vmem>>, %arg4: memref<32x64xf32, #tpu.memory_space<vmem>>, %arg5: memref<1x64xf32, #tpu.memory_space<vmem>>, %arg6: memref<64x16xf32, #tpu.memory_space<vmem>>, %arg7: memref<1x16xf32, #tpu.memory_space<vmem>>, %arg8: memref<16x4xf32, #tpu.memory_space<vmem>>, %arg9: memref<1x4xf32, #tpu.memory_space<vmem>>, %arg10: memref<1x16x32xbf16, #tpu.memory_space<vmem>>, %arg11: memref<1x1x4xf32, #tpu.memory_space<vmem>>) attributes {dimension_semantics = [#tpu.dimension_semantics<parallel>], iteration_bounds = array<i64: 2>, scalar_prefetch = 0 : i64, scratch_operands = 0 : i64, tpu.core_type = #tpu.core_type<tc>, window_params = [{transform_indices = @transform_0, window_bounds = array<i64: 1, 16, 32>}, {pipeline_mode = #tpu.pipeline_mode<synchronous>, transform_indices = @transform_1, window_bounds = array<i64: 32, 32>}, {pipeline_mode = #tpu.pipeline_mode<synchronous>, transform_indices = @transform_2, window_bounds = array<i64: 1, 32>}, {pipeline_mode = #tpu.pipeline_mode<synchronous>, transform_indices = @transform_3, window_bounds = array<i64: 32, 64>}, {pipeline_mode = #tpu.pipeline_mode<synchronous>, transform_indices = @transform_4, window_bounds = array<i64: 1, 64>}, {pipeline_mode = #tpu.pipeline_mode<synchronous>, transform_indices = @transform_5, window_bounds = array<i64: 64, 16>}, {pipeline_mode = #tpu.pipeline_mode<synchronous>, transform_indices = @transform_6, window_bounds = array<i64: 1, 16>}, {pipeline_mode = #tpu.pipeline_mode<synchronous>, transform_indices = @transform_7, window_bounds = array<i64: 16, 4>}, {pipeline_mode = #tpu.pipeline_mode<synchronous>, transform_indices = @transform_8, window_bounds = array<i64: 1, 4>}, {transform_indices = @transform_9, window_bounds = array<i64: 1, 16, 32>}, {transform_indices = @transform_10, window_bounds = array<i64: 1, 1, 4>}]} {
    %c0 = arith.constant 0 : index
    %c0_0 = arith.constant 0 : index
    %c0_1 = arith.constant 0 : index
    %0 = vector.load %arg1[%c0, %c0_0, %c0_1] : memref<1x16x32xbf16, #tpu.memory_space<vmem>>, vector<1x16x32xbf16>
    %1 = vector.shape_cast %0 : vector<1x16x32xbf16> to vector<16x32xbf16>
    %2 = arith.extf %1 : vector<16x32xbf16> to vector<16x32xf32>
    %cst = arith.constant dense<0.000000e+00> : vector<32xf32>
    %3 = vector.multi_reduction <add>, %2, %cst [0] : vector<16x32xf32> to vector<32xf32>
    %4 = vector.shape_cast %3 : vector<32xf32> to vector<1x32xf32>
    %cst_2 = arith.constant 1.600000e+01 : f32
    %5 = vector.broadcast %cst_2 : f32 to vector<1x32xf32>
    %6 = arith.divf %4, %5 : vector<1x32xf32>
    %c0_3 = arith.constant 0 : index
    %c0_4 = arith.constant 0 : index
    %7 = vector.load %arg4[%c0_3, %c0_4] : memref<32x64xf32, #tpu.memory_space<vmem>>, vector<32x64xf32>
    %cst_5 = arith.constant dense<0.000000e+00> : vector<1x64xf32>
    %8 = tpu.matmul %6, %7, %cst_5 {dimension_numbers = #tpu.dot_dimension_numbers<[1], [0], [0], [1], [0, 0, 1, 1], [], []>} : vector<1x32xf32>, vector<32x64xf32>, vector<1x64xf32> -> vector<1x64xf32>
    %c0_6 = arith.constant 0 : index
    %c0_7 = arith.constant 0 : index
    %9 = vector.load %arg5[%c0_6, %c0_7] : memref<1x64xf32, #tpu.memory_space<vmem>>, vector<1x64xf32>
    %10 = arith.addf %8, %9 : vector<1x64xf32>
    %cst_8 = arith.constant 0.000000e+00 : f32
    %11 = vector.broadcast %cst_8 : f32 to vector<1x64xf32>
    %12 = arith.maximumf %10, %11 : vector<1x64xf32>
    %c0_9 = arith.constant 0 : index
    %c0_10 = arith.constant 0 : index
    %13 = vector.load %arg6[%c0_9, %c0_10] : memref<64x16xf32, #tpu.memory_space<vmem>>, vector<64x16xf32>
    %cst_11 = arith.constant dense<0.000000e+00> : vector<1x16xf32>
    %14 = tpu.matmul %12, %13, %cst_11 {dimension_numbers = #tpu.dot_dimension_numbers<[1], [0], [0], [1], [0, 0, 1, 1], [], []>} : vector<1x64xf32>, vector<64x16xf32>, vector<1x16xf32> -> vector<1x16xf32>
    %c0_12 = arith.constant 0 : index
    %c0_13 = arith.constant 0 : index
    %15 = vector.load %arg7[%c0_12, %c0_13] : memref<1x16xf32, #tpu.memory_space<vmem>>, vector<1x16xf32>
    %16 = arith.addf %14, %15 : vector<1x16xf32>
    %cst_14 = arith.constant 0.000000e+00 : f32
    %17 = vector.broadcast %cst_14 : f32 to vector<1x16xf32>
    %18 = arith.maximumf %16, %17 : vector<1x16xf32>
    %c0_15 = arith.constant 0 : index
    %c0_16 = arith.constant 0 : index
    %19 = vector.load %arg8[%c0_15, %c0_16] : memref<16x4xf32, #tpu.memory_space<vmem>>, vector<16x4xf32>
    %cst_17 = arith.constant dense<0.000000e+00> : vector<1x4xf32>
    %20 = tpu.matmul %18, %19, %cst_17 {dimension_numbers = #tpu.dot_dimension_numbers<[1], [0], [0], [1], [0, 0, 1, 1], [], []>} : vector<1x16xf32>, vector<16x4xf32>, vector<1x4xf32> -> vector<1x4xf32>
    %c0_18 = arith.constant 0 : index
    %c0_19 = arith.constant 0 : index
    %21 = vector.load %arg9[%c0_18, %c0_19] : memref<1x4xf32, #tpu.memory_space<vmem>>, vector<1x4xf32>
    %22 = arith.addf %20, %21 : vector<1x4xf32>
    %23 = arith.negf %22 : vector<1x4xf32>
    %24 = math.exp %23 : vector<1x4xf32>
    %cst_20 = arith.constant 1.000000e+00 : f32
    %25 = vector.broadcast %cst_20 : f32 to vector<1x4xf32>
    %26 = arith.addf %25, %24 : vector<1x4xf32>
    %27 = arith.divf %25, %26 : vector<1x4xf32>
    %c0_21 = arith.constant 0 : index
    %c0_22 = arith.constant 0 : index
    %c0_23 = arith.constant 0 : index
    %28 = vector.load %arg11[%c0_21, %c0_22, %c0_23] : memref<1x1x4xf32, #tpu.memory_space<vmem>>, vector<1x1x4xf32>
    %29 = vector.shape_cast %28 : vector<1x1x4xf32> to vector<1x4xf32>
    %30 = vector.shape_cast %27 : vector<1x4xf32> to vector<1x1x4xf32>
    tpu.vector_store %arg11[%c0_21, %c0_22, %c0_23], %30 {strides = array<i32>} : memref<1x1x4xf32, #tpu.memory_space<vmem>>, vector<1x1x4xf32>,
    %c0_24 = arith.constant 0 : index
    %c0_25 = arith.constant 0 : index
    %31 = vector.load %arg2[%c0_24, %c0_25] : memref<32x32xbf16, #tpu.memory_space<vmem>>, vector<32x32xbf16>
    %cst_26 = arith.constant dense<0.000000e+00> : vector<16x32xf32>
    %32 = tpu.matmul %1, %31, %cst_26 {dimension_numbers = #tpu.dot_dimension_numbers<[1], [0], [0], [1], [0, 0, 1, 1], [], []>} : vector<16x32xbf16>, vector<32x32xbf16>, vector<16x32xf32> -> vector<16x32xf32>
    %c0_27 = arith.constant 0 : index
    %c0_28 = arith.constant 0 : index
    %33 = vector.load %arg3[%c0_27, %c0_28] : memref<1x32xf32, #tpu.memory_space<vmem>>, vector<1x32xf32>
    %34 = vector.broadcast %33 : vector<1x32xf32> to vector<16x32xf32>
    %35 = arith.addf %32, %34 : vector<16x32xf32>
    %cst_29 = arith.constant 0.000000e+00 : f32
    %36 = vector.broadcast %cst_29 : f32 to vector<16x32xf32>
    %37 = arith.maximumf %35, %36 : vector<16x32xf32>
    %38 = arith.truncf %37 : vector<16x32xf32> to vector<16x32xbf16>
    %c0_30 = arith.constant 0 : index
    %c0_31 = arith.constant 0 : index
    %c0_32 = arith.constant 0 : index
    %39 = vector.load %arg10[%c0_30, %c0_31, %c0_32] : memref<1x16x32xbf16, #tpu.memory_space<vmem>>, vector<1x16x32xbf16>
    %40 = vector.shape_cast %39 : vector<1x16x32xbf16> to vector<16x32xbf16>
    %41 = vector.shape_cast %38 : vector<16x32xbf16> to vector<1x16x32xbf16>
    tpu.vector_store %arg10[%c0_30, %c0_31, %c0_32], %41 {strides = array<i32>} : memref<1x16x32xbf16, #tpu.memory_space<vmem>>, vector<1x16x32xbf16>,
    return
  }
  func.func @transform_0(%arg0: i32) -> (i32, i32, i32) {
    %c0_i32 = arith.constant 0 : i32
    %c0_i32_0 = arith.constant 0 : i32
    %c0_i32_1 = arith.constant 0 : i32
    return %arg0, %c0_i32, %c0_i32_0 : i32, i32, i32
  }
  func.func @transform_1(%arg0: i32) -> (i32, i32) {
    %c0_i32 = arith.constant 0 : i32
    %c0_i32_0 = arith.constant 0 : i32
    %c0_i32_1 = arith.constant 0 : i32
    return %c0_i32, %c0_i32_0 : i32, i32
  }
  func.func @transform_2(%arg0: i32) -> (i32, i32) {
    %c0_i32 = arith.constant 0 : i32
    %c0_i32_0 = arith.constant 0 : i32
    %c0_i32_1 = arith.constant 0 : i32
    return %c0_i32, %c0_i32_0 : i32, i32
  }
  func.func @transform_3(%arg0: i32) -> (i32, i32) {
    %c0_i32 = arith.constant 0 : i32
    %c0_i32_0 = arith.constant 0 : i32
    %c0_i32_1 = arith.constant 0 : i32
    return %c0_i32, %c0_i32_0 : i32, i32
  }
  func.func @transform_4(%arg0: i32) -> (i32, i32) {
    %c0_i32 = arith.constant 0 : i32
    %c0_i32_0 = arith.constant 0 : i32
    %c0_i32_1 = arith.constant 0 : i32
    return %c0_i32, %c0_i32_0 : i32, i32
  }
  func.func @transform_5(%arg0: i32) -> (i32, i32) {
    %c0_i32 = arith.constant 0 : i32
    %c0_i32_0 = arith.constant 0 : i32
    %c0_i32_1 = arith.constant 0 : i32
    return %c0_i32, %c0_i32_0 : i32, i32
  }
  func.func @transform_6(%arg0: i32) -> (i32, i32) {
    %c0_i32 = arith.constant 0 : i32
    %c0_i32_0 = arith.constant 0 : i32
    %c0_i32_1 = arith.constant 0 : i32
    return %c0_i32, %c0_i32_0 : i32, i32
  }
  func.func @transform_7(%arg0: i32) -> (i32, i32) {
    %c0_i32 = arith.constant 0 : i32
    %c0_i32_0 = arith.constant 0 : i32
    %c0_i32_1 = arith.constant 0 : i32
    return %c0_i32, %c0_i32_0 : i32, i32
  }
  func.func @transform_8(%arg0: i32) -> (i32, i32) {
    %c0_i32 = arith.constant 0 : i32
    %c0_i32_0 = arith.constant 0 : i32
    %c0_i32_1 = arith.constant 0 : i32
    return %c0_i32, %c0_i32_0 : i32, i32
  }
  func.func @transform_9(%arg0: i32) -> (i32, i32, i32) {
    %c0_i32 = arith.constant 0 : i32
    %c0_i32_0 = arith.constant 0 : i32
    %c0_i32_1 = arith.constant 0 : i32
    return %arg0, %c0_i32, %c0_i32_0 : i32, i32, i32
  }
  func.func @transform_10(%arg0: i32) -> (i32, i32, i32) {
    %c0_i32 = arith.constant 0 : i32
    %c0_i32_0 = arith.constant 0 : i32
    %c0_i32_1 = arith.constant 0 : i32
    return %arg0, %c0_i32, %c0_i32_0 : i32, i32, i32
  }
}

module attributes {stable_mosaic.version = 11 : i64} {
  func.func @_block_tail_down_kernel(%arg0: i32, %arg1: i32, %arg2: memref<1x4x288xbf16, #tpu.memory_space<vmem>>, %arg3: memref<288x32xbf16, #tpu.memory_space<vmem>>, %arg4: memref<1x32xf32, #tpu.memory_space<vmem>>, %arg5: memref<1x1x32xf32, #tpu.memory_space<vmem>>, %arg6: memref<32x64xbf16, #tpu.memory_space<vmem>>, %arg7: memref<1x64xf32, #tpu.memory_space<vmem>>, %arg8: memref<1x4x32xbf16, #tpu.memory_space<vmem>>, %arg9: memref<32x64xbf16, #tpu.memory_space<vmem>>, %arg10: memref<1x64xf32, #tpu.memory_space<vmem>>, %arg11: memref<1x4x64xbf16, #tpu.memory_space<vmem>>) attributes {dimension_semantics = [#tpu.dimension_semantics<parallel>, #tpu.dimension_semantics<parallel>], iteration_bounds = array<i64: 2, 1>, scalar_prefetch = 0 : i64, scratch_operands = 0 : i64, tpu.core_type = #tpu.core_type<tc>, window_params = [{transform_indices = @transform_0, window_bounds = array<i64: 1, 4, 288>}, {pipeline_mode = #tpu.pipeline_mode<synchronous>, transform_indices = @transform_1, window_bounds = array<i64: 288, 32>}, {pipeline_mode = #tpu.pipeline_mode<synchronous>, transform_indices = @transform_2, window_bounds = array<i64: 1, 32>}, {transform_indices = @transform_3, window_bounds = array<i64: 1, 1, 32>}, {pipeline_mode = #tpu.pipeline_mode<synchronous>, transform_indices = @transform_4, window_bounds = array<i64: 32, 64>}, {pipeline_mode = #tpu.pipeline_mode<synchronous>, transform_indices = @transform_5, window_bounds = array<i64: 1, 64>}, {transform_indices = @transform_6, window_bounds = array<i64: 1, 4, 32>}, {pipeline_mode = #tpu.pipeline_mode<synchronous>, transform_indices = @transform_7, window_bounds = array<i64: 32, 64>}, {pipeline_mode = #tpu.pipeline_mode<synchronous>, transform_indices = @transform_8, window_bounds = array<i64: 1, 64>}, {transform_indices = @transform_9, window_bounds = array<i64: 1, 4, 64>}]} {
    %c0 = arith.constant 0 : index
    %c0_0 = arith.constant 0 : index
    %c0_1 = arith.constant 0 : index
    %0 = vector.load %arg2[%c0, %c0_0, %c0_1] : memref<1x4x288xbf16, #tpu.memory_space<vmem>>, vector<1x4x288xbf16>
    %1 = vector.shape_cast %0 : vector<1x4x288xbf16> to vector<4x288xbf16>
    %c0_2 = arith.constant 0 : index
    %c0_3 = arith.constant 0 : index
    %2 = vector.load %arg3[%c0_2, %c0_3] : memref<288x32xbf16, #tpu.memory_space<vmem>>, vector<288x32xbf16>
    %cst = arith.constant dense<0.000000e+00> : vector<4x32xf32>
    %3 = tpu.matmul %1, %2, %cst {dimension_numbers = #tpu.dot_dimension_numbers<[1], [0], [0], [1], [0, 0, 1, 1], [], []>} : vector<4x288xbf16>, vector<288x32xbf16>, vector<4x32xf32> -> vector<4x32xf32>
    %c0_4 = arith.constant 0 : index
    %c0_5 = arith.constant 0 : index
    %4 = vector.load %arg4[%c0_4, %c0_5] : memref<1x32xf32, #tpu.memory_space<vmem>>, vector<1x32xf32>
    %5 = vector.broadcast %4 : vector<1x32xf32> to vector<4x32xf32>
    %6 = arith.addf %3, %5 : vector<4x32xf32>
    %cst_6 = arith.constant 0.000000e+00 : f32
    %7 = vector.broadcast %cst_6 : f32 to vector<4x32xf32>
    %8 = arith.maximumf %6, %7 : vector<4x32xf32>
    %c0_7 = arith.constant 0 : index
    %c0_8 = arith.constant 0 : index
    %c0_9 = arith.constant 0 : index
    %9 = vector.load %arg5[%c0_7, %c0_8, %c0_9] : memref<1x1x32xf32, #tpu.memory_space<vmem>>, vector<1x1x32xf32>
    %10 = vector.shape_cast %9 : vector<1x1x32xf32> to vector<1x32xf32>
    %11 = vector.broadcast %10 : vector<1x32xf32> to vector<4x32xf32>
    %12 = arith.mulf %8, %11 : vector<4x32xf32>
    %13 = arith.truncf %12 : vector<4x32xf32> to vector<4x32xbf16>
    %c0_10 = arith.constant 0 : index
    %c0_11 = arith.constant 0 : index
    %14 = vector.load %arg6[%c0_10, %c0_11] : memref<32x64xbf16, #tpu.memory_space<vmem>>, vector<32x64xbf16>
    %cst_12 = arith.constant dense<0.000000e+00> : vector<4x64xf32>
    %15 = tpu.matmul %13, %14, %cst_12 {dimension_numbers = #tpu.dot_dimension_numbers<[1], [0], [0], [1], [0, 0, 1, 1], [], []>} : vector<4x32xbf16>, vector<32x64xbf16>, vector<4x64xf32> -> vector<4x64xf32>
    %c0_13 = arith.constant 0 : index
    %c0_14 = arith.constant 0 : index
    %16 = vector.load %arg7[%c0_13, %c0_14] : memref<1x64xf32, #tpu.memory_space<vmem>>, vector<1x64xf32>
    %17 = vector.broadcast %16 : vector<1x64xf32> to vector<4x64xf32>
    %18 = arith.addf %15, %17 : vector<4x64xf32>
    %cst_15 = arith.constant 0.000000e+00 : f32
    %19 = vector.broadcast %cst_15 : f32 to vector<4x64xf32>
    %20 = arith.maximumf %18, %19 : vector<4x64xf32>
    %c0_16 = arith.constant 0 : index
    %c0_17 = arith.constant 0 : index
    %c0_18 = arith.constant 0 : index
    %21 = vector.load %arg8[%c0_16, %c0_17, %c0_18] : memref<1x4x32xbf16, #tpu.memory_space<vmem>>, vector<1x4x32xbf16>
    %22 = vector.shape_cast %21 : vector<1x4x32xbf16> to vector<4x32xbf16>
    %c0_19 = arith.constant 0 : index
    %c0_20 = arith.constant 0 : index
    %23 = vector.load %arg9[%c0_19, %c0_20] : memref<32x64xbf16, #tpu.memory_space<vmem>>, vector<32x64xbf16>
    %cst_21 = arith.constant dense<0.000000e+00> : vector<4x64xf32>
    %24 = tpu.matmul %22, %23, %cst_21 {dimension_numbers = #tpu.dot_dimension_numbers<[1], [0], [0], [1], [0, 0, 1, 1], [], []>} : vector<4x32xbf16>, vector<32x64xbf16>, vector<4x64xf32> -> vector<4x64xf32>
    %c0_22 = arith.constant 0 : index
    %c0_23 = arith.constant 0 : index
    %25 = vector.load %arg10[%c0_22, %c0_23] : memref<1x64xf32, #tpu.memory_space<vmem>>, vector<1x64xf32>
    %26 = vector.broadcast %25 : vector<1x64xf32> to vector<4x64xf32>
    %27 = arith.addf %24, %26 : vector<4x64xf32>
    %28 = arith.addf %27, %20 : vector<4x64xf32>
    %cst_24 = arith.constant 0.000000e+00 : f32
    %29 = vector.broadcast %cst_24 : f32 to vector<4x64xf32>
    %30 = arith.maximumf %28, %29 : vector<4x64xf32>
    %31 = arith.truncf %30 : vector<4x64xf32> to vector<4x64xbf16>
    %c0_25 = arith.constant 0 : index
    %c0_26 = arith.constant 0 : index
    %c0_27 = arith.constant 0 : index
    %32 = vector.load %arg11[%c0_25, %c0_26, %c0_27] : memref<1x4x64xbf16, #tpu.memory_space<vmem>>, vector<1x4x64xbf16>
    %33 = vector.shape_cast %32 : vector<1x4x64xbf16> to vector<4x64xbf16>
    %34 = vector.shape_cast %31 : vector<4x64xbf16> to vector<1x4x64xbf16>
    tpu.vector_store %arg11[%c0_25, %c0_26, %c0_27], %34 {strides = array<i32>} : memref<1x4x64xbf16, #tpu.memory_space<vmem>>, vector<1x4x64xbf16>,
    return
  }
  func.func @transform_0(%arg0: i32, %arg1: i32) -> (i32, i32, i32) {
    %c0_i32 = arith.constant 0 : i32
    %c0_i32_0 = arith.constant 0 : i32
    return %arg0, %arg1, %c0_i32 : i32, i32, i32
  }
  func.func @transform_1(%arg0: i32, %arg1: i32) -> (i32, i32) {
    %c0_i32 = arith.constant 0 : i32
    %c0_i32_0 = arith.constant 0 : i32
    %c0_i32_1 = arith.constant 0 : i32
    return %c0_i32, %c0_i32_0 : i32, i32
  }
  func.func @transform_2(%arg0: i32, %arg1: i32) -> (i32, i32) {
    %c0_i32 = arith.constant 0 : i32
    %c0_i32_0 = arith.constant 0 : i32
    %c0_i32_1 = arith.constant 0 : i32
    return %c0_i32, %c0_i32_0 : i32, i32
  }
  func.func @transform_3(%arg0: i32, %arg1: i32) -> (i32, i32, i32) {
    %c0_i32 = arith.constant 0 : i32
    %c0_i32_0 = arith.constant 0 : i32
    %c0_i32_1 = arith.constant 0 : i32
    return %arg0, %c0_i32, %c0_i32_0 : i32, i32, i32
  }
  func.func @transform_4(%arg0: i32, %arg1: i32) -> (i32, i32) {
    %c0_i32 = arith.constant 0 : i32
    %c0_i32_0 = arith.constant 0 : i32
    %c0_i32_1 = arith.constant 0 : i32
    return %c0_i32, %c0_i32_0 : i32, i32
  }
  func.func @transform_5(%arg0: i32, %arg1: i32) -> (i32, i32) {
    %c0_i32 = arith.constant 0 : i32
    %c0_i32_0 = arith.constant 0 : i32
    %c0_i32_1 = arith.constant 0 : i32
    return %c0_i32, %c0_i32_0 : i32, i32
  }
  func.func @transform_6(%arg0: i32, %arg1: i32) -> (i32, i32, i32) {
    %c0_i32 = arith.constant 0 : i32
    %c0_i32_0 = arith.constant 0 : i32
    return %arg0, %arg1, %c0_i32 : i32, i32, i32
  }
  func.func @transform_7(%arg0: i32, %arg1: i32) -> (i32, i32) {
    %c0_i32 = arith.constant 0 : i32
    %c0_i32_0 = arith.constant 0 : i32
    %c0_i32_1 = arith.constant 0 : i32
    return %c0_i32, %c0_i32_0 : i32, i32
  }
  func.func @transform_8(%arg0: i32, %arg1: i32) -> (i32, i32) {
    %c0_i32 = arith.constant 0 : i32
    %c0_i32_0 = arith.constant 0 : i32
    %c0_i32_1 = arith.constant 0 : i32
    return %c0_i32, %c0_i32_0 : i32, i32
  }
  func.func @transform_9(%arg0: i32, %arg1: i32) -> (i32, i32, i32) {
    %c0_i32 = arith.constant 0 : i32
    %c0_i32_0 = arith.constant 0 : i32
    return %arg0, %arg1, %c0_i32 : i32, i32, i32
  }
}

module attributes {stable_mosaic.version = 11 : i64} {
  func.func @_fsm_conv1_kernel(%arg0: i32, %arg1: memref<1x4x64xbf16, #tpu.memory_space<vmem>>, %arg2: memref<64x32xbf16, #tpu.memory_space<vmem>>, %arg3: memref<1x32xf32, #tpu.memory_space<vmem>>, %arg4: memref<64x64xf32, #tpu.memory_space<vmem>>, %arg5: memref<1x64xf32, #tpu.memory_space<vmem>>, %arg6: memref<64x16xf32, #tpu.memory_space<vmem>>, %arg7: memref<1x16xf32, #tpu.memory_space<vmem>>, %arg8: memref<16x4xf32, #tpu.memory_space<vmem>>, %arg9: memref<1x4xf32, #tpu.memory_space<vmem>>, %arg10: memref<1x4x32xbf16, #tpu.memory_space<vmem>>, %arg11: memref<1x1x4xf32, #tpu.memory_space<vmem>>) attributes {dimension_semantics = [#tpu.dimension_semantics<parallel>], iteration_bounds = array<i64: 2>, scalar_prefetch = 0 : i64, scratch_operands = 0 : i64, tpu.core_type = #tpu.core_type<tc>, window_params = [{transform_indices = @transform_0, window_bounds = array<i64: 1, 4, 64>}, {pipeline_mode = #tpu.pipeline_mode<synchronous>, transform_indices = @transform_1, window_bounds = array<i64: 64, 32>}, {pipeline_mode = #tpu.pipeline_mode<synchronous>, transform_indices = @transform_2, window_bounds = array<i64: 1, 32>}, {pipeline_mode = #tpu.pipeline_mode<synchronous>, transform_indices = @transform_3, window_bounds = array<i64: 64, 64>}, {pipeline_mode = #tpu.pipeline_mode<synchronous>, transform_indices = @transform_4, window_bounds = array<i64: 1, 64>}, {pipeline_mode = #tpu.pipeline_mode<synchronous>, transform_indices = @transform_5, window_bounds = array<i64: 64, 16>}, {pipeline_mode = #tpu.pipeline_mode<synchronous>, transform_indices = @transform_6, window_bounds = array<i64: 1, 16>}, {pipeline_mode = #tpu.pipeline_mode<synchronous>, transform_indices = @transform_7, window_bounds = array<i64: 16, 4>}, {pipeline_mode = #tpu.pipeline_mode<synchronous>, transform_indices = @transform_8, window_bounds = array<i64: 1, 4>}, {transform_indices = @transform_9, window_bounds = array<i64: 1, 4, 32>}, {transform_indices = @transform_10, window_bounds = array<i64: 1, 1, 4>}]} {
    %c0 = arith.constant 0 : index
    %c0_0 = arith.constant 0 : index
    %c0_1 = arith.constant 0 : index
    %0 = vector.load %arg1[%c0, %c0_0, %c0_1] : memref<1x4x64xbf16, #tpu.memory_space<vmem>>, vector<1x4x64xbf16>
    %1 = vector.shape_cast %0 : vector<1x4x64xbf16> to vector<4x64xbf16>
    %2 = arith.extf %1 : vector<4x64xbf16> to vector<4x64xf32>
    %cst = arith.constant dense<0.000000e+00> : vector<64xf32>
    %3 = vector.multi_reduction <add>, %2, %cst [0] : vector<4x64xf32> to vector<64xf32>
    %4 = vector.shape_cast %3 : vector<64xf32> to vector<1x64xf32>
    %cst_2 = arith.constant 4.000000e+00 : f32
    %5 = vector.broadcast %cst_2 : f32 to vector<1x64xf32>
    %6 = arith.divf %4, %5 : vector<1x64xf32>
    %c0_3 = arith.constant 0 : index
    %c0_4 = arith.constant 0 : index
    %7 = vector.load %arg4[%c0_3, %c0_4] : memref<64x64xf32, #tpu.memory_space<vmem>>, vector<64x64xf32>
    %cst_5 = arith.constant dense<0.000000e+00> : vector<1x64xf32>
    %8 = tpu.matmul %6, %7, %cst_5 {dimension_numbers = #tpu.dot_dimension_numbers<[1], [0], [0], [1], [0, 0, 1, 1], [], []>} : vector<1x64xf32>, vector<64x64xf32>, vector<1x64xf32> -> vector<1x64xf32>
    %c0_6 = arith.constant 0 : index
    %c0_7 = arith.constant 0 : index
    %9 = vector.load %arg5[%c0_6, %c0_7] : memref<1x64xf32, #tpu.memory_space<vmem>>, vector<1x64xf32>
    %10 = arith.addf %8, %9 : vector<1x64xf32>
    %cst_8 = arith.constant 0.000000e+00 : f32
    %11 = vector.broadcast %cst_8 : f32 to vector<1x64xf32>
    %12 = arith.maximumf %10, %11 : vector<1x64xf32>
    %c0_9 = arith.constant 0 : index
    %c0_10 = arith.constant 0 : index
    %13 = vector.load %arg6[%c0_9, %c0_10] : memref<64x16xf32, #tpu.memory_space<vmem>>, vector<64x16xf32>
    %cst_11 = arith.constant dense<0.000000e+00> : vector<1x16xf32>
    %14 = tpu.matmul %12, %13, %cst_11 {dimension_numbers = #tpu.dot_dimension_numbers<[1], [0], [0], [1], [0, 0, 1, 1], [], []>} : vector<1x64xf32>, vector<64x16xf32>, vector<1x16xf32> -> vector<1x16xf32>
    %c0_12 = arith.constant 0 : index
    %c0_13 = arith.constant 0 : index
    %15 = vector.load %arg7[%c0_12, %c0_13] : memref<1x16xf32, #tpu.memory_space<vmem>>, vector<1x16xf32>
    %16 = arith.addf %14, %15 : vector<1x16xf32>
    %cst_14 = arith.constant 0.000000e+00 : f32
    %17 = vector.broadcast %cst_14 : f32 to vector<1x16xf32>
    %18 = arith.maximumf %16, %17 : vector<1x16xf32>
    %c0_15 = arith.constant 0 : index
    %c0_16 = arith.constant 0 : index
    %19 = vector.load %arg8[%c0_15, %c0_16] : memref<16x4xf32, #tpu.memory_space<vmem>>, vector<16x4xf32>
    %cst_17 = arith.constant dense<0.000000e+00> : vector<1x4xf32>
    %20 = tpu.matmul %18, %19, %cst_17 {dimension_numbers = #tpu.dot_dimension_numbers<[1], [0], [0], [1], [0, 0, 1, 1], [], []>} : vector<1x16xf32>, vector<16x4xf32>, vector<1x4xf32> -> vector<1x4xf32>
    %c0_18 = arith.constant 0 : index
    %c0_19 = arith.constant 0 : index
    %21 = vector.load %arg9[%c0_18, %c0_19] : memref<1x4xf32, #tpu.memory_space<vmem>>, vector<1x4xf32>
    %22 = arith.addf %20, %21 : vector<1x4xf32>
    %23 = arith.negf %22 : vector<1x4xf32>
    %24 = math.exp %23 : vector<1x4xf32>
    %cst_20 = arith.constant 1.000000e+00 : f32
    %25 = vector.broadcast %cst_20 : f32 to vector<1x4xf32>
    %26 = arith.addf %25, %24 : vector<1x4xf32>
    %27 = arith.divf %25, %26 : vector<1x4xf32>
    %c0_21 = arith.constant 0 : index
    %c0_22 = arith.constant 0 : index
    %c0_23 = arith.constant 0 : index
    %28 = vector.load %arg11[%c0_21, %c0_22, %c0_23] : memref<1x1x4xf32, #tpu.memory_space<vmem>>, vector<1x1x4xf32>
    %29 = vector.shape_cast %28 : vector<1x1x4xf32> to vector<1x4xf32>
    %30 = vector.shape_cast %27 : vector<1x4xf32> to vector<1x1x4xf32>
    tpu.vector_store %arg11[%c0_21, %c0_22, %c0_23], %30 {strides = array<i32>} : memref<1x1x4xf32, #tpu.memory_space<vmem>>, vector<1x1x4xf32>,
    %c0_24 = arith.constant 0 : index
    %c0_25 = arith.constant 0 : index
    %31 = vector.load %arg2[%c0_24, %c0_25] : memref<64x32xbf16, #tpu.memory_space<vmem>>, vector<64x32xbf16>
    %cst_26 = arith.constant dense<0.000000e+00> : vector<4x32xf32>
    %32 = tpu.matmul %1, %31, %cst_26 {dimension_numbers = #tpu.dot_dimension_numbers<[1], [0], [0], [1], [0, 0, 1, 1], [], []>} : vector<4x64xbf16>, vector<64x32xbf16>, vector<4x32xf32> -> vector<4x32xf32>
    %c0_27 = arith.constant 0 : index
    %c0_28 = arith.constant 0 : index
    %33 = vector.load %arg3[%c0_27, %c0_28] : memref<1x32xf32, #tpu.memory_space<vmem>>, vector<1x32xf32>
    %34 = vector.broadcast %33 : vector<1x32xf32> to vector<4x32xf32>
    %35 = arith.addf %32, %34 : vector<4x32xf32>
    %cst_29 = arith.constant 0.000000e+00 : f32
    %36 = vector.broadcast %cst_29 : f32 to vector<4x32xf32>
    %37 = arith.maximumf %35, %36 : vector<4x32xf32>
    %38 = arith.truncf %37 : vector<4x32xf32> to vector<4x32xbf16>
    %c0_30 = arith.constant 0 : index
    %c0_31 = arith.constant 0 : index
    %c0_32 = arith.constant 0 : index
    %39 = vector.load %arg10[%c0_30, %c0_31, %c0_32] : memref<1x4x32xbf16, #tpu.memory_space<vmem>>, vector<1x4x32xbf16>
    %40 = vector.shape_cast %39 : vector<1x4x32xbf16> to vector<4x32xbf16>
    %41 = vector.shape_cast %38 : vector<4x32xbf16> to vector<1x4x32xbf16>
    tpu.vector_store %arg10[%c0_30, %c0_31, %c0_32], %41 {strides = array<i32>} : memref<1x4x32xbf16, #tpu.memory_space<vmem>>, vector<1x4x32xbf16>,
    return
  }
  func.func @transform_0(%arg0: i32) -> (i32, i32, i32) {
    %c0_i32 = arith.constant 0 : i32
    %c0_i32_0 = arith.constant 0 : i32
    %c0_i32_1 = arith.constant 0 : i32
    return %arg0, %c0_i32, %c0_i32_0 : i32, i32, i32
  }
  func.func @transform_1(%arg0: i32) -> (i32, i32) {
    %c0_i32 = arith.constant 0 : i32
    %c0_i32_0 = arith.constant 0 : i32
    %c0_i32_1 = arith.constant 0 : i32
    return %c0_i32, %c0_i32_0 : i32, i32
  }
  func.func @transform_2(%arg0: i32) -> (i32, i32) {
    %c0_i32 = arith.constant 0 : i32
    %c0_i32_0 = arith.constant 0 : i32
    %c0_i32_1 = arith.constant 0 : i32
    return %c0_i32, %c0_i32_0 : i32, i32
  }
  func.func @transform_3(%arg0: i32) -> (i32, i32) {
    %c0_i32 = arith.constant 0 : i32
    %c0_i32_0 = arith.constant 0 : i32
    %c0_i32_1 = arith.constant 0 : i32
    return %c0_i32, %c0_i32_0 : i32, i32
  }
  func.func @transform_4(%arg0: i32) -> (i32, i32) {
    %c0_i32 = arith.constant 0 : i32
    %c0_i32_0 = arith.constant 0 : i32
    %c0_i32_1 = arith.constant 0 : i32
    return %c0_i32, %c0_i32_0 : i32, i32
  }
  func.func @transform_5(%arg0: i32) -> (i32, i32) {
    %c0_i32 = arith.constant 0 : i32
    %c0_i32_0 = arith.constant 0 : i32
    %c0_i32_1 = arith.constant 0 : i32
    return %c0_i32, %c0_i32_0 : i32, i32
  }
  func.func @transform_6(%arg0: i32) -> (i32, i32) {
    %c0_i32 = arith.constant 0 : i32
    %c0_i32_0 = arith.constant 0 : i32
    %c0_i32_1 = arith.constant 0 : i32
    return %c0_i32, %c0_i32_0 : i32, i32
  }
  func.func @transform_7(%arg0: i32) -> (i32, i32) {
    %c0_i32 = arith.constant 0 : i32
    %c0_i32_0 = arith.constant 0 : i32
    %c0_i32_1 = arith.constant 0 : i32
    return %c0_i32, %c0_i32_0 : i32, i32
  }
  func.func @transform_8(%arg0: i32) -> (i32, i32) {
    %c0_i32 = arith.constant 0 : i32
    %c0_i32_0 = arith.constant 0 : i32
    %c0_i32_1 = arith.constant 0 : i32
    return %c0_i32, %c0_i32_0 : i32, i32
  }
  func.func @transform_9(%arg0: i32) -> (i32, i32, i32) {
    %c0_i32 = arith.constant 0 : i32
    %c0_i32_0 = arith.constant 0 : i32
    %c0_i32_1 = arith.constant 0 : i32
    return %arg0, %c0_i32, %c0_i32_0 : i32, i32, i32
  }
  func.func @transform_10(%arg0: i32) -> (i32, i32, i32) {
    %c0_i32 = arith.constant 0 : i32
    %c0_i32_0 = arith.constant 0 : i32
    %c0_i32_1 = arith.constant 0 : i32
    return %arg0, %c0_i32, %c0_i32_0 : i32, i32, i32
  }
}

module attributes {stable_mosaic.version = 11 : i64} {
  func.func @_fsm_conv1_kernel(%arg0: i32, %arg1: memref<1x4x64xbf16, #tpu.memory_space<vmem>>, %arg2: memref<64x64xbf16, #tpu.memory_space<vmem>>, %arg3: memref<1x64xf32, #tpu.memory_space<vmem>>, %arg4: memref<64x64xf32, #tpu.memory_space<vmem>>, %arg5: memref<1x64xf32, #tpu.memory_space<vmem>>, %arg6: memref<64x16xf32, #tpu.memory_space<vmem>>, %arg7: memref<1x16xf32, #tpu.memory_space<vmem>>, %arg8: memref<16x4xf32, #tpu.memory_space<vmem>>, %arg9: memref<1x4xf32, #tpu.memory_space<vmem>>, %arg10: memref<1x4x64xbf16, #tpu.memory_space<vmem>>, %arg11: memref<1x1x4xf32, #tpu.memory_space<vmem>>) attributes {dimension_semantics = [#tpu.dimension_semantics<parallel>], iteration_bounds = array<i64: 2>, scalar_prefetch = 0 : i64, scratch_operands = 0 : i64, tpu.core_type = #tpu.core_type<tc>, window_params = [{transform_indices = @transform_0, window_bounds = array<i64: 1, 4, 64>}, {pipeline_mode = #tpu.pipeline_mode<synchronous>, transform_indices = @transform_1, window_bounds = array<i64: 64, 64>}, {pipeline_mode = #tpu.pipeline_mode<synchronous>, transform_indices = @transform_2, window_bounds = array<i64: 1, 64>}, {pipeline_mode = #tpu.pipeline_mode<synchronous>, transform_indices = @transform_3, window_bounds = array<i64: 64, 64>}, {pipeline_mode = #tpu.pipeline_mode<synchronous>, transform_indices = @transform_4, window_bounds = array<i64: 1, 64>}, {pipeline_mode = #tpu.pipeline_mode<synchronous>, transform_indices = @transform_5, window_bounds = array<i64: 64, 16>}, {pipeline_mode = #tpu.pipeline_mode<synchronous>, transform_indices = @transform_6, window_bounds = array<i64: 1, 16>}, {pipeline_mode = #tpu.pipeline_mode<synchronous>, transform_indices = @transform_7, window_bounds = array<i64: 16, 4>}, {pipeline_mode = #tpu.pipeline_mode<synchronous>, transform_indices = @transform_8, window_bounds = array<i64: 1, 4>}, {transform_indices = @transform_9, window_bounds = array<i64: 1, 4, 64>}, {transform_indices = @transform_10, window_bounds = array<i64: 1, 1, 4>}]} {
    %c0 = arith.constant 0 : index
    %c0_0 = arith.constant 0 : index
    %c0_1 = arith.constant 0 : index
    %0 = vector.load %arg1[%c0, %c0_0, %c0_1] : memref<1x4x64xbf16, #tpu.memory_space<vmem>>, vector<1x4x64xbf16>
    %1 = vector.shape_cast %0 : vector<1x4x64xbf16> to vector<4x64xbf16>
    %2 = arith.extf %1 : vector<4x64xbf16> to vector<4x64xf32>
    %cst = arith.constant dense<0.000000e+00> : vector<64xf32>
    %3 = vector.multi_reduction <add>, %2, %cst [0] : vector<4x64xf32> to vector<64xf32>
    %4 = vector.shape_cast %3 : vector<64xf32> to vector<1x64xf32>
    %cst_2 = arith.constant 4.000000e+00 : f32
    %5 = vector.broadcast %cst_2 : f32 to vector<1x64xf32>
    %6 = arith.divf %4, %5 : vector<1x64xf32>
    %c0_3 = arith.constant 0 : index
    %c0_4 = arith.constant 0 : index
    %7 = vector.load %arg4[%c0_3, %c0_4] : memref<64x64xf32, #tpu.memory_space<vmem>>, vector<64x64xf32>
    %cst_5 = arith.constant dense<0.000000e+00> : vector<1x64xf32>
    %8 = tpu.matmul %6, %7, %cst_5 {dimension_numbers = #tpu.dot_dimension_numbers<[1], [0], [0], [1], [0, 0, 1, 1], [], []>} : vector<1x64xf32>, vector<64x64xf32>, vector<1x64xf32> -> vector<1x64xf32>
    %c0_6 = arith.constant 0 : index
    %c0_7 = arith.constant 0 : index
    %9 = vector.load %arg5[%c0_6, %c0_7] : memref<1x64xf32, #tpu.memory_space<vmem>>, vector<1x64xf32>
    %10 = arith.addf %8, %9 : vector<1x64xf32>
    %cst_8 = arith.constant 0.000000e+00 : f32
    %11 = vector.broadcast %cst_8 : f32 to vector<1x64xf32>
    %12 = arith.maximumf %10, %11 : vector<1x64xf32>
    %c0_9 = arith.constant 0 : index
    %c0_10 = arith.constant 0 : index
    %13 = vector.load %arg6[%c0_9, %c0_10] : memref<64x16xf32, #tpu.memory_space<vmem>>, vector<64x16xf32>
    %cst_11 = arith.constant dense<0.000000e+00> : vector<1x16xf32>
    %14 = tpu.matmul %12, %13, %cst_11 {dimension_numbers = #tpu.dot_dimension_numbers<[1], [0], [0], [1], [0, 0, 1, 1], [], []>} : vector<1x64xf32>, vector<64x16xf32>, vector<1x16xf32> -> vector<1x16xf32>
    %c0_12 = arith.constant 0 : index
    %c0_13 = arith.constant 0 : index
    %15 = vector.load %arg7[%c0_12, %c0_13] : memref<1x16xf32, #tpu.memory_space<vmem>>, vector<1x16xf32>
    %16 = arith.addf %14, %15 : vector<1x16xf32>
    %cst_14 = arith.constant 0.000000e+00 : f32
    %17 = vector.broadcast %cst_14 : f32 to vector<1x16xf32>
    %18 = arith.maximumf %16, %17 : vector<1x16xf32>
    %c0_15 = arith.constant 0 : index
    %c0_16 = arith.constant 0 : index
    %19 = vector.load %arg8[%c0_15, %c0_16] : memref<16x4xf32, #tpu.memory_space<vmem>>, vector<16x4xf32>
    %cst_17 = arith.constant dense<0.000000e+00> : vector<1x4xf32>
    %20 = tpu.matmul %18, %19, %cst_17 {dimension_numbers = #tpu.dot_dimension_numbers<[1], [0], [0], [1], [0, 0, 1, 1], [], []>} : vector<1x16xf32>, vector<16x4xf32>, vector<1x4xf32> -> vector<1x4xf32>
    %c0_18 = arith.constant 0 : index
    %c0_19 = arith.constant 0 : index
    %21 = vector.load %arg9[%c0_18, %c0_19] : memref<1x4xf32, #tpu.memory_space<vmem>>, vector<1x4xf32>
    %22 = arith.addf %20, %21 : vector<1x4xf32>
    %23 = arith.negf %22 : vector<1x4xf32>
    %24 = math.exp %23 : vector<1x4xf32>
    %cst_20 = arith.constant 1.000000e+00 : f32
    %25 = vector.broadcast %cst_20 : f32 to vector<1x4xf32>
    %26 = arith.addf %25, %24 : vector<1x4xf32>
    %27 = arith.divf %25, %26 : vector<1x4xf32>
    %c0_21 = arith.constant 0 : index
    %c0_22 = arith.constant 0 : index
    %c0_23 = arith.constant 0 : index
    %28 = vector.load %arg11[%c0_21, %c0_22, %c0_23] : memref<1x1x4xf32, #tpu.memory_space<vmem>>, vector<1x1x4xf32>
    %29 = vector.shape_cast %28 : vector<1x1x4xf32> to vector<1x4xf32>
    %30 = vector.shape_cast %27 : vector<1x4xf32> to vector<1x1x4xf32>
    tpu.vector_store %arg11[%c0_21, %c0_22, %c0_23], %30 {strides = array<i32>} : memref<1x1x4xf32, #tpu.memory_space<vmem>>, vector<1x1x4xf32>,
    %c0_24 = arith.constant 0 : index
    %c0_25 = arith.constant 0 : index
    %31 = vector.load %arg2[%c0_24, %c0_25] : memref<64x64xbf16, #tpu.memory_space<vmem>>, vector<64x64xbf16>
    %cst_26 = arith.constant dense<0.000000e+00> : vector<4x64xf32>
    %32 = tpu.matmul %1, %31, %cst_26 {dimension_numbers = #tpu.dot_dimension_numbers<[1], [0], [0], [1], [0, 0, 1, 1], [], []>} : vector<4x64xbf16>, vector<64x64xbf16>, vector<4x64xf32> -> vector<4x64xf32>
    %c0_27 = arith.constant 0 : index
    %c0_28 = arith.constant 0 : index
    %33 = vector.load %arg3[%c0_27, %c0_28] : memref<1x64xf32, #tpu.memory_space<vmem>>, vector<1x64xf32>
    %34 = vector.broadcast %33 : vector<1x64xf32> to vector<4x64xf32>
    %35 = arith.addf %32, %34 : vector<4x64xf32>
    %cst_29 = arith.constant 0.000000e+00 : f32
    %36 = vector.broadcast %cst_29 : f32 to vector<4x64xf32>
    %37 = arith.maximumf %35, %36 : vector<4x64xf32>
    %38 = arith.truncf %37 : vector<4x64xf32> to vector<4x64xbf16>
    %c0_30 = arith.constant 0 : index
    %c0_31 = arith.constant 0 : index
    %c0_32 = arith.constant 0 : index
    %39 = vector.load %arg10[%c0_30, %c0_31, %c0_32] : memref<1x4x64xbf16, #tpu.memory_space<vmem>>, vector<1x4x64xbf16>
    %40 = vector.shape_cast %39 : vector<1x4x64xbf16> to vector<4x64xbf16>
    %41 = vector.shape_cast %38 : vector<4x64xbf16> to vector<1x4x64xbf16>
    tpu.vector_store %arg10[%c0_30, %c0_31, %c0_32], %41 {strides = array<i32>} : memref<1x4x64xbf16, #tpu.memory_space<vmem>>, vector<1x4x64xbf16>,
    return
  }
  func.func @transform_0(%arg0: i32) -> (i32, i32, i32) {
    %c0_i32 = arith.constant 0 : i32
    %c0_i32_0 = arith.constant 0 : i32
    %c0_i32_1 = arith.constant 0 : i32
    return %arg0, %c0_i32, %c0_i32_0 : i32, i32, i32
  }
  func.func @transform_1(%arg0: i32) -> (i32, i32) {
    %c0_i32 = arith.constant 0 : i32
    %c0_i32_0 = arith.constant 0 : i32
    %c0_i32_1 = arith.constant 0 : i32
    return %c0_i32, %c0_i32_0 : i32, i32
  }
  func.func @transform_2(%arg0: i32) -> (i32, i32) {
    %c0_i32 = arith.constant 0 : i32
    %c0_i32_0 = arith.constant 0 : i32
    %c0_i32_1 = arith.constant 0 : i32
    return %c0_i32, %c0_i32_0 : i32, i32
  }
  func.func @transform_3(%arg0: i32) -> (i32, i32) {
    %c0_i32 = arith.constant 0 : i32
    %c0_i32_0 = arith.constant 0 : i32
    %c0_i32_1 = arith.constant 0 : i32
    return %c0_i32, %c0_i32_0 : i32, i32
  }
  func.func @transform_4(%arg0: i32) -> (i32, i32) {
    %c0_i32 = arith.constant 0 : i32
    %c0_i32_0 = arith.constant 0 : i32
    %c0_i32_1 = arith.constant 0 : i32
    return %c0_i32, %c0_i32_0 : i32, i32
  }
  func.func @transform_5(%arg0: i32) -> (i32, i32) {
    %c0_i32 = arith.constant 0 : i32
    %c0_i32_0 = arith.constant 0 : i32
    %c0_i32_1 = arith.constant 0 : i32
    return %c0_i32, %c0_i32_0 : i32, i32
  }
  func.func @transform_6(%arg0: i32) -> (i32, i32) {
    %c0_i32 = arith.constant 0 : i32
    %c0_i32_0 = arith.constant 0 : i32
    %c0_i32_1 = arith.constant 0 : i32
    return %c0_i32, %c0_i32_0 : i32, i32
  }
  func.func @transform_7(%arg0: i32) -> (i32, i32) {
    %c0_i32 = arith.constant 0 : i32
    %c0_i32_0 = arith.constant 0 : i32
    %c0_i32_1 = arith.constant 0 : i32
    return %c0_i32, %c0_i32_0 : i32, i32
  }
  func.func @transform_8(%arg0: i32) -> (i32, i32) {
    %c0_i32 = arith.constant 0 : i32
    %c0_i32_0 = arith.constant 0 : i32
    %c0_i32_1 = arith.constant 0 : i32
    return %c0_i32, %c0_i32_0 : i32, i32
  }
  func.func @transform_9(%arg0: i32) -> (i32, i32, i32) {
    %c0_i32 = arith.constant 0 : i32
    %c0_i32_0 = arith.constant 0 : i32
    %c0_i32_1 = arith.constant 0 : i32
    return %arg0, %c0_i32, %c0_i32_0 : i32, i32, i32
  }
  func.func @transform_10(%arg0: i32) -> (i32, i32, i32) {
    %c0_i32 = arith.constant 0 : i32
    %c0_i32_0 = arith.constant 0 : i32
    %c0_i32_1 = arith.constant 0 : i32
    return %arg0, %c0_i32, %c0_i32_0 : i32, i32, i32
  }
}

module attributes {stable_mosaic.version = 11 : i64} {
  func.func @_block_tail_kernel(%arg0: i32, %arg1: i32, %arg2: memref<1x4x288xbf16, #tpu.memory_space<vmem>>, %arg3: memref<288x32xbf16, #tpu.memory_space<vmem>>, %arg4: memref<1x32xf32, #tpu.memory_space<vmem>>, %arg5: memref<1x1x32xf32, #tpu.memory_space<vmem>>, %arg6: memref<32x64xbf16, #tpu.memory_space<vmem>>, %arg7: memref<1x64xf32, #tpu.memory_space<vmem>>, %arg8: memref<1x4x64xbf16, #tpu.memory_space<vmem>>, %arg9: memref<1x4x64xbf16, #tpu.memory_space<vmem>>) attributes {dimension_semantics = [#tpu.dimension_semantics<parallel>, #tpu.dimension_semantics<parallel>], iteration_bounds = array<i64: 2, 1>, scalar_prefetch = 0 : i64, scratch_operands = 0 : i64, tpu.core_type = #tpu.core_type<tc>, window_params = [{transform_indices = @transform_0, window_bounds = array<i64: 1, 4, 288>}, {pipeline_mode = #tpu.pipeline_mode<synchronous>, transform_indices = @transform_1, window_bounds = array<i64: 288, 32>}, {pipeline_mode = #tpu.pipeline_mode<synchronous>, transform_indices = @transform_2, window_bounds = array<i64: 1, 32>}, {transform_indices = @transform_3, window_bounds = array<i64: 1, 1, 32>}, {pipeline_mode = #tpu.pipeline_mode<synchronous>, transform_indices = @transform_4, window_bounds = array<i64: 32, 64>}, {pipeline_mode = #tpu.pipeline_mode<synchronous>, transform_indices = @transform_5, window_bounds = array<i64: 1, 64>}, {transform_indices = @transform_6, window_bounds = array<i64: 1, 4, 64>}, {transform_indices = @transform_7, window_bounds = array<i64: 1, 4, 64>}]} {
    %c0 = arith.constant 0 : index
    %c0_0 = arith.constant 0 : index
    %c0_1 = arith.constant 0 : index
    %0 = vector.load %arg2[%c0, %c0_0, %c0_1] : memref<1x4x288xbf16, #tpu.memory_space<vmem>>, vector<1x4x288xbf16>
    %1 = vector.shape_cast %0 : vector<1x4x288xbf16> to vector<4x288xbf16>
    %c0_2 = arith.constant 0 : index
    %c0_3 = arith.constant 0 : index
    %2 = vector.load %arg3[%c0_2, %c0_3] : memref<288x32xbf16, #tpu.memory_space<vmem>>, vector<288x32xbf16>
    %cst = arith.constant dense<0.000000e+00> : vector<4x32xf32>
    %3 = tpu.matmul %1, %2, %cst {dimension_numbers = #tpu.dot_dimension_numbers<[1], [0], [0], [1], [0, 0, 1, 1], [], []>} : vector<4x288xbf16>, vector<288x32xbf16>, vector<4x32xf32> -> vector<4x32xf32>
    %c0_4 = arith.constant 0 : index
    %c0_5 = arith.constant 0 : index
    %4 = vector.load %arg4[%c0_4, %c0_5] : memref<1x32xf32, #tpu.memory_space<vmem>>, vector<1x32xf32>
    %5 = vector.broadcast %4 : vector<1x32xf32> to vector<4x32xf32>
    %6 = arith.addf %3, %5 : vector<4x32xf32>
    %cst_6 = arith.constant 0.000000e+00 : f32
    %7 = vector.broadcast %cst_6 : f32 to vector<4x32xf32>
    %8 = arith.maximumf %6, %7 : vector<4x32xf32>
    %c0_7 = arith.constant 0 : index
    %c0_8 = arith.constant 0 : index
    %c0_9 = arith.constant 0 : index
    %9 = vector.load %arg5[%c0_7, %c0_8, %c0_9] : memref<1x1x32xf32, #tpu.memory_space<vmem>>, vector<1x1x32xf32>
    %10 = vector.shape_cast %9 : vector<1x1x32xf32> to vector<1x32xf32>
    %11 = vector.broadcast %10 : vector<1x32xf32> to vector<4x32xf32>
    %12 = arith.mulf %8, %11 : vector<4x32xf32>
    %13 = arith.truncf %12 : vector<4x32xf32> to vector<4x32xbf16>
    %c0_10 = arith.constant 0 : index
    %c0_11 = arith.constant 0 : index
    %14 = vector.load %arg6[%c0_10, %c0_11] : memref<32x64xbf16, #tpu.memory_space<vmem>>, vector<32x64xbf16>
    %cst_12 = arith.constant dense<0.000000e+00> : vector<4x64xf32>
    %15 = tpu.matmul %13, %14, %cst_12 {dimension_numbers = #tpu.dot_dimension_numbers<[1], [0], [0], [1], [0, 0, 1, 1], [], []>} : vector<4x32xbf16>, vector<32x64xbf16>, vector<4x64xf32> -> vector<4x64xf32>
    %c0_13 = arith.constant 0 : index
    %c0_14 = arith.constant 0 : index
    %16 = vector.load %arg7[%c0_13, %c0_14] : memref<1x64xf32, #tpu.memory_space<vmem>>, vector<1x64xf32>
    %17 = vector.broadcast %16 : vector<1x64xf32> to vector<4x64xf32>
    %18 = arith.addf %15, %17 : vector<4x64xf32>
    %cst_15 = arith.constant 0.000000e+00 : f32
    %19 = vector.broadcast %cst_15 : f32 to vector<4x64xf32>
    %20 = arith.maximumf %18, %19 : vector<4x64xf32>
    %c0_16 = arith.constant 0 : index
    %c0_17 = arith.constant 0 : index
    %c0_18 = arith.constant 0 : index
    %21 = vector.load %arg8[%c0_16, %c0_17, %c0_18] : memref<1x4x64xbf16, #tpu.memory_space<vmem>>, vector<1x4x64xbf16>
    %22 = vector.shape_cast %21 : vector<1x4x64xbf16> to vector<4x64xbf16>
    %23 = arith.extf %22 : vector<4x64xbf16> to vector<4x64xf32>
    %24 = arith.addf %23, %20 : vector<4x64xf32>
    %cst_19 = arith.constant 0.000000e+00 : f32
    %25 = vector.broadcast %cst_19 : f32 to vector<4x64xf32>
    %26 = arith.maximumf %24, %25 : vector<4x64xf32>
    %27 = arith.truncf %26 : vector<4x64xf32> to vector<4x64xbf16>
    %c0_20 = arith.constant 0 : index
    %c0_21 = arith.constant 0 : index
    %c0_22 = arith.constant 0 : index
    %28 = vector.load %arg9[%c0_20, %c0_21, %c0_22] : memref<1x4x64xbf16, #tpu.memory_space<vmem>>, vector<1x4x64xbf16>
    %29 = vector.shape_cast %28 : vector<1x4x64xbf16> to vector<4x64xbf16>
    %30 = vector.shape_cast %27 : vector<4x64xbf16> to vector<1x4x64xbf16>
    tpu.vector_store %arg9[%c0_20, %c0_21, %c0_22], %30 {strides = array<i32>} : memref<1x4x64xbf16, #tpu.memory_space<vmem>>, vector<1x4x64xbf16>,
    return
  }
  func.func @transform_0(%arg0: i32, %arg1: i32) -> (i32, i32, i32) {
    %c0_i32 = arith.constant 0 : i32
    %c0_i32_0 = arith.constant 0 : i32
    return %arg0, %arg1, %c0_i32 : i32, i32, i32
  }
  func.func @transform_1(%arg0: i32, %arg1: i32) -> (i32, i32) {
    %c0_i32 = arith.constant 0 : i32
    %c0_i32_0 = arith.constant 0 : i32
    %c0_i32_1 = arith.constant 0 : i32
    return %c0_i32, %c0_i32_0 : i32, i32
  }
  func.func @transform_2(%arg0: i32, %arg1: i32) -> (i32, i32) {
    %c0_i32 = arith.constant 0 : i32
    %c0_i32_0 = arith.constant 0 : i32
    %c0_i32_1 = arith.constant 0 : i32
    return %c0_i32, %c0_i32_0 : i32, i32
  }
  func.func @transform_3(%arg0: i32, %arg1: i32) -> (i32, i32, i32) {
    %c0_i32 = arith.constant 0 : i32
    %c0_i32_0 = arith.constant 0 : i32
    %c0_i32_1 = arith.constant 0 : i32
    return %arg0, %c0_i32, %c0_i32_0 : i32, i32, i32
  }
  func.func @transform_4(%arg0: i32, %arg1: i32) -> (i32, i32) {
    %c0_i32 = arith.constant 0 : i32
    %c0_i32_0 = arith.constant 0 : i32
    %c0_i32_1 = arith.constant 0 : i32
    return %c0_i32, %c0_i32_0 : i32, i32
  }
  func.func @transform_5(%arg0: i32, %arg1: i32) -> (i32, i32) {
    %c0_i32 = arith.constant 0 : i32
    %c0_i32_0 = arith.constant 0 : i32
    %c0_i32_1 = arith.constant 0 : i32
    return %c0_i32, %c0_i32_0 : i32, i32
  }
  func.func @transform_6(%arg0: i32, %arg1: i32) -> (i32, i32, i32) {
    %c0_i32 = arith.constant 0 : i32
    %c0_i32_0 = arith.constant 0 : i32
    return %arg0, %arg1, %c0_i32 : i32, i32, i32
  }
  func.func @transform_7(%arg0: i32, %arg1: i32) -> (i32, i32, i32) {
    %c0_i32 = arith.constant 0 : i32
    %c0_i32_0 = arith.constant 0 : i32
    return %arg0, %arg1, %c0_i32 : i32, i32, i32
  }
}

module attributes {stable_mosaic.version = 11 : i64} {
  func.func @_block_tail_down_kernel(%arg0: i32, %arg1: i32, %arg2: memref<1x1x576xbf16, #tpu.memory_space<vmem>>, %arg3: memref<576x64xbf16, #tpu.memory_space<vmem>>, %arg4: memref<1x64xf32, #tpu.memory_space<vmem>>, %arg5: memref<1x1x64xf32, #tpu.memory_space<vmem>>, %arg6: memref<64x128xbf16, #tpu.memory_space<vmem>>, %arg7: memref<1x128xf32, #tpu.memory_space<vmem>>, %arg8: memref<1x1x64xbf16, #tpu.memory_space<vmem>>, %arg9: memref<64x128xbf16, #tpu.memory_space<vmem>>, %arg10: memref<1x128xf32, #tpu.memory_space<vmem>>, %arg11: memref<1x1x128xbf16, #tpu.memory_space<vmem>>) attributes {dimension_semantics = [#tpu.dimension_semantics<parallel>, #tpu.dimension_semantics<parallel>], iteration_bounds = array<i64: 2, 1>, scalar_prefetch = 0 : i64, scratch_operands = 0 : i64, tpu.core_type = #tpu.core_type<tc>, window_params = [{transform_indices = @transform_0, window_bounds = array<i64: 1, 1, 576>}, {pipeline_mode = #tpu.pipeline_mode<synchronous>, transform_indices = @transform_1, window_bounds = array<i64: 576, 64>}, {pipeline_mode = #tpu.pipeline_mode<synchronous>, transform_indices = @transform_2, window_bounds = array<i64: 1, 64>}, {transform_indices = @transform_3, window_bounds = array<i64: 1, 1, 64>}, {pipeline_mode = #tpu.pipeline_mode<synchronous>, transform_indices = @transform_4, window_bounds = array<i64: 64, 128>}, {pipeline_mode = #tpu.pipeline_mode<synchronous>, transform_indices = @transform_5, window_bounds = array<i64: 1, 128>}, {transform_indices = @transform_6, window_bounds = array<i64: 1, 1, 64>}, {pipeline_mode = #tpu.pipeline_mode<synchronous>, transform_indices = @transform_7, window_bounds = array<i64: 64, 128>}, {pipeline_mode = #tpu.pipeline_mode<synchronous>, transform_indices = @transform_8, window_bounds = array<i64: 1, 128>}, {transform_indices = @transform_9, window_bounds = array<i64: 1, 1, 128>}]} {
    %c0 = arith.constant 0 : index
    %c0_0 = arith.constant 0 : index
    %c0_1 = arith.constant 0 : index
    %0 = vector.load %arg2[%c0, %c0_0, %c0_1] : memref<1x1x576xbf16, #tpu.memory_space<vmem>>, vector<1x1x576xbf16>
    %1 = vector.shape_cast %0 : vector<1x1x576xbf16> to vector<1x576xbf16>
    %c0_2 = arith.constant 0 : index
    %c0_3 = arith.constant 0 : index
    %2 = vector.load %arg3[%c0_2, %c0_3] : memref<576x64xbf16, #tpu.memory_space<vmem>>, vector<576x64xbf16>
    %cst = arith.constant dense<0.000000e+00> : vector<1x64xf32>
    %3 = tpu.matmul %1, %2, %cst {dimension_numbers = #tpu.dot_dimension_numbers<[1], [0], [0], [1], [0, 0, 1, 1], [], []>} : vector<1x576xbf16>, vector<576x64xbf16>, vector<1x64xf32> -> vector<1x64xf32>
    %c0_4 = arith.constant 0 : index
    %c0_5 = arith.constant 0 : index
    %4 = vector.load %arg4[%c0_4, %c0_5] : memref<1x64xf32, #tpu.memory_space<vmem>>, vector<1x64xf32>
    %5 = arith.addf %3, %4 : vector<1x64xf32>
    %cst_6 = arith.constant 0.000000e+00 : f32
    %6 = vector.broadcast %cst_6 : f32 to vector<1x64xf32>
    %7 = arith.maximumf %5, %6 : vector<1x64xf32>
    %c0_7 = arith.constant 0 : index
    %c0_8 = arith.constant 0 : index
    %c0_9 = arith.constant 0 : index
    %8 = vector.load %arg5[%c0_7, %c0_8, %c0_9] : memref<1x1x64xf32, #tpu.memory_space<vmem>>, vector<1x1x64xf32>
    %9 = vector.shape_cast %8 : vector<1x1x64xf32> to vector<1x64xf32>
    %10 = arith.mulf %7, %9 : vector<1x64xf32>
    %11 = arith.truncf %10 : vector<1x64xf32> to vector<1x64xbf16>
    %c0_10 = arith.constant 0 : index
    %c0_11 = arith.constant 0 : index
    %12 = vector.load %arg6[%c0_10, %c0_11] : memref<64x128xbf16, #tpu.memory_space<vmem>>, vector<64x128xbf16>
    %cst_12 = arith.constant dense<0.000000e+00> : vector<1x128xf32>
    %13 = tpu.matmul %11, %12, %cst_12 {dimension_numbers = #tpu.dot_dimension_numbers<[1], [0], [0], [1], [0, 0, 1, 1], [], []>} : vector<1x64xbf16>, vector<64x128xbf16>, vector<1x128xf32> -> vector<1x128xf32>
    %c0_13 = arith.constant 0 : index
    %c0_14 = arith.constant 0 : index
    %14 = vector.load %arg7[%c0_13, %c0_14] : memref<1x128xf32, #tpu.memory_space<vmem>>, vector<1x128xf32>
    %15 = arith.addf %13, %14 : vector<1x128xf32>
    %cst_15 = arith.constant 0.000000e+00 : f32
    %16 = vector.broadcast %cst_15 : f32 to vector<1x128xf32>
    %17 = arith.maximumf %15, %16 : vector<1x128xf32>
    %c0_16 = arith.constant 0 : index
    %c0_17 = arith.constant 0 : index
    %c0_18 = arith.constant 0 : index
    %18 = vector.load %arg8[%c0_16, %c0_17, %c0_18] : memref<1x1x64xbf16, #tpu.memory_space<vmem>>, vector<1x1x64xbf16>
    %19 = vector.shape_cast %18 : vector<1x1x64xbf16> to vector<1x64xbf16>
    %c0_19 = arith.constant 0 : index
    %c0_20 = arith.constant 0 : index
    %20 = vector.load %arg9[%c0_19, %c0_20] : memref<64x128xbf16, #tpu.memory_space<vmem>>, vector<64x128xbf16>
    %cst_21 = arith.constant dense<0.000000e+00> : vector<1x128xf32>
    %21 = tpu.matmul %19, %20, %cst_21 {dimension_numbers = #tpu.dot_dimension_numbers<[1], [0], [0], [1], [0, 0, 1, 1], [], []>} : vector<1x64xbf16>, vector<64x128xbf16>, vector<1x128xf32> -> vector<1x128xf32>
    %c0_22 = arith.constant 0 : index
    %c0_23 = arith.constant 0 : index
    %22 = vector.load %arg10[%c0_22, %c0_23] : memref<1x128xf32, #tpu.memory_space<vmem>>, vector<1x128xf32>
    %23 = arith.addf %21, %22 : vector<1x128xf32>
    %24 = arith.addf %23, %17 : vector<1x128xf32>
    %cst_24 = arith.constant 0.000000e+00 : f32
    %25 = vector.broadcast %cst_24 : f32 to vector<1x128xf32>
    %26 = arith.maximumf %24, %25 : vector<1x128xf32>
    %27 = arith.truncf %26 : vector<1x128xf32> to vector<1x128xbf16>
    %c0_25 = arith.constant 0 : index
    %c0_26 = arith.constant 0 : index
    %c0_27 = arith.constant 0 : index
    %28 = vector.load %arg11[%c0_25, %c0_26, %c0_27] : memref<1x1x128xbf16, #tpu.memory_space<vmem>>, vector<1x1x128xbf16>
    %29 = vector.shape_cast %28 : vector<1x1x128xbf16> to vector<1x128xbf16>
    %30 = vector.shape_cast %27 : vector<1x128xbf16> to vector<1x1x128xbf16>
    tpu.vector_store %arg11[%c0_25, %c0_26, %c0_27], %30 {strides = array<i32>} : memref<1x1x128xbf16, #tpu.memory_space<vmem>>, vector<1x1x128xbf16>,
    return
  }
  func.func @transform_0(%arg0: i32, %arg1: i32) -> (i32, i32, i32) {
    %c0_i32 = arith.constant 0 : i32
    %c0_i32_0 = arith.constant 0 : i32
    return %arg0, %arg1, %c0_i32 : i32, i32, i32
  }
  func.func @transform_1(%arg0: i32, %arg1: i32) -> (i32, i32) {
    %c0_i32 = arith.constant 0 : i32
    %c0_i32_0 = arith.constant 0 : i32
    %c0_i32_1 = arith.constant 0 : i32
    return %c0_i32, %c0_i32_0 : i32, i32
  }
  func.func @transform_2(%arg0: i32, %arg1: i32) -> (i32, i32) {
    %c0_i32 = arith.constant 0 : i32
    %c0_i32_0 = arith.constant 0 : i32
    %c0_i32_1 = arith.constant 0 : i32
    return %c0_i32, %c0_i32_0 : i32, i32
  }
  func.func @transform_3(%arg0: i32, %arg1: i32) -> (i32, i32, i32) {
    %c0_i32 = arith.constant 0 : i32
    %c0_i32_0 = arith.constant 0 : i32
    %c0_i32_1 = arith.constant 0 : i32
    return %arg0, %c0_i32, %c0_i32_0 : i32, i32, i32
  }
  func.func @transform_4(%arg0: i32, %arg1: i32) -> (i32, i32) {
    %c0_i32 = arith.constant 0 : i32
    %c0_i32_0 = arith.constant 0 : i32
    %c0_i32_1 = arith.constant 0 : i32
    return %c0_i32, %c0_i32_0 : i32, i32
  }
  func.func @transform_5(%arg0: i32, %arg1: i32) -> (i32, i32) {
    %c0_i32 = arith.constant 0 : i32
    %c0_i32_0 = arith.constant 0 : i32
    %c0_i32_1 = arith.constant 0 : i32
    return %c0_i32, %c0_i32_0 : i32, i32
  }
  func.func @transform_6(%arg0: i32, %arg1: i32) -> (i32, i32, i32) {
    %c0_i32 = arith.constant 0 : i32
    %c0_i32_0 = arith.constant 0 : i32
    return %arg0, %arg1, %c0_i32 : i32, i32, i32
  }
  func.func @transform_7(%arg0: i32, %arg1: i32) -> (i32, i32) {
    %c0_i32 = arith.constant 0 : i32
    %c0_i32_0 = arith.constant 0 : i32
    %c0_i32_1 = arith.constant 0 : i32
    return %c0_i32, %c0_i32_0 : i32, i32
  }
  func.func @transform_8(%arg0: i32, %arg1: i32) -> (i32, i32) {
    %c0_i32 = arith.constant 0 : i32
    %c0_i32_0 = arith.constant 0 : i32
    %c0_i32_1 = arith.constant 0 : i32
    return %c0_i32, %c0_i32_0 : i32, i32
  }
  func.func @transform_9(%arg0: i32, %arg1: i32) -> (i32, i32, i32) {
    %c0_i32 = arith.constant 0 : i32
    %c0_i32_0 = arith.constant 0 : i32
    return %arg0, %arg1, %c0_i32 : i32, i32, i32
  }
}

module attributes {stable_mosaic.version = 11 : i64} {
  func.func @_fsm_conv1_kernel(%arg0: i32, %arg1: memref<1x1x128xbf16, #tpu.memory_space<vmem>>, %arg2: memref<128x64xbf16, #tpu.memory_space<vmem>>, %arg3: memref<1x64xf32, #tpu.memory_space<vmem>>, %arg4: memref<128x64xf32, #tpu.memory_space<vmem>>, %arg5: memref<1x64xf32, #tpu.memory_space<vmem>>, %arg6: memref<64x16xf32, #tpu.memory_space<vmem>>, %arg7: memref<1x16xf32, #tpu.memory_space<vmem>>, %arg8: memref<16x4xf32, #tpu.memory_space<vmem>>, %arg9: memref<1x4xf32, #tpu.memory_space<vmem>>, %arg10: memref<1x1x64xbf16, #tpu.memory_space<vmem>>, %arg11: memref<1x1x4xf32, #tpu.memory_space<vmem>>) attributes {dimension_semantics = [#tpu.dimension_semantics<parallel>], iteration_bounds = array<i64: 2>, scalar_prefetch = 0 : i64, scratch_operands = 0 : i64, tpu.core_type = #tpu.core_type<tc>, window_params = [{transform_indices = @transform_0, window_bounds = array<i64: 1, 1, 128>}, {pipeline_mode = #tpu.pipeline_mode<synchronous>, transform_indices = @transform_1, window_bounds = array<i64: 128, 64>}, {pipeline_mode = #tpu.pipeline_mode<synchronous>, transform_indices = @transform_2, window_bounds = array<i64: 1, 64>}, {pipeline_mode = #tpu.pipeline_mode<synchronous>, transform_indices = @transform_3, window_bounds = array<i64: 128, 64>}, {pipeline_mode = #tpu.pipeline_mode<synchronous>, transform_indices = @transform_4, window_bounds = array<i64: 1, 64>}, {pipeline_mode = #tpu.pipeline_mode<synchronous>, transform_indices = @transform_5, window_bounds = array<i64: 64, 16>}, {pipeline_mode = #tpu.pipeline_mode<synchronous>, transform_indices = @transform_6, window_bounds = array<i64: 1, 16>}, {pipeline_mode = #tpu.pipeline_mode<synchronous>, transform_indices = @transform_7, window_bounds = array<i64: 16, 4>}, {pipeline_mode = #tpu.pipeline_mode<synchronous>, transform_indices = @transform_8, window_bounds = array<i64: 1, 4>}, {transform_indices = @transform_9, window_bounds = array<i64: 1, 1, 64>}, {transform_indices = @transform_10, window_bounds = array<i64: 1, 1, 4>}]} {
    %c0 = arith.constant 0 : index
    %c0_0 = arith.constant 0 : index
    %c0_1 = arith.constant 0 : index
    %0 = vector.load %arg1[%c0, %c0_0, %c0_1] : memref<1x1x128xbf16, #tpu.memory_space<vmem>>, vector<1x1x128xbf16>
    %1 = vector.shape_cast %0 : vector<1x1x128xbf16> to vector<1x128xbf16>
    %2 = arith.extf %1 : vector<1x128xbf16> to vector<1x128xf32>
    %cst = arith.constant dense<0.000000e+00> : vector<128xf32>
    %3 = vector.multi_reduction <add>, %2, %cst [0] : vector<1x128xf32> to vector<128xf32>
    %4 = vector.shape_cast %3 : vector<128xf32> to vector<1x128xf32>
    %cst_2 = arith.constant 1.000000e+00 : f32
    %5 = vector.broadcast %cst_2 : f32 to vector<1x128xf32>
    %6 = arith.divf %4, %5 : vector<1x128xf32>
    %c0_3 = arith.constant 0 : index
    %c0_4 = arith.constant 0 : index
    %7 = vector.load %arg4[%c0_3, %c0_4] : memref<128x64xf32, #tpu.memory_space<vmem>>, vector<128x64xf32>
    %cst_5 = arith.constant dense<0.000000e+00> : vector<1x64xf32>
    %8 = tpu.matmul %6, %7, %cst_5 {dimension_numbers = #tpu.dot_dimension_numbers<[1], [0], [0], [1], [0, 0, 1, 1], [], []>} : vector<1x128xf32>, vector<128x64xf32>, vector<1x64xf32> -> vector<1x64xf32>
    %c0_6 = arith.constant 0 : index
    %c0_7 = arith.constant 0 : index
    %9 = vector.load %arg5[%c0_6, %c0_7] : memref<1x64xf32, #tpu.memory_space<vmem>>, vector<1x64xf32>
    %10 = arith.addf %8, %9 : vector<1x64xf32>
    %cst_8 = arith.constant 0.000000e+00 : f32
    %11 = vector.broadcast %cst_8 : f32 to vector<1x64xf32>
    %12 = arith.maximumf %10, %11 : vector<1x64xf32>
    %c0_9 = arith.constant 0 : index
    %c0_10 = arith.constant 0 : index
    %13 = vector.load %arg6[%c0_9, %c0_10] : memref<64x16xf32, #tpu.memory_space<vmem>>, vector<64x16xf32>
    %cst_11 = arith.constant dense<0.000000e+00> : vector<1x16xf32>
    %14 = tpu.matmul %12, %13, %cst_11 {dimension_numbers = #tpu.dot_dimension_numbers<[1], [0], [0], [1], [0, 0, 1, 1], [], []>} : vector<1x64xf32>, vector<64x16xf32>, vector<1x16xf32> -> vector<1x16xf32>
    %c0_12 = arith.constant 0 : index
    %c0_13 = arith.constant 0 : index
    %15 = vector.load %arg7[%c0_12, %c0_13] : memref<1x16xf32, #tpu.memory_space<vmem>>, vector<1x16xf32>
    %16 = arith.addf %14, %15 : vector<1x16xf32>
    %cst_14 = arith.constant 0.000000e+00 : f32
    %17 = vector.broadcast %cst_14 : f32 to vector<1x16xf32>
    %18 = arith.maximumf %16, %17 : vector<1x16xf32>
    %c0_15 = arith.constant 0 : index
    %c0_16 = arith.constant 0 : index
    %19 = vector.load %arg8[%c0_15, %c0_16] : memref<16x4xf32, #tpu.memory_space<vmem>>, vector<16x4xf32>
    %cst_17 = arith.constant dense<0.000000e+00> : vector<1x4xf32>
    %20 = tpu.matmul %18, %19, %cst_17 {dimension_numbers = #tpu.dot_dimension_numbers<[1], [0], [0], [1], [0, 0, 1, 1], [], []>} : vector<1x16xf32>, vector<16x4xf32>, vector<1x4xf32> -> vector<1x4xf32>
    %c0_18 = arith.constant 0 : index
    %c0_19 = arith.constant 0 : index
    %21 = vector.load %arg9[%c0_18, %c0_19] : memref<1x4xf32, #tpu.memory_space<vmem>>, vector<1x4xf32>
    %22 = arith.addf %20, %21 : vector<1x4xf32>
    %23 = arith.negf %22 : vector<1x4xf32>
    %24 = math.exp %23 : vector<1x4xf32>
    %cst_20 = arith.constant 1.000000e+00 : f32
    %25 = vector.broadcast %cst_20 : f32 to vector<1x4xf32>
    %26 = arith.addf %25, %24 : vector<1x4xf32>
    %27 = arith.divf %25, %26 : vector<1x4xf32>
    %c0_21 = arith.constant 0 : index
    %c0_22 = arith.constant 0 : index
    %c0_23 = arith.constant 0 : index
    %28 = vector.load %arg11[%c0_21, %c0_22, %c0_23] : memref<1x1x4xf32, #tpu.memory_space<vmem>>, vector<1x1x4xf32>
    %29 = vector.shape_cast %28 : vector<1x1x4xf32> to vector<1x4xf32>
    %30 = vector.shape_cast %27 : vector<1x4xf32> to vector<1x1x4xf32>
    tpu.vector_store %arg11[%c0_21, %c0_22, %c0_23], %30 {strides = array<i32>} : memref<1x1x4xf32, #tpu.memory_space<vmem>>, vector<1x1x4xf32>,
    %c0_24 = arith.constant 0 : index
    %c0_25 = arith.constant 0 : index
    %31 = vector.load %arg2[%c0_24, %c0_25] : memref<128x64xbf16, #tpu.memory_space<vmem>>, vector<128x64xbf16>
    %cst_26 = arith.constant dense<0.000000e+00> : vector<1x64xf32>
    %32 = tpu.matmul %1, %31, %cst_26 {dimension_numbers = #tpu.dot_dimension_numbers<[1], [0], [0], [1], [0, 0, 1, 1], [], []>} : vector<1x128xbf16>, vector<128x64xbf16>, vector<1x64xf32> -> vector<1x64xf32>
    %c0_27 = arith.constant 0 : index
    %c0_28 = arith.constant 0 : index
    %33 = vector.load %arg3[%c0_27, %c0_28] : memref<1x64xf32, #tpu.memory_space<vmem>>, vector<1x64xf32>
    %34 = arith.addf %32, %33 : vector<1x64xf32>
    %cst_29 = arith.constant 0.000000e+00 : f32
    %35 = vector.broadcast %cst_29 : f32 to vector<1x64xf32>
    %36 = arith.maximumf %34, %35 : vector<1x64xf32>
    %37 = arith.truncf %36 : vector<1x64xf32> to vector<1x64xbf16>
    %c0_30 = arith.constant 0 : index
    %c0_31 = arith.constant 0 : index
    %c0_32 = arith.constant 0 : index
    %38 = vector.load %arg10[%c0_30, %c0_31, %c0_32] : memref<1x1x64xbf16, #tpu.memory_space<vmem>>, vector<1x1x64xbf16>
    %39 = vector.shape_cast %38 : vector<1x1x64xbf16> to vector<1x64xbf16>
    %40 = vector.shape_cast %37 : vector<1x64xbf16> to vector<1x1x64xbf16>
    tpu.vector_store %arg10[%c0_30, %c0_31, %c0_32], %40 {strides = array<i32>} : memref<1x1x64xbf16, #tpu.memory_space<vmem>>, vector<1x1x64xbf16>,
    return
  }
  func.func @transform_0(%arg0: i32) -> (i32, i32, i32) {
    %c0_i32 = arith.constant 0 : i32
    %c0_i32_0 = arith.constant 0 : i32
    %c0_i32_1 = arith.constant 0 : i32
    return %arg0, %c0_i32, %c0_i32_0 : i32, i32, i32
  }
  func.func @transform_1(%arg0: i32) -> (i32, i32) {
    %c0_i32 = arith.constant 0 : i32
    %c0_i32_0 = arith.constant 0 : i32
    %c0_i32_1 = arith.constant 0 : i32
    return %c0_i32, %c0_i32_0 : i32, i32
  }
  func.func @transform_2(%arg0: i32) -> (i32, i32) {
    %c0_i32 = arith.constant 0 : i32
    %c0_i32_0 = arith.constant 0 : i32
    %c0_i32_1 = arith.constant 0 : i32
    return %c0_i32, %c0_i32_0 : i32, i32
  }
  func.func @transform_3(%arg0: i32) -> (i32, i32) {
    %c0_i32 = arith.constant 0 : i32
    %c0_i32_0 = arith.constant 0 : i32
    %c0_i32_1 = arith.constant 0 : i32
    return %c0_i32, %c0_i32_0 : i32, i32
  }
  func.func @transform_4(%arg0: i32) -> (i32, i32) {
    %c0_i32 = arith.constant 0 : i32
    %c0_i32_0 = arith.constant 0 : i32
    %c0_i32_1 = arith.constant 0 : i32
    return %c0_i32, %c0_i32_0 : i32, i32
  }
  func.func @transform_5(%arg0: i32) -> (i32, i32) {
    %c0_i32 = arith.constant 0 : i32
    %c0_i32_0 = arith.constant 0 : i32
    %c0_i32_1 = arith.constant 0 : i32
    return %c0_i32, %c0_i32_0 : i32, i32
  }
  func.func @transform_6(%arg0: i32) -> (i32, i32) {
    %c0_i32 = arith.constant 0 : i32
    %c0_i32_0 = arith.constant 0 : i32
    %c0_i32_1 = arith.constant 0 : i32
    return %c0_i32, %c0_i32_0 : i32, i32
  }
  func.func @transform_7(%arg0: i32) -> (i32, i32) {
    %c0_i32 = arith.constant 0 : i32
    %c0_i32_0 = arith.constant 0 : i32
    %c0_i32_1 = arith.constant 0 : i32
    return %c0_i32, %c0_i32_0 : i32, i32
  }
  func.func @transform_8(%arg0: i32) -> (i32, i32) {
    %c0_i32 = arith.constant 0 : i32
    %c0_i32_0 = arith.constant 0 : i32
    %c0_i32_1 = arith.constant 0 : i32
    return %c0_i32, %c0_i32_0 : i32, i32
  }
  func.func @transform_9(%arg0: i32) -> (i32, i32, i32) {
    %c0_i32 = arith.constant 0 : i32
    %c0_i32_0 = arith.constant 0 : i32
    %c0_i32_1 = arith.constant 0 : i32
    return %arg0, %c0_i32, %c0_i32_0 : i32, i32, i32
  }
  func.func @transform_10(%arg0: i32) -> (i32, i32, i32) {
    %c0_i32 = arith.constant 0 : i32
    %c0_i32_0 = arith.constant 0 : i32
    %c0_i32_1 = arith.constant 0 : i32
    return %arg0, %c0_i32, %c0_i32_0 : i32, i32, i32
  }
}

module attributes {stable_mosaic.version = 11 : i64} {
  func.func @_block_tail_kernel(%arg0: i32, %arg1: i32, %arg2: memref<1x1x576xbf16, #tpu.memory_space<vmem>>, %arg3: memref<576x64xbf16, #tpu.memory_space<vmem>>, %arg4: memref<1x64xf32, #tpu.memory_space<vmem>>, %arg5: memref<1x1x64xf32, #tpu.memory_space<vmem>>, %arg6: memref<64x128xbf16, #tpu.memory_space<vmem>>, %arg7: memref<1x128xf32, #tpu.memory_space<vmem>>, %arg8: memref<1x1x128xbf16, #tpu.memory_space<vmem>>, %arg9: memref<1x1x128xbf16, #tpu.memory_space<vmem>>) attributes {dimension_semantics = [#tpu.dimension_semantics<parallel>, #tpu.dimension_semantics<parallel>], iteration_bounds = array<i64: 2, 1>, scalar_prefetch = 0 : i64, scratch_operands = 0 : i64, tpu.core_type = #tpu.core_type<tc>, window_params = [{transform_indices = @transform_0, window_bounds = array<i64: 1, 1, 576>}, {pipeline_mode = #tpu.pipeline_mode<synchronous>, transform_indices = @transform_1, window_bounds = array<i64: 576, 64>}, {pipeline_mode = #tpu.pipeline_mode<synchronous>, transform_indices = @transform_2, window_bounds = array<i64: 1, 64>}, {transform_indices = @transform_3, window_bounds = array<i64: 1, 1, 64>}, {pipeline_mode = #tpu.pipeline_mode<synchronous>, transform_indices = @transform_4, window_bounds = array<i64: 64, 128>}, {pipeline_mode = #tpu.pipeline_mode<synchronous>, transform_indices = @transform_5, window_bounds = array<i64: 1, 128>}, {transform_indices = @transform_6, window_bounds = array<i64: 1, 1, 128>}, {transform_indices = @transform_7, window_bounds = array<i64: 1, 1, 128>}]} {
    %c0 = arith.constant 0 : index
    %c0_0 = arith.constant 0 : index
    %c0_1 = arith.constant 0 : index
    %0 = vector.load %arg2[%c0, %c0_0, %c0_1] : memref<1x1x576xbf16, #tpu.memory_space<vmem>>, vector<1x1x576xbf16>
    %1 = vector.shape_cast %0 : vector<1x1x576xbf16> to vector<1x576xbf16>
    %c0_2 = arith.constant 0 : index
    %c0_3 = arith.constant 0 : index
    %2 = vector.load %arg3[%c0_2, %c0_3] : memref<576x64xbf16, #tpu.memory_space<vmem>>, vector<576x64xbf16>
    %cst = arith.constant dense<0.000000e+00> : vector<1x64xf32>
    %3 = tpu.matmul %1, %2, %cst {dimension_numbers = #tpu.dot_dimension_numbers<[1], [0], [0], [1], [0, 0, 1, 1], [], []>} : vector<1x576xbf16>, vector<576x64xbf16>, vector<1x64xf32> -> vector<1x64xf32>
    %c0_4 = arith.constant 0 : index
    %c0_5 = arith.constant 0 : index
    %4 = vector.load %arg4[%c0_4, %c0_5] : memref<1x64xf32, #tpu.memory_space<vmem>>, vector<1x64xf32>
    %5 = arith.addf %3, %4 : vector<1x64xf32>
    %cst_6 = arith.constant 0.000000e+00 : f32
    %6 = vector.broadcast %cst_6 : f32 to vector<1x64xf32>
    %7 = arith.maximumf %5, %6 : vector<1x64xf32>
    %c0_7 = arith.constant 0 : index
    %c0_8 = arith.constant 0 : index
    %c0_9 = arith.constant 0 : index
    %8 = vector.load %arg5[%c0_7, %c0_8, %c0_9] : memref<1x1x64xf32, #tpu.memory_space<vmem>>, vector<1x1x64xf32>
    %9 = vector.shape_cast %8 : vector<1x1x64xf32> to vector<1x64xf32>
    %10 = arith.mulf %7, %9 : vector<1x64xf32>
    %11 = arith.truncf %10 : vector<1x64xf32> to vector<1x64xbf16>
    %c0_10 = arith.constant 0 : index
    %c0_11 = arith.constant 0 : index
    %12 = vector.load %arg6[%c0_10, %c0_11] : memref<64x128xbf16, #tpu.memory_space<vmem>>, vector<64x128xbf16>
    %cst_12 = arith.constant dense<0.000000e+00> : vector<1x128xf32>
    %13 = tpu.matmul %11, %12, %cst_12 {dimension_numbers = #tpu.dot_dimension_numbers<[1], [0], [0], [1], [0, 0, 1, 1], [], []>} : vector<1x64xbf16>, vector<64x128xbf16>, vector<1x128xf32> -> vector<1x128xf32>
    %c0_13 = arith.constant 0 : index
    %c0_14 = arith.constant 0 : index
    %14 = vector.load %arg7[%c0_13, %c0_14] : memref<1x128xf32, #tpu.memory_space<vmem>>, vector<1x128xf32>
    %15 = arith.addf %13, %14 : vector<1x128xf32>
    %cst_15 = arith.constant 0.000000e+00 : f32
    %16 = vector.broadcast %cst_15 : f32 to vector<1x128xf32>
    %17 = arith.maximumf %15, %16 : vector<1x128xf32>
    %c0_16 = arith.constant 0 : index
    %c0_17 = arith.constant 0 : index
    %c0_18 = arith.constant 0 : index
    %18 = vector.load %arg8[%c0_16, %c0_17, %c0_18] : memref<1x1x128xbf16, #tpu.memory_space<vmem>>, vector<1x1x128xbf16>
    %19 = vector.shape_cast %18 : vector<1x1x128xbf16> to vector<1x128xbf16>
    %20 = arith.extf %19 : vector<1x128xbf16> to vector<1x128xf32>
    %21 = arith.addf %20, %17 : vector<1x128xf32>
    %cst_19 = arith.constant 0.000000e+00 : f32
    %22 = vector.broadcast %cst_19 : f32 to vector<1x128xf32>
    %23 = arith.maximumf %21, %22 : vector<1x128xf32>
    %24 = arith.truncf %23 : vector<1x128xf32> to vector<1x128xbf16>
    %c0_20 = arith.constant 0 : index
    %c0_21 = arith.constant 0 : index
    %c0_22 = arith.constant 0 : index
    %25 = vector.load %arg9[%c0_20, %c0_21, %c0_22] : memref<1x1x128xbf16, #tpu.memory_space<vmem>>, vector<1x1x128xbf16>
    %26 = vector.shape_cast %25 : vector<1x1x128xbf16> to vector<1x128xbf16>
    %27 = vector.shape_cast %24 : vector<1x128xbf16> to vector<1x1x128xbf16>
    tpu.vector_store %arg9[%c0_20, %c0_21, %c0_22], %27 {strides = array<i32>} : memref<1x1x128xbf16, #tpu.memory_space<vmem>>, vector<1x1x128xbf16>,
    return
  }
  func.func @transform_0(%arg0: i32, %arg1: i32) -> (i32, i32, i32) {
    %c0_i32 = arith.constant 0 : i32
    %c0_i32_0 = arith.constant 0 : i32
    return %arg0, %arg1, %c0_i32 : i32, i32, i32
  }
  func.func @transform_1(%arg0: i32, %arg1: i32) -> (i32, i32) {
    %c0_i32 = arith.constant 0 : i32
    %c0_i32_0 = arith.constant 0 : i32
    %c0_i32_1 = arith.constant 0 : i32
    return %c0_i32, %c0_i32_0 : i32, i32
  }
  func.func @transform_2(%arg0: i32, %arg1: i32) -> (i32, i32) {
    %c0_i32 = arith.constant 0 : i32
    %c0_i32_0 = arith.constant 0 : i32
    %c0_i32_1 = arith.constant 0 : i32
    return %c0_i32, %c0_i32_0 : i32, i32
  }
  func.func @transform_3(%arg0: i32, %arg1: i32) -> (i32, i32, i32) {
    %c0_i32 = arith.constant 0 : i32
    %c0_i32_0 = arith.constant 0 : i32
    %c0_i32_1 = arith.constant 0 : i32
    return %arg0, %c0_i32, %c0_i32_0 : i32, i32, i32
  }
  func.func @transform_4(%arg0: i32, %arg1: i32) -> (i32, i32) {
    %c0_i32 = arith.constant 0 : i32
    %c0_i32_0 = arith.constant 0 : i32
    %c0_i32_1 = arith.constant 0 : i32
    return %c0_i32, %c0_i32_0 : i32, i32
  }
  func.func @transform_5(%arg0: i32, %arg1: i32) -> (i32, i32) {
    %c0_i32 = arith.constant 0 : i32
    %c0_i32_0 = arith.constant 0 : i32
    %c0_i32_1 = arith.constant 0 : i32
    return %c0_i32, %c0_i32_0 : i32, i32
  }
  func.func @transform_6(%arg0: i32, %arg1: i32) -> (i32, i32, i32) {
    %c0_i32 = arith.constant 0 : i32
    %c0_i32_0 = arith.constant 0 : i32
    return %arg0, %arg1, %c0_i32 : i32, i32, i32
  }
  func.func @transform_7(%arg0: i32, %arg1: i32) -> (i32, i32, i32) {
    %c0_i32 = arith.constant 0 : i32
    %c0_i32_0 = arith.constant 0 : i32
    return %arg0, %arg1, %c0_i32 : i32, i32, i32
  }
}

module attributes {stable_mosaic.version = 11 : i64} {
  func.func @_head_kernel(%arg0: i32, %arg1: memref<1x1x128xbf16, #tpu.memory_space<vmem>>, %arg2: memref<1x1x64xf32, #tpu.memory_space<vmem>>, %arg3: memref<128x32xf32, #tpu.memory_space<vmem>>, %arg4: memref<1x32xf32, #tpu.memory_space<vmem>>, %arg5: memref<64x32xf32, #tpu.memory_space<vmem>>, %arg6: memref<1x32xf32, #tpu.memory_space<vmem>>, %arg7: memref<1x1x32xf32, #tpu.memory_space<vmem>>) attributes {dimension_semantics = [#tpu.dimension_semantics<parallel>], iteration_bounds = array<i64: 2>, scalar_prefetch = 0 : i64, scratch_operands = 0 : i64, tpu.core_type = #tpu.core_type<tc>, window_params = [{transform_indices = @transform_0, window_bounds = array<i64: 1, 1, 128>}, {transform_indices = @transform_1, window_bounds = array<i64: 1, 1, 64>}, {pipeline_mode = #tpu.pipeline_mode<synchronous>, transform_indices = @transform_2, window_bounds = array<i64: 128, 32>}, {pipeline_mode = #tpu.pipeline_mode<synchronous>, transform_indices = @transform_3, window_bounds = array<i64: 1, 32>}, {pipeline_mode = #tpu.pipeline_mode<synchronous>, transform_indices = @transform_4, window_bounds = array<i64: 64, 32>}, {pipeline_mode = #tpu.pipeline_mode<synchronous>, transform_indices = @transform_5, window_bounds = array<i64: 1, 32>}, {transform_indices = @transform_6, window_bounds = array<i64: 1, 1, 32>}]} {
    %c0 = arith.constant 0 : index
    %c0_0 = arith.constant 0 : index
    %c0_1 = arith.constant 0 : index
    %0 = vector.load %arg1[%c0, %c0_0, %c0_1] : memref<1x1x128xbf16, #tpu.memory_space<vmem>>, vector<1x1x128xbf16>
    %1 = vector.shape_cast %0 : vector<1x1x128xbf16> to vector<1x128xbf16>
    %2 = arith.extf %1 : vector<1x128xbf16> to vector<1x128xf32>
    %cst = arith.constant dense<0.000000e+00> : vector<128xf32>
    %3 = vector.multi_reduction <add>, %2, %cst [0] : vector<1x128xf32> to vector<128xf32>
    %4 = vector.shape_cast %3 : vector<128xf32> to vector<1x128xf32>
    %cst_2 = arith.constant 1.000000e+00 : f32
    %5 = vector.broadcast %cst_2 : f32 to vector<1x128xf32>
    %6 = arith.divf %4, %5 : vector<1x128xf32>
    %c0_3 = arith.constant 0 : index
    %c0_4 = arith.constant 0 : index
    %7 = vector.load %arg3[%c0_3, %c0_4] : memref<128x32xf32, #tpu.memory_space<vmem>>, vector<128x32xf32>
    %cst_5 = arith.constant dense<0.000000e+00> : vector<1x32xf32>
    %8 = tpu.matmul %6, %7, %cst_5 {dimension_numbers = #tpu.dot_dimension_numbers<[1], [0], [0], [1], [0, 0, 1, 1], [], []>} : vector<1x128xf32>, vector<128x32xf32>, vector<1x32xf32> -> vector<1x32xf32>
    %c0_6 = arith.constant 0 : index
    %c0_7 = arith.constant 0 : index
    %9 = vector.load %arg4[%c0_6, %c0_7] : memref<1x32xf32, #tpu.memory_space<vmem>>, vector<1x32xf32>
    %10 = arith.addf %8, %9 : vector<1x32xf32>
    %cst_8 = arith.constant 0.000000e+00 : f32
    %11 = vector.broadcast %cst_8 : f32 to vector<1x32xf32>
    %12 = arith.maximumf %10, %11 : vector<1x32xf32>
    %c0_9 = arith.constant 0 : index
    %c0_10 = arith.constant 0 : index
    %c0_11 = arith.constant 0 : index
    %13 = vector.load %arg2[%c0_9, %c0_10, %c0_11] : memref<1x1x64xf32, #tpu.memory_space<vmem>>, vector<1x1x64xf32>
    %14 = vector.shape_cast %13 : vector<1x1x64xf32> to vector<1x64xf32>
    %c0_12 = arith.constant 0 : index
    %c0_13 = arith.constant 0 : index
    %15 = vector.load %arg5[%c0_12, %c0_13] : memref<64x32xf32, #tpu.memory_space<vmem>>, vector<64x32xf32>
    %cst_14 = arith.constant dense<0.000000e+00> : vector<1x32xf32>
    %16 = tpu.matmul %14, %15, %cst_14 {dimension_numbers = #tpu.dot_dimension_numbers<[1], [0], [0], [1], [0, 0, 1, 1], [], []>} : vector<1x64xf32>, vector<64x32xf32>, vector<1x32xf32> -> vector<1x32xf32>
    %c0_15 = arith.constant 0 : index
    %c0_16 = arith.constant 0 : index
    %17 = vector.load %arg6[%c0_15, %c0_16] : memref<1x32xf32, #tpu.memory_space<vmem>>, vector<1x32xf32>
    %18 = arith.addf %16, %17 : vector<1x32xf32>
    %cst_17 = arith.constant 0.000000e+00 : f32
    %19 = vector.broadcast %cst_17 : f32 to vector<1x32xf32>
    %20 = arith.maximumf %18, %19 : vector<1x32xf32>
    %21 = arith.addf %12, %20 : vector<1x32xf32>
    %cst_18 = arith.constant 5.000000e-01 : f32
    %22 = vector.broadcast %cst_18 : f32 to vector<1x32xf32>
    %23 = arith.mulf %22, %21 : vector<1x32xf32>
    %c0_19 = arith.constant 0 : index
    %c0_20 = arith.constant 0 : index
    %c0_21 = arith.constant 0 : index
    %24 = vector.load %arg7[%c0_19, %c0_20, %c0_21] : memref<1x1x32xf32, #tpu.memory_space<vmem>>, vector<1x1x32xf32>
    %25 = vector.shape_cast %24 : vector<1x1x32xf32> to vector<1x32xf32>
    %26 = vector.shape_cast %23 : vector<1x32xf32> to vector<1x1x32xf32>
    tpu.vector_store %arg7[%c0_19, %c0_20, %c0_21], %26 {strides = array<i32>} : memref<1x1x32xf32, #tpu.memory_space<vmem>>, vector<1x1x32xf32>,
    return
  }
  func.func @transform_0(%arg0: i32) -> (i32, i32, i32) {
    %c0_i32 = arith.constant 0 : i32
    %c0_i32_0 = arith.constant 0 : i32
    %c0_i32_1 = arith.constant 0 : i32
    return %arg0, %c0_i32, %c0_i32_0 : i32, i32, i32
  }
  func.func @transform_1(%arg0: i32) -> (i32, i32, i32) {
    %c0_i32 = arith.constant 0 : i32
    %c0_i32_0 = arith.constant 0 : i32
    %c0_i32_1 = arith.constant 0 : i32
    return %arg0, %c0_i32, %c0_i32_0 : i32, i32, i32
  }
  func.func @transform_2(%arg0: i32) -> (i32, i32) {
    %c0_i32 = arith.constant 0 : i32
    %c0_i32_0 = arith.constant 0 : i32
    %c0_i32_1 = arith.constant 0 : i32
    return %c0_i32, %c0_i32_0 : i32, i32
  }
  func.func @transform_3(%arg0: i32) -> (i32, i32) {
    %c0_i32 = arith.constant 0 : i32
    %c0_i32_0 = arith.constant 0 : i32
    %c0_i32_1 = arith.constant 0 : i32
    return %c0_i32, %c0_i32_0 : i32, i32
  }
  func.func @transform_4(%arg0: i32) -> (i32, i32) {
    %c0_i32 = arith.constant 0 : i32
    %c0_i32_0 = arith.constant 0 : i32
    %c0_i32_1 = arith.constant 0 : i32
    return %c0_i32, %c0_i32_0 : i32, i32
  }
  func.func @transform_5(%arg0: i32) -> (i32, i32) {
    %c0_i32 = arith.constant 0 : i32
    %c0_i32_0 = arith.constant 0 : i32
    %c0_i32_1 = arith.constant 0 : i32
    return %c0_i32, %c0_i32_0 : i32, i32
  }
  func.func @transform_6(%arg0: i32) -> (i32, i32, i32) {
    %c0_i32 = arith.constant 0 : i32
    %c0_i32_0 = arith.constant 0 : i32
    %c0_i32_1 = arith.constant 0 : i32
    return %arg0, %c0_i32, %c0_i32_0 : i32, i32, i32
  }
}

</mosaic_0001>

<bundles_post_ra>
// kernel: mlfn_forward.34
= control target key start
LH: loop header
LB: loop body
LE: loop exit
PB: predicated region body
PF: predicated region fallthrough
CT: control target
= control target key end

     0   :  { %s805_s12 = smov 0   ;;  %s937_s0 = inlined_call_operand.vmem [shape: bf16[512,147], index: 0, kind: input, shape index: {}]   ;;  %s938_s1 = inlined_call_operand.vmem [shape: bf16[147,8], index: 1, kind: input, shape index: {}]   ;;  %s939_s2 = inlined_call_operand.vmem [shape: f32[1,8], index: 2, kind: input, shape index: {}]   ;;  %s940_s3 = inlined_call_operand.vmem [shape: bf16[512,8], index: 3, kind: output, shape index: {}]  }
   0x1 LB: > { %s631_s13 = sadd.s32 4294967295, %s781_s12   ;;  %p635_p0 = scmp.ge.s32.totalorder %s781_s12, 1  ;;  %s781_s12 = sphi %s805_s12, %s13_s12  }
   0x2   : > { %p139_p1 = scmp.lt.s32.totalorder %s781_s12, 5 }
   0x4   : > { %p140_p2 = pnand %p635_p0, %p139_p1 }
   0x5   : > { %s636_s20 = sshll.u32 (!%p140_p2), %s631_s13, 4 }
   0x6   : > { %143 = sbr.rel (%p140_p2) target bundleno = 280 (0x118), region = 32  ;;  %p165_p3 = scmp.lt.s32.totalorder (!%p140_p2), %s636_s20, 63 }
   0xb   : > { %v741_v0 = vld [vmem:[%s938_s1 + $0x38] sm:$0xff]   ;;  %v783_v1 = vmov 0   ;;  %v742_v2 = vld [vmem:[%s938_s1 + $0x30] sm:$0xff]   ;;  %v743_v3 = vld [vmem:[%s938_s1 + $0x28] sm:$0xff]   ;;  %s942_s20 = smov (!%p165_p3, %s636_s20), 63  ;;  %vm349_vm0 = vcmask 154624  }
   0xc   : > { %381 = vmatprep.subr.bf16.mxu0 %v783_v1  ;;  %711 = vmatprep.subr.bf16.mxu1 %v783_v1  ;;  %v744_v4 = vld [vmem:[%s938_s1 + $0x20] sm:$0xff]   ;;  %s694_s23 = sshll.u32 %s942_s20, 3  ;;  %v745_v5 = vld [vmem:[%s938_s1 + $0x18] sm:$0xff]   ;;  %v746_v8 = vld [vmem:[%s938_s1 + $0x10] sm:$0xff]   ;;  %vm374_vm1 = vcmask 1040384   ;;  %vm375_vm2 = vcmask 1041408  }
   0xd   : > { %382 = vmatpush1.bf16.msra.mxu0 %v741_v0  ;;  %721 = vmatpush1.bf16.msra.mxu1 %v741_v0  ;;  %s831_s26 = scalar_lea.vmem %s937_s0, %s694_s23  ;;  %v747_v9 = vld [vmem:[%s938_s1 + $0x8] sm:$0xff]   ;;  %v784_v10 = vmov 65535   ;;  %v748_v12 = vld [vmem:[%s938_s1] sm:$0xff]   ;;  %s640_s15 = sshll.u32 %s942_s20, 2  ;;  %vm558_vm3 = vcmask 60416  }
   0xe   : > { %383 = vmatprep.subr.bf16.mxu0 %v783_v1  ;;  %712 = vmatprep.subr.bf16.mxu1 %v783_v1  ;;  %v753_v6 = vld [vmem:[%s831_s26 + $0x4] ss:$8 sps:$4 sm:$0xff]   ;;  %v376_v11 = vsel %vm374_vm1, 4294967295, %v784_v10  ;;  %v749_v13 = vld [vmem:[%s938_s1 + $0x48] ss:$0 sps:$4 sm:$0x33]   ;;  %s886_s18 = scalar_lea.vmem %s940_s3, %s640_s15 }
   0xf   : > { %v756_v7 = vld [vmem:[%s831_s26 + $0x44] ss:$8 sps:$4 sm:$0xff]   ;;  %668 = vmatprep.mubr.msk.bf16.mxu0 %vm349_vm0, %v753_v6  ;;  %v377_v14 = vsel %vm375_vm2, %v376_v11, 0  ;;  %v751_v17 = vld [vmem:[%s831_s26] ss:$8 sps:$4 sm:$0xff]  }
  0x10   : > { %672 = vmatprep.mubr.msk.bf16.mxu1 %vm349_vm0, %v756_v7  ;;  %v379_v15 = vand.u32 %v749_v13, %v377_v14  ;;  %v750_v16 = vld [vmem:[%s938_s1 + $0x40] sm:$0xff]   ;;  %v757_v19 = vld [vmem:[%s831_s26 + $0x14] ss:$8 sps:$4 sm:$0xff]   ;;  %v761_v21 = vld [vmem:[%s831_s26 + $0x10] ss:$8 sps:$4 sm:$0xff]  }
  0x11   : > { %384 = vmatpush1.bf16.msra.mxu0 %v742_v2  ;;  %722 = vmatpush1.bf16.msra.mxu1 %v742_v2  ;;  %v754_v18 = vld [vmem:[%s831_s26 + $0x40] ss:$8 sps:$4 sm:$0xff]   ;;  %v759_v20 = vld [vmem:[%s831_s26 + $0x54] ss:$8 sps:$4 sm:$0xff]   ;;  %v762_v22 = vld [vmem:[%s831_s26 + $0x50] ss:$8 sps:$4 sm:$0xff]  }
  0x12   : > { %385 = vmatprep.subr.bf16.mxu0 %v783_v1  ;;  %713 = vmatprep.subr.bf16.mxu1 %v783_v1  ;;  %v763_v23 = vld [vmem:[%s831_s26 + $0x24] ss:$8 sps:$4 sm:$0xff]   ;;  %v767_v25 = vld [vmem:[%s831_s26 + $0x20] ss:$8 sps:$4 sm:$0xff]   ;;  %v769_v27 = vld [vmem:[%s831_s26 + $0x34] ss:$8 sps:$4 sm:$0xff]  }
  0x13   : > { %v765_v24 = vld [vmem:[%s831_s26 + $0x64] ss:$8 sps:$4 sm:$0xff]   ;;  %v768_v26 = vld [vmem:[%s831_s26 + $0x60] ss:$8 sps:$4 sm:$0xff]   ;;  %v771_v28 = vld [vmem:[%s831_s26 + $0x74] ss:$8 sps:$4 sm:$0xff]  }
  0x14   : > { %v773_v29 = vld [vmem:[%s831_s26 + $0x30] ss:$8 sps:$4 sm:$0xff]   ;;  %v878_v31 = vld [vmem:[%s939_s2] ss:$0 sm:$0xff] }
  0x15   : > { %386 = vmatpush1.bf16.msra.mxu0 %v743_v3  ;;  %723 = vmatpush1.bf16.msra.mxu1 %v743_v3  ;;  %v774_v30 = vld [vmem:[%s831_s26 + $0x70] ss:$8 sps:$4 sm:$0xff]  }
  0x16   : > { %387 = vmatprep.subr.bf16.mxu0 %v783_v1  ;;  %714 = vmatprep.subr.bf16.mxu1 %v783_v1 }
  0x19   : > { %388 = vmatpush1.bf16.msra.mxu0 %v744_v4  ;;  %724 = vmatpush1.bf16.msra.mxu1 %v744_v4 }
  0x1a   : > { %389 = vmatprep.subr.bf16.mxu0 %v783_v1  ;;  %715 = vmatprep.subr.bf16.mxu1 %v783_v1 }
  0x1d   : > { %390 = vmatpush1.bf16.msra.mxu0 %v745_v5  ;;  %725 = vmatpush1.bf16.msra.mxu1 %v745_v5 }
  0x1e   : > { %391 = vmatprep.subr.bf16.mxu0 %v783_v1  ;;  %716 = vmatprep.subr.bf16.mxu1 %v783_v1 }
  0x21   : > { %392 = vmatpush1.bf16.msra.mxu0 %v746_v8  ;;  %726 = vmatpush1.bf16.msra.mxu1 %v746_v8 }
  0x22   : > { %393 = vmatprep.subr.bf16.mxu0 %v783_v1  ;;  %717 = vmatprep.subr.bf16.mxu1 %v783_v1 }
  0x25   : > { %394 = vmatpush1.bf16.msra.mxu0 %v747_v9  ;;  %727 = vmatpush1.bf16.msra.mxu1 %v747_v9 }
  0x26   : > { %395 = vmatprep.subr.bf16.mxu0 %v783_v1  ;;  %718 = vmatprep.subr.bf16.mxu1 %v783_v1 }
  0x29   : > { %396 = vmatpush1.bf16.msra.mxu0 %v748_v12  ;;  %728 = vmatpush1.bf16.msra.mxu1 %v748_v12 }
  0x2a   : > { %409 = vmatprep.subr.bf16.mxu0 %v783_v1  ;;  %719 = vmatprep.subr.bf16.mxu1 %v783_v1 }
  0x2d   : > { %410 = vmatpush2.bf16.msra.mxu0 %v379_v15  ;;  %729 = vmatpush2.bf16.msra.mxu1 %v379_v15 }
  0x2e   : > { %411 = vmatprep.subr.bf16.mxu0 %v783_v1  ;;  %720 = vmatprep.subr.bf16.mxu1 %v783_v1 }
  0x31   : > { %412 = vmatpush2.bf16.msra.mxu0 %v750_v16  ;;  %730 = vmatpush2.bf16.msra.mxu1 %v750_v16 }
  0x34   : > { %414 = vmatmul.mubr.bf16.vlgmr.msra.gmra.mxu0 %v751_v17  ;;  %446 = vmatmul.mubr.bf16.vlgmr.msra.gmra.mxu1 %v754_v18 }
  0x35   : > { %669 = vmatprep.mubr.msk.bf16.mxu0 %vm349_vm0, %v757_v19  ;;  %673 = vmatprep.mubr.msk.bf16.mxu1 %vm349_vm0, %v759_v20 }
  0x3c   : > { %422 = vmatmul.mubr.bf16.gmra.mxu0 %v761_v21  ;;  %454 = vmatmul.mubr.bf16.gmra.mxu1 %v762_v22 }
  0x3d   : > { %670 = vmatprep.mubr.msk.bf16.mxu0 %vm349_vm0, %v763_v23  ;;  %674 = vmatprep.mubr.msk.bf16.mxu1 %vm349_vm0, %v765_v24 }
  0x44   : > { %430 = vmatmul.mubr.bf16.gmra.mxu0 %v767_v25  ;;  %462 = vmatmul.mubr.bf16.gmra.mxu1 %v768_v26 }
  0x45   : > { %671 = vmatprep.mubr.msk.bf16.mxu0 %vm349_vm0, %v769_v27  ;;  %675 = vmatprep.mubr.msk.bf16.mxu1 %vm349_vm0, %v771_v28 }
  0x4c   : > { %438 = vmatmul.mubr.bf16.gmra.mxu0 %v773_v29  ;;  %470 = vmatmul.mubr.bf16.gmra.mxu1 %v774_v30 }
  0xf4   : > { %v415_v32 = vpop.f32.mrf.mxu0  ;;  %v447_v33 = vpop.f32.mrf.mxu1 }
  0xf5   : > { %v416_v34 = vadd.f32 %v878_v31, %v415_v32  ;;  %v448_v35 = vadd.f32 %v878_v31, %v447_v33 }
  0xf6   : > { %v417_v36 = vpop.f32.mrf.mxu0  ;;  %v449_v37 = vpop.f32.mrf.mxu1 }
  0xf7   : > { %v478_v38 = vmax.f32 %v416_v34, 0.0  ;;  %v486_v39 = vmax.f32 %v448_v35, 0.0 }
  0xf8   : > { %v418_v40 = vpop.f32.mrf.mxu0  ;;  %v450_v41 = vpop.f32.mrf.mxu1 }
  0xf9   : > { %v695_v42 = vpack.c.bf16 %v478_v38, %v478_v38  ;;  %v703_v43 = vpack.c.bf16 %v486_v39, %v486_v39  ;;  %v419_v44 = vadd.f32 %v878_v31, %v418_v40  ;;  %v451_v45 = vadd.f32 %v878_v31, %v450_v41 }
  0xfa   : > { %v420_v46 = vpop.f32.mrf.mxu0  ;;  %v452_v47 = vpop.f32.mrf.mxu1 }
  0xfb   : > { %559 = vst.msk [vmem:[%s886_s18] sm:$0xf] %vm558_vm3, %v695_v42  ;;  %567 = vst.msk [vmem:[%s886_s18 + $0x20] sm:$0xf] %vm558_vm3, %v703_v43  ;;  %v479_v48 = vmax.f32 %v419_v44, 0.0  ;;  %v487_v49 = vmax.f32 %v451_v45, 0.0 }
  0xfc   : > { %v423_v50 = vpop.f32.mrf.mxu0  ;;  %v455_v51 = vpop.f32.mrf.mxu1 }
  0xfd   : > { %v696_v52 = vpack.c.bf16 %v479_v48, %v479_v48  ;;  %v704_v53 = vpack.c.bf16 %v487_v49, %v487_v49  ;;  %v424_v54 = vadd.f32 %v878_v31, %v423_v50  ;;  %v456_v55 = vadd.f32 %v878_v31, %v455_v51 }
  0xfe   : > { %v425_v56 = vpop.f32.mrf.mxu0  ;;  %v457_v57 = vpop.f32.mrf.mxu1 }
  0xff   : > { %560 = vst.msk [vmem:[%s886_s18 + $0x4] sm:$0xf] %vm558_vm3, %v696_v52  ;;  %568 = vst.msk [vmem:[%s886_s18 + $0x24] sm:$0xf] %vm558_vm3, %v704_v53  ;;  %v480_v58 = vmax.f32 %v424_v54, 0.0  ;;  %v488_v59 = vmax.f32 %v456_v55, 0.0 }
 0x100   : > { %v426_v60 = vpop.f32.mrf.mxu0  ;;  %v458_v61 = vpop.f32.mrf.mxu1 }
 0x101   : > { %v697_v62 = vpack.c.bf16 %v480_v58, %v480_v58  ;;  %v705_v63 = vpack.c.bf16 %v488_v59, %v488_v59  ;;  %v427_v0 = vadd.f32 %v878_v31, %v426_v60  ;;  %v459_v1 = vadd.f32 %v878_v31, %v458_v61 }
 0x102   : > { %v428_v2 = vpop.f32.mrf.mxu0  ;;  %v460_v3 = vpop.f32.mrf.mxu1 }
 0x103   : > { %561 = vst.msk [vmem:[%s886_s18 + $0x8] sm:$0xf] %vm558_vm3, %v697_v62  ;;  %569 = vst.msk [vmem:[%s886_s18 + $0x28] sm:$0xf] %vm558_vm3, %v705_v63  ;;  %v481_v4 = vmax.f32 %v427_v0, 0.0  ;;  %v489_v5 = vmax.f32 %v459_v1, 0.0 }
 0x104   : > { %v431_v6 = vpop.f32.mrf.mxu0  ;;  %v463_v7 = vpop.f32.mrf.mxu1 }
 0x105   : > { %v698_v8 = vpack.c.bf16 %v481_v4, %v481_v4  ;;  %v706_v9 = vpack.c.bf16 %v489_v5, %v489_v5  ;;  %v432_v10 = vadd.f32 %v878_v31, %v431_v6  ;;  %v464_v11 = vadd.f32 %v878_v31, %v463_v7 }
 0x106   : > { %v433_v12 = vpop.f32.mrf.mxu0  ;;  %v465_v13 = vpop.f32.mrf.mxu1 }
 0x107   : > { %562 = vst.msk [vmem:[%s886_s18 + $0xc] sm:$0xf] %vm558_vm3, %v698_v8  ;;  %570 = vst.msk [vmem:[%s886_s18 + $0x2c] sm:$0xf] %vm558_vm3, %v706_v9  ;;  %v482_v14 = vmax.f32 %v432_v10, 0.0  ;;  %v490_v15 = vmax.f32 %v464_v11, 0.0 }
 0x108   : > { %v434_v16 = vpop.f32.mrf.mxu0  ;;  %v466_v17 = vpop.f32.mrf.mxu1 }
 0x109   : > { %v699_v18 = vpack.c.bf16 %v482_v14, %v482_v14  ;;  %v707_v19 = vpack.c.bf16 %v490_v15, %v490_v15  ;;  %v435_v20 = vadd.f32 %v878_v31, %v434_v16  ;;  %v467_v21 = vadd.f32 %v878_v31, %v466_v17 }
 0x10a   : > { %v436_v22 = vpop.f32.mrf.mxu0  ;;  %v468_v23 = vpop.f32.mrf.mxu1 }
 0x10b   : > { %563 = vst.msk [vmem:[%s886_s18 + $0x10] sm:$0xf] %vm558_vm3, %v699_v18  ;;  %571 = vst.msk [vmem:[%s886_s18 + $0x30] sm:$0xf] %vm558_vm3, %v707_v19  ;;  %v483_v24 = vmax.f32 %v435_v20, 0.0  ;;  %v491_v25 = vmax.f32 %v467_v21, 0.0 }
 0x10c   : > { %v439_v26 = vpop.f32.mrf.mxu0  ;;  %v471_v27 = vpop.f32.mrf.mxu1 }
 0x10d   : > { %v700_v28 = vpack.c.bf16 %v483_v24, %v483_v24  ;;  %v708_v29 = vpack.c.bf16 %v491_v25, %v491_v25  ;;  %v440_v30 = vadd.f32 %v878_v31, %v439_v26  ;;  %v472_v32 = vadd.f32 %v878_v31, %v471_v27 }
 0x10e   : > { %v441_v33 = vpop.f32.mrf.mxu0  ;;  %v473_v34 = vpop.f32.mrf.mxu1 }
 0x10f   : > { %564 = vst.msk [vmem:[%s886_s18 + $0x14] sm:$0xf] %vm558_vm3, %v700_v28  ;;  %572 = vst.msk [vmem:[%s886_s18 + $0x34] sm:$0xf] %vm558_vm3, %v708_v29  ;;  %v484_v35 = vmax.f32 %v440_v30, 0.0  ;;  %v492_v36 = vmax.f32 %v472_v32, 0.0 }
 0x110   : > { %v442_v37 = vpop.f32.mrf.mxu0  ;;  %v474_v38 = vpop.f32.mrf.mxu1 }
 0x111   : > { %v701_v39 = vpack.c.bf16 %v484_v35, %v484_v35  ;;  %v709_v40 = vpack.c.bf16 %v492_v36, %v492_v36  ;;  %v443_v41 = vadd.f32 %v878_v31, %v442_v37  ;;  %v475_v42 = vadd.f32 %v878_v31, %v474_v38 }
 0x112   : > { %v444_v43 = vpop.f32.mrf.mxu0  ;;  %v476_v44 = vpop.f32.mrf.mxu1 }
 0x113   : > { %565 = vst.msk [vmem:[%s886_s18 + $0x18] sm:$0xf] %vm558_vm3, %v701_v39  ;;  %573 = vst.msk [vmem:[%s886_s18 + $0x38] sm:$0xf] %vm558_vm3, %v709_v40  ;;  %v485_v45 = vmax.f32 %v443_v41, 0.0  ;;  %v493_v46 = vmax.f32 %v475_v42, 0.0 }
 0x115   : > { %v702_v47 = vpack.c.bf16 %v485_v45, %v485_v45  ;;  %v710_v48 = vpack.c.bf16 %v493_v46, %v493_v46 }
 0x117   : > { %566 = vst.msk [vmem:[%s886_s18 + $0x1c] sm:$0xf] %vm558_vm3, %v702_v47  ;;  %574 = vst.msk [vmem:[%s886_s18 + $0x3c] sm:$0xf] %vm558_vm3, %v710_v48 }
 0x118 PF: > { %s13_s12 = sadd.s32 1, %s781_s12  }
 0x119   : > { %p10_p4 = scmp.ge.s32.totalorder %s13_s12, 6  }
 0x11b   :  { %12 = sbr.rel (!%p10_p4) target bundleno = 1 (0x1), region = 62 }

// kernel: mlfn_forward.35
= control target key start
LH: loop header
LB: loop body
LE: loop exit
PB: predicated region body
PF: predicated region fallthrough
CT: control target
= control target key end

     0   :  { %s1057_s13 = smov 0   ;;  %s1157_s0 = inlined_call_operand.vmem [shape: bf16[2,64,8], index: 0, kind: input, shape index: {}]   ;;  %s1158_s1 = inlined_call_operand.vmem [shape: bf16[8,8], index: 1, kind: input, shape index: {}]   ;;  %s1159_s2 = inlined_call_operand.vmem [shape: f32[1,8], index: 2, kind: input, shape index: {}]   ;;  %s1160_s3 = inlined_call_operand.vmem [shape: f32[8,16], index: 3, kind: input, shape index: {}]   ;;  %s1161_s4 = inlined_call_operand.vmem [shape: f32[1,16], index: 4, kind: input, shape index: {}]   ;;  %s1162_s5 = inlined_call_operand.vmem [shape: f32[16,8], index: 5, kind: input, shape index: {}]   ;;  %s1163_s6 = inlined_call_operand.vmem [shape: f32[1,8], index: 6, kind: input, shape index: {}]   ;;  %s1164_s7 = inlined_call_operand.vmem [shape: f32[8,4], index: 7, kind: input, shape index: {}]   ;;  %s1165_s8 = inlined_call_operand.vmem [shape: f32[1,4], index: 8, kind: input, shape index: {}]   ;;  %s1166_s9 = inlined_call_operand.vmem [shape: bf16[2,64,8], index: 9, kind: output, shape index: {0}]   ;;  %s1167_s10 = inlined_call_operand.vmem [shape: f32[2,1,4], index: 10, kind: output, shape index: {1}]  }
   0x1 LB: > { %s885_s14 = sadd.s32 4294967295, %s998_s13   ;;  %p889_p0 = scmp.ge.s32.totalorder %s998_s13, 1  ;;  %s998_s13 = sphi %s1057_s13, %s21_s13  }
   0x2   : > { %p315_p1 = scmp.lt.s32.totalorder %s998_s13, 3 }
   0x4   : > { %p316_p2 = pnand %p889_p0, %p315_p1 }
   0x5   : > { %p356_p3 = scmp.lt.s32.totalorder (!%p316_p2), %s885_s14, 1 }
   0x6   : > { %319 = sbr.rel (%p316_p2) target bundleno = 668 (0x29c), region = 56 }
   0xb   : > { %v410_v0 = vld [vmem:[%s1160_s3] sm:$0xff]  ;;  %v1000_v1 = vmov 0.0   ;;  %vm1001_vm0 = vmmov 0   ;;  %s1169_s14 = smov (!%p356_p3, %s885_s14), 1  ;;  %vm386_vm1 = vcmask 64512   ;;  %v487_v36 = vld [vmem:[%s1162_s5 + $0x8] sm:$0xff] }
   0xc   : > { %939 = vmatprep.subr.mxu0 %v1000_v1  ;;  %941 = vmatprep.mubr.msk.f32.mxu0 %vm1001_vm0, %v1000_v1  ;;  %s917_s17 = sshll.u32 %s1169_s14, 5  ;;  %v486_v37 = vld [vmem:[%s1162_s5] sm:$0xff]  ;;  %vm489_vm2 = vcmask 130048   ;;  %vm687_vm3 = vcmask 1043456   ;;  %vm796_vm4 = vcmask 60416   ;;  %s368_s24 = scalar_lea.vmem %s1167_s10, %s1169_s14  ;;  %vm645_vm5 = vcmask 24576  }
   0xd   : > { %940 = vmatpush3.msra.mxu0 %v410_v0  ;;  %944 = vmatprep.subr.mxu1 %v1000_v1  ;;  %s360_s20 = scalar_lea.vmem %s1157_s0, %s917_s17  ;;  %v411_v38 = vld [vmem:[%s1161_s4] sm:$0x1] }
   0xe   : > { %948 = vmatprep.mubr.msk.f32.mxu1 %vm1001_vm0, %v1000_v1  ;;  %951 = vmatprep.subr.mxu0 %v1000_v1  ;;  %v1078_v2 = vld [vmem:[%s360_s20] sm:$0xff]   ;;  %v1080_v3 = vld [vmem:[%s360_s20 + $0x8] sm:$0xff]   ;;  %v374_v4 = vld [vmem:[%s360_s20 + $0x10] sm:$0xff]  }
   0xf   : > { %v378_v5 = vunpack.c.l.bf16 %v1078_v2  ;;  %v379_v6 = vunpack.c.h.bf16 %v1078_v2  ;;  %v380_v7 = vunpack.c.l.bf16 %v1080_v3  ;;  %v381_v8 = vunpack.c.h.bf16 %v1080_v3  ;;  %v376_v13 = vld [vmem:[%s360_s20 + $0x18] sm:$0xff]   ;;  %945 = vmatpush3.msra.mxu1 %v487_v36  ;;  %v564_v43 = vld [vmem:[%s1164_s7] sm:$0xff]  ;;  %s1129_s20 = scalar_lea.vmem %s1166_s9, %s917_s17 }
  0x10   : > { %v382_v9 = vunpack.c.l.bf16 %v374_v4  ;;  %v383_v15 = vunpack.c.h.bf16 %v374_v4  ;;  %v384_v18 = vunpack.c.l.bf16 %v376_v13  ;;  %v385_v21 = vunpack.c.h.bf16 %v376_v13  ;;  %946 = vmatprep.subr.mxu1 %v1000_v1  ;;  %v647_v44 = vld [vmem:[%s1158_s1] sm:$0xf] }
  0x11   : > { %v387_v10 = vsel %vm386_vm1, %v378_v5, 0.0  ;;  %v388_v11 = vsel %vm386_vm1, %v379_v6, 0.0  ;;  %v390_v12 = vsel %vm386_vm1, %v380_v7, 0.0  ;;  %v392_v16 = vsel %vm386_vm1, %v381_v8, 0.0  ;;  %947 = vmatpush3.msra.mxu1 %v486_v37  ;;  %v488_v46 = vld [vmem:[%s1163_s6] sm:$0x1] }
  0x12   : > { %v389_v14 = vadd.f32 %v388_v11, %v387_v10  ;;  %v394_v19 = vsel %vm386_vm1, %v382_v9, 0.0  ;;  %v396_v22 = vsel %vm386_vm1, %v383_v15, 0.0  ;;  %v398_v24 = vsel %vm386_vm1, %v384_v18, 0.0  ;;  %969 = vmatprep.subr.msk.bf16.mxu1 %vm687_vm3, %v647_v44  ;;  %v898_v54 = vld [vmem:[%s1159_s2] ss:$0 sm:$0xff] }
  0x13   : > { %v400_v26 = vsel %vm386_vm1, %v385_v21, 0.0  ;;  %v689_v45 = vsel %vm687_vm3, %v647_v44, 0 }
  0x14   : > { %v391_v17 = vadd.f32 %v390_v12, %v389_v14 }
  0x16   : > { %v393_v20 = vadd.f32 %v392_v16, %v391_v17 }
  0x18   : > { %v395_v23 = vadd.f32 %v394_v19, %v393_v20 }
  0x1a   : > { %v397_v25 = vadd.f32 %v396_v22, %v395_v23 }
  0x1c   : > { %v399_v27 = vadd.f32 %v398_v24, %v397_v25 }
  0x1e   : > { %v401_v28 = vadd.f32 %v400_v26, %v399_v27 }
  0x20   : > { %v402_v29 = vrot.slane %v401_v28, 4 }
  0x22   : > { %v403_v30 = vadd.f32 %v402_v29, %v401_v28 }
  0x24   : > { %v404_v31 = vrot.slane %v403_v30, 2 }
  0x26   : > { %v405_v32 = vadd.f32 %v404_v31, %v403_v30 }
  0x28   : > { %v406_v33 = vrot.slane %v405_v32, 1 }
  0x2a   : > { %v407_v34 = vadd.f32 %v406_v33, %v405_v32 }
  0x2c   : > { %v409_v35 = vmul.f32 0.015625, %v407_v34 }
  0x2e   : > { %942 = vmatmul.mubr.msk.f32.vlgmr.msra.gmra.mxu0 %vm386_vm1, %v409_v35 }
  0x2f   : > { %953 = vmatprep.mubr.msk.f32.mxu0 %vm1001_vm0, %v1000_v1  ;;  %952 = vmatpush3.msra.mxu0 %v564_v43 }
  0x30   : > { %968 = vmatprep.subr.msk.bf16.mxu0 %vm687_vm3, %v647_v44 }
  0xee   : > { %v481_v39 = vpop.f32.mrf.mxu0 }
  0xef   : > { %v482_v40 = vadd.f32 %v481_v39, %v411_v38 }
  0xf0   : > { %v943_v41 = vpop.f32.mrf.mxu0 }
  0xf1   : > { %v485_v42 = vmax.f32 %v482_v40, 0.0 }
  0xf3   : > { %949 = vmatmul.mubr.msk.f32.vlgmr.msra.gmra.mxu1 %vm489_vm2, %v485_v42 }
  0xf4   : > { %967 = vmatpush3.bf16.msra.mxu1 %v689_v45  ;;  %962 = vmatprep.mubr.msk.bf16.mxu1 %vm386_vm1, %v374_v4  ;;  %v565_v4 = vld [vmem:[%s1165_s8] sm:$0x1] }
  0xf7   : > { %963 = vmatmul.mubr.msk.bf16.vlgmr.msra.gmra.mxu1 %vm386_vm1, %v376_v13 }
 0x1b3   : > { %v559_v47 = vpop.f32.mrf.mxu1 }
 0x1b4   : > { %v560_v48 = vadd.f32 %v559_v47, %v488_v46 }
 0x1b5   : > { %v950_v49 = vpop.f32.mrf.mxu1 }
 0x1b6   : > { %v563_v50 = vmax.f32 %v560_v48, 0.0 }
 0x1b7   : > { %v964_v51 = vpop.f32.mrf.mxu1 }
 0x1b8   : > { %954 = vmatmul.mubr.msk.f32.vlgmr.msra.gmra.mxu0 %vm386_vm1, %v563_v50  ;;  %v750_v56 = vadd.f32 %v964_v51, %v898_v54 }
 0x1b9   : > { %957 = vmatpush3.bf16.msra.mxu0 %v689_v45  ;;  %958 = vmatprep.mubr.msk.bf16.mxu0 %vm386_vm1, %v1078_v2  ;;  %v741_v52 = vpop.f32.mrf.mxu1 }
 0x1ba   : > { %v742_v57 = vadd.f32 %v898_v54, %v741_v52  ;;  %v762_v60 = vmax.f32 %v750_v56, 0.0 }
 0x1bb   : > { %v965_v53 = vpop.f32.mrf.mxu1 }
 0x1bc   : > { %959 = vmatmul.mubr.msk.bf16.vlgmr.msra.gmra.mxu0 %vm386_vm1, %v1080_v3  ;;  %v753_v58 = vadd.f32 %v965_v53, %v898_v54  ;;  %v760_v61 = vmax.f32 %v742_v57, 0.0  ;;  %v925_v0 = vpack.c.bf16 %v762_v60, %v762_v60 }
 0x1bd   : > { %v744_v55 = vpop.f32.mrf.mxu1 }
 0x1be   : > { %v745_v59 = vadd.f32 %v898_v54, %v744_v55  ;;  %v763_v62 = vmax.f32 %v753_v58, 0.0  ;;  %v923_v1 = vpack.c.bf16 %v760_v61, %v760_v61  ;;  %803 = vst.msk [vmem:[%s1129_s20 + $0x18] sm:$0xf] %vm796_vm4, %v925_v0 }
 0x1c0   : > { %v761_v63 = vmax.f32 %v745_v59, 0.0  ;;  %v926_v2 = vpack.c.bf16 %v763_v62, %v763_v62  ;;  %801 = vst.msk [vmem:[%s1129_s20 + $0x10] sm:$0xf] %vm796_vm4, %v923_v1 }
 0x1c2   : > { %v924_v3 = vpack.c.bf16 %v761_v63, %v761_v63  ;;  %804 = vst.msk [vmem:[%s1129_s20 + $0x1c] sm:$0xf] %vm796_vm4, %v926_v2 }
 0x1c4   : > { %802 = vst.msk [vmem:[%s1129_s20 + $0x14] sm:$0xf] %vm796_vm4, %v924_v3 }
 0x278   : > { %v635_v5 = vpop.f32.mrf.mxu0 }
 0x279   : > { %v636_v6 = vadd.f32 %v635_v5, %v565_v4 }
 0x27a   : > { %v955_v7 = vpop.f32.mrf.mxu0 }
 0x27b   : > { %v897_v8 = vmul.f32 -1.442695, %v636_v6 }
 0x27c   : > { %v960_v9 = vpop.f32.mrf.mxu0 }
 0x27d   : > { %988 = vpow2.f32 %v897_v8  ;;  %v734_v10 = vadd.f32 %v960_v9, %v898_v54 }
 0x27e   : > { %v725_v11 = vpop.f32.mrf.mxu0 }
 0x27f   : > { %v758_v12 = vmax.f32 %v734_v10, 0.0  ;;  %v726_v13 = vadd.f32 %v898_v54, %v725_v11 }
 0x280   : > { %v961_v14 = vpop.f32.mrf.mxu0 }
 0x281   : > { %v921_v15 = vpack.c.bf16 %v758_v12, %v758_v12  ;;  %v756_v16 = vmax.f32 %v726_v13, 0.0  ;;  %v737_v17 = vadd.f32 %v961_v14, %v898_v54 }
 0x282   : > { %v728_v18 = vpop.f32.mrf.mxu0 }
 0x283   : > { %799 = vst.msk [vmem:[%s1129_s20 + $0x8] sm:$0xf] %vm796_vm4, %v921_v15  ;;  %v919_v19 = vpack.c.bf16 %v756_v16, %v756_v16  ;;  %v759_v20 = vmax.f32 %v737_v17, 0.0  ;;  %v729_v21 = vadd.f32 %v898_v54, %v728_v18 }
 0x285   : > { %797 = vst.msk [vmem:[%s1129_s20] sm:$0xf] %vm796_vm4, %v919_v19  ;;  %v922_v22 = vpack.c.bf16 %v759_v20, %v759_v20  ;;  %v757_v23 = vmax.f32 %v729_v21, 0.0 }
 0x287   : > { %800 = vst.msk [vmem:[%s1129_s20 + $0xc] sm:$0xf] %vm796_vm4, %v922_v22  ;;  %v920_v24 = vpack.c.bf16 %v757_v23, %v757_v23 }
 0x289   : > { %798 = vst.msk [vmem:[%s1129_s20 + $0x4] sm:$0xf] %vm796_vm4, %v920_v24 }
 0x28a   : > { %v989_v25 = vpop.eup %988 }
 0x28b   : > { %v642_v26 = vadd.f32 1.0, %v989_v25 }
 0x28d   : > { %990 = vrcp.f32 %v642_v26 }
 0x29a   : > { %v991_v27 = vpop.eup %990 }
 0x29b   : > { %646 = vst.msk [vmem:[%s368_s24] sm:$0x1] %vm645_vm5, %v991_v27 }
 0x29c PF: > { %s21_s13 = sadd.s32 1, %s998_s13  }
 0x29d   : > { %p18_p4 = scmp.ge.s32.totalorder %s21_s13, 4  }
 0x29f   :  { %20 = sbr.rel (!%p18_p4) target bundleno = 1 (0x1), region = 98 }

// kernel: mlfn_forward.36
= control target key start
LH: loop header
LB: loop body
LE: loop exit
PB: predicated region body
PF: predicated region fallthrough
CT: control target
= control target key end

     0   :  { %s1219_s30 = smov 0   ;;  %s1221_s10 = smov 0   ;;  %s1335_s0 = inlined_call_operand.vmem [shape: bf16[2,64,72], index: 0, kind: input, shape index: {}]   ;;  %s1336_s1 = inlined_call_operand.vmem [shape: bf16[72,8], index: 1, kind: input, shape index: {}]   ;;  %s1337_s2 = inlined_call_operand.vmem [shape: f32[1,8], index: 2, kind: input, shape index: {}]   ;;  %s1338_s3 = inlined_call_operand.vmem [shape: f32[2,1,8], index: 3, kind: input, shape index: {}]   ;;  %s1339_s4 = inlined_call_operand.vmem [shape: bf16[8,16], index: 4, kind: input, shape index: {}]   ;;  %s1340_s5 = inlined_call_operand.vmem [shape: f32[1,16], index: 5, kind: input, shape index: {}]   ;;  %s1341_s6 = inlined_call_operand.vmem [shape: bf16[2,64,8], index: 6, kind: input, shape index: {}]   ;;  %s1342_s7 = inlined_call_operand.vmem [shape: bf16[8,16], index: 7, kind: input, shape index: {}]   ;;  %s1343_s8 = inlined_call_operand.vmem [shape: f32[1,16], index: 8, kind: input, shape index: {}]   ;;  %s1344_s9 = inlined_call_operand.vmem [shape: bf16[2,64,16], index: 9, kind: output, shape index: {}]  }
   0x1   :  { %s1223_s11 = smov 0  }
   0x2 LB: > { %s31_s12 = sadd.s32 1, %s1163_s10  ;;  %p991_p0 = scmp.ge.s32.totalorder %s1167_s11, 1  ;;  %s1167_s11 = sphi %s1223_s11, %s19_s11   ;;  %s1163_s10 = sphi %s1221_s10, %s1346_s10   ;;  %s1159_s30 = sphi %s1219_s30, %s1345_s30  }
   0x3   : > { %p33_p1 = scmp.ge.s32.totalorder %s31_s12, 2  ;;  %p333_p2 = scmp.lt.s32.totalorder %s1167_s11, 3 }
   0x5   : > { %s1348_s12 = smov (%p33_p1, %s31_s12), 0  ;;  %p334_p3 = pnand %p991_p0, %p333_p2 }
   0x6   : > { %p390_p4 = scmp.lt.s32.totalorder (!%p334_p3), %s1159_s30, 1 }
   0x7   : > { %337 = sbr.rel (%p334_p3) target bundleno = 473 (0x1d9), region = 56 }
   0xc   : > { %v1132_v0 = vld [vmem:[%s1336_s1 + $0x20] ss:$0 sps:$4 sm:$0xff]   ;;  %vm507_vm0 = vcmask 1043456   ;;  %v1133_v1 = vld [vmem:[%s1336_s1 + $0x18] sm:$0xff]   ;;  %v1134_v3 = vld [vmem:[%s1336_s1 + $0x10] sm:$0xff]   ;;  %s1350_s30 = smov (!%p390_p4, %s1159_s30), 1 }
   0xd   : > { %1105 = vmatprep.subr.msk.bf16.mxu0 %vm507_vm0, %v1132_v0  ;;  %v509_v2 = vsel %vm507_vm0, %v1132_v0, 0  ;;  %s1251_s19 = sshll.u32 %s1350_s30, 5  ;;  %v1135_v4 = vld [vmem:[%s1336_s1 + $0x8] sm:$0xff]   ;;  %vm494_vm1 = vcmask 588800   ;;  %v1136_v6 = vld [vmem:[%s1336_s1] sm:$0xff]   ;;  %s401_s22 = scalar_lea.vmem %s1338_s3, %s1350_s30  ;;  %vm611_vm2 = vcmask 64512  }
   0xe   : > { %1068 = vmatpush3.bf16.msra.mxu0 %v509_v2  ;;  %s397_s24 = scalar_lea.vmem %s1335_s0, %s1251_s19  ;;  %s1267_s29 = scalar_lea.vmem %s1341_s6, %s1251_s19  ;;  %v603_v10 = vld [vmem:[%s1339_s4] sm:$0xf]  ;;  %vm864_vm3 = vcmask 125952  }
   0xf   : > { %1069 = vmatprep.subr.bf16.mxu0 %v1133_v1  ;;  %v1137_v5 = vld [vmem:[%s397_s24] sm:$0xff]   ;;  %v1138_v7 = vld [vmem:[%s397_s24 + $0x8] sm:$0xff]   ;;  %v1139_v8 = vld [vmem:[%s397_s24 + $0x10] sm:$0xff]   ;;  %1106 = vmatprep.subr.msk.bf16.mxu1 %vm507_vm0, %v603_v10  ;;  %v625_v11 = vsel %vm507_vm0, %v603_v10, 0  ;;  %s1308_s28 = scalar_lea.vmem %s1344_s9, %s1251_s19 }
  0x10   : > { %1077 = vmatprep.mubr.msk.bf16.mxu0 %vm494_vm1, %v1137_v5  ;;  %v1140_v9 = vld [vmem:[%s397_s24 + $0x18] sm:$0xff]   ;;  %1086 = vmatpush3.bf16.msra.mxu1 %v625_v11  ;;  %v708_v12 = vld [vmem:[%s1342_s7] sm:$0xf]  ;;  %v1142_v53 = vld [vmem:[%s1267_s29 + $0x8] sm:$0xff]  }
  0x11   : > { %1107 = vmatprep.subr.msk.bf16.mxu1 %vm507_vm0, %v708_v12  ;;  %v998_v14 = vld [vmem:[%s1337_s2] ss:$0 sm:$0xff]  ;;  %v749_v40 = vsel %vm507_vm0, %v708_v12, 0  ;;  %v1143_v54 = vld [vmem:[%s1267_s29 + $0x10] sm:$0xff]   ;;  %v1144_v55 = vld [vmem:[%s1267_s29 + $0x18] sm:$0xff]  }
  0x12   : > { %1070 = vmatpush3.bf16.msra.mxu0 %v1133_v1  ;;  %v1012_v26 = vld [vmem:[%s401_s22] ss:$0 sm:$0xff] }
  0x13   : > { %1071 = vmatprep.subr.bf16.mxu0 %v1134_v3  ;;  %v1141_v51 = vld [vmem:[%s1267_s29] sm:$0xff]  }
  0x14   : > { %v1013_v61 = vld [vmem:[%s1340_s5] ss:$0 sm:$0xff] }
  0x15   : > { %v1018_v2 = vld [vmem:[%s1343_s8] ss:$0 sm:$0xff] }
  0x16   : > { %1072 = vmatpush3.bf16.msra.mxu0 %v1134_v3 }
  0x17   : > { %1073 = vmatprep.subr.bf16.mxu0 %v1135_v4 }
  0x1a   : > { %1074 = vmatpush3.bf16.msra.mxu0 %v1135_v4 }
  0x1b   : > { %1075 = vmatprep.subr.bf16.mxu0 %v1136_v6 }
  0x1e   : > { %1076 = vmatpush3.bf16.msra.mxu0 %v1136_v6 }
  0x21   : > { %1078 = vmatmul.mubr.msk.bf16.vlgmr.msra.gmra.mxu0 %vm494_vm1, %v1138_v7 }
  0x22   : > { %1081 = vmatprep.mubr.msk.bf16.mxu0 %vm494_vm1, %v1139_v8 }
  0x29   : > { %1082 = vmatmul.mubr.msk.bf16.gmra.mxu0 %vm494_vm1, %v1140_v9 }
  0xe1   : > { %v1079_v13 = vpop.f32.mrf.mxu0 }
  0xe2   : > { %v554_v17 = vadd.f32 %v1079_v13, %v998_v14 }
  0xe3   : > { %v545_v15 = vpop.f32.mrf.mxu0 }
  0xe4   : > { %v546_v16 = vadd.f32 %v998_v14, %v545_v15  ;;  %v578_v24 = vmax.f32 %v554_v17, 0.0 }
  0xe5   : > { %v1080_v18 = vpop.f32.mrf.mxu0 }
  0xe6   : > { %v557_v19 = vadd.f32 %v1080_v18, %v998_v14  ;;  %v576_v21 = vmax.f32 %v546_v16, 0.0  ;;  %v593_v33 = vmul.f32 %v1012_v26, %v578_v24 }
  0xe7   : > { %v548_v20 = vpop.f32.mrf.mxu0 }
  0xe8   : > { %v579_v22 = vmax.f32 %v557_v19, 0.0  ;;  %v549_v23 = vadd.f32 %v998_v14, %v548_v20  ;;  %v591_v30 = vmul.f32 %v1012_v26, %v576_v21 }
  0xe9   : > { %v1083_v25 = vpop.f32.mrf.mxu0 }
  0xea   : > { %v577_v27 = vmax.f32 %v549_v23, 0.0  ;;  %v594_v28 = vmul.f32 %v1012_v26, %v579_v22  ;;  %v570_v34 = vadd.f32 %v1083_v25, %v998_v14 }
  0xeb   : > { %v561_v29 = vpop.f32.mrf.mxu0 }
  0xec   : > { %v592_v31 = vmul.f32 %v1012_v26, %v577_v27  ;;  %v562_v32 = vadd.f32 %v998_v14, %v561_v29  ;;  %v600_v38 = vpack.c.bf16 %v594_v28, %v593_v33  ;;  %v582_v44 = vmax.f32 %v570_v34, 0.0 }
  0xed   : > { %v1084_v35 = vpop.f32.mrf.mxu0 }
  0xee   : > { %v573_v36 = vadd.f32 %v1084_v35, %v998_v14  ;;  %v599_v37 = vpack.c.bf16 %v592_v31, %v591_v30  ;;  %v580_v41 = vmax.f32 %v562_v32, 0.0  ;;  %v597_v49 = vmul.f32 %v1012_v26, %v582_v44 }
  0xef   : > { %v564_v39 = vpop.f32.mrf.mxu0 }
  0xf0   : > { %v583_v42 = vmax.f32 %v573_v36, 0.0  ;;  %v565_v43 = vadd.f32 %v998_v14, %v564_v39  ;;  %1087 = vmatprep.mubr.msk.bf16.mxu1 %vm611_vm2, %v599_v37  ;;  %v595_v47 = vmul.f32 %v1012_v26, %v580_v41 }
  0xf1   : > { %1088 = vmatmul.mubr.msk.bf16.vlgmr.msra.gmra.mxu1 %vm611_vm2, %v600_v38 }
  0xf2   : > { %v581_v45 = vmax.f32 %v565_v43, 0.0  ;;  %1096 = vmatpush3.bf16.msra.mxu1 %v749_v40  ;;  %v598_v46 = vmul.f32 %v1012_v26, %v583_v42 }
  0xf4   : > { %v596_v48 = vmul.f32 %v1012_v26, %v581_v45  ;;  %v602_v52 = vpack.c.bf16 %v598_v46, %v597_v49 }
  0xf6   : > { %v601_v50 = vpack.c.bf16 %v596_v48, %v595_v47 }
  0xf8   : > { %1091 = vmatprep.mubr.msk.bf16.mxu1 %vm611_vm2, %v601_v50 }
  0xf9   : > { %1092 = vmatmul.mubr.msk.bf16.gmra.mxu1 %vm611_vm2, %v602_v52 }
  0xfa   : > { %1097 = vmatprep.mubr.msk.bf16.mxu1 %vm611_vm2, %v1141_v51 }
 0x101   : > { %1098 = vmatmul.mubr.msk.bf16.vlgmr.msra.gmra.mxu1 %vm611_vm2, %v1142_v53 }
 0x102   : > { %1101 = vmatprep.mubr.msk.bf16.mxu1 %vm611_vm2, %v1143_v54 }
 0x109   : > { %1102 = vmatmul.mubr.msk.bf16.gmra.mxu1 %vm611_vm2, %v1144_v55 }
 0x1b1   : > { %v1089_v56 = vpop.f32.mrf.mxu1 }
 0x1b2   : > { %v670_v0 = vadd.f32 %v1089_v56, %v1013_v61 }
 0x1b3   : > { %v661_v57 = vpop.f32.mrf.mxu1 }
 0x1b4   : > { %v662_v3 = vadd.f32 %v1013_v61, %v661_v57  ;;  %v694_v5 = vmax.f32 %v670_v0, 0.0 }
 0x1b5   : > { %v1090_v58 = vpop.f32.mrf.mxu1 }
 0x1b6   : > { %v673_v6 = vadd.f32 %v1090_v58, %v1013_v61  ;;  %v692_v10 = vmax.f32 %v662_v3, 0.0 }
 0x1b7   : > { %v664_v59 = vpop.f32.mrf.mxu1 }
 0x1b8   : > { %v665_v8 = vadd.f32 %v1013_v61, %v664_v59  ;;  %v695_v15 = vmax.f32 %v673_v6, 0.0 }
 0x1b9   : > { %v1093_v60 = vpop.f32.mrf.mxu1 }
 0x1ba   : > { %v686_v13 = vadd.f32 %v1093_v60, %v1013_v61  ;;  %v693_v19 = vmax.f32 %v665_v8, 0.0 }
 0x1bb   : > { %v677_v62 = vpop.f32.mrf.mxu1 }
 0x1bc   : > { %v678_v20 = vadd.f32 %v1013_v61, %v677_v62  ;;  %v698_v26 = vmax.f32 %v686_v13, 0.0 }
 0x1bd   : > { %v1094_v63 = vpop.f32.mrf.mxu1 }
 0x1be   : > { %v689_v27 = vadd.f32 %v1094_v63, %v1013_v61  ;;  %v696_v33 = vmax.f32 %v678_v20, 0.0 }
 0x1bf   : > { %v680_v1 = vpop.f32.mrf.mxu1 }
 0x1c0   : > { %v681_v34 = vadd.f32 %v1013_v61, %v680_v1  ;;  %v699_v40 = vmax.f32 %v689_v27, 0.0 }
 0x1c1   : > { %v1099_v4 = vpop.f32.mrf.mxu1 }
 0x1c2   : > { %v794_v7 = vadd.f32 %v1099_v4, %v1018_v2  ;;  %v697_v46 = vmax.f32 %v681_v34, 0.0 }
 0x1c3   : > { %v785_v9 = vpop.f32.mrf.mxu1 }
 0x1c4   : > { %v818_v11 = vadd.f32 %v794_v7, %v694_v5  ;;  %v786_v12 = vadd.f32 %v1018_v2, %v785_v9 }
 0x1c5   : > { %v1100_v14 = vpop.f32.mrf.mxu1 }
 0x1c6   : > { %v826_v16 = vmax.f32 %v818_v11, 0.0  ;;  %v816_v17 = vadd.f32 %v786_v12, %v692_v10  ;;  %v797_v18 = vadd.f32 %v1100_v14, %v1018_v2 }
 0x1c7   : > { %v788_v21 = vpop.f32.mrf.mxu1 }
 0x1c8   : > { %v1042_v22 = vpack.c.bf16 %v826_v16, %v826_v16  ;;  %v824_v23 = vmax.f32 %v816_v17, 0.0  ;;  %v819_v24 = vadd.f32 %v797_v18, %v695_v15  ;;  %v789_v25 = vadd.f32 %v1018_v2, %v788_v21 }
 0x1c9   : > { %v1103_v28 = vpop.f32.mrf.mxu1 }
 0x1ca   : > { %867 = vst.msk [vmem:[%s1308_s28 + $0x8] sm:$0xf] %vm864_vm3, %v1042_v22  ;;  %v1040_v29 = vpack.c.bf16 %v824_v23, %v824_v23  ;;  %v827_v30 = vmax.f32 %v819_v24, 0.0  ;;  %v817_v31 = vadd.f32 %v789_v25, %v693_v19  ;;  %v810_v32 = vadd.f32 %v1103_v28, %v1018_v2 }
 0x1cb   : > { %v801_v35 = vpop.f32.mrf.mxu1 }
 0x1cc   : > { %865 = vst.msk [vmem:[%s1308_s28] sm:$0xf] %vm864_vm3, %v1040_v29  ;;  %v1043_v36 = vpack.c.bf16 %v827_v30, %v827_v30  ;;  %v825_v37 = vmax.f32 %v817_v31, 0.0  ;;  %v822_v38 = vadd.f32 %v810_v32, %v698_v26  ;;  %v802_v39 = vadd.f32 %v1018_v2, %v801_v35 }
 0x1cd   : > { %v1104_v41 = vpop.f32.mrf.mxu1 }
 0x1ce   : > { %868 = vst.msk [vmem:[%s1308_s28 + $0xc] sm:$0xf] %vm864_vm3, %v1043_v36  ;;  %v1041_v42 = vpack.c.bf16 %v825_v37, %v825_v37  ;;  %v830_v43 = vmax.f32 %v822_v38, 0.0  ;;  %v820_v44 = vadd.f32 %v802_v39, %v696_v33  ;;  %v813_v45 = vadd.f32 %v1104_v41, %v1018_v2 }
 0x1cf   : > { %v804_v47 = vpop.f32.mrf.mxu1 }
 0x1d0   : > { %866 = vst.msk [vmem:[%s1308_s28 + $0x4] sm:$0xf] %vm864_vm3, %v1041_v42  ;;  %v1046_v48 = vpack.c.bf16 %v830_v43, %v830_v43  ;;  %v828_v49 = vmax.f32 %v820_v44, 0.0  ;;  %v823_v50 = vadd.f32 %v813_v45, %v699_v40  ;;  %v805_v51 = vadd.f32 %v1018_v2, %v804_v47 }
 0x1d2   : > { %871 = vst.msk [vmem:[%s1308_s28 + $0x18] sm:$0xf] %vm864_vm3, %v1046_v48  ;;  %v1044_v52 = vpack.c.bf16 %v828_v49, %v828_v49  ;;  %v831_v53 = vmax.f32 %v823_v50, 0.0  ;;  %v821_v54 = vadd.f32 %v805_v51, %v697_v46 }
 0x1d4   : > { %869 = vst.msk [vmem:[%s1308_s28 + $0x10] sm:$0xf] %vm864_vm3, %v1044_v52  ;;  %v1047_v55 = vpack.c.bf16 %v831_v53, %v831_v53  ;;  %v829_v56 = vmax.f32 %v821_v54, 0.0 }
 0x1d6   : > { %872 = vst.msk [vmem:[%s1308_s28 + $0x1c] sm:$0xf] %vm864_vm3, %v1047_v55  ;;  %v1045_v57 = vpack.c.bf16 %v829_v56, %v829_v56 }
 0x1d8   : > { %870 = vst.msk [vmem:[%s1308_s28 + $0x14] sm:$0xf] %vm864_vm3, %v1045_v57 }
 0x1d9 PF: > { %s19_s11 = sadd.s32 1, %s1167_s11   ;;  %s1345_s30 = smov %s1163_s10 }
 0x1da   : > { %p16_p5 = scmp.ge.s32.totalorder %s19_s11, 4   ;;  %s1346_s10 = smov %s1348_s12 }
 0x1dc   :  { %18 = sbr.rel (!%p16_p5) target bundleno = 2 (0x2), region = 92 }

// kernel: mlfn_forward.38
= control target key start
LH: loop header
LB: loop body
LE: loop exit
PB: predicated region body
PF: predicated region fallthrough
CT: control target
= control target key end

     0   :  { %s1045_s24 = smov 0   ;;  %s1047_s25 = smov 0   ;;  %s1143_s0 = inlined_call_operand.vmem [shape: bf16[2,64,72], index: 0, kind: input, shape index: {}]   ;;  %s1144_s1 = inlined_call_operand.vmem [shape: bf16[72,8], index: 1, kind: input, shape index: {}]   ;;  %s1145_s2 = inlined_call_operand.vmem [shape: f32[1,8], index: 2, kind: input, shape index: {}]   ;;  %s1146_s3 = inlined_call_operand.vmem [shape: f32[2,1,8], index: 3, kind: input, shape index: {}]   ;;  %s1147_s4 = inlined_call_operand.vmem [shape: bf16[8,16], index: 4, kind: input, shape index: {}]   ;;  %s1148_s5 = inlined_call_operand.vmem [shape: f32[1,16], index: 5, kind: input, shape index: {}]   ;;  %s1149_s6 = inlined_call_operand.vmem [shape: bf16[2,64,16], index: 6, kind: input, shape index: {}]   ;;  %s1150_s7 = inlined_call_operand.vmem [shape: bf16[2,64,16], index: 7, kind: output, shape index: {}]  }
   0x1   :  { %s1049_s26 = smov 0  }
   0x2 LB: > { %s29_s27 = sadd.s32 1, %s999_s25  ;;  %p837_p0 = scmp.ge.s32.totalorder %s1003_s26, 1  ;;  %s1003_s26 = sphi %s1049_s26, %s17_s26   ;;  %s999_s25 = sphi %s1047_s25, %s1152_s25   ;;  %s995_s24 = sphi %s1045_s24, %s1151_s24  }
   0x3   : > { %p31_p1 = scmp.ge.s32.totalorder %s29_s27, 2  ;;  %p283_p2 = scmp.lt.s32.totalorder %s1003_s26, 3 }
   0x5   : > { %s1154_s27 = smov (%p31_p1, %s29_s27), 0  ;;  %p284_p3 = pnand %p837_p0, %p283_p2 }
   0x6   : > { %p336_p4 = scmp.lt.s32.totalorder (!%p284_p3), %s995_s24, 1 }
   0x7   : > { %287 = sbr.rel (%p284_p3) target bundleno = 459 (0x1cb), region = 48 }
   0xc   : > { %v972_v0 = vld [vmem:[%s1144_s1 + $0x20] ss:$0 sps:$4 sm:$0xff]   ;;  %vm453_vm0 = vcmask 1043456   ;;  %v973_v1 = vld [vmem:[%s1144_s1 + $0x18] sm:$0xff]   ;;  %v974_v3 = vld [vmem:[%s1144_s1 + $0x10] sm:$0xff]   ;;  %s1156_s24 = smov (!%p336_p4, %s995_s24), 1 }
   0xd   : > { %946 = vmatprep.subr.msk.bf16.mxu0 %vm453_vm0, %v972_v0  ;;  %v455_v2 = vsel %vm453_vm0, %v972_v0, 0  ;;  %s1077_s11 = sshll.u32 %s1156_s24, 5  ;;  %v975_v4 = vld [vmem:[%s1144_s1 + $0x8] sm:$0xff]   ;;  %vm440_vm1 = vcmask 588800   ;;  %v976_v6 = vld [vmem:[%s1144_s1] sm:$0xff]   ;;  %s347_s29 = scalar_lea.vmem %s1146_s3, %s1156_s24  ;;  %vm557_vm2 = vcmask 64512  }
   0xe   : > { %919 = vmatpush3.bf16.msra.mxu0 %v455_v2  ;;  %s343_s16 = scalar_lea.vmem %s1143_s0, %s1077_s11  ;;  %v549_v10 = vld [vmem:[%s1147_s4] sm:$0xf]  ;;  %s356_s8 = scalar_lea.vmem %s1149_s6, %s1077_s11  ;;  %vm710_vm3 = vcmask 125952  }
   0xf   : > { %920 = vmatprep.subr.bf16.mxu0 %v973_v1  ;;  %v977_v5 = vld [vmem:[%s343_s16] sm:$0xff]   ;;  %v978_v7 = vld [vmem:[%s343_s16 + $0x8] sm:$0xff]   ;;  %v979_v8 = vld [vmem:[%s343_s16 + $0x10] sm:$0xff]   ;;  %947 = vmatprep.subr.msk.bf16.mxu1 %vm453_vm0, %v549_v10  ;;  %v571_v11 = vsel %vm453_vm0, %v549_v10, 0  ;;  %s1116_s14 = scalar_lea.vmem %s1150_s7, %s1077_s11 }
  0x10   : > { %928 = vmatprep.mubr.msk.bf16.mxu0 %vm440_vm1, %v977_v5  ;;  %v980_v9 = vld [vmem:[%s343_s16 + $0x18] sm:$0xff]   ;;  %937 = vmatpush3.bf16.msra.mxu1 %v571_v11  ;;  %v844_v13 = vld [vmem:[%s1145_s2] ss:$0 sm:$0xff]  ;;  %v901_v51 = vld [vmem:[%s356_s8 + $0x8] sm:$0xff]  }
  0x11   : > { %v858_v25 = vld [vmem:[%s347_s29] ss:$0 sm:$0xff]  ;;  %v891_v55 = vunpack.c.l.bf16 %v901_v51  ;;  %v892_v0 = vunpack.c.h.bf16 %v901_v51 }
  0x12   : > { %921 = vmatpush3.bf16.msra.mxu0 %v973_v1  ;;  %v859_v50 = vld [vmem:[%s1148_s5] ss:$0 sm:$0xff] }
  0x13   : > { %922 = vmatprep.subr.bf16.mxu0 %v974_v3  ;;  %v886_v53 = vld [vmem:[%s356_s8] sm:$0xff]  }
  0x14   : > { %v887_v59 = vunpack.c.l.bf16 %v886_v53  ;;  %v888_v2 = vunpack.c.h.bf16 %v886_v53 }
  0x16   : > { %923 = vmatpush3.bf16.msra.mxu0 %v974_v3 }
  0x17   : > { %924 = vmatprep.subr.bf16.mxu0 %v975_v4 }
  0x1a   : > { %925 = vmatpush3.bf16.msra.mxu0 %v975_v4 }
  0x1b   : > { %926 = vmatprep.subr.bf16.mxu0 %v976_v6 }
  0x1e   : > { %927 = vmatpush3.bf16.msra.mxu0 %v976_v6 }
  0x21   : > { %929 = vmatmul.mubr.msk.bf16.vlgmr.msra.gmra.mxu0 %vm440_vm1, %v978_v7  ;;  %v903_v7 = vld [vmem:[%s356_s8 + $0x18] sm:$0xff]  }
  0x22   : > { %932 = vmatprep.mubr.msk.bf16.mxu0 %vm440_vm1, %v979_v8  ;;  %v902_v8 = vld [vmem:[%s356_s8 + $0x10] sm:$0xff]  }
  0x29   : > { %933 = vmatmul.mubr.msk.bf16.gmra.mxu0 %vm440_vm1, %v980_v9 }
  0xe1   : > { %v930_v12 = vpop.f32.mrf.mxu0 }
  0xe2   : > { %v500_v16 = vadd.f32 %v930_v12, %v844_v13 }
  0xe3   : > { %v491_v14 = vpop.f32.mrf.mxu0 }
  0xe4   : > { %v492_v15 = vadd.f32 %v844_v13, %v491_v14  ;;  %v524_v23 = vmax.f32 %v500_v16, 0.0 }
  0xe5   : > { %v931_v17 = vpop.f32.mrf.mxu0 }
  0xe6   : > { %v503_v18 = vadd.f32 %v931_v17, %v844_v13  ;;  %v522_v20 = vmax.f32 %v492_v15, 0.0  ;;  %v539_v32 = vmul.f32 %v858_v25, %v524_v23  ;;  %v899_v15 = vunpack.c.l.bf16 %v903_v7 }
  0xe7   : > { %v494_v19 = vpop.f32.mrf.mxu0  ;;  %v895_v17 = vunpack.c.l.bf16 %v902_v8 }
  0xe8   : > { %v525_v21 = vmax.f32 %v503_v18, 0.0  ;;  %v495_v22 = vadd.f32 %v844_v13, %v494_v19  ;;  %v537_v29 = vmul.f32 %v858_v25, %v522_v20 }
  0xe9   : > { %v934_v24 = vpop.f32.mrf.mxu0 }
  0xea   : > { %v523_v26 = vmax.f32 %v495_v22, 0.0  ;;  %v540_v27 = vmul.f32 %v858_v25, %v525_v21  ;;  %v516_v33 = vadd.f32 %v934_v24, %v844_v13  ;;  %v900_v24 = vunpack.c.h.bf16 %v903_v7 }
  0xeb   : > { %v507_v28 = vpop.f32.mrf.mxu0 }
  0xec   : > { %v538_v30 = vmul.f32 %v858_v25, %v523_v26  ;;  %v508_v31 = vadd.f32 %v844_v13, %v507_v28  ;;  %v546_v37 = vpack.c.bf16 %v540_v27, %v539_v32  ;;  %v528_v42 = vmax.f32 %v516_v33, 0.0 }
  0xed   : > { %v935_v34 = vpop.f32.mrf.mxu0 }
  0xee   : > { %v519_v35 = vadd.f32 %v935_v34, %v844_v13  ;;  %v545_v36 = vpack.c.bf16 %v538_v30, %v537_v29  ;;  %v526_v39 = vmax.f32 %v508_v31, 0.0  ;;  %v543_v47 = vmul.f32 %v858_v25, %v528_v42 }
  0xef   : > { %v510_v38 = vpop.f32.mrf.mxu0  ;;  %v896_v31 = vunpack.c.h.bf16 %v902_v8 }
  0xf0   : > { %v529_v40 = vmax.f32 %v519_v35, 0.0  ;;  %v511_v41 = vadd.f32 %v844_v13, %v510_v38  ;;  %938 = vmatprep.mubr.msk.bf16.mxu1 %vm557_vm2, %v545_v36  ;;  %v541_v45 = vmul.f32 %v858_v25, %v526_v39 }
  0xf1   : > { %939 = vmatmul.mubr.msk.bf16.vlgmr.msra.gmra.mxu1 %vm557_vm2, %v546_v37 }
  0xf2   : > { %v527_v43 = vmax.f32 %v511_v41, 0.0  ;;  %v544_v44 = vmul.f32 %v858_v25, %v529_v40 }
  0xf4   : > { %v542_v46 = vmul.f32 %v858_v25, %v527_v43  ;;  %v548_v49 = vpack.c.bf16 %v544_v44, %v543_v47 }
  0xf6   : > { %v547_v48 = vpack.c.bf16 %v542_v46, %v541_v45 }
  0xf8   : > { %942 = vmatprep.mubr.msk.bf16.mxu1 %vm557_vm2, %v547_v48 }
  0xf9   : > { %943 = vmatmul.mubr.msk.bf16.gmra.mxu1 %vm557_vm2, %v548_v49 }
 0x1b1   : > { %v940_v52 = vpop.f32.mrf.mxu1 }
 0x1b2   : > { %v616_v54 = vadd.f32 %v940_v52, %v859_v50 }
 0x1b3   : > { %v607_v56 = vpop.f32.mrf.mxu1 }
 0x1b4   : > { %v640_v57 = vmax.f32 %v616_v54, 0.0  ;;  %v608_v58 = vadd.f32 %v859_v50, %v607_v56 }
 0x1b5   : > { %v941_v60 = vpop.f32.mrf.mxu1 }
 0x1b6   : > { %v664_v61 = vadd.f32 %v891_v55, %v640_v57  ;;  %v638_v62 = vmax.f32 %v608_v58, 0.0  ;;  %v619_v63 = vadd.f32 %v941_v60, %v859_v50 }
 0x1b7   : > { %v610_v1 = vpop.f32.mrf.mxu1 }
 0x1b8   : > { %v672_v3 = vmax.f32 %v664_v61, 0.0  ;;  %v662_v4 = vadd.f32 %v887_v59, %v638_v62  ;;  %v641_v5 = vmax.f32 %v619_v63, 0.0  ;;  %v611_v6 = vadd.f32 %v859_v50, %v610_v1 }
 0x1b9   : > { %v944_v9 = vpop.f32.mrf.mxu1 }
 0x1ba   : > { %v879_v10 = vpack.c.bf16 %v672_v3, %v672_v3  ;;  %v670_v11 = vmax.f32 %v662_v4, 0.0  ;;  %v665_v12 = vadd.f32 %v892_v0, %v641_v5  ;;  %v639_v13 = vmax.f32 %v611_v6, 0.0 }
 0x1bb   : > { %v632_v14 = vadd.f32 %v944_v9, %v859_v50  ;;  %v623_v16 = vpop.f32.mrf.mxu1 }
 0x1bc   : > { %713 = vst.msk [vmem:[%s1116_s14 + $0x8] sm:$0xf] %vm710_vm3, %v879_v10  ;;  %v877_v18 = vpack.c.bf16 %v670_v11, %v670_v11  ;;  %v673_v19 = vmax.f32 %v665_v12, 0.0  ;;  %v663_v20 = vadd.f32 %v888_v2, %v639_v13  ;;  %v624_v21 = vadd.f32 %v859_v50, %v623_v16 }
 0x1bd   : > { %v644_v22 = vmax.f32 %v632_v14, 0.0  ;;  %v945_v23 = vpop.f32.mrf.mxu1 }
 0x1be   : > { %711 = vst.msk [vmem:[%s1116_s14] sm:$0xf] %vm710_vm3, %v877_v18  ;;  %v880_v25 = vpack.c.bf16 %v673_v19, %v673_v19  ;;  %v671_v26 = vmax.f32 %v663_v20, 0.0  ;;  %v642_v27 = vmax.f32 %v624_v21, 0.0  ;;  %v635_v28 = vadd.f32 %v945_v23, %v859_v50 }
 0x1bf   : > { %v668_v29 = vadd.f32 %v899_v15, %v644_v22  ;;  %v626_v30 = vpop.f32.mrf.mxu1 }
 0x1c0   : > { %714 = vst.msk [vmem:[%s1116_s14 + $0xc] sm:$0xf] %vm710_vm3, %v880_v25  ;;  %v878_v32 = vpack.c.bf16 %v671_v26, %v671_v26  ;;  %v666_v33 = vadd.f32 %v895_v17, %v642_v27  ;;  %v645_v34 = vmax.f32 %v635_v28, 0.0  ;;  %v627_v35 = vadd.f32 %v859_v50, %v626_v30 }
 0x1c1   : > { %v676_v36 = vmax.f32 %v668_v29, 0.0 }
 0x1c2   : > { %712 = vst.msk [vmem:[%s1116_s14 + $0x4] sm:$0xf] %vm710_vm3, %v878_v32  ;;  %v674_v37 = vmax.f32 %v666_v33, 0.0  ;;  %v669_v38 = vadd.f32 %v900_v24, %v645_v34  ;;  %v643_v39 = vmax.f32 %v627_v35, 0.0 }
 0x1c3   : > { %v883_v40 = vpack.c.bf16 %v676_v36, %v676_v36 }
 0x1c4   : > { %v881_v41 = vpack.c.bf16 %v674_v37, %v674_v37  ;;  %v677_v42 = vmax.f32 %v669_v38, 0.0  ;;  %v667_v43 = vadd.f32 %v896_v31, %v643_v39 }
 0x1c5   : > { %717 = vst.msk [vmem:[%s1116_s14 + $0x18] sm:$0xf] %vm710_vm3, %v883_v40 }
 0x1c6   : > { %715 = vst.msk [vmem:[%s1116_s14 + $0x10] sm:$0xf] %vm710_vm3, %v881_v41  ;;  %v884_v44 = vpack.c.bf16 %v677_v42, %v677_v42  ;;  %v675_v45 = vmax.f32 %v667_v43, 0.0 }
 0x1c8   : > { %718 = vst.msk [vmem:[%s1116_s14 + $0x1c] sm:$0xf] %vm710_vm3, %v884_v44  ;;  %v882_v46 = vpack.c.bf16 %v675_v45, %v675_v45 }
 0x1ca   : > { %716 = vst.msk [vmem:[%s1116_s14 + $0x14] sm:$0xf] %vm710_vm3, %v882_v46 }
 0x1cb PF: > { %s17_s26 = sadd.s32 1, %s1003_s26   ;;  %s1151_s24 = smov %s999_s25 }
 0x1cc   : > { %p14_p5 = scmp.ge.s32.totalorder %s17_s26, 4   ;;  %s1152_s25 = smov %s1154_s27 }
 0x1ce   :  { %16 = sbr.rel (!%p14_p5) target bundleno = 2 (0x2), region = 84 }

// kernel: mlfn_forward.37
= control target key start
LH: loop header
LB: loop body
LE: loop exit
PB: predicated region body
PF: predicated region fallthrough
CT: control target
= control target key end

     0   :  { %s1062_s13 = smov 0   ;;  %s1145_s0 = inlined_call_operand.vmem [shape: bf16[2,64,16], index: 0, kind: input, shape index: {}]   ;;  %s1146_s1 = inlined_call_operand.vmem [shape: bf16[16,8], index: 1, kind: input, shape index: {}]   ;;  %s1147_s2 = inlined_call_operand.vmem [shape: f32[1,8], index: 2, kind: input, shape index: {}]   ;;  %s1148_s3 = inlined_call_operand.vmem [shape: f32[16,16], index: 3, kind: input, shape index: {}]   ;;  %s1149_s4 = inlined_call_operand.vmem [shape: f32[1,16], index: 4, kind: input, shape index: {}]   ;;  %s1150_s5 = inlined_call_operand.vmem [shape: f32[16,8], index: 5, kind: input, shape index: {}]   ;;  %s1151_s6 = inlined_call_operand.vmem [shape: f32[1,8], index: 6, kind: input, shape index: {}]   ;;  %s1152_s7 = inlined_call_operand.vmem [shape: f32[8,4], index: 7, kind: input, shape index: {}]   ;;  %s1153_s8 = inlined_call_operand.vmem [shape: f32[1,4], index: 8, kind: input, shape index: {}]   ;;  %s1154_s9 = inlined_call_operand.vmem [shape: bf16[2,64,8], index: 9, kind: output, shape index: {0}]   ;;  %s1155_s10 = inlined_call_operand.vmem [shape: f32[2,1,4], index: 10, kind: output, shape index: {1}]  }
   0x1 LB: > { %s889_s14 = sadd.s32 4294967295, %s1003_s13   ;;  %p893_p0 = scmp.ge.s32.totalorder %s1003_s13, 1  ;;  %s1003_s13 = sphi %s1062_s13, %s21_s13  }
   0x2   : > { %p315_p1 = scmp.lt.s32.totalorder %s1003_s13, 3 }
   0x4   : > { %p316_p2 = pnand %p893_p0, %p315_p1 }
   0x5   : > { %p356_p3 = scmp.lt.s32.totalorder (!%p316_p2), %s889_s14, 1 }
   0x6   : > { %319 = sbr.rel (%p316_p2) target bundleno = 668 (0x29c), region = 56 }
   0xb   : > { %v411_v0 = vld [vmem:[%s1148_s3 + $0x8] sm:$0xff]  ;;  %v1005_v1 = vmov 0.0   ;;  %v410_v2 = vld [vmem:[%s1148_s3] sm:$0xff]  ;;  %vm1006_vm0 = vmmov 0   ;;  %s1157_s14 = smov (!%p356_p3, %s889_s14), 1  ;;  %vm386_vm1 = vcmask 130048  }
   0xc   : > { %945 = vmatprep.subr.mxu0 %v1005_v1  ;;  %949 = vmatprep.mubr.msk.f32.mxu0 %vm1006_vm0, %v1005_v1  ;;  %s922_s19 = sshll.u32 %s1157_s14, 5  ;;  %v488_v37 = vld [vmem:[%s1150_s5 + $0x8] sm:$0xff]  ;;  %v487_v38 = vld [vmem:[%s1150_s5] sm:$0xff]  ;;  %vm566_vm2 = vcmask 64512   ;;  %vm800_vm3 = vcmask 60416   ;;  %s368_s26 = scalar_lea.vmem %s1155_s10, %s1157_s14  ;;  %vm646_vm4 = vcmask 24576  }
   0xd   : > { %946 = vmatpush3.msra.mxu0 %v411_v0  ;;  %s360_s22 = scalar_lea.vmem %s1145_s0, %s922_s19  ;;  %v412_v39 = vld [vmem:[%s1149_s4] sm:$0x1] }
   0xe   : > { %947 = vmatprep.subr.mxu0 %v1005_v1  ;;  %v370_v3 = vld [vmem:[%s360_s22] sm:$0xff]   ;;  %v372_v4 = vld [vmem:[%s360_s22 + $0x8] sm:$0xff]   ;;  %v374_v5 = vld [vmem:[%s360_s22 + $0x10] sm:$0xff]  }
   0xf   : > { %948 = vmatpush3.msra.mxu0 %v410_v2  ;;  %v378_v6 = vunpack.c.l.bf16 %v370_v3  ;;  %v379_v7 = vunpack.c.h.bf16 %v370_v3  ;;  %v380_v8 = vunpack.c.l.bf16 %v372_v4  ;;  %v381_v9 = vunpack.c.h.bf16 %v372_v4  ;;  %v376_v14 = vld [vmem:[%s360_s22 + $0x18] sm:$0xff]   ;;  %v564_v44 = vld [vmem:[%s1152_s7] sm:$0xff]  ;;  %966 = vmatprep.mubr.msk.bf16.mxu1 %vm386_vm1, %v370_v3  ;;  %s365_s22 = scalar_lea.vmem %s1154_s9, %s922_s19 }
  0x10   : > { %952 = vmatprep.subr.mxu0 %v1005_v1  ;;  %v382_v10 = vunpack.c.l.bf16 %v374_v5  ;;  %v383_v16 = vunpack.c.h.bf16 %v374_v5  ;;  %v384_v19 = vunpack.c.l.bf16 %v376_v14  ;;  %v385_v22 = vunpack.c.h.bf16 %v376_v14  ;;  %v984_v45 = vld [vmem:[%s1146_s1] sm:$0xff]  }
  0x11   : > { %v387_v11 = vsel %vm386_vm1, %v378_v6, 0.0  ;;  %v388_v12 = vsel %vm386_vm1, %v379_v7, 0.0  ;;  %v390_v13 = vsel %vm386_vm1, %v380_v8, 0.0  ;;  %v392_v17 = vsel %vm386_vm1, %v381_v9, 0.0  ;;  %964 = vmatprep.subr.bf16.mxu1 %v984_v45  ;;  %v489_v46 = vld [vmem:[%s1151_s6] sm:$0x1] }
  0x12   : > { %v389_v15 = vadd.f32 %v388_v12, %v387_v11  ;;  %v394_v20 = vsel %vm386_vm1, %v382_v10, 0.0  ;;  %v396_v23 = vsel %vm386_vm1, %v383_v16, 0.0  ;;  %v398_v25 = vsel %vm386_vm1, %v384_v19, 0.0  ;;  %965 = vmatpush3.bf16.msra.mxu1 %v984_v45  ;;  %v902_v54 = vld [vmem:[%s1147_s2] ss:$0 sm:$0xff] }
  0x13   : > { %v400_v27 = vsel %vm386_vm1, %v385_v22, 0.0 }
  0x14   : > { %v391_v18 = vadd.f32 %v390_v13, %v389_v15 }
  0x15   : > { %967 = vmatmul.mubr.msk.bf16.vlgmr.msra.gmra.mxu1 %vm386_vm1, %v372_v4 }
  0x16   : > { %v393_v21 = vadd.f32 %v392_v17, %v391_v18  ;;  %970 = vmatprep.mubr.msk.bf16.mxu1 %vm386_vm1, %v374_v5 }
  0x18   : > { %v395_v24 = vadd.f32 %v394_v20, %v393_v21  ;;  %v565_v20 = vld [vmem:[%s1153_s8] sm:$0x1] }
  0x1a   : > { %v397_v26 = vadd.f32 %v396_v23, %v395_v24 }
  0x1c   : > { %v399_v28 = vadd.f32 %v398_v25, %v397_v26 }
  0x1d   : > { %971 = vmatmul.mubr.msk.bf16.gmra.mxu1 %vm386_vm1, %v376_v14 }
  0x1e   : > { %v401_v29 = vadd.f32 %v400_v27, %v399_v28 }
  0x20   : > { %v402_v30 = vrot.slane %v401_v29, 4 }
  0x22   : > { %v403_v31 = vadd.f32 %v402_v30, %v401_v29 }
  0x24   : > { %v404_v32 = vrot.slane %v403_v31, 2 }
  0x26   : > { %v405_v33 = vadd.f32 %v404_v32, %v403_v31 }
  0x28   : > { %v406_v34 = vrot.slane %v405_v33, 1 }
  0x2a   : > { %v407_v35 = vadd.f32 %v406_v34, %v405_v33 }
  0x2c   : > { %v409_v36 = vmul.f32 0.015625, %v407_v35 }
  0x2e   : > { %950 = vmatmul.mubr.msk.f32.vlgmr.msra.gmra.mxu0 %vm386_vm1, %v409_v36 }
  0x2f   : > { %956 = vmatprep.mubr.msk.f32.mxu0 %vm1006_vm0, %v1005_v1  ;;  %953 = vmatpush3.msra.mxu0 %v488_v37 }
  0x30   : > { %954 = vmatprep.subr.mxu0 %v1005_v1 }
  0x31   : > { %955 = vmatpush3.msra.mxu0 %v487_v38 }
  0x32   : > { %959 = vmatprep.subr.mxu0 %v1005_v1 }
  0xd5   : > { %v968_v51 = vpop.f32.mrf.mxu1 }
  0xd6   : > { %v738_v56 = vadd.f32 %v968_v51, %v902_v54 }
  0xd7   : > { %v729_v52 = vpop.f32.mrf.mxu1 }
  0xd8   : > { %v730_v57 = vadd.f32 %v902_v54, %v729_v52  ;;  %v762_v61 = vmax.f32 %v738_v56, 0.0 }
  0xd9   : > { %v969_v53 = vpop.f32.mrf.mxu1 }
  0xda   : > { %v741_v58 = vadd.f32 %v969_v53, %v902_v54  ;;  %v760_v62 = vmax.f32 %v730_v57, 0.0  ;;  %v926_v2 = vpack.c.bf16 %v762_v61, %v762_v61 }
  0xdb   : > { %v732_v55 = vpop.f32.mrf.mxu1 }
  0xdc   : > { %v733_v59 = vadd.f32 %v902_v54, %v732_v55  ;;  %v763_v63 = vmax.f32 %v741_v58, 0.0  ;;  %v924_v3 = vpack.c.bf16 %v760_v62, %v760_v62  ;;  %803 = vst.msk [vmem:[%s365_s22 + $0x8] sm:$0xf] %vm800_vm3, %v926_v2 }
  0xdd   : > { %v972_v60 = vpop.f32.mrf.mxu1 }
  0xde   : > { %v761_v0 = vmax.f32 %v733_v59, 0.0  ;;  %v927_v4 = vpack.c.bf16 %v763_v63, %v763_v63  ;;  %801 = vst.msk [vmem:[%s365_s22] sm:$0xf] %vm800_vm3, %v924_v3  ;;  %v754_v8 = vadd.f32 %v972_v60, %v902_v54 }
  0xe0   : > { %v925_v5 = vpack.c.bf16 %v761_v0, %v761_v0  ;;  %804 = vst.msk [vmem:[%s365_s22 + $0xc] sm:$0xf] %vm800_vm3, %v927_v4  ;;  %v766_v12 = vmax.f32 %v754_v8, 0.0 }
  0xe2   : > { %802 = vst.msk [vmem:[%s365_s22 + $0x4] sm:$0xf] %vm800_vm3, %v925_v5  ;;  %v930_v16 = vpack.c.bf16 %v766_v12, %v766_v12 }
  0xe4   : > { %807 = vst.msk [vmem:[%s365_s22 + $0x18] sm:$0xf] %vm800_vm3, %v930_v16 }
  0xee   : > { %v482_v40 = vpop.f32.mrf.mxu0 }
  0xef   : > { %v483_v41 = vadd.f32 %v482_v40, %v412_v39 }
  0xf0   : > { %v951_v42 = vpop.f32.mrf.mxu0 }
  0xf1   : > { %v486_v43 = vmax.f32 %v483_v41, 0.0 }
  0xf3   : > { %957 = vmatmul.mubr.msk.f32.vlgmr.msra.gmra.mxu0 %vm386_vm1, %v486_v43 }
  0xf4   : > { %961 = vmatprep.mubr.msk.f32.mxu0 %vm1006_vm0, %v1005_v1  ;;  %960 = vmatpush3.msra.mxu0 %v564_v44  ;;  %v745_v1 = vpop.f32.mrf.mxu1 }
  0xf5   : > { %v746_v9 = vadd.f32 %v902_v54, %v745_v1 }
  0xf6   : > { %v973_v6 = vpop.f32.mrf.mxu1 }
  0xf7   : > { %v757_v10 = vadd.f32 %v973_v6, %v902_v54  ;;  %v764_v13 = vmax.f32 %v746_v9, 0.0 }
  0xf8   : > { %v748_v7 = vpop.f32.mrf.mxu1 }
  0xf9   : > { %v749_v11 = vadd.f32 %v902_v54, %v748_v7  ;;  %v767_v14 = vmax.f32 %v757_v10, 0.0  ;;  %v928_v17 = vpack.c.bf16 %v764_v13, %v764_v13 }
  0xfb   : > { %v765_v15 = vmax.f32 %v749_v11, 0.0  ;;  %v931_v18 = vpack.c.bf16 %v767_v14, %v767_v14  ;;  %805 = vst.msk [vmem:[%s365_s22 + $0x10] sm:$0xf] %vm800_vm3, %v928_v17 }
  0xfd   : > { %v929_v19 = vpack.c.bf16 %v765_v15, %v765_v15  ;;  %808 = vst.msk [vmem:[%s365_s22 + $0x1c] sm:$0xf] %vm800_vm3, %v931_v18 }
  0xff   : > { %806 = vst.msk [vmem:[%s365_s22 + $0x14] sm:$0xf] %vm800_vm3, %v929_v19 }
 0x1b3   : > { %v559_v47 = vpop.f32.mrf.mxu0 }
 0x1b4   : > { %v560_v48 = vadd.f32 %v559_v47, %v489_v46 }
 0x1b5   : > { %v958_v49 = vpop.f32.mrf.mxu0 }
 0x1b6   : > { %v563_v50 = vmax.f32 %v560_v48, 0.0 }
 0x1b8   : > { %962 = vmatmul.mubr.msk.f32.vlgmr.msra.gmra.mxu0 %vm566_vm2, %v563_v50 }
 0x278   : > { %v636_v21 = vpop.f32.mrf.mxu0 }
 0x279   : > { %v637_v22 = vadd.f32 %v636_v21, %v565_v20 }
 0x27a   : > { %v963_v23 = vpop.f32.mrf.mxu0 }
 0x27b   : > { %v901_v24 = vmul.f32 -1.442695, %v637_v22 }
 0x27d   : > { %993 = vpow2.f32 %v901_v24 }
 0x28a   : > { %v994_v25 = vpop.eup %993 }
 0x28b   : > { %v643_v26 = vadd.f32 1.0, %v994_v25 }
 0x28d   : > { %995 = vrcp.f32 %v643_v26 }
 0x29a   : > { %v996_v27 = vpop.eup %995 }
 0x29b   : > { %647 = vst.msk [vmem:[%s368_s26] sm:$0x1] %vm646_vm4, %v996_v27 }
 0x29c PF: > { %s21_s13 = sadd.s32 1, %s1003_s13  }
 0x29d   : > { %p18_p4 = scmp.ge.s32.totalorder %s21_s13, 4  }
 0x29f   :  { %20 = sbr.rel (!%p18_p4) target bundleno = 1 (0x1), region = 98 }

// kernel: mlfn_forward.41
= control target key start
LH: loop header
LB: loop body
LE: loop exit
PB: predicated region body
PF: predicated region fallthrough
CT: control target
= control target key end

     0   :  { %s1076_s13 = smov 0   ;;  %s1199_s0 = inlined_call_operand.vmem [shape: bf16[2,64,16], index: 0, kind: input, shape index: {}]   ;;  %s1200_s1 = inlined_call_operand.vmem [shape: bf16[16,16], index: 1, kind: input, shape index: {}]   ;;  %s1201_s2 = inlined_call_operand.vmem [shape: f32[1,16], index: 2, kind: input, shape index: {}]   ;;  %s1202_s3 = inlined_call_operand.vmem [shape: f32[16,32], index: 3, kind: input, shape index: {}]   ;;  %s1203_s4 = inlined_call_operand.vmem [shape: f32[1,32], index: 4, kind: input, shape index: {}]   ;;  %s1204_s5 = inlined_call_operand.vmem [shape: f32[32,16], index: 5, kind: input, shape index: {}]   ;;  %s1205_s6 = inlined_call_operand.vmem [shape: f32[1,16], index: 6, kind: input, shape index: {}]   ;;  %s1206_s7 = inlined_call_operand.vmem [shape: f32[16,4], index: 7, kind: input, shape index: {}]   ;;  %s1207_s8 = inlined_call_operand.vmem [shape: f32[1,4], index: 8, kind: input, shape index: {}]   ;;  %s1208_s9 = inlined_call_operand.vmem [shape: bf16[2,64,16], index: 9, kind: output, shape index: {0}]   ;;  %s1209_s10 = inlined_call_operand.vmem [shape: f32[2,1,4], index: 10, kind: output, shape index: {1}]  }
   0x1 LB: > { %s892_s14 = sadd.s32 4294967295, %s1017_s13   ;;  %p896_p0 = scmp.ge.s32.totalorder %s1017_s13, 1  ;;  %s1017_s13 = sphi %s1076_s13, %s21_s13  }
   0x2   : > { %p315_p1 = scmp.lt.s32.totalorder %s1017_s13, 3 }
   0x4   : > { %p316_p2 = pnand %p896_p0, %p315_p1 }
   0x5   : > { %p356_p3 = scmp.lt.s32.totalorder (!%p316_p2), %s892_s14, 1 }
   0x6   : > { %319 = sbr.rel (%p316_p2) target bundleno = 668 (0x29c), region = 56 }
   0xb   : > { %v411_v0 = vld [vmem:[%s1202_s3 + $0x8] sm:$0xff]  ;;  %v1019_v1 = vmov 0.0   ;;  %v410_v2 = vld [vmem:[%s1202_s3] sm:$0xff]  ;;  %vm1020_vm0 = vmmov 0   ;;  %v490_v3 = vld [vmem:[%s1204_s5 + $0x18] sm:$0xff]  ;;  %s1211_s14 = smov (!%p356_p3, %s892_s14), 1 }
   0xc   : > { %951 = vmatprep.subr.mxu0 %v1019_v1  ;;  %955 = vmatprep.mubr.msk.f32.mxu0 %vm1020_vm0, %v1019_v1  ;;  %s925_s21 = sshll.u32 %s1211_s14, 5  ;;  %vm386_vm1 = vcmask 130048   ;;  %v489_v38 = vld [vmem:[%s1204_s5 + $0x10] sm:$0xff]  ;;  %v488_v39 = vld [vmem:[%s1204_s5 + $0x8] sm:$0xff]  ;;  %v487_v40 = vld [vmem:[%s1204_s5] sm:$0xff]  ;;  %vm492_vm2 = vcmask 261120   ;;  %s368_s12 = scalar_lea.vmem %s1209_s10, %s1211_s14 }
   0xd   : > { %952 = vmatpush3.msra.mxu0 %v411_v0  ;;  %958 = vmatprep.subr.mxu1 %v1019_v1  ;;  %s360_s24 = scalar_lea.vmem %s1199_s0, %s925_s21  ;;  %v412_v41 = vld [vmem:[%s1203_s4] sm:$0x1]  ;;  %v568_v46 = vld [vmem:[%s1206_s7 + $0x8] sm:$0xff]  ;;  %s1171_s28 = scalar_lea.vmem %s1208_s9, %s925_s21  ;;  %vm803_vm3 = vcmask 125952   ;;  %vm649_vm4 = vcmask 24576  }
   0xe   : > { %953 = vmatprep.subr.mxu0 %v1019_v1  ;;  %959 = vmatpush3.msra.mxu1 %v490_v3  ;;  %v1110_v4 = vld [vmem:[%s360_s24] sm:$0xff]   ;;  %v1112_v5 = vld [vmem:[%s360_s24 + $0x8] sm:$0xff]   ;;  %v374_v6 = vld [vmem:[%s360_s24 + $0x10] sm:$0xff]  }
   0xf   : > { %954 = vmatpush3.msra.mxu0 %v410_v2  ;;  %960 = vmatprep.subr.mxu1 %v1019_v1  ;;  %v378_v7 = vunpack.c.l.bf16 %v1110_v4  ;;  %v379_v8 = vunpack.c.h.bf16 %v1110_v4  ;;  %v380_v9 = vunpack.c.l.bf16 %v1112_v5  ;;  %v381_v10 = vunpack.c.h.bf16 %v1112_v5  ;;  %v376_v15 = vld [vmem:[%s360_s24 + $0x18] sm:$0xff]   ;;  %v567_v47 = vld [vmem:[%s1206_s7] sm:$0xff] }
  0x10   : > { %966 = vmatprep.mubr.msk.f32.mxu1 %vm1020_vm0, %v1019_v1  ;;  %969 = vmatprep.subr.mxu0 %v1019_v1  ;;  %v382_v11 = vunpack.c.l.bf16 %v374_v6  ;;  %v383_v17 = vunpack.c.h.bf16 %v374_v6  ;;  %v384_v20 = vunpack.c.l.bf16 %v376_v15  ;;  %v385_v23 = vunpack.c.h.bf16 %v376_v15  ;;  %v998_v48 = vld [vmem:[%s1200_s1] sm:$0xff]  }
  0x11   : > { %v387_v12 = vsel %vm386_vm1, %v378_v7, 0.0  ;;  %v388_v13 = vsel %vm386_vm1, %v379_v8, 0.0  ;;  %v390_v14 = vsel %vm386_vm1, %v380_v9, 0.0  ;;  %v392_v18 = vsel %vm386_vm1, %v381_v10, 0.0  ;;  %961 = vmatpush3.msra.mxu1 %v489_v38  ;;  %v491_v49 = vld [vmem:[%s1205_s6] sm:$0x1] }
  0x12   : > { %v389_v16 = vadd.f32 %v388_v13, %v387_v12  ;;  %v394_v21 = vsel %vm386_vm1, %v382_v11, 0.0  ;;  %v396_v24 = vsel %vm386_vm1, %v383_v17, 0.0  ;;  %v398_v26 = vsel %vm386_vm1, %v384_v20, 0.0  ;;  %962 = vmatprep.subr.mxu1 %v1019_v1  ;;  %v905_v57 = vld [vmem:[%s1201_s2] ss:$0 sm:$0xff] }
  0x13   : > { %v400_v28 = vsel %vm386_vm1, %v385_v23, 0.0  ;;  %963 = vmatpush3.msra.mxu1 %v488_v39  ;;  %v569_v7 = vld [vmem:[%s1207_s8] sm:$0x1] }
  0x14   : > { %v391_v19 = vadd.f32 %v390_v14, %v389_v16  ;;  %964 = vmatprep.subr.mxu1 %v1019_v1 }
  0x15   : > { %965 = vmatpush3.msra.mxu1 %v487_v40 }
  0x16   : > { %v393_v22 = vadd.f32 %v392_v18, %v391_v19  ;;  %986 = vmatprep.subr.bf16.mxu1 %v998_v48 }
  0x18   : > { %v395_v25 = vadd.f32 %v394_v21, %v393_v22 }
  0x1a   : > { %v397_v27 = vadd.f32 %v396_v24, %v395_v25 }
  0x1c   : > { %v399_v29 = vadd.f32 %v398_v26, %v397_v27 }
  0x1e   : > { %v401_v30 = vadd.f32 %v400_v28, %v399_v29 }
  0x20   : > { %v402_v31 = vrot.slane %v401_v30, 4 }
  0x22   : > { %v403_v32 = vadd.f32 %v402_v31, %v401_v30 }
  0x24   : > { %v404_v33 = vrot.slane %v403_v32, 2 }
  0x26   : > { %v405_v34 = vadd.f32 %v404_v33, %v403_v32 }
  0x28   : > { %v406_v35 = vrot.slane %v405_v34, 1 }
  0x2a   : > { %v407_v36 = vadd.f32 %v406_v35, %v405_v34 }
  0x2c   : > { %v409_v37 = vmul.f32 0.015625, %v407_v36 }
  0x2e   : > { %956 = vmatmul.mubr.msk.f32.vlgmr.msra.gmra.mxu0 %vm386_vm1, %v409_v37 }
  0x2f   : > { %973 = vmatprep.mubr.msk.f32.mxu0 %vm1020_vm0, %v1019_v1  ;;  %970 = vmatpush3.msra.mxu0 %v568_v46 }
  0x30   : > { %971 = vmatprep.subr.mxu0 %v1019_v1 }
  0x31   : > { %972 = vmatpush3.msra.mxu0 %v567_v47 }
  0x32   : > { %976 = vmatprep.subr.bf16.mxu0 %v998_v48 }
  0xee   : > { %v482_v42 = vpop.f32.mrf.mxu0 }
  0xef   : > { %v483_v43 = vadd.f32 %v482_v42, %v412_v41 }
  0xf0   : > { %v957_v44 = vpop.f32.mrf.mxu0 }
  0xf1   : > { %v486_v45 = vmax.f32 %v483_v43, 0.0 }
  0xf3   : > { %967 = vmatmul.mubr.msk.f32.vlgmr.msra.gmra.mxu1 %vm492_vm2, %v486_v45 }
  0xf4   : > { %987 = vmatpush3.bf16.msra.mxu1 %v998_v48  ;;  %982 = vmatprep.mubr.msk.bf16.mxu1 %vm386_vm1, %v374_v6 }
  0xf7   : > { %983 = vmatmul.mubr.msk.bf16.vlgmr.msra.gmra.mxu1 %vm386_vm1, %v376_v15 }
 0x1b3   : > { %v562_v50 = vpop.f32.mrf.mxu1 }
 0x1b4   : > { %v563_v51 = vadd.f32 %v562_v50, %v491_v49 }
 0x1b5   : > { %v968_v52 = vpop.f32.mrf.mxu1 }
 0x1b6   : > { %v566_v53 = vmax.f32 %v563_v51, 0.0 }
 0x1b7   : > { %v984_v54 = vpop.f32.mrf.mxu1 }
 0x1b8   : > { %974 = vmatmul.mubr.msk.f32.vlgmr.msra.gmra.mxu0 %vm386_vm1, %v566_v53  ;;  %v757_v59 = vadd.f32 %v984_v54, %v905_v57 }
 0x1b9   : > { %977 = vmatpush3.bf16.msra.mxu0 %v998_v48  ;;  %978 = vmatprep.mubr.msk.bf16.mxu0 %vm386_vm1, %v1110_v4  ;;  %v748_v55 = vpop.f32.mrf.mxu1 }
 0x1ba   : > { %v749_v60 = vadd.f32 %v905_v57, %v748_v55  ;;  %v769_v63 = vmax.f32 %v757_v59, 0.0 }
 0x1bb   : > { %v985_v56 = vpop.f32.mrf.mxu1 }
 0x1bc   : > { %979 = vmatmul.mubr.msk.bf16.vlgmr.msra.gmra.mxu0 %vm386_vm1, %v1112_v5  ;;  %v760_v61 = vadd.f32 %v985_v56, %v905_v57  ;;  %v767_v0 = vmax.f32 %v749_v60, 0.0  ;;  %v933_v3 = vpack.c.bf16 %v769_v63, %v769_v63 }
 0x1bd   : > { %v751_v58 = vpop.f32.mrf.mxu1 }
 0x1be   : > { %v752_v62 = vadd.f32 %v905_v57, %v751_v58  ;;  %v770_v1 = vmax.f32 %v760_v61, 0.0  ;;  %v931_v4 = vpack.c.bf16 %v767_v0, %v767_v0  ;;  %810 = vst.msk [vmem:[%s1171_s28 + $0x18] sm:$0xf] %vm803_vm3, %v933_v3 }
 0x1c0   : > { %v768_v2 = vmax.f32 %v752_v62, 0.0  ;;  %v934_v5 = vpack.c.bf16 %v770_v1, %v770_v1  ;;  %808 = vst.msk [vmem:[%s1171_s28 + $0x10] sm:$0xf] %vm803_vm3, %v931_v4 }
 0x1c2   : > { %v932_v6 = vpack.c.bf16 %v768_v2, %v768_v2  ;;  %811 = vst.msk [vmem:[%s1171_s28 + $0x1c] sm:$0xf] %vm803_vm3, %v934_v5 }
 0x1c4   : > { %809 = vst.msk [vmem:[%s1171_s28 + $0x14] sm:$0xf] %vm803_vm3, %v932_v6 }
 0x278   : > { %v639_v8 = vpop.f32.mrf.mxu0 }
 0x279   : > { %v640_v9 = vadd.f32 %v639_v8, %v569_v7 }
 0x27a   : > { %v975_v10 = vpop.f32.mrf.mxu0 }
 0x27b   : > { %v904_v11 = vmul.f32 -1.442695, %v640_v9 }
 0x27c   : > { %v980_v12 = vpop.f32.mrf.mxu0 }
 0x27d   : > { %1007 = vpow2.f32 %v904_v11  ;;  %v741_v13 = vadd.f32 %v980_v12, %v905_v57 }
 0x27e   : > { %v732_v14 = vpop.f32.mrf.mxu0 }
 0x27f   : > { %v765_v15 = vmax.f32 %v741_v13, 0.0  ;;  %v733_v16 = vadd.f32 %v905_v57, %v732_v14 }
 0x280   : > { %v981_v17 = vpop.f32.mrf.mxu0 }
 0x281   : > { %v929_v18 = vpack.c.bf16 %v765_v15, %v765_v15  ;;  %v763_v19 = vmax.f32 %v733_v16, 0.0  ;;  %v744_v20 = vadd.f32 %v981_v17, %v905_v57 }
 0x282   : > { %v735_v21 = vpop.f32.mrf.mxu0 }
 0x283   : > { %806 = vst.msk [vmem:[%s1171_s28 + $0x8] sm:$0xf] %vm803_vm3, %v929_v18  ;;  %v927_v22 = vpack.c.bf16 %v763_v19, %v763_v19  ;;  %v766_v23 = vmax.f32 %v744_v20, 0.0  ;;  %v736_v24 = vadd.f32 %v905_v57, %v735_v21 }
 0x285   : > { %804 = vst.msk [vmem:[%s1171_s28] sm:$0xf] %vm803_vm3, %v927_v22  ;;  %v930_v25 = vpack.c.bf16 %v766_v23, %v766_v23  ;;  %v764_v26 = vmax.f32 %v736_v24, 0.0 }
 0x287   : > { %807 = vst.msk [vmem:[%s1171_s28 + $0xc] sm:$0xf] %vm803_vm3, %v930_v25  ;;  %v928_v27 = vpack.c.bf16 %v764_v26, %v764_v26 }
 0x289   : > { %805 = vst.msk [vmem:[%s1171_s28 + $0x4] sm:$0xf] %vm803_vm3, %v928_v27 }
 0x28a   : > { %v1008_v28 = vpop.eup %1007 }
 0x28b   : > { %v646_v29 = vadd.f32 1.0, %v1008_v28 }
 0x28d   : > { %1009 = vrcp.f32 %v646_v29 }
 0x29a   : > { %v1010_v30 = vpop.eup %1009 }
 0x29b   : > { %650 = vst.msk [vmem:[%s368_s12] sm:$0x1] %vm649_vm4, %v1010_v30 }
 0x29c PF: > { %s21_s13 = sadd.s32 1, %s1017_s13  }
 0x29d   : > { %p18_p4 = scmp.ge.s32.totalorder %s21_s13, 4  }
 0x29f   :  { %20 = sbr.rel (!%p18_p4) target bundleno = 1 (0x1), region = 98 }

// kernel: mlfn_forward.42
= control target key start
LH: loop header
LB: loop body
LE: loop exit
PB: predicated region body
PF: predicated region fallthrough
CT: control target
= control target key end

     0   :  { %s1008_s30 = smov 0   ;;  %s1010_s10 = smov 0   ;;  %s1106_s0 = inlined_call_operand.vmem [shape: bf16[2,16,144], index: 0, kind: input, shape index: {}]   ;;  %s1107_s1 = inlined_call_operand.vmem [shape: bf16[144,16], index: 1, kind: input, shape index: {}]   ;;  %s1108_s2 = inlined_call_operand.vmem [shape: f32[1,16], index: 2, kind: input, shape index: {}]   ;;  %s1109_s3 = inlined_call_operand.vmem [shape: f32[2,1,16], index: 3, kind: input, shape index: {}]   ;;  %s1110_s4 = inlined_call_operand.vmem [shape: bf16[16,32], index: 4, kind: input, shape index: {}]   ;;  %s1111_s5 = inlined_call_operand.vmem [shape: f32[1,32], index: 5, kind: input, shape index: {}]   ;;  %s1112_s6 = inlined_call_operand.vmem [shape: bf16[2,16,16], index: 6, kind: input, shape index: {}]   ;;  %s1113_s7 = inlined_call_operand.vmem [shape: bf16[16,32], index: 7, kind: input, shape index: {}]   ;;  %s1114_s8 = inlined_call_operand.vmem [shape: f32[1,32], index: 8, kind: input, shape index: {}]   ;;  %s1115_s9 = inlined_call_operand.vmem [shape: bf16[2,16,32], index: 9, kind: output, shape index: {}]  }
   0x1   :  { %s1012_s11 = smov 0  }
   0x2 LB: > { %s31_s12 = sadd.s32 1, %s949_s10  ;;  %p836_p0 = scmp.ge.s32.totalorder %s953_s11, 1  ;;  %s953_s11 = sphi %s1012_s11, %s19_s11   ;;  %s949_s10 = sphi %s1010_s10, %s1117_s10   ;;  %s945_s30 = sphi %s1008_s30, %s1116_s30  }
   0x3   : > { %p33_p1 = scmp.ge.s32.totalorder %s31_s12, 2  ;;  %p334_p2 = scmp.lt.s32.totalorder %s953_s11, 3 }
   0x5   : > { %s1119_s12 = smov (%p33_p1, %s31_s12), 0  ;;  %p335_p3 = pnand %p836_p0, %p334_p2 }
   0x6   : > { %p392_p4 = scmp.lt.s32.totalorder (!%p335_p3), %s945_s30, 1 }
   0x7   : > { %338 = sbr.rel (%p335_p3) target bundleno = 468 (0x1d4), region = 56 }
   0xc   : > { %v916_v0 = vld [vmem:[%s1107_s1 + $0x38] sm:$0xff]   ;;  %v955_v1 = vmov 0   ;;  %v917_v2 = vld [vmem:[%s1107_s1 + $0x30] sm:$0xff]   ;;  %s1121_s30 = smov (!%p392_p4, %s945_s30), 1  ;;  %v918_v3 = vld [vmem:[%s1107_s1 + $0x28] sm:$0xff]   ;;  %vm516_vm0 = vcmask 130048  }
   0xd   : > { %520 = vmatprep.subr.bf16.mxu0 %v955_v1  ;;  %s868_s17 = sshll.u32 %s1121_s30, 4  ;;  %s869_s23 = sshll.u32 %s1121_s30, 3  ;;  %v919_v4 = vld [vmem:[%s1107_s1 + $0x20] sm:$0xff]   ;;  %v920_v6 = vld [vmem:[%s1107_s1 + $0x18] sm:$0xff]   ;;  %v921_v7 = vld [vmem:[%s1107_s1 + $0x10] sm:$0xff]   ;;  %v956_v13 = vmov 0.0  }
   0xe   : > { %521 = vmatpush1.bf16.msra.mxu0 %v916_v0  ;;  %s400_s22 = scalar_lea.vmem %s1106_s0, %s868_s17  ;;  %s1050_s28 = scalar_lea.vmem %s1112_s6, %s869_s23  ;;  %v922_v8 = vld [vmem:[%s1107_s1 + $0x8] sm:$0xff]   ;;  %v923_v9 = vld [vmem:[%s1107_s1] sm:$0xff]   ;;  %877 = vmatprep.subr.bf16.mxu1 %v956_v13  ;;  %vm957_vm1 = vmmov 0   ;;  %vm712_vm2 = vcmask 257024  }
   0xf   : > { %522 = vmatprep.subr.bf16.mxu0 %v955_v1  ;;  %v927_v5 = vld [vmem:[%s400_s22 + $0x4] ss:$8 sps:$4 sm:$0xff]   ;;  %v925_v11 = vld [vmem:[%s400_s22] ss:$8 sps:$4 sm:$0xff]   ;;  %879 = vmatprep.mubr.msk.bf16.mxu1 %vm957_vm1, %v956_v13  ;;  %s404_s13 = scalar_lea.vmem %s1109_s3, %s1121_s30  ;;  %s423_s21 = scalar_lea.vmem %s1115_s9, %s869_s23 }
  0x10   : > { %855 = vmatprep.mubr.msk.bf16.mxu0 %vm516_vm0, %v927_v5  ;;  %v924_v10 = vld [vmem:[%s1107_s1 + $0x40] sm:$0xff]  }
  0x11   : > { %v928_v12 = vld [vmem:[%s1110_s4] sm:$0xff]  }
  0x12   : > { %523 = vmatpush1.bf16.msra.mxu0 %v917_v2  ;;  %878 = vmatpush3.bf16.msra.mxu1 %v928_v12  ;;  %v843_v14 = vld [vmem:[%s1108_s2] ss:$0 sm:$0xff] }
  0x13   : > { %524 = vmatprep.subr.bf16.mxu0 %v955_v1  ;;  %883 = vmatprep.subr.bf16.mxu1 %v956_v13  ;;  %v856_v21 = vld [vmem:[%s404_s13] ss:$0 sm:$0xff] }
  0x14   : > { %v929_v26 = vld [vmem:[%s1113_s7] sm:$0xff]  }
  0x15   : > { %v930_v28 = vld [vmem:[%s1050_s28] sm:$0xff]  }
  0x16   : > { %525 = vmatpush1.bf16.msra.mxu0 %v918_v3  ;;  %v857_v30 = vld [vmem:[%s1111_s5] ss:$0 sm:$0xff] }
  0x17   : > { %526 = vmatprep.subr.bf16.mxu0 %v955_v1  ;;  %v860_v35 = vld [vmem:[%s1114_s8] ss:$0 sm:$0xff] }
  0x1a   : > { %527 = vmatpush1.bf16.msra.mxu0 %v919_v4 }
  0x1b   : > { %528 = vmatprep.subr.bf16.mxu0 %v955_v1 }
  0x1e   : > { %529 = vmatpush1.bf16.msra.mxu0 %v920_v6 }
  0x1f   : > { %530 = vmatprep.subr.bf16.mxu0 %v955_v1 }
  0x22   : > { %531 = vmatpush1.bf16.msra.mxu0 %v921_v7 }
  0x23   : > { %532 = vmatprep.subr.bf16.mxu0 %v955_v1 }
  0x26   : > { %533 = vmatpush1.bf16.msra.mxu0 %v922_v8 }
  0x27   : > { %534 = vmatprep.subr.bf16.mxu0 %v955_v1 }
  0x2a   : > { %535 = vmatpush1.bf16.msra.mxu0 %v923_v9 }
  0x2b   : > { %550 = vmatprep.subr.bf16.mxu0 %v955_v1 }
  0x2e   : > { %551 = vmatpush2.bf16.msra.mxu0 %v924_v10 }
  0x31   : > { %553 = vmatmul.mubr.bf16.vlgmr.msra.gmra.mxu0 %v925_v11 }
  0xf1   : > { %v554_v15 = vpop.f32.mrf.mxu0 }
  0xf2   : > { %v555_v16 = vadd.f32 %v843_v14, %v554_v15 }
  0xf3   : > { %v556_v17 = vpop.f32.mrf.mxu0 }
  0xf4   : > { %v561_v19 = vmax.f32 %v555_v16, 0.0 }
  0xf5   : > { %v557_v18 = vpop.f32.mrf.mxu0 }
  0xf6   : > { %v558_v20 = vadd.f32 %v843_v14, %v557_v18  ;;  %v570_v24 = vmul.f32 %v856_v21, %v561_v19 }
  0xf7   : > { %v559_v22 = vpop.f32.mrf.mxu0 }
  0xf8   : > { %v562_v23 = vmax.f32 %v558_v20, 0.0 }
  0xfa   : > { %v571_v25 = vmul.f32 %v856_v21, %v562_v23 }
  0xfc   : > { %v572_v27 = vpack.c.bf16 %v571_v25, %v570_v24 }
  0xfe   : > { %880 = vmatmul.mubr.msk.bf16.vlgmr.msra.gmra.mxu1 %vm516_vm0, %v572_v27 }
  0xff   : > { %884 = vmatpush3.bf16.msra.mxu1 %v929_v26  ;;  %885 = vmatprep.mubr.msk.bf16.mxu1 %vm957_vm1, %v956_v13 }
 0x106   : > { %886 = vmatmul.mubr.msk.bf16.vlgmr.msra.gmra.mxu1 %vm516_vm0, %v930_v28 }
 0x1be   : > { %v625_v29 = vpop.f32.mrf.mxu1 }
 0x1bf   : > { %v626_v33 = vadd.f32 %v857_v30, %v625_v29 }
 0x1c0   : > { %v881_v31 = vpop.f32.mrf.mxu1 }
 0x1c1   : > { %v632_v37 = vmax.f32 %v626_v33, 0.0 }
 0x1c2   : > { %v628_v32 = vpop.f32.mrf.mxu1 }
 0x1c3   : > { %v629_v38 = vadd.f32 %v857_v30, %v628_v32 }
 0x1c4   : > { %v882_v34 = vpop.f32.mrf.mxu1 }
 0x1c5   : > { %v633_v43 = vmax.f32 %v629_v38, 0.0 }
 0x1c6   : > { %v693_v36 = vpop.f32.mrf.mxu1 }
 0x1c7   : > { %v694_v39 = vadd.f32 %v860_v35, %v693_v36 }
 0x1c8   : > { %v887_v40 = vpop.f32.mrf.mxu1 }
 0x1c9   : > { %v700_v41 = vadd.f32 %v694_v39, %v632_v37 }
 0x1ca   : > { %v696_v42 = vpop.f32.mrf.mxu1 }
 0x1cb   : > { %v702_v44 = vmax.f32 %v700_v41, 0.0  ;;  %v697_v45 = vadd.f32 %v860_v35, %v696_v42 }
 0x1cc   : > { %v888_v46 = vpop.f32.mrf.mxu1 }
 0x1cd   : > { %v871_v47 = vpack.c.bf16 %v702_v44, %v702_v44  ;;  %v701_v48 = vadd.f32 %v697_v45, %v633_v43 }
 0x1cf   : > { %713 = vst.msk [vmem:[%s423_s21] sm:$0xf] %vm712_vm2, %v871_v47  ;;  %v703_v49 = vmax.f32 %v701_v48, 0.0 }
 0x1d1   : > { %v872_v50 = vpack.c.bf16 %v703_v49, %v703_v49 }
 0x1d3   : > { %714 = vst.msk [vmem:[%s423_s21 + $0x4] sm:$0xf] %vm712_vm2, %v872_v50 }
 0x1d4 PF: > { %s19_s11 = sadd.s32 1, %s953_s11   ;;  %s1116_s30 = smov %s949_s10 }
 0x1d5   : > { %p16_p5 = scmp.ge.s32.totalorder %s19_s11, 4   ;;  %s1117_s10 = smov %s1119_s12 }
 0x1d7   :  { %18 = sbr.rel (!%p16_p5) target bundleno = 2 (0x2), region = 92 }

// kernel: mlfn_forward.43
= control target key start
LH: loop header
LB: loop body
LE: loop exit
PB: predicated region body
PF: predicated region fallthrough
CT: control target
= control target key end

     0   :  { %s956_s13 = smov 0   ;;  %s1041_s0 = inlined_call_operand.vmem [shape: bf16[2,16,32], index: 0, kind: input, shape index: {}]   ;;  %s1042_s1 = inlined_call_operand.vmem [shape: bf16[32,16], index: 1, kind: input, shape index: {}]   ;;  %s1043_s2 = inlined_call_operand.vmem [shape: f32[1,16], index: 2, kind: input, shape index: {}]   ;;  %s1044_s3 = inlined_call_operand.vmem [shape: f32[32,32], index: 3, kind: input, shape index: {}]   ;;  %s1045_s4 = inlined_call_operand.vmem [shape: f32[1,32], index: 4, kind: input, shape index: {}]   ;;  %s1046_s5 = inlined_call_operand.vmem [shape: f32[32,16], index: 5, kind: input, shape index: {}]   ;;  %s1047_s6 = inlined_call_operand.vmem [shape: f32[1,16], index: 6, kind: input, shape index: {}]   ;;  %s1048_s7 = inlined_call_operand.vmem [shape: f32[16,4], index: 7, kind: input, shape index: {}]   ;;  %s1049_s8 = inlined_call_operand.vmem [shape: f32[1,4], index: 8, kind: input, shape index: {}]   ;;  %s1050_s9 = inlined_call_operand.vmem [shape: bf16[2,16,16], index: 9, kind: output, shape index: {0}]   ;;  %s1051_s10 = inlined_call_operand.vmem [shape: f32[2,1,4], index: 10, kind: output, shape index: {1}]  }
   0x1 LB: > { %s794_s14 = sadd.s32 4294967295, %s897_s13   ;;  %p798_p0 = scmp.ge.s32.totalorder %s897_s13, 1  ;;  %s897_s13 = sphi %s956_s13, %s21_s13  }
   0x2   : > { %p315_p1 = scmp.lt.s32.totalorder %s897_s13, 3 }
   0x4   : > { %p316_p2 = pnand %p798_p0, %p315_p1 }
   0x5   : > { %p356_p3 = scmp.lt.s32.totalorder (!%p316_p2), %s794_s14, 1 }
   0x6   : > { %319 = sbr.rel (%p316_p2) target bundleno = 656 (0x290), region = 56 }
   0xb   : > { %v389_v0 = vld [vmem:[%s1044_s3 + $0x18] sm:$0xff]  ;;  %v899_v1 = vmov 0.0   ;;  %v388_v2 = vld [vmem:[%s1044_s3 + $0x10] sm:$0xff]  ;;  %vm900_vm0 = vmmov 0   ;;  %s1053_s14 = smov (!%p356_p3, %s794_s14), 1  ;;  %v387_v4 = vld [vmem:[%s1044_s3 + $0x8] sm:$0xff] }
   0xc   : > { %836 = vmatprep.subr.mxu0 %v899_v1  ;;  %844 = vmatprep.mubr.msk.f32.mxu0 %vm900_vm0, %v899_v1  ;;  %v468_v3 = vld [vmem:[%s1046_s5 + $0x18] sm:$0xff]  ;;  %s816_s23 = sshll.u32 %s1053_s14, 3  ;;  %v386_v5 = vld [vmem:[%s1044_s3] sm:$0xff]  ;;  %vm374_vm1 = vcmask 261120   ;;  %v467_v19 = vld [vmem:[%s1046_s5 + $0x10] sm:$0xff]  ;;  %vm547_vm2 = vcmask 130048   ;;  %s368_s21 = scalar_lea.vmem %s1051_s10, %s1053_s14 }
   0xd   : > { %837 = vmatpush3.msra.mxu0 %v389_v0  ;;  %847 = vmatprep.subr.mxu1 %v899_v1  ;;  %s360_s28 = scalar_lea.vmem %s1041_s0, %s816_s23  ;;  %v466_v20 = vld [vmem:[%s1046_s5 + $0x8] sm:$0xff]  ;;  %v465_v21 = vld [vmem:[%s1046_s5] sm:$0xff]  ;;  %s365_s16 = scalar_lea.vmem %s1050_s9, %s816_s23  ;;  %vm711_vm3 = vcmask 125952   ;;  %vm627_vm4 = vcmask 24576  }
   0xe   : > { %838 = vmatprep.subr.mxu0 %v899_v1  ;;  %848 = vmatpush3.msra.mxu1 %v468_v3  ;;  %v370_v6 = vld [vmem:[%s360_s28] sm:$0xff]   ;;  %v545_v27 = vld [vmem:[%s1048_s7 + $0x8] sm:$0xff] }
   0xf   : > { %839 = vmatpush3.msra.mxu0 %v388_v2  ;;  %849 = vmatprep.subr.mxu1 %v899_v1  ;;  %v372_v7 = vunpack.c.l.bf16 %v370_v6  ;;  %v373_v8 = vunpack.c.h.bf16 %v370_v6  ;;  %v390_v22 = vld [vmem:[%s1045_s4] sm:$0x1]  ;;  %v883_v29 = vld [vmem:[%s1042_s1 + $0x8] sm:$0xff]  }
  0x10   : > { %840 = vmatprep.subr.mxu0 %v899_v1  ;;  %855 = vmatprep.mubr.msk.f32.mxu1 %vm900_vm0, %v899_v1  ;;  %v544_v28 = vld [vmem:[%s1048_s7] sm:$0xff] }
  0x11   : > { %841 = vmatpush3.msra.mxu0 %v387_v4  ;;  %v375_v9 = vsel %vm374_vm1, %v372_v7, 0.0  ;;  %v376_v10 = vsel %vm374_vm1, %v373_v8, 0.0  ;;  %850 = vmatpush3.msra.mxu1 %v467_v19  ;;  %v884_v30 = vld [vmem:[%s1042_s1] sm:$0xff]  }
  0x12   : > { %842 = vmatprep.subr.mxu0 %v899_v1  ;;  %v377_v11 = vadd.f32 %v376_v10, %v375_v9  ;;  %851 = vmatprep.subr.mxu1 %v899_v1  ;;  %v469_v31 = vld [vmem:[%s1047_s6] sm:$0x1] }
  0x13   : > { %843 = vmatpush3.msra.mxu0 %v386_v5  ;;  %852 = vmatpush3.msra.mxu1 %v466_v20  ;;  %v807_v39 = vld [vmem:[%s1043_s2] ss:$0 sm:$0xff] }
  0x14   : > { %858 = vmatprep.subr.mxu0 %v899_v1  ;;  %v378_v12 = vrot.slane %v377_v11, 4  ;;  %853 = vmatprep.subr.mxu1 %v899_v1  ;;  %v546_v47 = vld [vmem:[%s1049_s8] sm:$0x1] }
  0x15   : > { %854 = vmatpush3.msra.mxu1 %v465_v21 }
  0x16   : > { %v379_v13 = vadd.f32 %v378_v12, %v377_v11  ;;  %865 = vmatprep.subr.bf16.mxu1 %v899_v1 }
  0x18   : > { %v380_v14 = vrot.slane %v379_v13, 2 }
  0x1a   : > { %v381_v15 = vadd.f32 %v380_v14, %v379_v13 }
  0x1c   : > { %v382_v16 = vrot.slane %v381_v15, 1 }
  0x1e   : > { %v383_v17 = vadd.f32 %v382_v16, %v381_v15 }
  0x20   : > { %v385_v18 = vmul.f32 0.0625, %v383_v17 }
  0x22   : > { %845 = vmatmul.mubr.msk.f32.vlgmr.msra.gmra.mxu0 %vm374_vm1, %v385_v18 }
  0x23   : > { %862 = vmatprep.mubr.msk.f32.mxu0 %vm900_vm0, %v899_v1  ;;  %859 = vmatpush3.msra.mxu0 %v545_v27 }
  0x24   : > { %860 = vmatprep.subr.mxu0 %v899_v1 }
  0x25   : > { %861 = vmatpush3.msra.mxu0 %v544_v28 }
  0xe2   : > { %v460_v23 = vpop.f32.mrf.mxu0 }
  0xe3   : > { %v461_v24 = vadd.f32 %v460_v23, %v390_v22 }
  0xe4   : > { %v846_v25 = vpop.f32.mrf.mxu0 }
  0xe5   : > { %v464_v26 = vmax.f32 %v461_v24, 0.0 }
  0xe7   : > { %856 = vmatmul.mubr.msk.f32.vlgmr.msra.gmra.mxu1 %vm374_vm1, %v464_v26 }
  0xe8   : > { %869 = vmatprep.mubr.msk.bf16.mxu1 %vm900_vm0, %v899_v1  ;;  %866 = vmatpush3.bf16.msra.mxu1 %v883_v29 }
  0xe9   : > { %867 = vmatprep.subr.bf16.mxu1 %v899_v1 }
  0xec   : > { %868 = vmatpush3.bf16.msra.mxu1 %v884_v30 }
  0xef   : > { %870 = vmatmul.mubr.msk.bf16.vlgmr.msra.gmra.mxu1 %vm374_vm1, %v370_v6 }
 0x1a7   : > { %v539_v32 = vpop.f32.mrf.mxu1 }
 0x1a8   : > { %v540_v33 = vadd.f32 %v539_v32, %v469_v31 }
 0x1a9   : > { %v857_v34 = vpop.f32.mrf.mxu1 }
 0x1aa   : > { %v543_v35 = vmax.f32 %v540_v33, 0.0 }
 0x1ac   : > { %863 = vmatmul.mubr.msk.f32.vlgmr.msra.gmra.mxu0 %vm547_vm2, %v543_v35 }
 0x1af   : > { %v694_v36 = vpop.f32.mrf.mxu1 }
 0x1b0   : > { %v695_v41 = vadd.f32 %v807_v39, %v694_v36 }
 0x1b1   : > { %v871_v37 = vpop.f32.mrf.mxu1 }
 0x1b2   : > { %v701_v43 = vmax.f32 %v695_v41, 0.0 }
 0x1b3   : > { %v697_v38 = vpop.f32.mrf.mxu1 }
 0x1b4   : > { %v698_v42 = vadd.f32 %v807_v39, %v697_v38  ;;  %v818_v45 = vpack.c.bf16 %v701_v43, %v701_v43 }
 0x1b5   : > { %v872_v40 = vpop.f32.mrf.mxu1 }
 0x1b6   : > { %v702_v44 = vmax.f32 %v698_v42, 0.0  ;;  %712 = vst.msk [vmem:[%s365_s16] sm:$0xf] %vm711_vm3, %v818_v45 }
 0x1b8   : > { %v819_v46 = vpack.c.bf16 %v702_v44, %v702_v44 }
 0x1ba   : > { %713 = vst.msk [vmem:[%s365_s16 + $0x4] sm:$0xf] %vm711_vm3, %v819_v46 }
 0x26c   : > { %v617_v48 = vpop.f32.mrf.mxu0 }
 0x26d   : > { %v618_v49 = vadd.f32 %v617_v48, %v546_v47 }
 0x26e   : > { %v864_v50 = vpop.f32.mrf.mxu0 }
 0x26f   : > { %v806_v51 = vmul.f32 -1.442695, %v618_v49 }
 0x271   : > { %887 = vpow2.f32 %v806_v51 }
 0x27e   : > { %v888_v52 = vpop.eup %887 }
 0x27f   : > { %v624_v53 = vadd.f32 1.0, %v888_v52 }
 0x281   : > { %889 = vrcp.f32 %v624_v53 }
 0x28e   : > { %v890_v54 = vpop.eup %889 }
 0x28f   : > { %628 = vst.msk [vmem:[%s368_s21] sm:$0x1] %vm627_vm4, %v890_v54 }
 0x290 PF: > { %s21_s13 = sadd.s32 1, %s897_s13  }
 0x291   : > { %p18_p4 = scmp.ge.s32.totalorder %s21_s13, 4  }
 0x293   :  { %20 = sbr.rel (!%p18_p4) target bundleno = 1 (0x1), region = 98 }

// kernel: mlfn_forward.44
= control target key start
LH: loop header
LB: loop body
LE: loop exit
PB: predicated region body
PF: predicated region fallthrough
CT: control target
= control target key end

     0   :  { %s872_s24 = smov 0   ;;  %s874_s25 = smov 0   ;;  %s954_s0 = inlined_call_operand.vmem [shape: bf16[2,16,144], index: 0, kind: input, shape index: {}]   ;;  %s955_s1 = inlined_call_operand.vmem [shape: bf16[144,16], index: 1, kind: input, shape index: {}]   ;;  %s956_s2 = inlined_call_operand.vmem [shape: f32[1,16], index: 2, kind: input, shape index: {}]   ;;  %s957_s3 = inlined_call_operand.vmem [shape: f32[2,1,16], index: 3, kind: input, shape index: {}]   ;;  %s958_s4 = inlined_call_operand.vmem [shape: bf16[16,32], index: 4, kind: input, shape index: {}]   ;;  %s959_s5 = inlined_call_operand.vmem [shape: f32[1,32], index: 5, kind: input, shape index: {}]   ;;  %s960_s6 = inlined_call_operand.vmem [shape: bf16[2,16,32], index: 6, kind: input, shape index: {}]   ;;  %s961_s7 = inlined_call_operand.vmem [shape: bf16[2,16,32], index: 7, kind: output, shape index: {}]  }
   0x1   :  { %s876_s26 = smov 0  }
   0x2 LB: > { %s29_s27 = sadd.s32 1, %s823_s25  ;;  %p720_p0 = scmp.ge.s32.totalorder %s827_s26, 1  ;;  %s827_s26 = sphi %s876_s26, %s17_s26   ;;  %s823_s25 = sphi %s874_s25, %s963_s25   ;;  %s819_s24 = sphi %s872_s24, %s962_s24  }
   0x3   : > { %p31_p1 = scmp.ge.s32.totalorder %s29_s27, 2  ;;  %p284_p2 = scmp.lt.s32.totalorder %s827_s26, 3 }
   0x5   : > { %s965_s27 = smov (%p31_p1, %s29_s27), 0  ;;  %p285_p3 = pnand %p720_p0, %p284_p2 }
   0x6   : > { %p338_p4 = scmp.lt.s32.totalorder (!%p285_p3), %s819_s24, 1 }
   0x7   : > { %288 = sbr.rel (%p285_p3) target bundleno = 462 (0x1ce), region = 48 }
   0xc   : > { %v792_v0 = vld [vmem:[%s955_s1 + $0x38] sm:$0xff]   ;;  %v829_v1 = vmov 0   ;;  %v793_v2 = vld [vmem:[%s955_s1 + $0x30] sm:$0xff]   ;;  %s967_s24 = smov (!%p338_p4, %s819_s24), 1  ;;  %v794_v3 = vld [vmem:[%s955_s1 + $0x28] sm:$0xff]   ;;  %vm462_vm0 = vcmask 130048  }
   0xd   : > { %466 = vmatprep.subr.bf16.mxu0 %v829_v1  ;;  %s748_s9 = sshll.u32 %s967_s24, 4  ;;  %v795_v4 = vld [vmem:[%s955_s1 + $0x20] sm:$0xff]   ;;  %v796_v6 = vld [vmem:[%s955_s1 + $0x18] sm:$0xff]   ;;  %v797_v7 = vld [vmem:[%s955_s1 + $0x10] sm:$0xff]   ;;  %v830_v13 = vmov 0.0   ;;  %vm831_vm1 = vmmov 0  }
   0xe   : > { %467 = vmatpush1.bf16.msra.mxu0 %v792_v0  ;;  %s346_s14 = scalar_lea.vmem %s954_s0, %s748_s9  ;;  %v798_v8 = vld [vmem:[%s955_s1 + $0x8] sm:$0xff]   ;;  %v799_v9 = vld [vmem:[%s955_s1] sm:$0xff]   ;;  %759 = vmatprep.subr.bf16.mxu1 %v830_v13  ;;  %s749_s15 = sshll.u32 %s967_s24, 3  ;;  %vm596_vm2 = vcmask 257024  }
   0xf   : > { %468 = vmatprep.subr.bf16.mxu0 %v829_v1  ;;  %v803_v5 = vld [vmem:[%s346_s14 + $0x4] ss:$8 sps:$4 sm:$0xff]   ;;  %v801_v11 = vld [vmem:[%s346_s14] ss:$8 sps:$4 sm:$0xff]   ;;  %761 = vmatprep.mubr.msk.bf16.mxu1 %vm831_vm1, %v830_v13  ;;  %s350_s14 = scalar_lea.vmem %s957_s3, %s967_s24  ;;  %s359_s18 = scalar_lea.vmem %s960_s6, %s749_s15 }
  0x10   : > { %739 = vmatprep.mubr.msk.bf16.mxu0 %vm462_vm0, %v803_v5  ;;  %v800_v10 = vld [vmem:[%s955_s1 + $0x40] sm:$0xff]   ;;  %s369_s22 = scalar_lea.vmem %s961_s7, %s749_s15 }
  0x11   : > { %v804_v12 = vld [vmem:[%s958_s4] sm:$0xff]  }
  0x12   : > { %469 = vmatpush1.bf16.msra.mxu0 %v793_v2  ;;  %760 = vmatpush3.bf16.msra.mxu1 %v804_v12  ;;  %v727_v14 = vld [vmem:[%s956_s2] ss:$0 sm:$0xff] }
  0x13   : > { %470 = vmatprep.subr.bf16.mxu0 %v829_v1  ;;  %v740_v21 = vld [vmem:[%s350_s14] ss:$0 sm:$0xff] }
  0x14   : > { %v741_v27 = vld [vmem:[%s959_s5] ss:$0 sm:$0xff] }
  0x15   : > { %v754_v28 = vld [vmem:[%s359_s18] sm:$0xff]  }
  0x16   : > { %471 = vmatpush1.bf16.msra.mxu0 %v794_v3  ;;  %v755_v31 = vunpack.c.l.bf16 %v754_v28  ;;  %v756_v37 = vunpack.c.h.bf16 %v754_v28 }
  0x17   : > { %472 = vmatprep.subr.bf16.mxu0 %v829_v1 }
  0x1a   : > { %473 = vmatpush1.bf16.msra.mxu0 %v795_v4 }
  0x1b   : > { %474 = vmatprep.subr.bf16.mxu0 %v829_v1 }
  0x1e   : > { %475 = vmatpush1.bf16.msra.mxu0 %v796_v6 }
  0x1f   : > { %476 = vmatprep.subr.bf16.mxu0 %v829_v1 }
  0x22   : > { %477 = vmatpush1.bf16.msra.mxu0 %v797_v7 }
  0x23   : > { %478 = vmatprep.subr.bf16.mxu0 %v829_v1 }
  0x26   : > { %479 = vmatpush1.bf16.msra.mxu0 %v798_v8 }
  0x27   : > { %480 = vmatprep.subr.bf16.mxu0 %v829_v1 }
  0x2a   : > { %481 = vmatpush1.bf16.msra.mxu0 %v799_v9 }
  0x2b   : > { %496 = vmatprep.subr.bf16.mxu0 %v829_v1 }
  0x2e   : > { %497 = vmatpush2.bf16.msra.mxu0 %v800_v10 }
  0x31   : > { %499 = vmatmul.mubr.bf16.vlgmr.msra.gmra.mxu0 %v801_v11 }
  0xf1   : > { %v500_v15 = vpop.f32.mrf.mxu0 }
  0xf2   : > { %v501_v16 = vadd.f32 %v727_v14, %v500_v15 }
  0xf3   : > { %v502_v17 = vpop.f32.mrf.mxu0 }
  0xf4   : > { %v507_v19 = vmax.f32 %v501_v16, 0.0 }
  0xf5   : > { %v503_v18 = vpop.f32.mrf.mxu0 }
  0xf6   : > { %v504_v20 = vadd.f32 %v727_v14, %v503_v18  ;;  %v516_v24 = vmul.f32 %v740_v21, %v507_v19 }
  0xf7   : > { %v505_v22 = vpop.f32.mrf.mxu0 }
  0xf8   : > { %v508_v23 = vmax.f32 %v504_v20, 0.0 }
  0xfa   : > { %v517_v25 = vmul.f32 %v740_v21, %v508_v23 }
  0xfc   : > { %v518_v26 = vpack.c.bf16 %v517_v25, %v516_v24 }
  0xfe   : > { %762 = vmatmul.mubr.msk.bf16.vlgmr.msra.gmra.mxu1 %vm462_vm0, %v518_v26 }
 0x1be   : > { %v571_v29 = vpop.f32.mrf.mxu1 }
 0x1bf   : > { %v572_v30 = vadd.f32 %v741_v27, %v571_v29 }
 0x1c0   : > { %v763_v32 = vpop.f32.mrf.mxu1 }
 0x1c1   : > { %v578_v33 = vmax.f32 %v572_v30, 0.0 }
 0x1c2   : > { %v574_v34 = vpop.f32.mrf.mxu1 }
 0x1c3   : > { %v584_v35 = vadd.f32 %v755_v31, %v578_v33  ;;  %v575_v36 = vadd.f32 %v741_v27, %v574_v34 }
 0x1c4   : > { %v764_v38 = vpop.f32.mrf.mxu1 }
 0x1c5   : > { %v586_v39 = vmax.f32 %v584_v35, 0.0  ;;  %v579_v40 = vmax.f32 %v575_v36, 0.0 }
 0x1c7   : > { %v751_v41 = vpack.c.bf16 %v586_v39, %v586_v39  ;;  %v585_v42 = vadd.f32 %v756_v37, %v579_v40 }
 0x1c9   : > { %597 = vst.msk [vmem:[%s369_s22] sm:$0xf] %vm596_vm2, %v751_v41  ;;  %v587_v43 = vmax.f32 %v585_v42, 0.0 }
 0x1cb   : > { %v752_v44 = vpack.c.bf16 %v587_v43, %v587_v43 }
 0x1cd   : > { %598 = vst.msk [vmem:[%s369_s22 + $0x4] sm:$0xf] %vm596_vm2, %v752_v44 }
 0x1ce PF: > { %s17_s26 = sadd.s32 1, %s827_s26   ;;  %s962_s24 = smov %s823_s25 }
 0x1cf   : > { %p14_p5 = scmp.ge.s32.totalorder %s17_s26, 4   ;;  %s963_s25 = smov %s965_s27 }
 0x1d1   :  { %16 = sbr.rel (!%p14_p5) target bundleno = 2 (0x2), region = 84 }

// kernel: mlfn_forward.49
= control target key start
LH: loop header
LB: loop body
LE: loop exit
PB: predicated region body
PF: predicated region fallthrough
CT: control target
= control target key end

     0   :  { %s973_s13 = smov 0   ;;  %s1089_s0 = inlined_call_operand.vmem [shape: bf16[2,16,32], index: 0, kind: input, shape index: {}]   ;;  %s1090_s1 = inlined_call_operand.vmem [shape: bf16[32,32], index: 1, kind: input, shape index: {}]   ;;  %s1091_s2 = inlined_call_operand.vmem [shape: f32[1,32], index: 2, kind: input, shape index: {}]   ;;  %s1092_s3 = inlined_call_operand.vmem [shape: f32[32,64], index: 3, kind: input, shape index: {}]   ;;  %s1093_s4 = inlined_call_operand.vmem [shape: f32[1,64], index: 4, kind: input, shape index: {}]   ;;  %s1094_s5 = inlined_call_operand.vmem [shape: f32[64,16], index: 5, kind: input, shape index: {}]   ;;  %s1095_s6 = inlined_call_operand.vmem [shape: f32[1,16], index: 6, kind: input, shape index: {}]   ;;  %s1096_s7 = inlined_call_operand.vmem [shape: f32[16,4], index: 7, kind: input, shape index: {}]   ;;  %s1097_s8 = inlined_call_operand.vmem [shape: f32[1,4], index: 8, kind: input, shape index: {}]   ;;  %s1098_s9 = inlined_call_operand.vmem [shape: bf16[2,16,32], index: 9, kind: output, shape index: {0}]   ;;  %s1099_s10 = inlined_call_operand.vmem [shape: f32[2,1,4], index: 10, kind: output, shape index: {1}]  }
   0x1 LB: > { %s799_s14 = sadd.s32 4294967295, %s914_s13   ;;  %p803_p0 = scmp.ge.s32.totalorder %s914_s13, 1  ;;  %s914_s13 = sphi %s973_s13, %s21_s13  }
   0x2   : > { %p315_p1 = scmp.lt.s32.totalorder %s914_s13, 3 }
   0x4   : > { %p316_p2 = pnand %p803_p0, %p315_p1 }
   0x5   : > { %p356_p3 = scmp.lt.s32.totalorder (!%p316_p2), %s799_s14, 1 }
   0x6   : > { %319 = sbr.rel (%p316_p2) target bundleno = 656 (0x290), region = 56 }
   0xb   : > { %v389_v0 = vld [vmem:[%s1092_s3 + $0x18] sm:$0xff]  ;;  %v916_v1 = vmov 0.0   ;;  %v388_v2 = vld [vmem:[%s1092_s3 + $0x10] sm:$0xff]  ;;  %vm917_vm0 = vmmov 0   ;;  %s1101_s14 = smov (!%p356_p3, %s799_s14), 1  ;;  %v387_v5 = vld [vmem:[%s1092_s3 + $0x8] sm:$0xff] }
   0xc   : > { %845 = vmatprep.subr.mxu0 %v916_v1  ;;  %853 = vmatprep.mubr.msk.f32.mxu0 %vm917_vm0, %v916_v1  ;;  %v472_v3 = vld [vmem:[%s1094_s5 + $0x38] sm:$0xff]  ;;  %v471_v4 = vld [vmem:[%s1094_s5 + $0x30] sm:$0xff]  ;;  %s821_s25 = sshll.u32 %s1101_s14, 3  ;;  %v470_v6 = vld [vmem:[%s1094_s5 + $0x28] sm:$0xff]  ;;  %vm374_vm1 = vcmask 261120   ;;  %vm474_vm2 = vcmask 523264   ;;  %s368_s30 = scalar_lea.vmem %s1099_s10, %s1101_s14 }
   0xd   : > { %846 = vmatpush3.msra.mxu0 %v389_v0  ;;  %856 = vmatprep.subr.mxu1 %v916_v1  ;;  %v386_v7 = vld [vmem:[%s1092_s3] sm:$0xff]  ;;  %s360_s12 = scalar_lea.vmem %s1089_s0, %s821_s25  ;;  %v468_v12 = vld [vmem:[%s1094_s5 + $0x18] sm:$0xff]  ;;  %v467_v23 = vld [vmem:[%s1094_s5 + $0x10] sm:$0xff]  ;;  %vm552_vm3 = vcmask 130048   ;;  %s365_s24 = scalar_lea.vmem %s1098_s9, %s821_s25  ;;  %vm716_vm4 = vcmask 257024   ;;  %vm632_vm5 = vcmask 24576  }
   0xe   : > { %847 = vmatprep.subr.mxu0 %v916_v1  ;;  %857 = vmatpush3.msra.mxu1 %v472_v3  ;;  %v370_v8 = vld [vmem:[%s360_s12] sm:$0xff]   ;;  %v466_v24 = vld [vmem:[%s1094_s5 + $0x8] sm:$0xff] }
   0xf   : > { %848 = vmatpush3.msra.mxu0 %v388_v2  ;;  %858 = vmatprep.subr.mxu1 %v916_v1  ;;  %v469_v9 = vld [vmem:[%s1094_s5 + $0x20] sm:$0xff]  ;;  %v372_v10 = vunpack.c.l.bf16 %v370_v8  ;;  %v373_v11 = vunpack.c.h.bf16 %v370_v8  ;;  %v550_v31 = vld [vmem:[%s1096_s7 + $0x8] sm:$0xff] }
  0x10   : > { %849 = vmatprep.subr.mxu0 %v916_v1  ;;  %859 = vmatpush3.msra.mxu1 %v471_v4  ;;  %v465_v25 = vld [vmem:[%s1094_s5] sm:$0xff]  ;;  %v901_v33 = vld [vmem:[%s1090_s1 + $0x8] sm:$0xff]  }
  0x11   : > { %850 = vmatpush3.msra.mxu0 %v387_v5  ;;  %860 = vmatprep.subr.mxu1 %v916_v1  ;;  %v375_v13 = vsel %vm374_vm1, %v372_v10, 0.0  ;;  %v376_v14 = vsel %vm374_vm1, %v373_v11, 0.0  ;;  %v390_v26 = vld [vmem:[%s1093_s4] sm:$0x1] }
  0x12   : > { %851 = vmatprep.subr.mxu0 %v916_v1  ;;  %861 = vmatpush3.msra.mxu1 %v470_v6  ;;  %v377_v15 = vadd.f32 %v376_v14, %v375_v13  ;;  %v549_v32 = vld [vmem:[%s1096_s7] sm:$0xff] }
  0x13   : > { %852 = vmatpush3.msra.mxu0 %v386_v7  ;;  %862 = vmatprep.subr.mxu1 %v916_v1  ;;  %v902_v34 = vld [vmem:[%s1090_s1] sm:$0xff]  }
  0x14   : > { %863 = vmatpush3.msra.mxu1 %v469_v9  ;;  %872 = vmatprep.mubr.msk.f32.mxu1 %vm917_vm0, %v916_v1  ;;  %v378_v16 = vrot.slane %v377_v15, 4  ;;  %v473_v35 = vld [vmem:[%s1095_s6] sm:$0x1] }
  0x15   : > { %864 = vmatprep.subr.mxu1 %v916_v1  ;;  %882 = vmatprep.subr.bf16.mxu0 %v916_v1  ;;  %v812_v43 = vld [vmem:[%s1091_s2] ss:$0 sm:$0xff] }
  0x16   : > { %865 = vmatpush3.msra.mxu1 %v468_v12  ;;  %v379_v17 = vadd.f32 %v378_v16, %v377_v15  ;;  %v551_v51 = vld [vmem:[%s1097_s8] sm:$0x1] }
  0x17   : > { %866 = vmatprep.subr.mxu1 %v916_v1 }
  0x18   : > { %v380_v18 = vrot.slane %v379_v17, 2  ;;  %867 = vmatpush3.msra.mxu1 %v467_v23 }
  0x19   : > { %868 = vmatprep.subr.mxu1 %v916_v1 }
  0x1a   : > { %v381_v19 = vadd.f32 %v380_v18, %v379_v17  ;;  %869 = vmatpush3.msra.mxu1 %v466_v24 }
  0x1b   : > { %870 = vmatprep.subr.mxu1 %v916_v1 }
  0x1c   : > { %v382_v20 = vrot.slane %v381_v19, 1  ;;  %871 = vmatpush3.msra.mxu1 %v465_v25 }
  0x1d   : > { %875 = vmatprep.subr.mxu1 %v916_v1 }
  0x1e   : > { %v383_v21 = vadd.f32 %v382_v20, %v381_v19 }
  0x20   : > { %v385_v22 = vmul.f32 0.0625, %v383_v21 }
  0x22   : > { %854 = vmatmul.mubr.msk.f32.vlgmr.msra.gmra.mxu0 %vm374_vm1, %v385_v22 }
  0x23   : > { %886 = vmatprep.mubr.msk.bf16.mxu0 %vm917_vm0, %v916_v1  ;;  %883 = vmatpush3.bf16.msra.mxu0 %v901_v33 }
  0x24   : > { %884 = vmatprep.subr.bf16.mxu0 %v916_v1 }
  0x27   : > { %885 = vmatpush3.bf16.msra.mxu0 %v902_v34 }
  0x2a   : > { %887 = vmatmul.mubr.msk.bf16.vlgmr.msra.gmra.mxu0 %vm374_vm1, %v370_v8 }
  0xe2   : > { %v460_v27 = vpop.f32.mrf.mxu0 }
  0xe3   : > { %v461_v28 = vadd.f32 %v460_v27, %v390_v26 }
  0xe4   : > { %v855_v29 = vpop.f32.mrf.mxu0 }
  0xe5   : > { %v464_v30 = vmax.f32 %v461_v28, 0.0 }
  0xe7   : > { %873 = vmatmul.mubr.msk.f32.vlgmr.msra.gmra.mxu1 %vm474_vm2, %v464_v30 }
  0xe8   : > { %879 = vmatprep.mubr.msk.f32.mxu1 %vm917_vm0, %v916_v1  ;;  %876 = vmatpush3.msra.mxu1 %v550_v31 }
  0xe9   : > { %877 = vmatprep.subr.mxu1 %v916_v1 }
  0xea   : > { %878 = vmatpush3.msra.mxu1 %v549_v32  ;;  %v699_v40 = vpop.f32.mrf.mxu0 }
  0xeb   : > { %v700_v45 = vadd.f32 %v812_v43, %v699_v40 }
  0xec   : > { %v888_v41 = vpop.f32.mrf.mxu0 }
  0xed   : > { %v706_v47 = vmax.f32 %v700_v45, 0.0 }
  0xee   : > { %v702_v42 = vpop.f32.mrf.mxu0 }
  0xef   : > { %v703_v46 = vadd.f32 %v812_v43, %v702_v42  ;;  %v823_v49 = vpack.c.bf16 %v706_v47, %v706_v47 }
  0xf0   : > { %v889_v44 = vpop.f32.mrf.mxu0 }
  0xf1   : > { %v707_v48 = vmax.f32 %v703_v46, 0.0  ;;  %717 = vst.msk [vmem:[%s365_s24] sm:$0xf] %vm716_vm4, %v823_v49 }
  0xf3   : > { %v824_v50 = vpack.c.bf16 %v707_v48, %v707_v48 }
  0xf5   : > { %718 = vst.msk [vmem:[%s365_s24 + $0x4] sm:$0xf] %vm716_vm4, %v824_v50 }
 0x1a7   : > { %v544_v36 = vpop.f32.mrf.mxu1 }
 0x1a8   : > { %v545_v37 = vadd.f32 %v544_v36, %v473_v35 }
 0x1a9   : > { %v874_v38 = vpop.f32.mrf.mxu1 }
 0x1aa   : > { %v548_v39 = vmax.f32 %v545_v37, 0.0 }
 0x1ac   : > { %880 = vmatmul.mubr.msk.f32.vlgmr.msra.gmra.mxu1 %vm552_vm3, %v548_v39 }
 0x26c   : > { %v622_v52 = vpop.f32.mrf.mxu1 }
 0x26d   : > { %v623_v53 = vadd.f32 %v622_v52, %v551_v51 }
 0x26e   : > { %v881_v54 = vpop.f32.mrf.mxu1 }
 0x26f   : > { %v811_v55 = vmul.f32 -1.442695, %v623_v53 }
 0x271   : > { %904 = vpow2.f32 %v811_v55 }
 0x27e   : > { %v905_v56 = vpop.eup %904 }
 0x27f   : > { %v629_v57 = vadd.f32 1.0, %v905_v56 }
 0x281   : > { %906 = vrcp.f32 %v629_v57 }
 0x28e   : > { %v907_v58 = vpop.eup %906 }
 0x28f   : > { %633 = vst.msk [vmem:[%s368_s30] sm:$0x1] %vm632_vm5, %v907_v58 }
 0x290 PF: > { %s21_s13 = sadd.s32 1, %s914_s13  }
 0x291   : > { %p18_p4 = scmp.ge.s32.totalorder %s21_s13, 4  }
 0x293   :  { %20 = sbr.rel (!%p18_p4) target bundleno = 1 (0x1), region = 98 }

// kernel: mlfn_forward.50
= control target key start
LH: loop header
LB: loop body
LE: loop exit
PB: predicated region body
PF: predicated region fallthrough
CT: control target
= control target key end

     0   :  { %s1138_s30 = smov 0   ;;  %s1140_s10 = smov 0   ;;  %s1272_s0 = inlined_call_operand.vmem [shape: bf16[2,4,288], index: 0, kind: input, shape index: {}]   ;;  %s1273_s1 = inlined_call_operand.vmem [shape: bf16[288,32], index: 1, kind: input, shape index: {}]   ;;  %s1274_s2 = inlined_call_operand.vmem [shape: f32[1,32], index: 2, kind: input, shape index: {}]   ;;  %s1275_s3 = inlined_call_operand.vmem [shape: f32[2,1,32], index: 3, kind: input, shape index: {}]   ;;  %s1276_s4 = inlined_call_operand.vmem [shape: bf16[32,64], index: 4, kind: input, shape index: {}]   ;;  %s1277_s5 = inlined_call_operand.vmem [shape: f32[1,64], index: 5, kind: input, shape index: {}]   ;;  %s1278_s6 = inlined_call_operand.vmem [shape: bf16[2,4,32], index: 6, kind: input, shape index: {}]   ;;  %s1279_s7 = inlined_call_operand.vmem [shape: bf16[32,64], index: 7, kind: input, shape index: {}]   ;;  %s1280_s8 = inlined_call_operand.vmem [shape: f32[1,64], index: 8, kind: input, shape index: {}]   ;;  %s1281_s9 = inlined_call_operand.vmem [shape: bf16[2,4,64], index: 9, kind: output, shape index: {}]  }
   0x1   :  { %s1142_s11 = smov 0  }
   0x2 LB: > { %s31_s12 = sadd.s32 1, %s1079_s10  ;;  %p920_p0 = scmp.ge.s32.totalorder %s1083_s11, 1  ;;  %s1083_s11 = sphi %s1142_s11, %s19_s11   ;;  %s1079_s10 = sphi %s1140_s10, %s1283_s10   ;;  %s1075_s30 = sphi %s1138_s30, %s1282_s30  }
   0x3   : > { %p33_p1 = scmp.ge.s32.totalorder %s31_s12, 2  ;;  %p329_p2 = scmp.lt.s32.totalorder %s1083_s11, 3 }
   0x5   : > { %s1285_s12 = smov (%p33_p1, %s31_s12), 0  ;;  %p330_p3 = pnand %p920_p0, %p329_p2 }
   0x6   : > { %p381_p4 = scmp.lt.s32.totalorder (!%p330_p3), %s1075_s30, 1 }
   0x7   : > { %333 = sbr.rel (%p330_p3) target bundleno = 462 (0x1ce), region = 56 }
   0xc   : > { %v1038_v0 = vld [vmem:[%s1273_s1 + $0x78] sm:$0xff]   ;;  %v1085_v2 = vmov 0.0   ;;  %v1040_v3 = vld [vmem:[%s1273_s1 + $0x70] sm:$0xff]   ;;  %v1042_v5 = vld [vmem:[%s1273_s1 + $0x68] sm:$0xff]   ;;  %vm1086_vm0 = vmmov 0   ;;  %s1287_s30 = smov (!%p381_p4, %s1075_s30), 1  ;;  %v457_v10 = vlaneseq }
   0xd   : > { %v1039_v1 = vld [vmem:[%s1273_s1 + $0x38] sm:$0xff]   ;;  %986 = vmatprep.subr.bf16.mxu1 %v1085_v2  ;;  %955 = vmatprep.subr.bf16.mxu0 %v1038_v0  ;;  %v1041_v4 = vld [vmem:[%s1273_s1 + $0x30] sm:$0xff]   ;;  %v1043_v6 = vld [vmem:[%s1273_s1 + $0x28] sm:$0xff]   ;;  %s1010_s29 = smul.u32 6, %s1287_s30  ;;  %v1087_v19 = vmov 1983009808   ;;  %s392_s27 = scalar_lea.vmem %s1275_s3, %s1287_s30 }
   0xe   : > { %956 = vmatpush3.bf16.msra.mxu0 %v1039_v1  ;;  %990 = vmatprep.mubr.msk.bf16.mxu1 %vm1086_vm0, %v1085_v2  ;;  %v1044_v7 = vld [vmem:[%s1273_s1 + $0x60] sm:$0xff]   ;;  %v1046_v9 = vld [vmem:[%s1273_s1 + $0x58] sm:$0xff]   ;;  %v1052_v11 = vld [vmem:[%s1273_s1 + $0x88] sm:$0xff]   ;;  %v458_v16 = vshrl.u32 %v457_v10, 7  ;;  %v455_v20 = vunpack.c.l.s4 %v1087_v19  ;;  %vm579_vm1 = vcmask 261120   ;;  %vm810_vm2 = vcmask 517120  }
   0xf   : > { %957 = vmatprep.subr.bf16.mxu0 %v1040_v3  ;;  %v1045_v8 = vld [vmem:[%s1273_s1 + $0x20] sm:$0xff]   ;;  %v1047_v12 = vld [vmem:[%s1273_s1 + $0x18] sm:$0xff]   ;;  %s389_s21 = scalar_lea.vmem %s1272_s0, %s1010_s29  ;;  %v1048_v13 = vld [vmem:[%s1273_s1 + $0x50] sm:$0xff]   ;;  %987 = vmatpush3.bf16.msra.mxu1 %v1052_v11  ;;  %s922_s29 = sshll.u32 %s1287_s30, 1 }
  0x10   : > { %v1049_v14 = vld [vmem:[%s1273_s1 + $0x10] sm:$0xff]   ;;  %988 = vmatprep.subr.bf16.mxu1 %v1085_v2  ;;  %v1055_v15 = vld [vmem:[%s1273_s1 + $0x80] sm:$0xff]   ;;  %v1050_v17 = vld [vmem:[%s1273_s1 + $0x48] sm:$0xff]   ;;  %v456_v22 = vunpack.c.0.s8 %v455_v20  ;;  %s399_s18 = scalar_lea.vmem %s1278_s6, %s922_s29  ;;  %s406_s24 = scalar_lea.vmem %s1281_s9, %s922_s29 }
  0x11   : > { %v408_v18 = vld [vmem:[%s389_s21] sm:$0x3f]  ;;  %v1051_v23 = vld [vmem:[%s1273_s1 + $0x8] sm:$0xff]  }
  0x12   : > { %958 = vmatpush3.bf16.msra.mxu0 %v1041_v4  ;;  %v453_v21 = vcombine.high %v408_v18, %v408_v18  ;;  %v459_v24 = vsub.s32 %v456_v22, %v458_v16  ;;  %v1053_v25 = vld [vmem:[%s1273_s1 + $0x40] sm:$0xff]   ;;  %v1057_v30 = vld [vmem:[%s1276_s4 + $0x8] sm:$0xff]  }
  0x13   : > { %959 = vmatprep.subr.bf16.mxu0 %v1042_v5  ;;  %989 = vmatpush3.bf16.msra.mxu1 %v1055_v15  ;;  %v1054_v28 = vld [vmem:[%s1273_s1] sm:$0xff]   ;;  %v1059_v47 = vld [vmem:[%s1279_s7 + $0x8] sm:$0xff]  }
  0x14   : > { %994 = vmatprep.subr.bf16.mxu1 %v1085_v2  ;;  %v460_v26 = vrot.slane %v408_v18, %v459_v24  ;;  %v467_v27 = vrot.slane %v453_v21, %v459_v24  ;;  %v1058_v31 = vld [vmem:[%s1276_s4] sm:$0xff]  }
  0x15   : > { %v924_v37 = vld [vmem:[%s1274_s2] ss:$0 sm:$0xff] }
  0x16   : > { %960 = vmatpush3.bf16.msra.mxu0 %v1043_v6  ;;  %v468_v29 = vcombine.high %v460_v26, %v460_v26  ;;  %991 = vmatmul.mubr.msk.bf16.vlgmr.msra.gmra.mxu1 %vm579_vm1, %v467_v27  ;;  %v944_v44 = vld [vmem:[%s392_s27] ss:$0 sm:$0xff] }
  0x17   : > { %961 = vmatprep.subr.bf16.mxu0 %v1044_v7  ;;  %998 = vmatprep.mubr.msk.bf16.mxu1 %vm1086_vm0, %v1085_v2  ;;  %v1060_v49 = vld [vmem:[%s1279_s7] sm:$0xff]  }
  0x18   : > { %615 = vmatprep.mubr.bf16.mxu0 %v468_v29  ;;  %995 = vmatpush3.bf16.msra.mxu1 %v1057_v30  ;;  %v740_v50 = vld [vmem:[%s399_s18] sm:$0x3] }
  0x19   : > { %996 = vmatprep.subr.bf16.mxu1 %v1085_v2  ;;  %v945_v52 = vld [vmem:[%s1277_s5] ss:$0 sm:$0xff] }
  0x1a   : > { %962 = vmatpush3.bf16.msra.mxu0 %v1045_v8  ;;  %v949_v57 = vld [vmem:[%s1280_s8] ss:$0 sm:$0xff] }
  0x1b   : > { %963 = vmatprep.subr.bf16.mxu0 %v1046_v9 }
  0x1c   : > { %997 = vmatpush3.bf16.msra.mxu1 %v1058_v31 }
  0x1d   : > { %1002 = vmatprep.subr.bf16.mxu1 %v1085_v2 }
  0x1e   : > { %964 = vmatpush3.bf16.msra.mxu0 %v1047_v12 }
  0x1f   : > { %965 = vmatprep.subr.bf16.mxu0 %v1048_v13 }
  0x22   : > { %966 = vmatpush3.bf16.msra.mxu0 %v1049_v14 }
  0x23   : > { %967 = vmatprep.subr.bf16.mxu0 %v1050_v17 }
  0x26   : > { %968 = vmatpush3.bf16.msra.mxu0 %v1051_v23 }
  0x27   : > { %969 = vmatprep.subr.bf16.mxu0 %v1053_v25 }
  0x2a   : > { %970 = vmatpush3.bf16.msra.mxu0 %v1054_v28 }
  0x2d   : > { %616 = vmatmul.mubr.bf16.vlgmr.msra.gmra.mxu0 %v460_v26 }
  0xd6   : > { %v657_v32 = vpop.f32.mrf.mxu1 }
  0xd8   : > { %v992_v33 = vpop.f32.mrf.mxu1 }
  0xda   : > { %v660_v34 = vpop.f32.mrf.mxu1 }
  0xdc   : > { %v993_v35 = vpop.f32.mrf.mxu1 }
  0xed   : > { %v971_v36 = vpop.f32.mrf.mxu0 }
  0xef   : > { %v972_v38 = vpop.f32.mrf.mxu0 }
  0xf0   : > { %v973_v39 = vadd.f32 %v972_v38, %v971_v36 }
  0xf1   : > { %v974_v40 = vpop.f32.mrf.mxu0 }
  0xf2   : > { %v618_v41 = vadd.f32 %v973_v39, %v924_v37 }
  0xf3   : > { %v975_v42 = vpop.f32.mrf.mxu0 }
  0xf4   : > { %v658_v43 = vadd.f32 %v657_v32, %v618_v41 }
  0xf6   : > { %v663_v45 = vmax.f32 %v658_v43, 0.0 }
  0xf8   : > { %v671_v46 = vmul.f32 %v944_v44, %v663_v45 }
  0xfa   : > { %v672_v48 = vpack.c.bf16 %v671_v46, %v671_v46 }
  0xfc   : > { %999 = vmatmul.mubr.msk.bf16.vlgmr.msra.gmra.mxu1 %vm579_vm1, %v672_v48 }
  0xfd   : > { %1003 = vmatpush3.bf16.msra.mxu1 %v1059_v47  ;;  %1006 = vmatprep.mubr.msk.bf16.mxu1 %vm1086_vm0, %v1085_v2 }
  0xfe   : > { %1004 = vmatprep.subr.bf16.mxu1 %v1085_v2 }
 0x101   : > { %1005 = vmatpush3.bf16.msra.mxu1 %v1060_v49 }
 0x104   : > { %1007 = vmatmul.mubr.msk.bf16.vlgmr.msra.gmra.mxu1 %vm579_vm1, %v740_v50 }
 0x1bc   : > { %v733_v51 = vpop.f32.mrf.mxu1 }
 0x1bd   : > { %v734_v55 = vadd.f32 %v945_v52, %v733_v51 }
 0x1be   : > { %v1000_v53 = vpop.f32.mrf.mxu1 }
 0x1bf   : > { %v739_v59 = vmax.f32 %v734_v55, 0.0 }
 0x1c0   : > { %v736_v54 = vpop.f32.mrf.mxu1 }
 0x1c2   : > { %v1001_v56 = vpop.f32.mrf.mxu1 }
 0x1c4   : > { %v801_v58 = vpop.f32.mrf.mxu1 }
 0x1c5   : > { %v802_v60 = vadd.f32 %v949_v57, %v801_v58 }
 0x1c6   : > { %v1008_v61 = vpop.f32.mrf.mxu1 }
 0x1c7   : > { %v807_v62 = vadd.f32 %v802_v60, %v739_v59 }
 0x1c8   : > { %v804_v63 = vpop.f32.mrf.mxu1 }
 0x1c9   : > { %v808_v0 = vmax.f32 %v807_v62, 0.0 }
 0x1ca   : > { %v1009_v1 = vpop.f32.mrf.mxu1 }
 0x1cb   : > { %v809_v2 = vpack.c.bf16 %v808_v0, %v808_v0 }
 0x1cd   : > { %811 = vst.msk [vmem:[%s406_s24] sm:$0x3] %vm810_vm2, %v809_v2 }
 0x1ce PF: > { %s19_s11 = sadd.s32 1, %s1083_s11   ;;  %s1282_s30 = smov %s1079_s10 }
 0x1cf   : > { %p16_p5 = scmp.ge.s32.totalorder %s19_s11, 4   ;;  %s1283_s10 = smov %s1285_s12 }
 0x1d1   :  { %18 = sbr.rel (!%p16_p5) target bundleno = 2 (0x2), region = 92 }

// kernel: mlfn_forward.51
= control target key start
LH: loop header
LB: loop body
LE: loop exit
PB: predicated region body
PF: predicated region fallthrough
CT: control target
= control target key end

     0   :  { %s978_s13 = smov 0   ;;  %s1122_s0 = inlined_call_operand.vmem [shape: bf16[2,4,64], index: 0, kind: input, shape index: {}]   ;;  %s1123_s1 = inlined_call_operand.vmem [shape: bf16[64,32], index: 1, kind: input, shape index: {}]   ;;  %s1124_s2 = inlined_call_operand.vmem [shape: f32[1,32], index: 2, kind: input, shape index: {}]   ;;  %s1125_s3 = inlined_call_operand.vmem [shape: f32[64,64], index: 3, kind: input, shape index: {}]   ;;  %s1126_s4 = inlined_call_operand.vmem [shape: f32[1,64], index: 4, kind: input, shape index: {}]   ;;  %s1127_s5 = inlined_call_operand.vmem [shape: f32[64,16], index: 5, kind: input, shape index: {}]   ;;  %s1128_s6 = inlined_call_operand.vmem [shape: f32[1,16], index: 6, kind: input, shape index: {}]   ;;  %s1129_s7 = inlined_call_operand.vmem [shape: f32[16,4], index: 7, kind: input, shape index: {}]   ;;  %s1130_s8 = inlined_call_operand.vmem [shape: f32[1,4], index: 8, kind: input, shape index: {}]   ;;  %s1131_s9 = inlined_call_operand.vmem [shape: bf16[2,4,32], index: 9, kind: output, shape index: {0}]   ;;  %s1132_s10 = inlined_call_operand.vmem [shape: f32[2,1,4], index: 10, kind: output, shape index: {1}]  }
   0x1 LB: > { %s793_s14 = sadd.s32 4294967295, %s919_s13   ;;  %p797_p0 = scmp.ge.s32.totalorder %s919_s13, 1  ;;  %s919_s13 = sphi %s978_s13, %s21_s13  }
   0x2   : > { %p314_p1 = scmp.lt.s32.totalorder %s919_s13, 3 }
   0x4   : > { %p315_p2 = pnand %p797_p0, %p314_p1 }
   0x5   : > { %p353_p3 = scmp.lt.s32.totalorder (!%p315_p2), %s793_s14, 1 }
   0x6   : > { %318 = sbr.rel (%p315_p2) target bundleno = 654 (0x28e), region = 56 }
   0xb   : > { %v384_v0 = vld [vmem:[%s1125_s3 + $0x38] sm:$0xff]  ;;  %v921_v1 = vmov 0.0   ;;  %v383_v2 = vld [vmem:[%s1125_s3 + $0x30] sm:$0xff]  ;;  %vm922_vm0 = vmmov 0   ;;  %s1134_s14 = smov (!%p353_p3, %s793_s14), 1  ;;  %v382_v4 = vld [vmem:[%s1125_s3 + $0x28] sm:$0xff] }
   0xc   : > { %838 = vmatprep.subr.mxu0 %v921_v1  ;;  %854 = vmatprep.mubr.msk.f32.mxu0 %vm922_vm0, %v921_v1  ;;  %v468_v3 = vld [vmem:[%s1127_s5 + $0x38] sm:$0xff]  ;;  %v381_v5 = vld [vmem:[%s1125_s3 + $0x20] sm:$0xff]  ;;  %v467_v6 = vld [vmem:[%s1127_s5 + $0x30] sm:$0xff]  ;;  %s798_s27 = sshll.u32 %s1134_s14, 1  ;;  %vm367_vm1 = vcmask 519168   ;;  %vm386_vm2 = vcmask 523264   ;;  %s363_s24 = scalar_lea.vmem %s1132_s10, %s1134_s14 }
   0xd   : > { %839 = vmatpush3.msra.mxu0 %v384_v0  ;;  %857 = vmatprep.subr.mxu1 %v921_v1  ;;  %v466_v7 = vld [vmem:[%s1127_s5 + $0x28] sm:$0xff]  ;;  %v465_v8 = vld [vmem:[%s1127_s5 + $0x20] sm:$0xff]  ;;  %s356_s16 = scalar_lea.vmem %s1122_s0, %s798_s27  ;;  %v380_v10 = vld [vmem:[%s1125_s3 + $0x18] sm:$0xff]  ;;  %vm547_vm3 = vcmask 130048   ;;  %s360_s19 = scalar_lea.vmem %s1131_s9, %s798_s27  ;;  %vm713_vm4 = vcmask 254976   ;;  %vm627_vm5 = vcmask 24576  }
   0xe   : > { %840 = vmatprep.subr.mxu0 %v921_v1  ;;  %858 = vmatpush3.msra.mxu1 %v468_v3  ;;  %v1025_v9 = vld [vmem:[%s356_s16] sm:$0x3]  ;;  %v464_v12 = vld [vmem:[%s1127_s5 + $0x18] sm:$0xff]  ;;  %v379_v13 = vld [vmem:[%s1125_s3 + $0x10] sm:$0xff] }
   0xf   : > { %841 = vmatpush3.msra.mxu0 %v383_v2  ;;  %859 = vmatprep.subr.mxu1 %v921_v1  ;;  %v366_v11 = vunpack.c.l.bf16 %v1025_v9  ;;  %v378_v16 = vld [vmem:[%s1125_s3 + $0x8] sm:$0xff]  ;;  %v377_v18 = vld [vmem:[%s1125_s3] sm:$0xff]  ;;  %v463_v24 = vld [vmem:[%s1127_s5 + $0x10] sm:$0xff] }
  0x10   : > { %842 = vmatprep.subr.mxu0 %v921_v1  ;;  %860 = vmatpush3.msra.mxu1 %v467_v6  ;;  %v462_v25 = vld [vmem:[%s1127_s5 + $0x8] sm:$0xff]  ;;  %v461_v26 = vld [vmem:[%s1127_s5] sm:$0xff]  ;;  %v905_v34 = vld [vmem:[%s1123_s1 + $0x18] sm:$0xff]  }
  0x11   : > { %843 = vmatpush3.msra.mxu0 %v382_v4  ;;  %861 = vmatprep.subr.mxu1 %v921_v1  ;;  %v368_v14 = vsel %vm367_vm1, %v366_v11, 0.0  ;;  %v385_v27 = vld [vmem:[%s1126_s4] sm:$0x1]  ;;  %v545_v32 = vld [vmem:[%s1129_s7 + $0x8] sm:$0xff]  ;;  %v906_v35 = vld [vmem:[%s1123_s1 + $0x10] sm:$0xff]  }
  0x12   : > { %844 = vmatprep.subr.mxu0 %v921_v1  ;;  %862 = vmatpush3.msra.mxu1 %v466_v7  ;;  %v369_v15 = vrot.slane %v368_v14, 4  ;;  %v544_v33 = vld [vmem:[%s1129_s7] sm:$0xff]  ;;  %v907_v36 = vld [vmem:[%s1123_s1 + $0x8] sm:$0xff]  }
  0x13   : > { %845 = vmatpush3.msra.mxu0 %v381_v5  ;;  %863 = vmatprep.subr.mxu1 %v921_v1  ;;  %v908_v37 = vld [vmem:[%s1123_s1] sm:$0xff]  }
  0x14   : > { %846 = vmatprep.subr.mxu0 %v921_v1  ;;  %864 = vmatpush3.msra.mxu1 %v465_v8  ;;  %v370_v17 = vadd.f32 %v369_v15, %v368_v14  ;;  %v469_v38 = vld [vmem:[%s1128_s6] sm:$0x1] }
  0x15   : > { %847 = vmatpush3.msra.mxu0 %v380_v10  ;;  %865 = vmatprep.subr.mxu1 %v921_v1  ;;  %v804_v46 = vld [vmem:[%s1124_s2] ss:$0 sm:$0xff] }
  0x16   : > { %848 = vmatprep.subr.mxu0 %v921_v1  ;;  %866 = vmatpush3.msra.mxu1 %v464_v12  ;;  %v371_v19 = vrot.slane %v370_v17, 2  ;;  %v546_v51 = vld [vmem:[%s1130_s8] sm:$0x1] }
  0x17   : > { %849 = vmatpush3.msra.mxu0 %v379_v13  ;;  %867 = vmatprep.subr.mxu1 %v921_v1 }
  0x18   : > { %850 = vmatprep.subr.mxu0 %v921_v1  ;;  %873 = vmatprep.mubr.msk.f32.mxu1 %vm922_vm0, %v921_v1  ;;  %v372_v20 = vadd.f32 %v371_v19, %v370_v17 }
  0x19   : > { %851 = vmatpush3.msra.mxu0 %v378_v16  ;;  %868 = vmatpush3.msra.mxu1 %v463_v24 }
  0x1a   : > { %852 = vmatprep.subr.mxu0 %v921_v1  ;;  %v373_v21 = vrot.slane %v372_v20, 1  ;;  %869 = vmatprep.subr.mxu1 %v921_v1 }
  0x1b   : > { %853 = vmatpush3.msra.mxu0 %v377_v18  ;;  %870 = vmatpush3.msra.mxu1 %v462_v25 }
  0x1c   : > { %876 = vmatprep.subr.mxu0 %v921_v1  ;;  %v374_v22 = vadd.f32 %v373_v21, %v372_v20  ;;  %871 = vmatprep.subr.mxu1 %v921_v1 }
  0x1d   : > { %872 = vmatpush3.msra.mxu1 %v461_v26 }
  0x1e   : > { %v376_v23 = vmul.f32 0.25, %v374_v22  ;;  %883 = vmatprep.subr.bf16.mxu1 %v921_v1 }
  0x20   : > { %855 = vmatmul.mubr.msk.f32.vlgmr.msra.gmra.mxu0 %vm386_vm2, %v376_v23 }
  0x21   : > { %880 = vmatprep.mubr.msk.f32.mxu0 %vm922_vm0, %v921_v1  ;;  %877 = vmatpush3.msra.mxu0 %v545_v32 }
  0x22   : > { %878 = vmatprep.subr.mxu0 %v921_v1 }
  0x23   : > { %879 = vmatpush3.msra.mxu0 %v544_v33 }
  0xe0   : > { %v456_v28 = vpop.f32.mrf.mxu0 }
  0xe1   : > { %v457_v29 = vadd.f32 %v456_v28, %v385_v27 }
  0xe2   : > { %v856_v30 = vpop.f32.mrf.mxu0 }
  0xe3   : > { %v460_v31 = vmax.f32 %v457_v29, 0.0 }
  0xe5   : > { %874 = vmatmul.mubr.msk.f32.vlgmr.msra.gmra.mxu1 %vm386_vm2, %v460_v31 }
  0xe6   : > { %891 = vmatprep.mubr.msk.bf16.mxu1 %vm922_vm0, %v921_v1  ;;  %884 = vmatpush3.bf16.msra.mxu1 %v905_v34 }
  0xe7   : > { %885 = vmatprep.subr.bf16.mxu1 %v921_v1 }
  0xea   : > { %886 = vmatpush3.bf16.msra.mxu1 %v906_v35 }
  0xeb   : > { %887 = vmatprep.subr.bf16.mxu1 %v921_v1 }
  0xee   : > { %888 = vmatpush3.bf16.msra.mxu1 %v907_v36 }
  0xef   : > { %889 = vmatprep.subr.bf16.mxu1 %v921_v1 }
  0xf2   : > { %890 = vmatpush3.bf16.msra.mxu1 %v908_v37 }
  0xf5   : > { %892 = vmatmul.mubr.msk.bf16.vlgmr.msra.gmra.mxu1 %vm386_vm2, %v1025_v9 }
 0x1a5   : > { %v539_v39 = vpop.f32.mrf.mxu1 }
 0x1a6   : > { %v540_v40 = vadd.f32 %v539_v39, %v469_v38 }
 0x1a7   : > { %v875_v41 = vpop.f32.mrf.mxu1 }
 0x1a8   : > { %v543_v42 = vmax.f32 %v540_v40, 0.0 }
 0x1aa   : > { %881 = vmatmul.mubr.msk.f32.vlgmr.msra.gmra.mxu0 %vm547_vm3, %v543_v42 }
 0x1b5   : > { %v705_v43 = vpop.f32.mrf.mxu1 }
 0x1b6   : > { %v706_v48 = vadd.f32 %v804_v46, %v705_v43 }
 0x1b7   : > { %v893_v44 = vpop.f32.mrf.mxu1 }
 0x1b8   : > { %v711_v49 = vmax.f32 %v706_v48, 0.0 }
 0x1b9   : > { %v708_v45 = vpop.f32.mrf.mxu1 }
 0x1ba   : > { %v712_v50 = vpack.c.bf16 %v711_v49, %v711_v49 }
 0x1bb   : > { %v894_v47 = vpop.f32.mrf.mxu1 }
 0x1bc   : > { %714 = vst.msk [vmem:[%s360_s19] sm:$0x3] %vm713_vm4, %v712_v50 }
 0x26a   : > { %v617_v52 = vpop.f32.mrf.mxu0 }
 0x26b   : > { %v618_v53 = vadd.f32 %v617_v52, %v546_v51 }
 0x26c   : > { %v882_v54 = vpop.f32.mrf.mxu0 }
 0x26d   : > { %v803_v55 = vmul.f32 -1.442695, %v618_v53 }
 0x26f   : > { %909 = vpow2.f32 %v803_v55 }
 0x27c   : > { %v910_v56 = vpop.eup %909 }
 0x27d   : > { %v624_v57 = vadd.f32 1.0, %v910_v56 }
 0x27f   : > { %911 = vrcp.f32 %v624_v57 }
 0x28c   : > { %v912_v58 = vpop.eup %911 }
 0x28d   : > { %628 = vst.msk [vmem:[%s363_s24] sm:$0x1] %vm627_vm5, %v912_v58 }
 0x28e PF: > { %s21_s13 = sadd.s32 1, %s919_s13  }
 0x28f   : > { %p18_p4 = scmp.ge.s32.totalorder %s21_s13, 4  }
 0x291   :  { %20 = sbr.rel (!%p18_p4) target bundleno = 1 (0x1), region = 98 }

// kernel: mlfn_forward.61
= control target key start
LH: loop header
LB: loop body
LE: loop exit
PB: predicated region body
PF: predicated region fallthrough
CT: control target
= control target key end

     0   :  { %s978_s13 = smov 0   ;;  %s1122_s0 = inlined_call_operand.vmem [shape: bf16[2,4,64], index: 0, kind: input, shape index: {}]   ;;  %s1123_s1 = inlined_call_operand.vmem [shape: bf16[64,64], index: 1, kind: input, shape index: {}]   ;;  %s1124_s2 = inlined_call_operand.vmem [shape: f32[1,64], index: 2, kind: input, shape index: {}]   ;;  %s1125_s3 = inlined_call_operand.vmem [shape: f32[64,64], index: 3, kind: input, shape index: {}]   ;;  %s1126_s4 = inlined_call_operand.vmem [shape: f32[1,64], index: 4, kind: input, shape index: {}]   ;;  %s1127_s5 = inlined_call_operand.vmem [shape: f32[64,16], index: 5, kind: input, shape index: {}]   ;;  %s1128_s6 = inlined_call_operand.vmem [shape: f32[1,16], index: 6, kind: input, shape index: {}]   ;;  %s1129_s7 = inlined_call_operand.vmem [shape: f32[16,4], index: 7, kind: input, shape index: {}]   ;;  %s1130_s8 = inlined_call_operand.vmem [shape: f32[1,4], index: 8, kind: input, shape index: {}]   ;;  %s1131_s9 = inlined_call_operand.vmem [shape: bf16[2,4,64], index: 9, kind: output, shape index: {0}]   ;;  %s1132_s10 = inlined_call_operand.vmem [shape: f32[2,1,4], index: 10, kind: output, shape index: {1}]  }
   0x1 LB: > { %s793_s14 = sadd.s32 4294967295, %s919_s13   ;;  %p797_p0 = scmp.ge.s32.totalorder %s919_s13, 1  ;;  %s919_s13 = sphi %s978_s13, %s21_s13  }
   0x2   : > { %p314_p1 = scmp.lt.s32.totalorder %s919_s13, 3 }
   0x4   : > { %p315_p2 = pnand %p797_p0, %p314_p1 }
   0x5   : > { %p353_p3 = scmp.lt.s32.totalorder (!%p315_p2), %s793_s14, 1 }
   0x6   : > { %318 = sbr.rel (%p315_p2) target bundleno = 654 (0x28e), region = 56 }
   0xb   : > { %v384_v0 = vld [vmem:[%s1125_s3 + $0x38] sm:$0xff]  ;;  %v921_v1 = vmov 0.0   ;;  %v383_v2 = vld [vmem:[%s1125_s3 + $0x30] sm:$0xff]  ;;  %vm922_vm0 = vmmov 0   ;;  %s1134_s14 = smov (!%p353_p3, %s793_s14), 1  ;;  %v382_v4 = vld [vmem:[%s1125_s3 + $0x28] sm:$0xff] }
   0xc   : > { %838 = vmatprep.subr.mxu0 %v921_v1  ;;  %854 = vmatprep.mubr.msk.f32.mxu0 %vm922_vm0, %v921_v1  ;;  %v468_v3 = vld [vmem:[%s1127_s5 + $0x38] sm:$0xff]  ;;  %v381_v5 = vld [vmem:[%s1125_s3 + $0x20] sm:$0xff]  ;;  %v467_v6 = vld [vmem:[%s1127_s5 + $0x30] sm:$0xff]  ;;  %s798_s27 = sshll.u32 %s1134_s14, 1  ;;  %vm367_vm1 = vcmask 519168   ;;  %vm386_vm2 = vcmask 523264   ;;  %s363_s24 = scalar_lea.vmem %s1132_s10, %s1134_s14 }
   0xd   : > { %839 = vmatpush3.msra.mxu0 %v384_v0  ;;  %857 = vmatprep.subr.mxu1 %v921_v1  ;;  %v466_v7 = vld [vmem:[%s1127_s5 + $0x28] sm:$0xff]  ;;  %v465_v8 = vld [vmem:[%s1127_s5 + $0x20] sm:$0xff]  ;;  %s356_s16 = scalar_lea.vmem %s1122_s0, %s798_s27  ;;  %v380_v10 = vld [vmem:[%s1125_s3 + $0x18] sm:$0xff]  ;;  %vm547_vm3 = vcmask 130048   ;;  %s360_s19 = scalar_lea.vmem %s1131_s9, %s798_s27  ;;  %vm713_vm4 = vcmask 517120   ;;  %vm627_vm5 = vcmask 24576  }
   0xe   : > { %840 = vmatprep.subr.mxu0 %v921_v1  ;;  %858 = vmatpush3.msra.mxu1 %v468_v3  ;;  %v1025_v9 = vld [vmem:[%s356_s16] sm:$0x3]  ;;  %v464_v12 = vld [vmem:[%s1127_s5 + $0x18] sm:$0xff]  ;;  %v379_v13 = vld [vmem:[%s1125_s3 + $0x10] sm:$0xff] }
   0xf   : > { %841 = vmatpush3.msra.mxu0 %v383_v2  ;;  %859 = vmatprep.subr.mxu1 %v921_v1  ;;  %v366_v11 = vunpack.c.l.bf16 %v1025_v9  ;;  %v378_v16 = vld [vmem:[%s1125_s3 + $0x8] sm:$0xff]  ;;  %v377_v18 = vld [vmem:[%s1125_s3] sm:$0xff]  ;;  %v463_v24 = vld [vmem:[%s1127_s5 + $0x10] sm:$0xff] }
  0x10   : > { %842 = vmatprep.subr.mxu0 %v921_v1  ;;  %860 = vmatpush3.msra.mxu1 %v467_v6  ;;  %v462_v25 = vld [vmem:[%s1127_s5 + $0x8] sm:$0xff]  ;;  %v461_v26 = vld [vmem:[%s1127_s5] sm:$0xff]  ;;  %v905_v34 = vld [vmem:[%s1123_s1 + $0x18] sm:$0xff]  }
  0x11   : > { %843 = vmatpush3.msra.mxu0 %v382_v4  ;;  %861 = vmatprep.subr.mxu1 %v921_v1  ;;  %v368_v14 = vsel %vm367_vm1, %v366_v11, 0.0  ;;  %v385_v27 = vld [vmem:[%s1126_s4] sm:$0x1]  ;;  %v545_v32 = vld [vmem:[%s1129_s7 + $0x8] sm:$0xff]  ;;  %v906_v35 = vld [vmem:[%s1123_s1 + $0x10] sm:$0xff]  }
  0x12   : > { %844 = vmatprep.subr.mxu0 %v921_v1  ;;  %862 = vmatpush3.msra.mxu1 %v466_v7  ;;  %v369_v15 = vrot.slane %v368_v14, 4  ;;  %v544_v33 = vld [vmem:[%s1129_s7] sm:$0xff]  ;;  %v907_v36 = vld [vmem:[%s1123_s1 + $0x8] sm:$0xff]  }
  0x13   : > { %845 = vmatpush3.msra.mxu0 %v381_v5  ;;  %863 = vmatprep.subr.mxu1 %v921_v1  ;;  %v908_v37 = vld [vmem:[%s1123_s1] sm:$0xff]  }
  0x14   : > { %846 = vmatprep.subr.mxu0 %v921_v1  ;;  %864 = vmatpush3.msra.mxu1 %v465_v8  ;;  %v370_v17 = vadd.f32 %v369_v15, %v368_v14  ;;  %v469_v38 = vld [vmem:[%s1128_s6] sm:$0x1] }
  0x15   : > { %847 = vmatpush3.msra.mxu0 %v380_v10  ;;  %865 = vmatprep.subr.mxu1 %v921_v1  ;;  %v804_v46 = vld [vmem:[%s1124_s2] ss:$0 sm:$0xff] }
  0x16   : > { %848 = vmatprep.subr.mxu0 %v921_v1  ;;  %866 = vmatpush3.msra.mxu1 %v464_v12  ;;  %v371_v19 = vrot.slane %v370_v17, 2  ;;  %v546_v51 = vld [vmem:[%s1130_s8] sm:$0x1] }
  0x17   : > { %849 = vmatpush3.msra.mxu0 %v379_v13  ;;  %867 = vmatprep.subr.mxu1 %v921_v1 }
  0x18   : > { %850 = vmatprep.subr.mxu0 %v921_v1  ;;  %873 = vmatprep.mubr.msk.f32.mxu1 %vm922_vm0, %v921_v1  ;;  %v372_v20 = vadd.f32 %v371_v19, %v370_v17 }
  0x19   : > { %851 = vmatpush3.msra.mxu0 %v378_v16  ;;  %868 = vmatpush3.msra.mxu1 %v463_v24 }
  0x1a   : > { %852 = vmatprep.subr.mxu0 %v921_v1  ;;  %v373_v21 = vrot.slane %v372_v20, 1  ;;  %869 = vmatprep.subr.mxu1 %v921_v1 }
  0x1b   : > { %853 = vmatpush3.msra.mxu0 %v377_v18  ;;  %870 = vmatpush3.msra.mxu1 %v462_v25 }
  0x1c   : > { %876 = vmatprep.subr.mxu0 %v921_v1  ;;  %v374_v22 = vadd.f32 %v373_v21, %v372_v20  ;;  %871 = vmatprep.subr.mxu1 %v921_v1 }
  0x1d   : > { %872 = vmatpush3.msra.mxu1 %v461_v26 }
  0x1e   : > { %v376_v23 = vmul.f32 0.25, %v374_v22  ;;  %883 = vmatprep.subr.bf16.mxu1 %v921_v1 }
  0x20   : > { %855 = vmatmul.mubr.msk.f32.vlgmr.msra.gmra.mxu0 %vm386_vm2, %v376_v23 }
  0x21   : > { %880 = vmatprep.mubr.msk.f32.mxu0 %vm922_vm0, %v921_v1  ;;  %877 = vmatpush3.msra.mxu0 %v545_v32 }
  0x22   : > { %878 = vmatprep.subr.mxu0 %v921_v1 }
  0x23   : > { %879 = vmatpush3.msra.mxu0 %v544_v33 }
  0xe0   : > { %v456_v28 = vpop.f32.mrf.mxu0 }
  0xe1   : > { %v457_v29 = vadd.f32 %v456_v28, %v385_v27 }
  0xe2   : > { %v856_v30 = vpop.f32.mrf.mxu0 }
  0xe3   : > { %v460_v31 = vmax.f32 %v457_v29, 0.0 }
  0xe5   : > { %874 = vmatmul.mubr.msk.f32.vlgmr.msra.gmra.mxu1 %vm386_vm2, %v460_v31 }
  0xe6   : > { %891 = vmatprep.mubr.msk.bf16.mxu1 %vm922_vm0, %v921_v1  ;;  %884 = vmatpush3.bf16.msra.mxu1 %v905_v34 }
  0xe7   : > { %885 = vmatprep.subr.bf16.mxu1 %v921_v1 }
  0xea   : > { %886 = vmatpush3.bf16.msra.mxu1 %v906_v35 }
  0xeb   : > { %887 = vmatprep.subr.bf16.mxu1 %v921_v1 }
  0xee   : > { %888 = vmatpush3.bf16.msra.mxu1 %v907_v36 }
  0xef   : > { %889 = vmatprep.subr.bf16.mxu1 %v921_v1 }
  0xf2   : > { %890 = vmatpush3.bf16.msra.mxu1 %v908_v37 }
  0xf5   : > { %892 = vmatmul.mubr.msk.bf16.vlgmr.msra.gmra.mxu1 %vm386_vm2, %v1025_v9 }
 0x1a5   : > { %v539_v39 = vpop.f32.mrf.mxu1 }
 0x1a6   : > { %v540_v40 = vadd.f32 %v539_v39, %v469_v38 }
 0x1a7   : > { %v875_v41 = vpop.f32.mrf.mxu1 }
 0x1a8   : > { %v543_v42 = vmax.f32 %v540_v40, 0.0 }
 0x1aa   : > { %881 = vmatmul.mubr.msk.f32.vlgmr.msra.gmra.mxu0 %vm547_vm3, %v543_v42 }
 0x1b5   : > { %v705_v43 = vpop.f32.mrf.mxu1 }
 0x1b6   : > { %v706_v48 = vadd.f32 %v804_v46, %v705_v43 }
 0x1b7   : > { %v893_v44 = vpop.f32.mrf.mxu1 }
 0x1b8   : > { %v711_v49 = vmax.f32 %v706_v48, 0.0 }
 0x1b9   : > { %v708_v45 = vpop.f32.mrf.mxu1 }
 0x1ba   : > { %v712_v50 = vpack.c.bf16 %v711_v49, %v711_v49 }
 0x1bb   : > { %v894_v47 = vpop.f32.mrf.mxu1 }
 0x1bc   : > { %714 = vst.msk [vmem:[%s360_s19] sm:$0x3] %vm713_vm4, %v712_v50 }
 0x26a   : > { %v617_v52 = vpop.f32.mrf.mxu0 }
 0x26b   : > { %v618_v53 = vadd.f32 %v617_v52, %v546_v51 }
 0x26c   : > { %v882_v54 = vpop.f32.mrf.mxu0 }
 0x26d   : > { %v803_v55 = vmul.f32 -1.442695, %v618_v53 }
 0x26f   : > { %909 = vpow2.f32 %v803_v55 }
 0x27c   : > { %v910_v56 = vpop.eup %909 }
 0x27d   : > { %v624_v57 = vadd.f32 1.0, %v910_v56 }
 0x27f   : > { %911 = vrcp.f32 %v624_v57 }
 0x28c   : > { %v912_v58 = vpop.eup %911 }
 0x28d   : > { %628 = vst.msk [vmem:[%s363_s24] sm:$0x1] %vm627_vm5, %v912_v58 }
 0x28e PF: > { %s21_s13 = sadd.s32 1, %s919_s13  }
 0x28f   : > { %p18_p4 = scmp.ge.s32.totalorder %s21_s13, 4  }
 0x291   :  { %20 = sbr.rel (!%p18_p4) target bundleno = 1 (0x1), region = 98 }

// kernel: mlfn_forward.52
= control target key start
LH: loop header
LB: loop body
LE: loop exit
PB: predicated region body
PF: predicated region fallthrough
CT: control target
= control target key end

     0   :  { %s992_s24 = smov 0   ;;  %s994_s25 = smov 0   ;;  %s1106_s0 = inlined_call_operand.vmem [shape: bf16[2,4,288], index: 0, kind: input, shape index: {}]   ;;  %s1107_s1 = inlined_call_operand.vmem [shape: bf16[288,32], index: 1, kind: input, shape index: {}]   ;;  %s1108_s2 = inlined_call_operand.vmem [shape: f32[1,32], index: 2, kind: input, shape index: {}]   ;;  %s1109_s3 = inlined_call_operand.vmem [shape: f32[2,1,32], index: 3, kind: input, shape index: {}]   ;;  %s1110_s4 = inlined_call_operand.vmem [shape: bf16[32,64], index: 4, kind: input, shape index: {}]   ;;  %s1111_s5 = inlined_call_operand.vmem [shape: f32[1,64], index: 5, kind: input, shape index: {}]   ;;  %s1112_s6 = inlined_call_operand.vmem [shape: bf16[2,4,64], index: 6, kind: input, shape index: {}]   ;;  %s1113_s7 = inlined_call_operand.vmem [shape: bf16[2,4,64], index: 7, kind: output, shape index: {}]  }
   0x1   :  { %s996_s26 = smov 0  }
   0x2 LB: > { %s29_s27 = sadd.s32 1, %s943_s25  ;;  %p801_p0 = scmp.ge.s32.totalorder %s947_s26, 1  ;;  %s947_s26 = sphi %s996_s26, %s17_s26   ;;  %s943_s25 = sphi %s994_s25, %s1115_s25   ;;  %s939_s24 = sphi %s992_s24, %s1114_s24  }
   0x3   : > { %p31_p1 = scmp.ge.s32.totalorder %s29_s27, 2  ;;  %p279_p2 = scmp.lt.s32.totalorder %s947_s26, 3 }
   0x5   : > { %s1117_s27 = smov (%p31_p1, %s29_s27), 0  ;;  %p280_p3 = pnand %p801_p0, %p279_p2 }
   0x6   : > { %p327_p4 = scmp.lt.s32.totalorder (!%p280_p3), %s939_s24, 1 }
   0x7   : > { %283 = sbr.rel (%p280_p3) target bundleno = 456 (0x1c8), region = 48 }
   0xc   : > { %v904_v0 = vld [vmem:[%s1107_s1 + $0x78] sm:$0xff]   ;;  %v949_v2 = vmov 0.0   ;;  %v906_v3 = vld [vmem:[%s1107_s1 + $0x70] sm:$0xff]   ;;  %v908_v5 = vld [vmem:[%s1107_s1 + $0x68] sm:$0xff]   ;;  %vm950_vm0 = vmmov 0   ;;  %s1119_s24 = smov (!%p327_p4, %s939_s24), 1  ;;  %v403_v10 = vlaneseq }
   0xd   : > { %v905_v1 = vld [vmem:[%s1107_s1 + $0x38] sm:$0xff]   ;;  %860 = vmatprep.subr.bf16.mxu1 %v949_v2  ;;  %832 = vmatprep.subr.bf16.mxu0 %v904_v0  ;;  %v907_v4 = vld [vmem:[%s1107_s1 + $0x30] sm:$0xff]   ;;  %v909_v6 = vld [vmem:[%s1107_s1 + $0x28] sm:$0xff]   ;;  %s876_s21 = smul.u32 6, %s1119_s24  ;;  %v951_v18 = vmov 1983009808   ;;  %s338_s15 = scalar_lea.vmem %s1109_s3, %s1119_s24 }
   0xe   : > { %833 = vmatpush3.bf16.msra.mxu0 %v905_v1  ;;  %864 = vmatprep.mubr.msk.bf16.mxu1 %vm950_vm0, %v949_v2  ;;  %v910_v7 = vld [vmem:[%s1107_s1 + $0x60] sm:$0xff]   ;;  %v912_v9 = vld [vmem:[%s1107_s1 + $0x58] sm:$0xff]   ;;  %v918_v11 = vld [vmem:[%s1107_s1 + $0x88] sm:$0xff]   ;;  %v404_v16 = vshrl.u32 %v403_v10, 7  ;;  %v401_v19 = vunpack.c.l.s4 %v951_v18  ;;  %vm525_vm1 = vcmask 261120   ;;  %s803_s16 = sshll.u32 %s1119_s24, 1 }
   0xf   : > { %834 = vmatprep.subr.bf16.mxu0 %v906_v3  ;;  %v911_v8 = vld [vmem:[%s1107_s1 + $0x20] sm:$0xff]   ;;  %v913_v12 = vld [vmem:[%s1107_s1 + $0x18] sm:$0xff]   ;;  %s335_s11 = scalar_lea.vmem %s1106_s0, %s876_s21  ;;  %v914_v13 = vld [vmem:[%s1107_s1 + $0x50] sm:$0xff]   ;;  %861 = vmatpush3.bf16.msra.mxu1 %v918_v11  ;;  %s345_s19 = scalar_lea.vmem %s1112_s6, %s803_s16  ;;  %vm691_vm2 = vcmask 517120  }
  0x10   : > { %v915_v14 = vld [vmem:[%s1107_s1 + $0x10] sm:$0xff]   ;;  %862 = vmatprep.subr.bf16.mxu1 %v949_v2  ;;  %v921_v15 = vld [vmem:[%s1107_s1 + $0x80] sm:$0xff]   ;;  %v916_v20 = vld [vmem:[%s1107_s1 + $0x48] sm:$0xff]   ;;  %v402_v22 = vunpack.c.0.s8 %v401_v19  ;;  %s352_s23 = scalar_lea.vmem %s1113_s7, %s803_s16 }
  0x11   : > { %v354_v17 = vld [vmem:[%s335_s11] sm:$0x3f]  ;;  %v917_v23 = vld [vmem:[%s1107_s1 + $0x8] sm:$0xff]  }
  0x12   : > { %835 = vmatpush3.bf16.msra.mxu0 %v907_v4  ;;  %v399_v21 = vcombine.high %v354_v17, %v354_v17  ;;  %v405_v24 = vsub.s32 %v402_v22, %v404_v16  ;;  %v919_v25 = vld [vmem:[%s1107_s1 + $0x40] sm:$0xff]   ;;  %v923_v30 = vld [vmem:[%s1110_s4 + $0x8] sm:$0xff]  }
  0x13   : > { %836 = vmatprep.subr.bf16.mxu0 %v908_v5  ;;  %863 = vmatpush3.bf16.msra.mxu1 %v921_v15  ;;  %v920_v28 = vld [vmem:[%s1107_s1] sm:$0xff]  }
  0x14   : > { %868 = vmatprep.subr.bf16.mxu1 %v949_v2  ;;  %v406_v26 = vrot.slane %v354_v17, %v405_v24  ;;  %v413_v27 = vrot.slane %v399_v21, %v405_v24  ;;  %v924_v31 = vld [vmem:[%s1110_s4] sm:$0xff]  }
  0x15   : > { %v805_v37 = vld [vmem:[%s1108_s2] ss:$0 sm:$0xff] }
  0x16   : > { %837 = vmatpush3.bf16.msra.mxu0 %v909_v6  ;;  %v414_v29 = vcombine.high %v406_v26, %v406_v26  ;;  %865 = vmatmul.mubr.msk.bf16.vlgmr.msra.gmra.mxu1 %vm525_vm1, %v413_v27  ;;  %v825_v44 = vld [vmem:[%s338_s15] ss:$0 sm:$0xff] }
  0x17   : > { %838 = vmatprep.subr.bf16.mxu0 %v910_v7  ;;  %872 = vmatprep.mubr.msk.bf16.mxu1 %vm950_vm0, %v949_v2  ;;  %v826_v48 = vld [vmem:[%s1111_s5] ss:$0 sm:$0xff] }
  0x18   : > { %561 = vmatprep.mubr.bf16.mxu0 %v414_v29  ;;  %869 = vmatpush3.bf16.msra.mxu1 %v923_v30  ;;  %v686_v49 = vld [vmem:[%s345_s19] sm:$0x3] }
  0x19   : > { %870 = vmatprep.subr.bf16.mxu1 %v949_v2  ;;  %v687_v52 = vunpack.c.l.bf16 %v686_v49 }
  0x1a   : > { %839 = vmatpush3.bf16.msra.mxu0 %v911_v8 }
  0x1b   : > { %840 = vmatprep.subr.bf16.mxu0 %v912_v9 }
  0x1c   : > { %871 = vmatpush3.bf16.msra.mxu1 %v924_v31 }
  0x1e   : > { %841 = vmatpush3.bf16.msra.mxu0 %v913_v12 }
  0x1f   : > { %842 = vmatprep.subr.bf16.mxu0 %v914_v13 }
  0x22   : > { %843 = vmatpush3.bf16.msra.mxu0 %v915_v14 }
  0x23   : > { %844 = vmatprep.subr.bf16.mxu0 %v916_v20 }
  0x26   : > { %845 = vmatpush3.bf16.msra.mxu0 %v917_v23 }
  0x27   : > { %846 = vmatprep.subr.bf16.mxu0 %v919_v25 }
  0x2a   : > { %847 = vmatpush3.bf16.msra.mxu0 %v920_v28 }
  0x2d   : > { %562 = vmatmul.mubr.bf16.vlgmr.msra.gmra.mxu0 %v406_v26 }
  0xd6   : > { %v603_v32 = vpop.f32.mrf.mxu1 }
  0xd8   : > { %v866_v33 = vpop.f32.mrf.mxu1 }
  0xda   : > { %v606_v34 = vpop.f32.mrf.mxu1 }
  0xdc   : > { %v867_v35 = vpop.f32.mrf.mxu1 }
  0xed   : > { %v848_v36 = vpop.f32.mrf.mxu0 }
  0xef   : > { %v849_v38 = vpop.f32.mrf.mxu0 }
  0xf0   : > { %v850_v39 = vadd.f32 %v849_v38, %v848_v36 }
  0xf1   : > { %v851_v40 = vpop.f32.mrf.mxu0 }
  0xf2   : > { %v564_v41 = vadd.f32 %v850_v39, %v805_v37 }
  0xf3   : > { %v852_v42 = vpop.f32.mrf.mxu0 }
  0xf4   : > { %v604_v43 = vadd.f32 %v603_v32, %v564_v41 }
  0xf6   : > { %v609_v45 = vmax.f32 %v604_v43, 0.0 }
  0xf8   : > { %v617_v46 = vmul.f32 %v825_v44, %v609_v45 }
  0xfa   : > { %v618_v47 = vpack.c.bf16 %v617_v46, %v617_v46 }
  0xfc   : > { %873 = vmatmul.mubr.msk.bf16.vlgmr.msra.gmra.mxu1 %vm525_vm1, %v618_v47 }
 0x1bc   : > { %v679_v50 = vpop.f32.mrf.mxu1 }
 0x1bd   : > { %v680_v51 = vadd.f32 %v826_v48, %v679_v50 }
 0x1be   : > { %v874_v53 = vpop.f32.mrf.mxu1 }
 0x1bf   : > { %v685_v54 = vmax.f32 %v680_v51, 0.0 }
 0x1c0   : > { %v682_v55 = vpop.f32.mrf.mxu1 }
 0x1c1   : > { %v688_v56 = vadd.f32 %v687_v52, %v685_v54 }
 0x1c2   : > { %v875_v57 = vpop.f32.mrf.mxu1 }
 0x1c3   : > { %v689_v58 = vmax.f32 %v688_v56, 0.0 }
 0x1c5   : > { %v690_v59 = vpack.c.bf16 %v689_v58, %v689_v58 }
 0x1c7   : > { %692 = vst.msk [vmem:[%s352_s23] sm:$0x3] %vm691_vm2, %v690_v59 }
 0x1c8 PF: > { %s17_s26 = sadd.s32 1, %s947_s26   ;;  %s1114_s24 = smov %s943_s25 }
 0x1c9   : > { %p14_p5 = scmp.ge.s32.totalorder %s17_s26, 4   ;;  %s1115_s25 = smov %s1117_s27 }
 0x1cb   :  { %16 = sbr.rel (!%p14_p5) target bundleno = 2 (0x2), region = 84 }

// kernel: mlfn_forward.62
= control target key start
LH: loop header
LB: loop body
LE: loop exit
PB: predicated region body
PF: predicated region fallthrough
CT: control target
= control target key end

     0   :  { %s1416_s30 = smov 0   ;;  %s1418_s10 = smov 0   ;;  %s1612_s0 = inlined_call_operand.vmem [shape: bf16[2,1,576], index: 0, kind: input, shape index: {}]   ;;  %s1613_s1 = inlined_call_operand.vmem [shape: bf16[576,64], index: 1, kind: input, shape index: {}]   ;;  %s1614_s2 = inlined_call_operand.vmem [shape: f32[1,64], index: 2, kind: input, shape index: {}]   ;;  %s1615_s3 = inlined_call_operand.vmem [shape: f32[2,1,64], index: 3, kind: input, shape index: {}]   ;;  %s1616_s4 = inlined_call_operand.vmem [shape: bf16[64,128], index: 4, kind: input, shape index: {}]   ;;  %s1617_s5 = inlined_call_operand.vmem [shape: f32[1,128], index: 5, kind: input, shape index: {}]   ;;  %s1618_s6 = inlined_call_operand.vmem [shape: bf16[2,1,64], index: 6, kind: input, shape index: {}]   ;;  %s1619_s7 = inlined_call_operand.vmem [shape: bf16[64,128], index: 7, kind: input, shape index: {}]   ;;  %s1620_s8 = inlined_call_operand.vmem [shape: f32[1,128], index: 8, kind: input, shape index: {}]   ;;  %s1621_s9 = inlined_call_operand.vmem [shape: bf16[2,1,128], index: 9, kind: output, shape index: {}]  }
   0x1   :  { %s1420_s11 = smov 0  }
   0x2 LB: > { %s31_s12 = sadd.s32 1, %s1357_s10  ;;  %p1121_p0 = scmp.ge.s32.totalorder %s1361_s11, 1  ;;  %s1361_s11 = sphi %s1420_s11, %s19_s11   ;;  %s1357_s10 = sphi %s1418_s10, %s1623_s10   ;;  %s1353_s30 = sphi %s1416_s30, %s1622_s30  }
   0x3   : > { %p33_p1 = scmp.ge.s32.totalorder %s31_s12, 2  ;;  %p327_p2 = scmp.lt.s32.totalorder %s1361_s11, 3 }
   0x5   : > { %s1625_s12 = smov (%p33_p1, %s31_s12), 0  ;;  %p328_p3 = pnand %p1121_p0, %p327_p2 }
   0x6   : > { %p376_p4 = scmp.lt.s32.totalorder (!%p328_p3), %s1353_s30, 1 }
   0x7   : > { %331 = sbr.rel (%p328_p3) target bundleno = 467 (0x1d3), region = 56 }
   0xc   : > { %v1294_v0 = vld [vmem:[%s1613_s1 + $0x78] sm:$0xff]   ;;  %v1298_v4 = vld [vmem:[%s1613_s1 + $0x70] sm:$0xff]   ;;  %v1302_v8 = vld [vmem:[%s1613_s1 + $0x68] sm:$0xff]   ;;  %s1627_s30 = smov (!%p376_p4, %s1353_s30), 1  ;;  %v479_v29 = vlaneseq  ;;  %v1363_v32 = vmov 1966171168  }
   0xd   : > { %v1295_v1 = vld [vmem:[%s1613_s1 + $0x38] sm:$0xff]   ;;  %1171 = vmatprep.subr.bf16.mxu0 %v1294_v0  ;;  %v1299_v5 = vld [vmem:[%s1613_s1 + $0x30] sm:$0xff]   ;;  %v1303_v9 = vld [vmem:[%s1613_s1 + $0x28] sm:$0xff]   ;;  %s1266_s20 = smul.u32 5, %s1627_s30  ;;  %v477_v33 = vunpack.c.l.s4 %v1363_v32  ;;  %v1364_v36 = vmov 0.0   ;;  %vm1365_vm0 = vmmov 0   ;;  %s398_s17 = scalar_lea.vmem %s1621_s9, %s1627_s30 }
   0xe   : > { %v1296_v2 = vld [vmem:[%s1613_s1 + $0xf8] sm:$0xff]   ;;  %1172 = vmatpush3.bf16.msra.mxu0 %v1295_v1  ;;  %v1300_v6 = vld [vmem:[%s1613_s1 + $0xf0] sm:$0xff]   ;;  %v1304_v10 = vld [vmem:[%s1613_s1 + $0xe8] sm:$0xff]   ;;  %v480_v34 = vshrl.u32 %v479_v29, 7  ;;  %vm734_vm1 = vcmask 523264   ;;  %vm1019_vm2 = vcmask 1040384  }
   0xf   : > { %v1297_v3 = vld [vmem:[%s1613_s1 + $0xb8] sm:$0xff]   ;;  %1193 = vmatprep.subr.bf16.mxu1 %v1296_v2  ;;  %1173 = vmatprep.subr.bf16.mxu0 %v1298_v4  ;;  %v1301_v7 = vld [vmem:[%s1613_s1 + $0xb0] sm:$0xff]   ;;  %v1305_v11 = vld [vmem:[%s1613_s1 + $0xa8] sm:$0xff]   ;;  %s383_s27 = scalar_lea.vmem %s1612_s0, %s1266_s20  ;;  %v478_v37 = vunpack.c.0.s8 %v477_v33  ;;  %s392_s20 = scalar_lea.vmem %s1618_s6, %s1627_s30  ;;  %vm1020_vm3 = vsmask.f32 256 }
  0x10   : > { %1194 = vmatpush3.bf16.msra.mxu1 %v1297_v3  ;;  %v1306_v12 = vld [vmem:[%s1613_s1 + $0x60] sm:$0xff]   ;;  %v1310_v16 = vld [vmem:[%s1613_s1 + $0x58] sm:$0xff]   ;;  %v1314_v20 = vld [vmem:[%s1613_s1 + $0x50] sm:$0xff]  }
  0x11   : > { %1195 = vmatprep.subr.bf16.mxu1 %v1300_v6  ;;  %v1307_v13 = vld [vmem:[%s1613_s1 + $0x20] sm:$0xff]   ;;  %v1311_v17 = vld [vmem:[%s1613_s1 + $0x18] sm:$0xff]   ;;  %v1315_v21 = vld [vmem:[%s1613_s1 + $0x10] sm:$0xff]   ;;  %v481_v39 = vsub.s32 %v478_v37, %v480_v34 }
  0x12   : > { %1174 = vmatpush3.bf16.msra.mxu0 %v1299_v5  ;;  %v1308_v14 = vld [vmem:[%s1613_s1 + $0xe0] sm:$0xff]   ;;  %v1312_v18 = vld [vmem:[%s1613_s1 + $0xd8] sm:$0xff]   ;;  %v1316_v22 = vld [vmem:[%s1613_s1 + $0xd0] sm:$0xff]  }
  0x13   : > { %1175 = vmatprep.subr.bf16.mxu0 %v1302_v8  ;;  %v1309_v15 = vld [vmem:[%s1613_s1 + $0xa0] sm:$0xff]   ;;  %v1313_v19 = vld [vmem:[%s1613_s1 + $0x98] sm:$0xff]   ;;  %v1317_v23 = vld [vmem:[%s1613_s1 + $0x90] sm:$0xff]  }
  0x14   : > { %1196 = vmatpush3.bf16.msra.mxu1 %v1301_v7  ;;  %v1318_v24 = vld [vmem:[%s1613_s1 + $0x48] sm:$0xff]   ;;  %v1322_v28 = vld [vmem:[%s1613_s1 + $0x40] sm:$0xff]   ;;  %v1327_v44 = vld [vmem:[%s1613_s1 + $0x118] sm:$0xff]  }
  0x15   : > { %1197 = vmatprep.subr.bf16.mxu1 %v1304_v10  ;;  %v1319_v25 = vld [vmem:[%s1613_s1 + $0x8] sm:$0xff]   ;;  %v1323_v30 = vld [vmem:[%s1613_s1] sm:$0xff]   ;;  %v1328_v47 = vld [vmem:[%s1613_s1 + $0x110] sm:$0xff]  }
  0x16   : > { %1176 = vmatpush3.bf16.msra.mxu0 %v1303_v9  ;;  %v1320_v26 = vld [vmem:[%s1613_s1 + $0xc8] sm:$0xff]   ;;  %v1324_v31 = vld [vmem:[%s1613_s1 + $0xc0] sm:$0xff]   ;;  %v1331_v53 = vld [vmem:[%s1619_s7 + $0x18] sm:$0xff]  }
  0x17   : > { %1177 = vmatprep.subr.bf16.mxu0 %v1306_v12  ;;  %v1321_v27 = vld [vmem:[%s1613_s1 + $0x88] sm:$0xff]   ;;  %v1326_v35 = vld [vmem:[%s1613_s1 + $0x80] sm:$0xff]   ;;  %v1332_v54 = vld [vmem:[%s1616_s4 + $0x18] sm:$0xff]  }
  0x18   : > { %1198 = vmatpush3.bf16.msra.mxu1 %v1305_v11  ;;  %v400_v38 = vld [vmem:[%s383_s27] sm:$0x1f]  ;;  %v1329_v49 = vld [vmem:[%s1613_s1 + $0x108] sm:$0xff]   ;;  %v1333_v55 = vld [vmem:[%s1619_s7 + $0x10] sm:$0xff]   ;;  %s386_s27 = scalar_lea.vmem %s1615_s3, %s1627_s30 }
  0x19   : > { %1199 = vmatprep.subr.bf16.mxu1 %v1308_v14  ;;  %v482_v40 = vrot.slane %v400_v38, %v481_v39  ;;  %v475_v48 = vcombine.high %v400_v38, %v400_v38  ;;  %v1330_v51 = vld [vmem:[%s1613_s1 + $0x100] sm:$0xff]   ;;  %v1334_v56 = vld [vmem:[%s1616_s4 + $0x10] sm:$0xff]   ;;  %v1335_v57 = vld [vmem:[%s1619_s7 + $0x8] sm:$0xff]  }
  0x1a   : > { %1178 = vmatpush3.bf16.msra.mxu0 %v1307_v13  ;;  %v1336_v58 = vld [vmem:[%s1616_s4 + $0x8] sm:$0xff]   ;;  %v1337_v59 = vld [vmem:[%s1619_s7] sm:$0xff]   ;;  %vm1021_vm4 = vmand %vm1019_vm2, %vm1020_vm3 }
  0x1b   : > { %1179 = vmatprep.subr.bf16.mxu0 %v1310_v16  ;;  %v490_v41 = vcombine.high %v482_v40, %v482_v40  ;;  %v497_v42 = vrot.slane %v482_v40, %v481_v39  ;;  %v489_v50 = vrot.slane %v475_v48, %v481_v39  ;;  %v939_v60 = vld [vmem:[%s392_s20] sm:$0x1] }
  0x1c   : > { %1200 = vmatpush3.bf16.msra.mxu1 %v1309_v15  ;;  %v1338_v61 = vld [vmem:[%s1616_s4] sm:$0xff]  }
  0x1d   : > { %1201 = vmatprep.subr.bf16.mxu1 %v1312_v18  ;;  %v511_v43 = vrot.slane %v490_v41, %v481_v39  ;;  %v512_v45 = vcombine.high %v497_v42, %v497_v42  ;;  %v504_v52 = vrot.slane %v489_v50, %v481_v39  ;;  %v473_v6 = vld [vmem:[%s1614_s2] sm:$0x1] }
  0x1e   : > { %1180 = vmatpush3.bf16.msra.mxu0 %v1311_v17  ;;  %v859_v13 = vld [vmem:[%s386_s27] sm:$0x1] }
  0x1f   : > { %1181 = vmatprep.subr.bf16.mxu0 %v1314_v20  ;;  %770 = vmatprep.mubr.bf16.mxu0 %v511_v43  ;;  %v513_v46 = vcombine.high %v511_v43, %v511_v43 }
  0x20   : > { %1202 = vmatpush3.bf16.msra.mxu1 %v1313_v19 }
  0x21   : > { %1203 = vmatprep.subr.bf16.mxu1 %v1316_v22  ;;  %810 = vmatprep.mubr.bf16.mxu1 %v513_v46 }
  0x22   : > { %1182 = vmatpush3.bf16.msra.mxu0 %v1315_v21 }
  0x23   : > { %1183 = vmatprep.subr.bf16.mxu0 %v1318_v24  ;;  %v948_v24 = vld [vmem:[%s1620_s8] sm:$0x1] }
  0x24   : > { %1204 = vmatpush3.bf16.msra.mxu1 %v1317_v23 }
  0x25   : > { %1205 = vmatprep.subr.bf16.mxu1 %v1320_v26 }
  0x26   : > { %1184 = vmatpush3.bf16.msra.mxu0 %v1319_v25  ;;  %v870_v25 = vld [vmem:[%s1617_s5] sm:$0x1] }
  0x27   : > { %1185 = vmatprep.subr.bf16.mxu0 %v1322_v28 }
  0x28   : > { %1206 = vmatpush3.bf16.msra.mxu1 %v1321_v27 }
  0x29   : > { %1207 = vmatprep.subr.bf16.mxu1 %v1324_v31 }
  0x2a   : > { %1186 = vmatpush3.bf16.msra.mxu0 %v1323_v30 }
  0x2b   : > { %1230 = vmatprep.subr.bf16.mxu0 %v1364_v36 }
  0x2c   : > { %1208 = vmatpush3.bf16.msra.mxu1 %v1326_v35  ;;  %v1022_v35 = vld [vmem:[%s398_s17] sm:$0x1] }
  0x2d   : > { %1242 = vmatprep.subr.bf16.mxu1 %v1364_v36  ;;  %771 = vmatmul.mubr.bf16.vlgmr.msra.gmra.mxu0 %v497_v42 }
  0x2e   : > { %1231 = vmatpush3.bf16.msra.mxu0 %v1327_v44  ;;  %1238 = vmatprep.mubr.msk.bf16.mxu0 %vm1365_vm0, %v1364_v36 }
  0x2f   : > { %811 = vmatmul.mubr.bf16.vlgmr.msra.gmra.mxu1 %v512_v45  ;;  %1232 = vmatprep.subr.bf16.mxu0 %v1364_v36 }
  0x30   : > { %1250 = vmatprep.mubr.msk.bf16.mxu1 %vm1365_vm0, %v1364_v36  ;;  %1243 = vmatpush3.bf16.msra.mxu1 %v1332_v54 }
  0x31   : > { %1244 = vmatprep.subr.bf16.mxu1 %v1364_v36 }
  0x32   : > { %1233 = vmatpush3.bf16.msra.mxu0 %v1328_v47 }
  0x33   : > { %1234 = vmatprep.subr.bf16.mxu0 %v1364_v36 }
  0x34   : > { %1245 = vmatpush3.bf16.msra.mxu1 %v1334_v56 }
  0x35   : > { %1246 = vmatprep.subr.bf16.mxu1 %v1364_v36 }
  0x36   : > { %1235 = vmatpush3.bf16.msra.mxu0 %v1329_v49 }
  0x37   : > { %1236 = vmatprep.subr.bf16.mxu0 %v1364_v36 }
  0x38   : > { %1247 = vmatpush3.bf16.msra.mxu1 %v1336_v58 }
  0x39   : > { %1248 = vmatprep.subr.bf16.mxu1 %v1364_v36 }
  0x3a   : > { %1237 = vmatpush3.bf16.msra.mxu0 %v1330_v51 }
  0x3b   : > { %1254 = vmatprep.subr.bf16.mxu0 %v1364_v36 }
  0x3c   : > { %1249 = vmatpush3.bf16.msra.mxu1 %v1338_v61 }
  0x3d   : > { %1239 = vmatmul.mubr.msk.bf16.vlgmr.msra.gmra.mxu0 %vm734_vm1, %v504_v52 }
  0x3e   : > { %1262 = vmatprep.mubr.msk.bf16.mxu0 %vm1365_vm0, %v1364_v36  ;;  %1255 = vmatpush3.bf16.msra.mxu0 %v1331_v53 }
  0x3f   : > { %1256 = vmatprep.subr.bf16.mxu0 %v1364_v36 }
  0x42   : > { %1257 = vmatpush3.bf16.msra.mxu0 %v1333_v55 }
  0x43   : > { %1258 = vmatprep.subr.bf16.mxu0 %v1364_v36 }
  0x46   : > { %1259 = vmatpush3.bf16.msra.mxu0 %v1335_v57 }
  0x47   : > { %1260 = vmatprep.subr.bf16.mxu0 %v1364_v36 }
  0x4a   : > { %1261 = vmatpush3.bf16.msra.mxu0 %v1337_v59 }
  0x4d   : > { %1263 = vmatmul.mubr.msk.bf16.vlgmr.msra.gmra.mxu0 %vm734_vm1, %v939_v60 }
  0xed   : > { %v1187_v62 = vpop.f32.mrf.mxu0 }
  0xef   : > { %v1188_v63 = vpop.f32.mrf.mxu0  ;;  %v1209_v0 = vpop.f32.mrf.mxu1 }
  0xf0   : > { %v1189_v5 = vadd.f32 %v1188_v63, %v1187_v62 }
  0xf1   : > { %v1190_v1 = vpop.f32.mrf.mxu0  ;;  %v1210_v2 = vpop.f32.mrf.mxu1 }
  0xf2   : > { %v773_v8 = vadd.f32 %v1189_v5, %v473_v6  ;;  %v1211_v9 = vadd.f32 %v1210_v2, %v1209_v0 }
  0xf3   : > { %v1191_v3 = vpop.f32.mrf.mxu0  ;;  %v1212_v4 = vpop.f32.mrf.mxu1 }
  0xf4   : > { %v813_v10 = vadd.f32 %v1211_v9, %v773_v8 }
  0xf5   : > { %v1213_v7 = vpop.f32.mrf.mxu1 }
  0xfd   : > { %v852_v11 = vpop.f32.mrf.mxu0 }
  0xfe   : > { %v853_v12 = vadd.f32 %v852_v11, %v813_v10 }
  0xff   : > { %v1240_v14 = vpop.f32.mrf.mxu0 }
 0x100   : > { %v858_v15 = vmax.f32 %v853_v12, 0.0 }
 0x101   : > { %v855_v16 = vpop.f32.mrf.mxu0 }
 0x102   : > { %v860_v17 = vmul.f32 %v859_v13, %v858_v15 }
 0x103   : > { %v1241_v18 = vpop.f32.mrf.mxu0 }
 0x104   : > { %v861_v19 = vpack.c.bf16 %v860_v17, %v860_v17 }
 0x106   : > { %1251 = vmatmul.mubr.msk.bf16.vlgmr.msra.gmra.mxu1 %vm734_vm1, %v861_v19 }
 0x10d   : > { %v1010_v20 = vpop.f32.mrf.mxu0 }
 0x10e   : > { %v1011_v27 = vadd.f32 %v1010_v20, %v948_v24 }
 0x10f   : > { %v1264_v21 = vpop.f32.mrf.mxu0 }
 0x111   : > { %v1013_v22 = vpop.f32.mrf.mxu0 }
 0x113   : > { %v1265_v23 = vpop.f32.mrf.mxu0 }
 0x1c6   : > { %v932_v26 = vpop.f32.mrf.mxu1 }
 0x1c7   : > { %v933_v28 = vadd.f32 %v932_v26, %v870_v25 }
 0x1c8   : > { %v1252_v29 = vpop.f32.mrf.mxu1 }
 0x1c9   : > { %v938_v30 = vmax.f32 %v933_v28, 0.0 }
 0x1ca   : > { %v935_v31 = vpop.f32.mrf.mxu1 }
 0x1cb   : > { %v1016_v32 = vadd.f32 %v1011_v27, %v938_v30 }
 0x1cc   : > { %v1253_v33 = vpop.f32.mrf.mxu1 }
 0x1cd   : > { %v1017_v34 = vmax.f32 %v1016_v32, 0.0 }
 0x1cf   : > { %v1018_v36 = vpack.c.bf16 %v1017_v34, %v1017_v34 }
 0x1d1   : > { %v1023_v37 = vsel %vm1021_vm4, %v1018_v36, %v1022_v35 }
 0x1d2   : > { %1024 = vst [vmem:[%s398_s17] sm:$0x1] %v1023_v37 }
 0x1d3 PF: > { %s19_s11 = sadd.s32 1, %s1361_s11   ;;  %s1622_s30 = smov %s1357_s10 }
 0x1d4   : > { %p16_p5 = scmp.ge.s32.totalorder %s19_s11, 4   ;;  %s1623_s10 = smov %s1625_s12 }
 0x1d6   :  { %18 = sbr.rel (!%p16_p5) target bundleno = 2 (0x2), region = 92 }

// kernel: mlfn_forward.63
= control target key start
LH: loop header
LB: loop body
LE: loop exit
PB: predicated region body
PF: predicated region fallthrough
CT: control target
= control target key end

     0   :  { %s1026_s13 = smov 0   ;;  %s1215_s0 = inlined_call_operand.vmem [shape: bf16[2,1,128], index: 0, kind: input, shape index: {}]   ;;  %s1216_s1 = inlined_call_operand.vmem [shape: bf16[128,64], index: 1, kind: input, shape index: {}]   ;;  %s1217_s2 = inlined_call_operand.vmem [shape: f32[1,64], index: 2, kind: input, shape index: {}]   ;;  %s1218_s3 = inlined_call_operand.vmem [shape: f32[128,64], index: 3, kind: input, shape index: {}]   ;;  %s1219_s4 = inlined_call_operand.vmem [shape: f32[1,64], index: 4, kind: input, shape index: {}]   ;;  %s1220_s5 = inlined_call_operand.vmem [shape: f32[64,16], index: 5, kind: input, shape index: {}]   ;;  %s1221_s6 = inlined_call_operand.vmem [shape: f32[1,16], index: 6, kind: input, shape index: {}]   ;;  %s1222_s7 = inlined_call_operand.vmem [shape: f32[16,4], index: 7, kind: input, shape index: {}]   ;;  %s1223_s8 = inlined_call_operand.vmem [shape: f32[1,4], index: 8, kind: input, shape index: {}]   ;;  %s1224_s9 = inlined_call_operand.vmem [shape: bf16[2,1,64], index: 9, kind: output, shape index: {0}]   ;;  %s1225_s10 = inlined_call_operand.vmem [shape: f32[2,1,4], index: 10, kind: output, shape index: {1}]  }
   0x1 LB: > { %s802_s14 = sadd.s32 4294967295, %s967_s13   ;;  %p806_p0 = scmp.ge.s32.totalorder %s967_s13, 1  ;;  %s967_s13 = sphi %s1026_s13, %s21_s13  }
   0x2   : > { %p313_p1 = scmp.lt.s32.totalorder %s967_s13, 3 }
   0x4   : > { %p314_p2 = pnand %p806_p0, %p313_p1 }
   0x5   : > { %p350_p3 = scmp.lt.s32.totalorder (!%p314_p2), %s802_s14, 1 }
   0x6   : > { %317 = sbr.rel (%p314_p2) target bundleno = 671 (0x29f), region = 56 }
   0xb   : > { %v378_v0 = vld [vmem:[%s1218_s3 + $0x78] sm:$0xff]  ;;  %v969_v1 = vmov 0.0   ;;  %v377_v2 = vld [vmem:[%s1218_s3 + $0x70] sm:$0xff]  ;;  %vm970_vm0 = vmmov 0   ;;  %v376_v3 = vld [vmem:[%s1218_s3 + $0x68] sm:$0xff]  ;;  %s1227_s14 = smov (!%p350_p3, %s802_s14), 1 }
   0xc   : > { %858 = vmatprep.subr.mxu0 %v969_v1  ;;  %890 = vmatprep.mubr.msk.f32.mxu0 %vm970_vm0, %v969_v1  ;;  %v375_v4 = vld [vmem:[%s1218_s3 + $0x60] sm:$0xff]  ;;  %v374_v5 = vld [vmem:[%s1218_s3 + $0x58] sm:$0xff]  ;;  %v373_v6 = vld [vmem:[%s1218_s3 + $0x50] sm:$0xff]  ;;  %s352_s25 = scalar_lea.vmem %s1215_s0, %s1227_s14  ;;  %vm460_vm1 = vcmask 523264   ;;  %vm538_vm2 = vcmask 130048   ;;  %s358_s24 = scalar_lea.vmem %s1225_s10, %s1227_s14  ;;  %vm618_vm3 = vcmask 24576  }
   0xd   : > { %859 = vmatpush3.msra.mxu0 %v378_v0  ;;  %912 = vmatprep.subr.mxu1 %v969_v1  ;;  %v372_v7 = vld [vmem:[%s1218_s3 + $0x48] sm:$0xff]  ;;  %v371_v8 = vld [vmem:[%s1218_s3 + $0x40] sm:$0xff]  ;;  %v370_v9 = vld [vmem:[%s1218_s3 + $0x38] sm:$0xff]  ;;  %s355_s27 = scalar_lea.vmem %s1224_s9, %s1227_s14  ;;  %vm727_vm4 = vcmask 516096   ;;  %vm728_vm5 = vsmask.f32 256 }
   0xe   : > { %860 = vmatprep.subr.mxu0 %v969_v1  ;;  %916 = vmatprep.mubr.msk.f32.mxu1 %vm970_vm0, %v969_v1  ;;  %v369_v10 = vld [vmem:[%s1218_s3 + $0x30] sm:$0xff]  ;;  %v368_v11 = vld [vmem:[%s1218_s3 + $0x28] sm:$0xff]  ;;  %v367_v12 = vld [vmem:[%s1218_s3 + $0x20] sm:$0xff] }
   0xf   : > { %861 = vmatpush3.msra.mxu0 %v377_v2  ;;  %v366_v13 = vld [vmem:[%s1218_s3 + $0x18] sm:$0xff]  ;;  %v365_v14 = vld [vmem:[%s1218_s3 + $0x10] sm:$0xff]  ;;  %v1104_v15 = vld [vmem:[%s352_s25] sm:$0x1] }
  0x10   : > { %862 = vmatprep.subr.mxu0 %v969_v1  ;;  %v364_v16 = vld [vmem:[%s1218_s3 + $0x8] sm:$0xff]  ;;  %v363_v17 = vld [vmem:[%s1218_s3] sm:$0xff]  ;;  %v361_v18 = vunpack.c.l.bf16 %v1104_v15  ;;  %v458_v19 = vld [vmem:[%s1220_s5 + $0x38] sm:$0xff] }
  0x11   : > { %863 = vmatpush3.msra.mxu0 %v376_v3  ;;  %v457_v20 = vld [vmem:[%s1220_s5 + $0x30] sm:$0xff]  ;;  %v456_v21 = vld [vmem:[%s1220_s5 + $0x28] sm:$0xff]  ;;  %v455_v22 = vld [vmem:[%s1220_s5 + $0x20] sm:$0xff] }
  0x12   : > { %864 = vmatprep.subr.mxu0 %v969_v1  ;;  %v454_v23 = vld [vmem:[%s1220_s5 + $0x18] sm:$0xff]  ;;  %v453_v24 = vld [vmem:[%s1220_s5 + $0x10] sm:$0xff]  ;;  %v452_v25 = vld [vmem:[%s1220_s5 + $0x8] sm:$0xff] }
  0x13   : > { %865 = vmatpush3.msra.mxu0 %v375_v4  ;;  %v451_v26 = vld [vmem:[%s1220_s5] sm:$0xff]  ;;  %v536_v32 = vld [vmem:[%s1222_s7 + $0x8] sm:$0xff]  ;;  %v949_v38 = vld [vmem:[%s1216_s1 + $0x38] sm:$0xff]  }
  0x14   : > { %866 = vmatprep.subr.mxu0 %v969_v1  ;;  %v379_v27 = vld [vmem:[%s1219_s4] sm:$0x1]  ;;  %913 = vmatpush3.msra.mxu1 %v536_v32  ;;  %v950_v40 = vld [vmem:[%s1216_s1 + $0x30] sm:$0xff]   ;;  %v951_v41 = vld [vmem:[%s1216_s1 + $0x28] sm:$0xff]  }
  0x15   : > { %867 = vmatpush3.msra.mxu0 %v374_v5  ;;  %914 = vmatprep.subr.mxu1 %v969_v1  ;;  %v535_v33 = vld [vmem:[%s1222_s7] sm:$0xff]  ;;  %v953_v43 = vld [vmem:[%s1216_s1 + $0x18] sm:$0xff]   ;;  %v954_v44 = vld [vmem:[%s1216_s1 + $0x10] sm:$0xff]  }
  0x16   : > { %868 = vmatprep.subr.mxu0 %v969_v1  ;;  %915 = vmatpush3.msra.mxu1 %v535_v33  ;;  %v459_v34 = vld [vmem:[%s1221_s6] sm:$0x1]  ;;  %v955_v45 = vld [vmem:[%s1216_s1 + $0x8] sm:$0xff]   ;;  %vm729_vm6 = vmand %vm727_vm4, %vm728_vm5 }
  0x17   : > { %869 = vmatpush3.msra.mxu0 %v373_v6  ;;  %919 = vmatprep.subr.bf16.mxu1 %v969_v1  ;;  %v952_v42 = vld [vmem:[%s1216_s1 + $0x20] sm:$0xff]  }
  0x18   : > { %870 = vmatprep.subr.mxu0 %v969_v1  ;;  %v956_v46 = vld [vmem:[%s1216_s1] sm:$0xff]  }
  0x19   : > { %871 = vmatpush3.msra.mxu0 %v372_v7  ;;  %v537_v47 = vld [vmem:[%s1223_s8] sm:$0x1] }
  0x1a   : > { %872 = vmatprep.subr.mxu0 %v969_v1  ;;  %v636_v54 = vld [vmem:[%s1217_s2] sm:$0x1] }
  0x1b   : > { %873 = vmatpush3.msra.mxu0 %v371_v8  ;;  %v730_v60 = vld [vmem:[%s355_s27] sm:$0x1] }
  0x1c   : > { %874 = vmatprep.subr.mxu0 %v969_v1 }
  0x1d   : > { %875 = vmatpush3.msra.mxu0 %v370_v9 }
  0x1e   : > { %876 = vmatprep.subr.mxu0 %v969_v1 }
  0x1f   : > { %877 = vmatpush3.msra.mxu0 %v369_v10 }
  0x20   : > { %878 = vmatprep.subr.mxu0 %v969_v1 }
  0x21   : > { %879 = vmatpush3.msra.mxu0 %v368_v11 }
  0x22   : > { %880 = vmatprep.subr.mxu0 %v969_v1 }
  0x23   : > { %881 = vmatpush3.msra.mxu0 %v367_v12 }
  0x24   : > { %882 = vmatprep.subr.mxu0 %v969_v1 }
  0x25   : > { %883 = vmatpush3.msra.mxu0 %v366_v13 }
  0x26   : > { %884 = vmatprep.subr.mxu0 %v969_v1 }
  0x27   : > { %885 = vmatpush3.msra.mxu0 %v365_v14 }
  0x28   : > { %886 = vmatprep.subr.mxu0 %v969_v1 }
  0x29   : > { %887 = vmatpush3.msra.mxu0 %v364_v16 }
  0x2a   : > { %888 = vmatprep.subr.mxu0 %v969_v1 }
  0x2b   : > { %889 = vmatpush3.msra.mxu0 %v363_v17 }
  0x2c   : > { %891 = vmatmul.mubr.f32.vlgmr.msra.gmra.mxu0 %v361_v18  ;;  %893 = vmatprep.subr.mxu0 %v969_v1 }
  0x2d   : > { %894 = vmatpush3.msra.mxu0 %v458_v19  ;;  %909 = vmatprep.mubr.msk.f32.mxu0 %vm970_vm0, %v969_v1 }
  0x2e   : > { %895 = vmatprep.subr.mxu0 %v969_v1 }
  0x2f   : > { %896 = vmatpush3.msra.mxu0 %v457_v20 }
  0x30   : > { %897 = vmatprep.subr.mxu0 %v969_v1 }
  0x31   : > { %898 = vmatpush3.msra.mxu0 %v456_v21 }
  0x32   : > { %899 = vmatprep.subr.mxu0 %v969_v1 }
  0x33   : > { %900 = vmatpush3.msra.mxu0 %v455_v22 }
  0x34   : > { %901 = vmatprep.subr.mxu0 %v969_v1 }
  0x35   : > { %902 = vmatpush3.msra.mxu0 %v454_v23 }
  0x36   : > { %903 = vmatprep.subr.mxu0 %v969_v1 }
  0x37   : > { %904 = vmatpush3.msra.mxu0 %v453_v24 }
  0x38   : > { %905 = vmatprep.subr.mxu0 %v969_v1 }
  0x39   : > { %906 = vmatpush3.msra.mxu0 %v452_v25 }
  0x3a   : > { %907 = vmatprep.subr.mxu0 %v969_v1 }
  0x3b   : > { %908 = vmatpush3.msra.mxu0 %v451_v26 }
  0xec   : > { %v446_v28 = vpop.f32.mrf.mxu0 }
  0xed   : > { %v447_v29 = vadd.f32 %v446_v28, %v379_v27 }
  0xee   : > { %v892_v30 = vpop.f32.mrf.mxu0 }
  0xef   : > { %v450_v31 = vmax.f32 %v447_v29, 0.0 }
  0xf1   : > { %910 = vmatmul.mubr.msk.f32.vlgmr.msra.gmra.mxu0 %vm460_vm1, %v450_v31 }
 0x1b1   : > { %v530_v35 = vpop.f32.mrf.mxu0 }
 0x1b2   : > { %v531_v36 = vadd.f32 %v530_v35, %v459_v34 }
 0x1b3   : > { %v911_v37 = vpop.f32.mrf.mxu0 }
 0x1b4   : > { %v534_v39 = vmax.f32 %v531_v36, 0.0 }
 0x1b6   : > { %917 = vmatmul.mubr.msk.f32.vlgmr.msra.gmra.mxu1 %vm538_vm2, %v534_v39 }
 0x1b7   : > { %920 = vmatpush3.bf16.msra.mxu1 %v949_v38  ;;  %935 = vmatprep.mubr.msk.bf16.mxu1 %vm970_vm0, %v969_v1 }
 0x1b8   : > { %921 = vmatprep.subr.bf16.mxu1 %v969_v1 }
 0x1bb   : > { %922 = vmatpush3.bf16.msra.mxu1 %v950_v40 }
 0x1bc   : > { %923 = vmatprep.subr.bf16.mxu1 %v969_v1 }
 0x1bf   : > { %924 = vmatpush3.bf16.msra.mxu1 %v951_v41 }
 0x1c0   : > { %925 = vmatprep.subr.bf16.mxu1 %v969_v1 }
 0x1c3   : > { %926 = vmatpush3.bf16.msra.mxu1 %v952_v42 }
 0x1c4   : > { %927 = vmatprep.subr.bf16.mxu1 %v969_v1 }
 0x1c7   : > { %928 = vmatpush3.bf16.msra.mxu1 %v953_v43 }
 0x1c8   : > { %929 = vmatprep.subr.bf16.mxu1 %v969_v1 }
 0x1cb   : > { %930 = vmatpush3.bf16.msra.mxu1 %v954_v44 }
 0x1cc   : > { %931 = vmatprep.subr.bf16.mxu1 %v969_v1 }
 0x1cf   : > { %932 = vmatpush3.bf16.msra.mxu1 %v955_v45 }
 0x1d0   : > { %933 = vmatprep.subr.bf16.mxu1 %v969_v1 }
 0x1d3   : > { %934 = vmatpush3.bf16.msra.mxu1 %v956_v46 }
 0x1d6   : > { %936 = vmatmul.mubr.bf16.vlgmr.msra.gmra.mxu1 %v1104_v15 }
 0x276   : > { %v608_v48 = vpop.f32.mrf.mxu1 }
 0x277   : > { %v609_v49 = vadd.f32 %v608_v48, %v537_v47 }
 0x278   : > { %v918_v50 = vpop.f32.mrf.mxu1 }
 0x279   : > { %v809_v51 = vmul.f32 -1.442695, %v609_v49 }
 0x27b   : > { %957 = vpow2.f32 %v809_v51 }
 0x288   : > { %v958_v52 = vpop.eup %957 }
 0x289   : > { %v615_v53 = vadd.f32 1.0, %v958_v52 }
 0x28b   : > { %959 = vrcp.f32 %v615_v53 }
 0x296   : > { %v719_v55 = vpop.f32.mrf.mxu1 }
 0x297   : > { %v720_v56 = vadd.f32 %v719_v55, %v636_v54 }
 0x298   : > { %v960_v57 = vpop.eup %959  ;;  %v937_v58 = vpop.f32.mrf.mxu1 }
 0x299   : > { %619 = vst.msk [vmem:[%s358_s24] sm:$0x1] %vm618_vm3, %v960_v57  ;;  %v725_v59 = vmax.f32 %v720_v56, 0.0 }
 0x29a   : > { %v722_v61 = vpop.f32.mrf.mxu1 }
 0x29b   : > { %v726_v62 = vpack.c.bf16 %v725_v59, %v725_v59 }
 0x29c   : > { %v938_v63 = vpop.f32.mrf.mxu1 }
 0x29d   : > { %v731_v0 = vsel %vm729_vm6, %v726_v62, %v730_v60 }
 0x29e   : > { %732 = vst [vmem:[%s355_s27] sm:$0x1] %v731_v0 }
 0x29f PF: > { %s21_s13 = sadd.s32 1, %s967_s13  }
 0x2a0   : > { %p18_p4 = scmp.ge.s32.totalorder %s21_s13, 4  }
 0x2a2   :  { %20 = sbr.rel (!%p18_p4) target bundleno = 1 (0x1), region = 98 }

// kernel: mlfn_forward.64
= control target key start
LH: loop header
LB: loop body
LE: loop exit
PB: predicated region body
PF: predicated region fallthrough
CT: control target
= control target key end

     0   :  { %s1251_s24 = smov 0   ;;  %s1253_s25 = smov 0   ;;  %s1428_s0 = inlined_call_operand.vmem [shape: bf16[2,1,576], index: 0, kind: input, shape index: {}]   ;;  %s1429_s1 = inlined_call_operand.vmem [shape: bf16[576,64], index: 1, kind: input, shape index: {}]   ;;  %s1430_s2 = inlined_call_operand.vmem [shape: f32[1,64], index: 2, kind: input, shape index: {}]   ;;  %s1431_s3 = inlined_call_operand.vmem [shape: f32[2,1,64], index: 3, kind: input, shape index: {}]   ;;  %s1432_s4 = inlined_call_operand.vmem [shape: bf16[64,128], index: 4, kind: input, shape index: {}]   ;;  %s1433_s5 = inlined_call_operand.vmem [shape: f32[1,128], index: 5, kind: input, shape index: {}]   ;;  %s1434_s6 = inlined_call_operand.vmem [shape: bf16[2,1,128], index: 6, kind: input, shape index: {}]   ;;  %s1435_s7 = inlined_call_operand.vmem [shape: bf16[2,1,128], index: 7, kind: output, shape index: {}]  }
   0x1   :  { %s1255_s26 = smov 0  }
   0x2 LB: > { %s29_s27 = sadd.s32 1, %s1202_s25  ;;  %p992_p0 = scmp.ge.s32.totalorder %s1206_s26, 1  ;;  %s1206_s26 = sphi %s1255_s26, %s17_s26   ;;  %s1202_s25 = sphi %s1253_s25, %s1437_s25   ;;  %s1198_s24 = sphi %s1251_s24, %s1436_s24  }
   0x3   : > { %p31_p1 = scmp.ge.s32.totalorder %s29_s27, 2  ;;  %p277_p2 = scmp.lt.s32.totalorder %s1206_s26, 3 }
   0x5   : > { %s1439_s27 = smov (%p31_p1, %s29_s27), 0  ;;  %p278_p3 = pnand %p992_p0, %p277_p2 }
   0x6   : > { %p322_p4 = scmp.lt.s32.totalorder (!%p278_p3), %s1198_s24, 1 }
   0x7   : > { %281 = sbr.rel (%p278_p3) target bundleno = 467 (0x1d3), region = 48 }
   0xc   : > { %v1143_v0 = vld [vmem:[%s1429_s1 + $0x78] sm:$0xff]   ;;  %v1147_v4 = vld [vmem:[%s1429_s1 + $0x70] sm:$0xff]   ;;  %v1151_v8 = vld [vmem:[%s1429_s1 + $0x68] sm:$0xff]   ;;  %s1441_s24 = smov (!%p322_p4, %s1198_s24), 1  ;;  %v425_v29 = vlaneseq  ;;  %v1208_v32 = vmov 1966171168  }
   0xd   : > { %v1144_v1 = vld [vmem:[%s1429_s1 + $0x38] sm:$0xff]   ;;  %1037 = vmatprep.subr.bf16.mxu0 %v1143_v0  ;;  %v1148_v5 = vld [vmem:[%s1429_s1 + $0x30] sm:$0xff]   ;;  %v1152_v9 = vld [vmem:[%s1429_s1 + $0x28] sm:$0xff]   ;;  %s1115_s29 = smul.u32 5, %s1441_s24  ;;  %v423_v33 = vunpack.c.l.s4 %v1208_v32  ;;  %v1209_v36 = vmov 0.0   ;;  %vm1210_vm0 = vmmov 0   ;;  %s332_s17 = scalar_lea.vmem %s1431_s3, %s1441_s24 }
   0xe   : > { %v1145_v2 = vld [vmem:[%s1429_s1 + $0xf8] sm:$0xff]   ;;  %1038 = vmatpush3.bf16.msra.mxu0 %v1144_v1  ;;  %v1149_v6 = vld [vmem:[%s1429_s1 + $0xf0] sm:$0xff]   ;;  %v1153_v10 = vld [vmem:[%s1429_s1 + $0xe8] sm:$0xff]   ;;  %v426_v34 = vshrl.u32 %v425_v29, 7  ;;  %vm680_vm1 = vcmask 523264   ;;  %s338_s20 = scalar_lea.vmem %s1434_s6, %s1441_s24  ;;  %vm890_vm2 = vcmask 1040384  }
   0xf   : > { %v1146_v3 = vld [vmem:[%s1429_s1 + $0xb8] sm:$0xff]   ;;  %1059 = vmatprep.subr.bf16.mxu1 %v1145_v2  ;;  %1039 = vmatprep.subr.bf16.mxu0 %v1147_v4  ;;  %v1150_v7 = vld [vmem:[%s1429_s1 + $0xb0] sm:$0xff]   ;;  %v1154_v11 = vld [vmem:[%s1429_s1 + $0xa8] sm:$0xff]   ;;  %s329_s13 = scalar_lea.vmem %s1428_s0, %s1115_s29  ;;  %v424_v37 = vunpack.c.0.s8 %v423_v33  ;;  %s344_s29 = scalar_lea.vmem %s1435_s7, %s1441_s24  ;;  %vm891_vm3 = vsmask.f32 256 }
  0x10   : > { %1060 = vmatpush3.bf16.msra.mxu1 %v1146_v3  ;;  %v1155_v12 = vld [vmem:[%s1429_s1 + $0x60] sm:$0xff]   ;;  %v1159_v16 = vld [vmem:[%s1429_s1 + $0x58] sm:$0xff]   ;;  %v1163_v20 = vld [vmem:[%s1429_s1 + $0x50] sm:$0xff]  }
  0x11   : > { %1061 = vmatprep.subr.bf16.mxu1 %v1149_v6  ;;  %v1156_v13 = vld [vmem:[%s1429_s1 + $0x20] sm:$0xff]   ;;  %v1160_v17 = vld [vmem:[%s1429_s1 + $0x18] sm:$0xff]   ;;  %v1164_v21 = vld [vmem:[%s1429_s1 + $0x10] sm:$0xff]   ;;  %v427_v39 = vsub.s32 %v424_v37, %v426_v34 }
  0x12   : > { %1040 = vmatpush3.bf16.msra.mxu0 %v1148_v5  ;;  %v1157_v14 = vld [vmem:[%s1429_s1 + $0xe0] sm:$0xff]   ;;  %v1161_v18 = vld [vmem:[%s1429_s1 + $0xd8] sm:$0xff]   ;;  %v1165_v22 = vld [vmem:[%s1429_s1 + $0xd0] sm:$0xff]  }
  0x13   : > { %1041 = vmatprep.subr.bf16.mxu0 %v1151_v8  ;;  %v1158_v15 = vld [vmem:[%s1429_s1 + $0xa0] sm:$0xff]   ;;  %v1162_v19 = vld [vmem:[%s1429_s1 + $0x98] sm:$0xff]   ;;  %v1166_v23 = vld [vmem:[%s1429_s1 + $0x90] sm:$0xff]  }
  0x14   : > { %1062 = vmatpush3.bf16.msra.mxu1 %v1150_v7  ;;  %v1167_v24 = vld [vmem:[%s1429_s1 + $0x48] sm:$0xff]   ;;  %v1171_v28 = vld [vmem:[%s1429_s1 + $0x40] sm:$0xff]   ;;  %v1176_v44 = vld [vmem:[%s1429_s1 + $0x118] sm:$0xff]  }
  0x15   : > { %1063 = vmatprep.subr.bf16.mxu1 %v1153_v10  ;;  %v1168_v25 = vld [vmem:[%s1429_s1 + $0x8] sm:$0xff]   ;;  %v1172_v30 = vld [vmem:[%s1429_s1] sm:$0xff]   ;;  %v1177_v47 = vld [vmem:[%s1429_s1 + $0x110] sm:$0xff]  }
  0x16   : > { %1042 = vmatpush3.bf16.msra.mxu0 %v1152_v9  ;;  %v1169_v26 = vld [vmem:[%s1429_s1 + $0xc8] sm:$0xff]   ;;  %v1173_v31 = vld [vmem:[%s1429_s1 + $0xc0] sm:$0xff]   ;;  %v1180_v53 = vld [vmem:[%s1432_s4 + $0x18] sm:$0xff]  }
  0x17   : > { %1043 = vmatprep.subr.bf16.mxu0 %v1155_v12  ;;  %v1170_v27 = vld [vmem:[%s1429_s1 + $0x88] sm:$0xff]   ;;  %v1175_v35 = vld [vmem:[%s1429_s1 + $0x80] sm:$0xff]   ;;  %v1181_v54 = vld [vmem:[%s1432_s4 + $0x10] sm:$0xff]  }
  0x18   : > { %1064 = vmatpush3.bf16.msra.mxu1 %v1154_v11  ;;  %v346_v38 = vld [vmem:[%s329_s13] sm:$0x1f]  ;;  %v1178_v49 = vld [vmem:[%s1429_s1 + $0x108] sm:$0xff]   ;;  %vm892_vm4 = vmand %vm890_vm2, %vm891_vm3 }
  0x19   : > { %1065 = vmatprep.subr.bf16.mxu1 %v1157_v14  ;;  %v428_v40 = vrot.slane %v346_v38, %v427_v39  ;;  %v421_v48 = vcombine.high %v346_v38, %v346_v38  ;;  %v1179_v51 = vld [vmem:[%s1429_s1 + $0x100] sm:$0xff]   ;;  %v1182_v55 = vld [vmem:[%s1432_s4 + $0x8] sm:$0xff]  }
  0x1a   : > { %1044 = vmatpush3.bf16.msra.mxu0 %v1156_v13  ;;  %v1183_v56 = vld [vmem:[%s1432_s4] sm:$0xff]  }
  0x1b   : > { %1045 = vmatprep.subr.bf16.mxu0 %v1159_v16  ;;  %v436_v41 = vcombine.high %v428_v40, %v428_v40  ;;  %v443_v42 = vrot.slane %v428_v40, %v427_v39  ;;  %v435_v50 = vrot.slane %v421_v48, %v427_v39  ;;  %v419_v1 = vld [vmem:[%s1430_s2] sm:$0x1] }
  0x1c   : > { %1066 = vmatpush3.bf16.msra.mxu1 %v1158_v15  ;;  %v805_v8 = vld [vmem:[%s332_s17] sm:$0x1] }
  0x1d   : > { %1067 = vmatprep.subr.bf16.mxu1 %v1161_v18  ;;  %v457_v43 = vrot.slane %v436_v41, %v427_v39  ;;  %v458_v45 = vcombine.high %v443_v42, %v443_v42  ;;  %v450_v52 = vrot.slane %v435_v50, %v427_v39  ;;  %v816_v15 = vld [vmem:[%s1433_s5] sm:$0x1] }
  0x1e   : > { %1046 = vmatpush3.bf16.msra.mxu0 %v1160_v17  ;;  %v885_v16 = vld [vmem:[%s338_s20] sm:$0x1] }
  0x1f   : > { %1047 = vmatprep.subr.bf16.mxu0 %v1163_v20  ;;  %716 = vmatprep.mubr.bf16.mxu0 %v457_v43  ;;  %v459_v46 = vcombine.high %v457_v43, %v457_v43 }
  0x20   : > { %1068 = vmatpush3.bf16.msra.mxu1 %v1162_v19  ;;  %v886_v19 = vunpack.c.l.bf16 %v885_v16 }
  0x21   : > { %1069 = vmatprep.subr.bf16.mxu1 %v1165_v22  ;;  %756 = vmatprep.mubr.bf16.mxu1 %v459_v46 }
  0x22   : > { %1048 = vmatpush3.bf16.msra.mxu0 %v1164_v21 }
  0x23   : > { %1049 = vmatprep.subr.bf16.mxu0 %v1167_v24 }
  0x24   : > { %1070 = vmatpush3.bf16.msra.mxu1 %v1166_v23 }
  0x25   : > { %1071 = vmatprep.subr.bf16.mxu1 %v1169_v26  ;;  %v893_v26 = vld [vmem:[%s344_s29] sm:$0x1] }
  0x26   : > { %1050 = vmatpush3.bf16.msra.mxu0 %v1168_v25 }
  0x27   : > { %1051 = vmatprep.subr.bf16.mxu0 %v1171_v28 }
  0x28   : > { %1072 = vmatpush3.bf16.msra.mxu1 %v1170_v27 }
  0x29   : > { %1073 = vmatprep.subr.bf16.mxu1 %v1173_v31 }
  0x2a   : > { %1052 = vmatpush3.bf16.msra.mxu0 %v1172_v30 }
  0x2b   : > { %1091 = vmatprep.subr.bf16.mxu0 %v1209_v36 }
  0x2c   : > { %1074 = vmatpush3.bf16.msra.mxu1 %v1175_v35 }
  0x2d   : > { %1103 = vmatprep.subr.bf16.mxu1 %v1209_v36  ;;  %717 = vmatmul.mubr.bf16.vlgmr.msra.gmra.mxu0 %v443_v42 }
  0x2e   : > { %1092 = vmatpush3.bf16.msra.mxu0 %v1176_v44  ;;  %1099 = vmatprep.mubr.msk.bf16.mxu0 %vm1210_vm0, %v1209_v36 }
  0x2f   : > { %757 = vmatmul.mubr.bf16.vlgmr.msra.gmra.mxu1 %v458_v45  ;;  %1093 = vmatprep.subr.bf16.mxu0 %v1209_v36 }
  0x30   : > { %1111 = vmatprep.mubr.msk.bf16.mxu1 %vm1210_vm0, %v1209_v36  ;;  %1104 = vmatpush3.bf16.msra.mxu1 %v1180_v53 }
  0x31   : > { %1105 = vmatprep.subr.bf16.mxu1 %v1209_v36 }
  0x32   : > { %1094 = vmatpush3.bf16.msra.mxu0 %v1177_v47 }
  0x33   : > { %1095 = vmatprep.subr.bf16.mxu0 %v1209_v36 }
  0x34   : > { %1106 = vmatpush3.bf16.msra.mxu1 %v1181_v54 }
  0x35   : > { %1107 = vmatprep.subr.bf16.mxu1 %v1209_v36 }
  0x36   : > { %1096 = vmatpush3.bf16.msra.mxu0 %v1178_v49 }
  0x37   : > { %1097 = vmatprep.subr.bf16.mxu0 %v1209_v36 }
  0x38   : > { %1108 = vmatpush3.bf16.msra.mxu1 %v1182_v55 }
  0x39   : > { %1109 = vmatprep.subr.bf16.mxu1 %v1209_v36 }
  0x3a   : > { %1098 = vmatpush3.bf16.msra.mxu0 %v1179_v51 }
  0x3c   : > { %1110 = vmatpush3.bf16.msra.mxu1 %v1183_v56 }
  0x3d   : > { %1100 = vmatmul.mubr.msk.bf16.vlgmr.msra.gmra.mxu0 %vm680_vm1, %v450_v52 }
  0xed   : > { %v1053_v57 = vpop.f32.mrf.mxu0 }
  0xef   : > { %v1054_v58 = vpop.f32.mrf.mxu0  ;;  %v1075_v59 = vpop.f32.mrf.mxu1 }
  0xf0   : > { %v1055_v0 = vadd.f32 %v1054_v58, %v1053_v57 }
  0xf1   : > { %v1056_v60 = vpop.f32.mrf.mxu0  ;;  %v1076_v61 = vpop.f32.mrf.mxu1 }
  0xf2   : > { %v719_v3 = vadd.f32 %v1055_v0, %v419_v1  ;;  %v1077_v4 = vadd.f32 %v1076_v61, %v1075_v59 }
  0xf3   : > { %v1057_v62 = vpop.f32.mrf.mxu0  ;;  %v1078_v63 = vpop.f32.mrf.mxu1 }
  0xf4   : > { %v759_v5 = vadd.f32 %v1077_v4, %v719_v3 }
  0xf5   : > { %v1079_v2 = vpop.f32.mrf.mxu1 }
  0xfd   : > { %v798_v6 = vpop.f32.mrf.mxu0 }
  0xfe   : > { %v799_v7 = vadd.f32 %v798_v6, %v759_v5 }
  0xff   : > { %v1101_v9 = vpop.f32.mrf.mxu0 }
 0x100   : > { %v804_v10 = vmax.f32 %v799_v7, 0.0 }
 0x101   : > { %v801_v11 = vpop.f32.mrf.mxu0 }
 0x102   : > { %v806_v12 = vmul.f32 %v805_v8, %v804_v10 }
 0x103   : > { %v1102_v13 = vpop.f32.mrf.mxu0 }
 0x104   : > { %v807_v14 = vpack.c.bf16 %v806_v12, %v806_v12 }
 0x106   : > { %1112 = vmatmul.mubr.msk.bf16.vlgmr.msra.gmra.mxu1 %vm680_vm1, %v807_v14 }
 0x1c6   : > { %v878_v17 = vpop.f32.mrf.mxu1 }
 0x1c7   : > { %v879_v18 = vadd.f32 %v878_v17, %v816_v15 }
 0x1c8   : > { %v1113_v20 = vpop.f32.mrf.mxu1 }
 0x1c9   : > { %v884_v21 = vmax.f32 %v879_v18, 0.0 }
 0x1ca   : > { %v881_v22 = vpop.f32.mrf.mxu1 }
 0x1cb   : > { %v887_v23 = vadd.f32 %v886_v19, %v884_v21 }
 0x1cc   : > { %v1114_v24 = vpop.f32.mrf.mxu1 }
 0x1cd   : > { %v888_v25 = vmax.f32 %v887_v23, 0.0 }
 0x1cf   : > { %v889_v27 = vpack.c.bf16 %v888_v25, %v888_v25 }
 0x1d1   : > { %v894_v28 = vsel %vm892_vm4, %v889_v27, %v893_v26 }
 0x1d2   : > { %895 = vst [vmem:[%s344_s29] sm:$0x1] %v894_v28 }
 0x1d3 PF: > { %s17_s26 = sadd.s32 1, %s1206_s26   ;;  %s1436_s24 = smov %s1202_s25 }
 0x1d4   : > { %p14_p5 = scmp.ge.s32.totalorder %s17_s26, 4   ;;  %s1437_s25 = smov %s1439_s27 }
 0x1d6   :  { %16 = sbr.rel (!%p14_p5) target bundleno = 2 (0x2), region = 84 }

// kernel: mlfn_forward.67
= control target key start
LH: loop header
LB: loop body
LE: loop exit
PB: predicated region body
PF: predicated region fallthrough
CT: control target
= control target key end

     0   :  { %11 = vsyncpa [#allocation3], 0  ;;  %s940_s0 = inlined_call_operand.vmem [shape: bf16[2,1,128], index: 0, kind: input, shape index: {}]   ;;  %s941_s1 = inlined_call_operand.vmem [shape: f32[2,1,64], index: 1, kind: input, shape index: {}]   ;;  %s942_s2 = inlined_call_operand.vmem [shape: f32[128,32], index: 2, kind: input, shape index: {}]   ;;  %s943_s3 = inlined_call_operand.vmem [shape: f32[1,32], index: 3, kind: input, shape index: {}]   ;;  %s944_s4 = inlined_call_operand.vmem [shape: f32[64,32], index: 4, kind: input, shape index: {}]   ;;  %s945_s5 = inlined_call_operand.vmem [shape: f32[1,32], index: 5, kind: input, shape index: {}]   ;;  %s946_s6 = inlined_call_operand.hbm [shape: f32[2,1,32], index: 6, kind: output, shape index: {}]  }
   0x1   :  { %13 = vsyncpa [#allocation3 + $0x1], 0  ;;  %s740_s21 = smov 0   ;;  %s742_s22 = smov 0  }
   0x2   :  { %s744_s23 = smov 0   ;;  %s746_s24 = smov 0  }
   0x3 LB: > { %s761_s25 = sadd.s32 4294967295, %s700_s24   ;;  %s511_s26 = sadd.s32 4294967294, %s700_s24   ;;  %s700_s24 = sphi %s746_s24, %s952_s24   ;;  %s696_s23 = sphi %s744_s23, %s951_s23   ;;  %s692_s22 = sphi %s742_s22, %s950_s22   ;;  %s688_s21 = sphi %s740_s21, %s949_s21  }
   0x4   : > { %s765_s27 = sadd.s32 1, %s700_s24   ;;  %s162_s28 = sadd.s32 1, %s696_s23 }
   0x5   : > { %s159_s29 = ssub.s32 %s700_s24, %s765_s27  ;;  %p172_p0 = scmp.ne.s32.totalorder %s696_s23, %s692_s22 }
   0x6   : > { %p160_p1 = scmp.eq.s32.totalorder %s159_s29, 0  ;;  %p173_p2 = scmp.eq.s32.totalorder %s761_s25, 1 }
   0x7   : > { %p178_p3 = scmp.ne.s32.totalorder %s692_s22, %s688_s21  ;;  %p179_p4 = scmp.eq.s32.totalorder %s511_s26, 1 }
   0x8   : > { %s776_s30 = scalar_select %p160_p1, %s696_s23, %s162_s28  }
   0x9   : > { %p778_p5 = por %p173_p2, %p172_p0  ;;  %p782_p6 = por %p179_p4, %p178_p3 }
   0xa   : > { %p514_p7 = scmp.ge.s32.totalorder %s700_s24, 1  ;;  %p221_p8 = scmp.lt.s32.totalorder %s700_s24, 3 }
   0xc   : > { %p222_p9 = pnand %p514_p7, %p221_p8 }
   0xd   : > { %p251_p10 = scmp.lt.s32.totalorder (!%p222_p9), %s761_s25, 1  ;;  %s249_s9 = sand.u32 (!%p222_p9), 1, %s692_s22  }
   0xe   : > { %225 = sbr.rel (%p222_p9) target bundleno = 266 (0x10a), region = 44  ;;  %s250_s11 = scalar_lea.vmem (!%p222_p9), [#allocation2], %s249_s9 }
   0xf   : > { %s450_s12 = sshll.u32 (!%p222_p9), %s250_s11, 4  ;;  %s438_s17 = scalar_lea.sflag (!%p222_p9), [#allocation3], %s249_s9  ;;  %s451_s12 = int_to_ptr.vmem [resolvable:$true] %s450_s12 }
  0x10   : > { %s640_s18 = scalar_lea.vmem (!%p222_p9), %s451_s12, 16 }
  0x11   : > { %p641_p11 = scmp.ne.s32.totalorder (!%p222_p9), %s451_s12, %s640_s18 }
  0x13   : > { %v275_v0 = vld [vmem:[%s942_s2 + $0x78] sm:$0xff]  ;;  %v702_v1 = vmov 0.0   ;;  %v274_v2 = vld [vmem:[%s942_s2 + $0x70] sm:$0xff]  ;;  %vm703_vm0 = vmmov 0   ;;  %v273_v4 = vld [vmem:[%s942_s2 + $0x68] sm:$0xff]  ;;  %s830_s14 = scalar_select %p251_p10, %s761_s25, 1 }
  0x14   : > { %545 = vmatprep.subr.mxu0 %v702_v1  ;;  %580 = vmatprep.subr.mxu1 %v702_v1  ;;  %v356_v3 = vld [vmem:[%s944_s4 + $0x38] sm:$0xff]  ;;  %v355_v5 = vld [vmem:[%s944_s4 + $0x30] sm:$0xff]  ;;  %v354_v6 = vld [vmem:[%s944_s4 + $0x28] sm:$0xff]  ;;  %vm358_vm1 = vcmask 523264   ;;  %vm435_vm2 = vcmask 253952   ;;  %p642_p12 = pnand %p641_p11, %p778_p5 }
  0x15   : > { %546 = vmatpush3.msra.mxu0 %v275_v0  ;;  %596 = vmatprep.mubr.msk.f32.mxu1 %vm703_vm0, %v702_v1  ;;  %v272_v7 = vld [vmem:[%s942_s2 + $0x60] sm:$0xff]  ;;  %v271_v9 = vld [vmem:[%s942_s2 + $0x58] sm:$0xff]  ;;  %v270_v11 = vld [vmem:[%s942_s2 + $0x50] sm:$0xff]  ;;  %s256_s10 = scalar_lea.vmem %s941_s1, %s830_s14  ;;  %s253_s13 = scalar_lea.vmem %s940_s0, %s830_s14 }
  0x16   : > { %547 = vmatprep.subr.mxu0 %v702_v1  ;;  %581 = vmatpush3.msra.mxu1 %v356_v3  ;;  %v353_v8 = vld [vmem:[%s944_s4 + $0x20] sm:$0xff]  ;;  %v352_v10 = vld [vmem:[%s944_s4 + $0x18] sm:$0xff]  ;;  %v351_v12 = vld [vmem:[%s944_s4 + $0x10] sm:$0xff]  ;;  %p643_p13 = pneg %p642_p12  ;;  %s704_s14 = smov [#allocation2]  }
  0x17   : > { %548 = vmatpush3.msra.mxu0 %v274_v2  ;;  %582 = vmatprep.subr.mxu1 %v702_v1  ;;  %v269_v13 = vld [vmem:[%s942_s2 + $0x48] sm:$0xff]  ;;  %v268_v15 = vld [vmem:[%s942_s2 + $0x40] sm:$0xff]  ;;  %v267_v17 = vld [vmem:[%s942_s2 + $0x38] sm:$0xff]  ;;  %s644_s19 = sshll.u32 %s704_s14, 4  ;;  %s645_s19 = int_to_ptr.vmem [resolvable:$false] %s644_s19 }
  0x18   : > { %549 = vmatprep.subr.mxu0 %v702_v1  ;;  %583 = vmatpush3.msra.mxu1 %v355_v5  ;;  %v350_v14 = vld [vmem:[%s944_s4 + $0x8] sm:$0xff]  ;;  %v349_v16 = vld [vmem:[%s944_s4] sm:$0xff]  ;;  %v266_v19 = vld [vmem:[%s942_s2 + $0x30] sm:$0xff]  ;;  %p647_p0 = scmp.lt.s32.totalorder %s451_s12, %s645_s19 }
  0x19   : > { %550 = vmatpush3.msra.mxu0 %v273_v4  ;;  %584 = vmatprep.subr.mxu1 %v702_v1  ;;  %v348_v18 = vld [vmem:[%s256_s10] sm:$0x1]  ;;  %v265_v20 = vld [vmem:[%s942_s2 + $0x28] sm:$0xff]  ;;  %v263_v22 = vld [vmem:[%s942_s2 + $0x18] sm:$0xff]  ;;  %s516_s10 = sshll.u32 %s761_s25, 4  ;;  %s646_s25 = scalar_lea.vmem %s645_s19, 32 }
  0x1a   : > { %551 = vmatprep.subr.mxu0 %v702_v1  ;;  %585 = vmatpush3.msra.mxu1 %v354_v6  ;;  %v264_v21 = vld [vmem:[%s942_s2 + $0x20] sm:$0xff]  ;;  %v262_v23 = vld [vmem:[%s942_s2 + $0x10] sm:$0xff]  ;;  %v261_v25 = vld [vmem:[%s942_s2 + $0x8] sm:$0xff]  ;;  %s448_s16 = scalar_lea.hbm %s946_s6, %s516_s10  ;;  %p648_p1 = scmp.lt.s32.totalorder %s646_s25, %s640_s18 }
  0x1b   : > { %552 = vmatpush3.msra.mxu0 %v272_v7  ;;  %586 = vmatprep.subr.mxu1 %v702_v1  ;;  %v257_v24 = vld [vmem:[%s253_s13] sm:$0x1] }
  0x1c   : > { %553 = vmatprep.subr.mxu0 %v702_v1  ;;  %587 = vmatpush3.msra.mxu1 %v353_v8  ;;  %v260_v26 = vld [vmem:[%s942_s2] sm:$0xff]  ;;  %v258_v27 = vunpack.c.l.bf16 %v257_v24  ;;  %p649_p2 = por %p648_p1, %p647_p0 }
  0x1d   : > { %554 = vmatpush3.msra.mxu0 %v271_v9  ;;  %588 = vmatprep.subr.mxu1 %v702_v1  ;;  %v357_v30 = vld [vmem:[%s945_s5] sm:$0x1] }
  0x1e   : > { %555 = vmatprep.subr.mxu0 %v702_v1  ;;  %589 = vmatpush3.msra.mxu1 %v352_v10  ;;  %v276_v32 = vld [vmem:[%s943_s3] sm:$0x1]  ;;  %p650_p3 = pnand %p649_p2, %p643_p13 }
  0x1f   : > { %556 = vmatpush3.msra.mxu0 %v270_v11  ;;  %590 = vmatprep.subr.mxu1 %v702_v1 }
  0x20   : > { %557 = vmatprep.subr.mxu0 %v702_v1  ;;  %591 = vmatpush3.msra.mxu1 %v351_v12 }
  0x21   : > { %558 = vmatpush3.msra.mxu0 %v269_v13  ;;  %592 = vmatprep.subr.mxu1 %v702_v1 }
  0x22   : > { %559 = vmatprep.subr.mxu0 %v702_v1  ;;  %593 = vmatpush3.msra.mxu1 %v350_v14 }
  0x23   : > { %560 = vmatpush3.msra.mxu0 %v268_v15  ;;  %594 = vmatprep.subr.mxu1 %v702_v1 }
  0x24   : > { %561 = vmatprep.subr.mxu0 %v702_v1  ;;  %595 = vmatpush3.msra.mxu1 %v349_v16 }
  0x25   : > { %562 = vmatpush3.msra.mxu0 %v267_v17  ;;  %597 = vmatmul.mubr.msk.f32.vlgmr.msra.gmra.mxu1 %vm358_vm1, %v348_v18 }
  0x26   : > { %563 = vmatprep.subr.mxu0 %v702_v1  ;;  %577 = vmatprep.mubr.msk.f32.mxu0 %vm703_vm0, %v702_v1 }
  0x27   : > { %564 = vmatpush3.msra.mxu0 %v266_v19 }
  0x28   : > { %565 = vmatprep.subr.mxu0 %v702_v1 }
  0x29   : > { %566 = vmatpush3.msra.mxu0 %v265_v20 }
  0x2a   : > { %567 = vmatprep.subr.mxu0 %v702_v1 }
  0x2b   : > { %568 = vmatpush3.msra.mxu0 %v264_v21 }
  0x2c   : > { %569 = vmatprep.subr.mxu0 %v702_v1 }
  0x2d   : > { %570 = vmatpush3.msra.mxu0 %v263_v22 }
  0x2e   : > { %571 = vmatprep.subr.mxu0 %v702_v1 }
  0x2f   : > { %572 = vmatpush3.msra.mxu0 %v262_v23 }
  0x30   : > { %573 = vmatprep.subr.mxu0 %v702_v1 }
  0x31   : > { %574 = vmatpush3.msra.mxu0 %v261_v25 }
  0x32   : > { %575 = vmatprep.subr.mxu0 %v702_v1 }
  0x33   : > { %576 = vmatpush3.msra.mxu0 %v260_v26 }
  0x34   : > { %578 = vmatmul.mubr.f32.vlgmr.msra.gmra.mxu0 %v258_v27 }
  0xe5   : > { %v428_v28 = vpop.f32.mrf.mxu1 }
  0xe6   : > { %v429_v31 = vadd.f32 %v428_v28, %v357_v30 }
  0xe7   : > { %v598_v29 = vpop.f32.mrf.mxu1 }
  0xe8   : > { %v432_v34 = vmax.f32 %v429_v31, 0.0 }
  0xf4   : > { %v343_v33 = vpop.f32.mrf.mxu0 }
  0xf5   : > { %v344_v35 = vadd.f32 %v343_v33, %v276_v32 }
  0xf6   : > { %v579_v36 = vpop.f32.mrf.mxu0 }
  0xf7   : > { %v347_v37 = vmax.f32 %v344_v35, 0.0 }
  0xf9   : > { %v433_v38 = vadd.f32 %v432_v34, %v347_v37 }
  0xfb   : > { %v434_v39 = vmul.f32 0.5, %v433_v38 }
  0xfd   : > { %436 = vst.msk [vmem:[%s250_s11] sm:$0x1] %vm435_vm2, %v434_v39 }
  0xfe   : > { %653 = shalt.err (!%p650_p3)
}
  0xff   : > { %s654_s20 = scalar_lea.hbm %s448_s16, 16  ;;  %s658_s29 = scalar_lea.hbm %s946_s6, 32 }
 0x100   : > { %p655_p4 = scmp.ne.s32.totalorder %s448_s16, %s654_s20  ;;  %p659_p9 = scmp.lt.s32.totalorder %s448_s16, %s946_s6 }
 0x101   : > { %p660_p10 = scmp.lt.s32.totalorder %s658_s29, %s654_s20 }
 0x102   : > { %p656_p7 = pnand %p655_p4, %p778_p5 }
 0x103   : > { %p661_p11 = por %p660_p10, %p659_p9 }
 0x104   : > { %p657_p8 = pneg %p656_p7 }
 0x106   : > { %p662_p12 = pnand %p661_p11, %p657_p8 }
 0x108   : > { %665 = shalt.err (!%p662_p12)
}
 0x109   : > { %599 = dma.vmem_to_hbm [thread:$0]  (%p778_p5), %s451_s12, 16, %s448_s16, %s438_s17  }
 0x10a PF: > { %p605_p13 = scmp.ge.s32.totalorder %s700_s24, 2  ;;  %s462_s11 = sand.u32 1, %s688_s21  }
 0x10b   : > { %s463_s13 = scalar_lea.sflag [#allocation3], %s462_s11 }
 0x10c   : > { %p602_p0 = pnand %p605_p13, %p782_p6 }
 0x10e   : > { %p603_p1 = pneg %p602_p0 }
 0x110   : > { %683 = dma.done.wait (%p603_p1), %s463_s13, 16  }
 0x111   : > { %685 = vsyncadd (%p603_p1), %s463_s13, 4294967280  ;;  %p16_p2 = scmp.ge.s32.totalorder %s765_s27, 4   ;;  %s949_s21 = smov %s692_s22 }
 0x112   : > { %s950_s22 = smov %s696_s23  ;;  %s951_s23 = smov %s776_s30 }
 0x113   : > { %s952_s24 = smov %s765_s27  ;;  %18 = sbr.rel (!%p16_p2) target bundleno = 3 (0x3), region = 82 }
 0x118   :  { %467 = vsyncpa [#allocation3], 1 }
 0x119   :  { %469 = vsyncpa [#allocation3 + $0x1], 1 }

</bundles_post_ra>
